<compile_context>
chip_gen: v7x
topology: tpu7x:2x2x1
jax: 0.10.0
libtpu: 0.0.40
codegen_flags: <defaults>
</compile_context>

<pallas_src>
import jax
import jax.numpy as jnp
from jax.experimental import pallas as pl
from jax.experimental.pallas import tpu as pltpu

LANE = 128


def _round_up(x, m):
    return ((x + m - 1) // m) * m


def fold_bn(gamma, beta, mean, var, eps=1e-5):
    scale = gamma / jnp.sqrt(var + eps)
    bias = beta - mean * scale
    return scale, bias


def _make_block_kernel(H, W, Ho, Wo, stride, Cin, Cpi, Cp, has_sc):
    """Fused BasicBlock kernel for one batch element (all channel dims padded)."""
    KH = KW = 3
    TAPS = [(kh, kw) for kh in range(KH) for kw in range(KW)]

    def _tap(xp_ref, kh, kw):
        # One (kh, kw) tap of a conv with the given stride, read from the
        # spatially padded VMEM image.  Stride along H is on the major dim
        # (cheap); stride along W uses a documented strided pl.ds load.
        if stride == 1:
            return xp_ref[kh:kh + Ho, kw:kw + Wo, :]
        return xp_ref[pl.ds(kh, Ho, stride), pl.ds(kw, Wo, stride), :]

    def kernel(x_ref, w1_ref, s1_ref, b1_ref, w2_ref, s2_ref, b2_ref, *rest):
        if has_sc:
            wsc_ref, ssc_ref, bsc_ref, o_ref, xp_ref, yp_ref, patch_ref = rest
        else:
            o_ref, xp_ref, yp_ref, patch_ref = rest

        # ---- stage 0: spatial halo + channel pad of the input, in VMEM ----
        xp_ref[...] = jnp.zeros_like(xp_ref)
        xp_ref[1:H + 1, 1:W + 1, 0:Cin] = x_ref[0].astype(jnp.bfloat16)

        # ---- conv1 (3x3, stride) as one big-K MXU matmul via im2col ----
        for k, (kh, kw) in enumerate(TAPS):
            patch_ref[:, :, k * Cpi:(k + 1) * Cpi] = _tap(xp_ref, kh, kw)
        p1 = patch_ref[:, :, 0:KH * KW * Cpi].reshape(Ho * Wo, KH * KW * Cpi)
        acc1 = jnp.dot(p1, w1_ref[...], preferred_element_type=jnp.float32)
        out1 = jnp.maximum(acc1 * s1_ref[...] + b1_ref[...], 0.0)   # f32

        # ---- shortcut ----
        if has_sc:
            scp = _tap(xp_ref, 1, 1).reshape(Ho * Wo, Cpi)
            accs = jnp.dot(scp, wsc_ref[...], preferred_element_type=jnp.float32)
            sc = accs * ssc_ref[...] + bsc_ref[...]
        else:
            sc = xp_ref[1:H + 1, 1:W + 1, :].reshape(Ho * Wo, Cp).astype(jnp.float32)

        # ---- stage conv1 output (with zero halo) in VMEM for conv2 ----
        yp_ref[...] = jnp.zeros_like(yp_ref)
        yp_ref[1:Ho + 1, 1:Wo + 1, :] = out1.reshape(Ho, Wo, Cp).astype(jnp.bfloat16)

        # ---- conv2 (3x3, stride 1) as one big-K MXU matmul via im2col ----
        for k, (kh, kw) in enumerate(TAPS):
            patch_ref[:, :, k * Cp:(k + 1) * Cp] = yp_ref[kh:kh + Ho, kw:kw + Wo, :]
        p2 = patch_ref[:, :, 0:KH * KW * Cp].reshape(Ho * Wo, KH * KW * Cp)
        acc2 = jnp.dot(p2, w2_ref[...], preferred_element_type=jnp.float32)
        out2 = acc2 * s2_ref[...] + b2_ref[...]

        out = jnp.maximum(out2 + sc, 0.0)
        o_ref[0] = out.reshape(Ho, Wo, Cp).astype(o_ref.dtype)

    return kernel


def basic_block_forward(x_nchw, params, *, in_planes, planes, stride):
    """Pallas implementation of BasicBlock.forward.  x_nchw: (N, Cin, H, W)."""
    N, Cin, H, W = x_nchw.shape
    assert Cin == in_planes
    assert H % stride == 0 and W % stride == 0
    KH = KW = 3
    Ho = (H + 2 - KH) // stride + 1
    Wo = (W + 2 - KW) // stride + 1

    Cpi = _round_up(in_planes, LANE)   # padded input channels
    Cp = _round_up(planes, LANE)       # padded output channels
    Cmax = max(Cpi, Cp)
    has_sc = (stride != 1) or (in_planes != planes)

    x = jnp.transpose(x_nchw, (0, 2, 3, 1))  # NCHW -> NHWC

    # ---- one-time weight prep: pad channels, flatten for matmul, cast bf16 ----
    def prep3x3(w, ci, co, cpi, cpo):
        wp = jnp.zeros((KH, KW, cpi, cpo), jnp.float32).at[:, :, :ci, :co].set(w)
        return wp.reshape(KH * KW * cpi, cpo).astype(jnp.bfloat16)

    def prep1x1(w, ci, co, cpi, cpo):
        wp = jnp.zeros((cpi, cpo), jnp.float32).at[:ci, :co].set(w[0, 0])
        return wp.astype(jnp.bfloat16)

    def prep_sb(v, co, cpo):
        return jnp.zeros((1, cpo), jnp.float32).at[0, :co].set(v.astype(jnp.float32))

    w1 = prep3x3(params["w1"], in_planes, planes, Cpi, Cp)
    w2 = prep3x3(params["w2"], planes, planes, Cp, Cp)
    s1 = prep_sb(params["s1"], planes, Cp)
    b1 = prep_sb(params["b1"], planes, Cp)
    s2 = prep_sb(params["s2"], planes, Cp)
    b2 = prep_sb(params["b2"], planes, Cp)

    args = [x, w1, s1, b1, w2, s2, b2]
    in_specs = [
        pl.BlockSpec((1, H, W, Cin), lambda n: (n, 0, 0, 0)),
        pl.BlockSpec((KH * KW * Cpi, Cp), lambda n: (0, 0)),
        pl.BlockSpec((1, Cp), lambda n: (0, 0)),
        pl.BlockSpec((1, Cp), lambda n: (0, 0)),
        pl.BlockSpec((KH * KW * Cp, Cp), lambda n: (0, 0)),
        pl.BlockSpec((1, Cp), lambda n: (0, 0)),
        pl.BlockSpec((1, Cp), lambda n: (0, 0)),
    ]
    if has_sc:
        wsc = prep1x1(params["wsc"], in_planes, planes, Cpi, Cp)
        ssc = prep_sb(params["ssc"], planes, Cp)
        bsc = prep_sb(params["bsc"], planes, Cp)
        args += [wsc, ssc, bsc]
        in_specs += [
            pl.BlockSpec((Cpi, Cp), lambda n: (0, 0)),
            pl.BlockSpec((1, Cp), lambda n: (0, 0)),
            pl.BlockSpec((1, Cp), lambda n: (0, 0)),
        ]

    kernel = _make_block_kernel(H, W, Ho, Wo, stride, Cin, Cpi, Cp, has_sc)

    flops = 2 * N * Ho * Wo * (KH * KW * Cpi * Cp + KH * KW * Cp * Cp
                               + (Cpi * Cp if has_sc else 0))
    bytes_accessed = int(x.size) * x.dtype.itemsize + N * Ho * Wo * Cp * 4
    bytes_accessed += sum(int(a.size) * a.dtype.itemsize for a in args[1:])

    out = pl.pallas_call(
        kernel,
        out_shape=jax.ShapeDtypeStruct((N, Ho, Wo, Cp), x.dtype),
        grid=(N,),
        in_specs=in_specs,
        out_specs=pl.BlockSpec((1, Ho, Wo, Cp), lambda n: (n, 0, 0, 0)),
        scratch_shapes=[
            pltpu.VMEM((H + 2, W + 2, Cpi), jnp.bfloat16),          # padded input
            pltpu.VMEM((Ho + 2, Wo + 2, Cp), jnp.bfloat16),         # padded conv1 out
            pltpu.VMEM((Ho, Wo, KH * KW * Cmax), jnp.bfloat16),     # im2col patch
        ],
        compiler_params=pltpu.CompilerParams(
            dimension_semantics=("parallel",),
            vmem_limit_bytes=32 * 1024 * 1024),
        cost_estimate=pl.CostEstimate(flops=flops, transcendentals=0,
                                      bytes_accessed=bytes_accessed),
    )(*args)

    out = out[..., :planes]                     # drop channel padding
    return jnp.transpose(out, (0, 3, 1, 2))     # NHWC -> NCHW


# ------------------------- pure-JAX reference ------------------------------ #
def _ref_conv(x, w, s, pad):
    # bf16 operands + f32 accumulation, matching the kernel's MXU setup.
    return jax.lax.conv_general_dilated(
        x.astype(jnp.bfloat16), w.astype(jnp.bfloat16), (s, s),
        [(pad, pad), (pad, pad)],
        dimension_numbers=("NHWC", "HWIO", "NHWC"),
        preferred_element_type=jnp.float32)


def ref_forward(x_nchw, params, *, in_planes, planes, stride):
    x = jnp.transpose(x_nchw, (0, 2, 3, 1))
    o = jnp.maximum(_ref_conv(x, params["w1"], stride, 1) * params["s1"]
                    + params["b1"], 0.0)
    if stride != 1 or in_planes != planes:
        sc = _ref_conv(x, params["wsc"], stride, 0) * params["ssc"] + params["bsc"]
    else:
        sc = x.astype(jnp.bfloat16).astype(jnp.float32)
    o = jnp.maximum(_ref_conv(o, params["w2"], 1, 1) * params["s2"]
                    + params["b2"] + sc, 0.0)
    return jnp.transpose(o, (0, 3, 1, 2))


# --------------------------------- main ------------------------------------ #
if __name__ == "__main__":
    key = jax.random.PRNGKey(0)

    def bn_init(k, c):
        k1, k2, k3, k4 = jax.random.split(k, 4)
        gamma = jax.random.uniform(k1, (c,), minval=0.5, maxval=1.5)
        beta = jax.random.normal(k2, (c,)) * 0.1
        mean = jax.random.normal(k3, (c,)) * 0.1
        var = jax.random.uniform(k4, (c,), minval=0.5, maxval=1.5)
        return fold_bn(gamma, beta, mean, var)

    def make_params(k, in_planes, planes, stride):
        ks = jax.random.split(k, 8)
        w1 = jax.random.normal(ks[0], (planes, in_planes, 3, 3), jnp.float32) * 0.1
        w2 = jax.random.normal(ks[1], (planes, planes, 3, 3), jnp.float32) * 0.1
        s1, b1 = bn_init(ks[3], planes)
        s2, b2 = bn_init(ks[4], planes)
        p = dict(w1=jnp.transpose(w1, (2, 3, 1, 0)),   # OIHW -> HWIO
                 w2=jnp.transpose(w2, (2, 3, 1, 0)),
                 s1=s1, b1=b1, s2=s2, b2=b2)
        if stride != 1 or in_planes != planes:
            wsc = jax.random.normal(ks[2], (planes, in_planes, 1, 1),
                                    jnp.float32) * 0.1
            ssc, bsc = bn_init(ks[5], planes)
            p.update(wsc=jnp.transpose(wsc, (2, 3, 1, 0)), ssc=ssc, bsc=bsc)
        return p, ks[6]

    N, H, W = 2, 16, 16
    # (in_planes, planes, stride): conv-shortcut, strided conv-shortcut, identity
    configs = [(4, 8, 1), (4, 8, 2), (8, 8, 1)]

    for (in_planes, planes, stride) in configs:
        params, xk = make_params(key, in_planes, planes, stride)
        x = jax.random.normal(xk, (N, in_planes, H, W), jnp.float32)

        out = basic_block_forward(x, params, in_planes=in_planes,
                                  planes=planes, stride=stride)
        out = jax.block_until_ready(out)
        ref = ref_forward(x, params, in_planes=in_planes,
                          planes=planes, stride=stride)
        ref = jax.block_until_ready(ref)

        assert out.shape == (N, planes, H // stride, W // stride), out.shape
        err = float(jnp.max(jnp.abs(out - ref)))
        assert jnp.allclose(out, ref, atol=2e-2, rtol=2e-2), err

    print("KERNEL_OK")
</pallas_src>

<mosaic_0001>
module attributes {stable_mosaic.version = 11 : i64} {
  func.func @kernel(%arg0: i32, %arg1: memref<1x16x16x4xf32, #tpu.memory_space<vmem>>, %arg2: memref<1152x128xbf16, #tpu.memory_space<vmem>>, %arg3: memref<1x128xf32, #tpu.memory_space<vmem>>, %arg4: memref<1x128xf32, #tpu.memory_space<vmem>>, %arg5: memref<1152x128xbf16, #tpu.memory_space<vmem>>, %arg6: memref<1x128xf32, #tpu.memory_space<vmem>>, %arg7: memref<1x128xf32, #tpu.memory_space<vmem>>, %arg8: memref<128x128xbf16, #tpu.memory_space<vmem>>, %arg9: memref<1x128xf32, #tpu.memory_space<vmem>>, %arg10: memref<1x128xf32, #tpu.memory_space<vmem>>, %arg11: memref<1x16x16x128xf32, #tpu.memory_space<vmem>>, %arg12: memref<18x18x128xbf16, #tpu.memory_space<vmem>>, %arg13: memref<18x18x128xbf16, #tpu.memory_space<vmem>>, %arg14: memref<16x16x1152xbf16, #tpu.memory_space<vmem>>) attributes {dimension_semantics = [#tpu.dimension_semantics<parallel>], iteration_bounds = array<i64: 2>, scalar_prefetch = 0 : i64, scratch_operands = 3 : i64, tpu.core_type = #tpu.core_type<tc>, window_params = [{transform_indices = @transform_0, window_bounds = array<i64: 1, 16, 16, 4>}, {pipeline_mode = #tpu.pipeline_mode<synchronous>, transform_indices = @transform_1, window_bounds = array<i64: 1152, 128>}, {pipeline_mode = #tpu.pipeline_mode<synchronous>, transform_indices = @transform_2, window_bounds = array<i64: 1, 128>}, {pipeline_mode = #tpu.pipeline_mode<synchronous>, transform_indices = @transform_3, window_bounds = array<i64: 1, 128>}, {pipeline_mode = #tpu.pipeline_mode<synchronous>, transform_indices = @transform_4, window_bounds = array<i64: 1152, 128>}, {pipeline_mode = #tpu.pipeline_mode<synchronous>, transform_indices = @transform_5, window_bounds = array<i64: 1, 128>}, {pipeline_mode = #tpu.pipeline_mode<synchronous>, transform_indices = @transform_6, window_bounds = array<i64: 1, 128>}, {pipeline_mode = #tpu.pipeline_mode<synchronous>, transform_indices = @transform_7, window_bounds = array<i64: 128, 128>}, {pipeline_mode = #tpu.pipeline_mode<synchronous>, transform_indices = @transform_8, window_bounds = array<i64: 1, 128>}, {pipeline_mode = #tpu.pipeline_mode<synchronous>, transform_indices = @transform_9, window_bounds = array<i64: 1, 128>}, {transform_indices = @transform_10, window_bounds = array<i64: 1, 16, 16, 128>}]} {
    %cst = arith.constant 0.000000e+00 : bf16
    %0 = vector.broadcast %cst : bf16 to vector<18x18x128xbf16>
    %c0 = arith.constant 0 : index
    %c0_0 = arith.constant 0 : index
    %c0_1 = arith.constant 0 : index
    %1 = vector.load %arg12[%c0, %c0_0, %c0_1] : memref<18x18x128xbf16, #tpu.memory_space<vmem>>, vector<18x18x128xbf16>
    tpu.vector_store %arg12[%c0, %c0_0, %c0_1], %0 {strides = array<i32>} : memref<18x18x128xbf16, #tpu.memory_space<vmem>>, vector<18x18x128xbf16>,
    %c0_2 = arith.constant 0 : index
    %c0_3 = arith.constant 0 : index
    %c0_4 = arith.constant 0 : index
    %c0_5 = arith.constant 0 : index
    %2 = vector.load %arg1[%c0_2, %c0_3, %c0_4, %c0_5] : memref<1x16x16x4xf32, #tpu.memory_space<vmem>>, vector<1x16x16x4xf32>
    %3 = vector.shape_cast %2 : vector<1x16x16x4xf32> to vector<16x16x4xf32>
    %4 = arith.truncf %3 : vector<16x16x4xf32> to vector<16x16x4xbf16>
    %c1 = arith.constant 1 : index
    %c1_6 = arith.constant 1 : index
    %c0_7 = arith.constant 0 : index
    %5 = vector.load %arg12[%c1, %c1_6, %c0_7] : memref<18x18x128xbf16, #tpu.memory_space<vmem>>, vector<16x16x4xbf16>
    tpu.vector_store %arg12[%c1, %c1_6, %c0_7], %4 {strides = array<i32>} : memref<18x18x128xbf16, #tpu.memory_space<vmem>>, vector<16x16x4xbf16>,
    %c0_8 = arith.constant 0 : index
    %c0_9 = arith.constant 0 : index
    %c0_10 = arith.constant 0 : index
    %6 = vector.load %arg12[%c0_8, %c0_9, %c0_10] : memref<18x18x128xbf16, #tpu.memory_space<vmem>>, vector<16x16x128xbf16>
    %c0_11 = arith.constant 0 : index
    %c0_12 = arith.constant 0 : index
    %c0_13 = arith.constant 0 : index
    %7 = vector.load %arg14[%c0_11, %c0_12, %c0_13] : memref<16x16x1152xbf16, #tpu.memory_space<vmem>>, vector<16x16x128xbf16>
    tpu.vector_store %arg14[%c0_11, %c0_12, %c0_13], %6 {strides = array<i32>} : memref<16x16x1152xbf16, #tpu.memory_space<vmem>>, vector<16x16x128xbf16>,
    %c0_14 = arith.constant 0 : index
    %c1_15 = arith.constant 1 : index
    %c0_16 = arith.constant 0 : index
    %8 = vector.load %arg12[%c0_14, %c1_15, %c0_16] : memref<18x18x128xbf16, #tpu.memory_space<vmem>>, vector<16x16x128xbf16>
    %c0_17 = arith.constant 0 : index
    %c0_18 = arith.constant 0 : index
    %c128 = arith.constant 128 : index
    %9 = vector.load %arg14[%c0_17, %c0_18, %c128] : memref<16x16x1152xbf16, #tpu.memory_space<vmem>>, vector<16x16x128xbf16>
    tpu.vector_store %arg14[%c0_17, %c0_18, %c128], %8 {strides = array<i32>} : memref<16x16x1152xbf16, #tpu.memory_space<vmem>>, vector<16x16x128xbf16>,
    %c0_19 = arith.constant 0 : index
    %c2 = arith.constant 2 : index
    %c0_20 = arith.constant 0 : index
    %10 = vector.load %arg12[%c0_19, %c2, %c0_20] : memref<18x18x128xbf16, #tpu.memory_space<vmem>>, vector<16x16x128xbf16>
    %c0_21 = arith.constant 0 : index
    %c0_22 = arith.constant 0 : index
    %c256 = arith.constant 256 : index
    %11 = vector.load %arg14[%c0_21, %c0_22, %c256] : memref<16x16x1152xbf16, #tpu.memory_space<vmem>>, vector<16x16x128xbf16>
    tpu.vector_store %arg14[%c0_21, %c0_22, %c256], %10 {strides = array<i32>} : memref<16x16x1152xbf16, #tpu.memory_space<vmem>>, vector<16x16x128xbf16>,
    %c1_23 = arith.constant 1 : index
    %c0_24 = arith.constant 0 : index
    %c0_25 = arith.constant 0 : index
    %12 = vector.load %arg12[%c1_23, %c0_24, %c0_25] : memref<18x18x128xbf16, #tpu.memory_space<vmem>>, vector<16x16x128xbf16>
    %c0_26 = arith.constant 0 : index
    %c0_27 = arith.constant 0 : index
    %c384 = arith.constant 384 : index
    %13 = vector.load %arg14[%c0_26, %c0_27, %c384] : memref<16x16x1152xbf16, #tpu.memory_space<vmem>>, vector<16x16x128xbf16>
    tpu.vector_store %arg14[%c0_26, %c0_27, %c384], %12 {strides = array<i32>} : memref<16x16x1152xbf16, #tpu.memory_space<vmem>>, vector<16x16x128xbf16>,
    %c1_28 = arith.constant 1 : index
    %c1_29 = arith.constant 1 : index
    %c0_30 = arith.constant 0 : index
    %14 = vector.load %arg12[%c1_28, %c1_29, %c0_30] : memref<18x18x128xbf16, #tpu.memory_space<vmem>>, vector<16x16x128xbf16>
    %c0_31 = arith.constant 0 : index
    %c0_32 = arith.constant 0 : index
    %c512 = arith.constant 512 : index
    %15 = vector.load %arg14[%c0_31, %c0_32, %c512] : memref<16x16x1152xbf16, #tpu.memory_space<vmem>>, vector<16x16x128xbf16>
    tpu.vector_store %arg14[%c0_31, %c0_32, %c512], %14 {strides = array<i32>} : memref<16x16x1152xbf16, #tpu.memory_space<vmem>>, vector<16x16x128xbf16>,
    %c1_33 = arith.constant 1 : index
    %c2_34 = arith.constant 2 : index
    %c0_35 = arith.constant 0 : index
    %16 = vector.load %arg12[%c1_33, %c2_34, %c0_35] : memref<18x18x128xbf16, #tpu.memory_space<vmem>>, vector<16x16x128xbf16>
    %c0_36 = arith.constant 0 : index
    %c0_37 = arith.constant 0 : index
    %c640 = arith.constant 640 : index
    %17 = vector.load %arg14[%c0_36, %c0_37, %c640] : memref<16x16x1152xbf16, #tpu.memory_space<vmem>>, vector<16x16x128xbf16>
    tpu.vector_store %arg14[%c0_36, %c0_37, %c640], %16 {strides = array<i32>} : memref<16x16x1152xbf16, #tpu.memory_space<vmem>>, vector<16x16x128xbf16>,
    %c2_38 = arith.constant 2 : index
    %c0_39 = arith.constant 0 : index
    %c0_40 = arith.constant 0 : index
    %18 = vector.load %arg12[%c2_38, %c0_39, %c0_40] : memref<18x18x128xbf16, #tpu.memory_space<vmem>>, vector<16x16x128xbf16>
    %c0_41 = arith.constant 0 : index
    %c0_42 = arith.constant 0 : index
    %c768 = arith.constant 768 : index
    %19 = vector.load %arg14[%c0_41, %c0_42, %c768] : memref<16x16x1152xbf16, #tpu.memory_space<vmem>>, vector<16x16x128xbf16>
    tpu.vector_store %arg14[%c0_41, %c0_42, %c768], %18 {strides = array<i32>} : memref<16x16x1152xbf16, #tpu.memory_space<vmem>>, vector<16x16x128xbf16>,
    %c2_43 = arith.constant 2 : index
    %c1_44 = arith.constant 1 : index
    %c0_45 = arith.constant 0 : index
    %20 = vector.load %arg12[%c2_43, %c1_44, %c0_45] : memref<18x18x128xbf16, #tpu.memory_space<vmem>>, vector<16x16x128xbf16>
    %c0_46 = arith.constant 0 : index
    %c0_47 = arith.constant 0 : index
    %c896 = arith.constant 896 : index
    %21 = vector.load %arg14[%c0_46, %c0_47, %c896] : memref<16x16x1152xbf16, #tpu.memory_space<vmem>>, vector<16x16x128xbf16>
    tpu.vector_store %arg14[%c0_46, %c0_47, %c896], %20 {strides = array<i32>} : memref<16x16x1152xbf16, #tpu.memory_space<vmem>>, vector<16x16x128xbf16>,
    %c2_48 = arith.constant 2 : index
    %c2_49 = arith.constant 2 : index
    %c0_50 = arith.constant 0 : index
    %22 = vector.load %arg12[%c2_48, %c2_49, %c0_50] : memref<18x18x128xbf16, #tpu.memory_space<vmem>>, vector<16x16x128xbf16>
    %c0_51 = arith.constant 0 : index
    %c0_52 = arith.constant 0 : index
    %c1024 = arith.constant 1024 : index
    %23 = vector.load %arg14[%c0_51, %c0_52, %c1024] : memref<16x16x1152xbf16, #tpu.memory_space<vmem>>, vector<16x16x128xbf16>
    tpu.vector_store %arg14[%c0_51, %c0_52, %c1024], %22 {strides = array<i32>} : memref<16x16x1152xbf16, #tpu.memory_space<vmem>>, vector<16x16x128xbf16>,
    %c0_53 = arith.constant 0 : index
    %c0_54 = arith.constant 0 : index
    %c0_55 = arith.constant 0 : index
    %24 = vector.load %arg14[%c0_53, %c0_54, %c0_55] : memref<16x16x1152xbf16, #tpu.memory_space<vmem>>, vector<16x16x1152xbf16>
    %25 = vector.shape_cast %24 : vector<16x16x1152xbf16> to vector<256x1152xbf16>
    %c0_56 = arith.constant 0 : index
    %c0_57 = arith.constant 0 : index
    %26 = vector.load %arg2[%c0_56, %c0_57] : memref<1152x128xbf16, #tpu.memory_space<vmem>>, vector<1152x128xbf16>
    %cst_58 = arith.constant dense<0.000000e+00> : vector<256x128xf32>
    %27 = tpu.matmul %25, %26, %cst_58 {dimension_numbers = #tpu.dot_dimension_numbers<[1], [0], [0], [1], [0, 0, 1, 1], [], []>} : vector<256x1152xbf16>, vector<1152x128xbf16>, vector<256x128xf32> -> vector<256x128xf32>
    %c0_59 = arith.constant 0 : index
    %c0_60 = arith.constant 0 : index
    %28 = vector.load %arg3[%c0_59, %c0_60] : memref<1x128xf32, #tpu.memory_space<vmem>>, vector<1x128xf32>
    %29 = vector.broadcast %28 : vector<1x128xf32> to vector<256x128xf32>
    %30 = arith.mulf %27, %29 : vector<256x128xf32>
    %c0_61 = arith.constant 0 : index
    %c0_62 = arith.constant 0 : index
    %31 = vector.load %arg4[%c0_61, %c0_62] : memref<1x128xf32, #tpu.memory_space<vmem>>, vector<1x128xf32>
    %32 = vector.broadcast %31 : vector<1x128xf32> to vector<256x128xf32>
    %33 = arith.addf %30, %32 : vector<256x128xf32>
    %cst_63 = arith.constant 0.000000e+00 : f32
    %34 = vector.broadcast %cst_63 : f32 to vector<256x128xf32>
    %35 = arith.maximumf %33, %34 : vector<256x128xf32>
    %c1_64 = arith.constant 1 : index
    %c1_65 = arith.constant 1 : index
    %c0_66 = arith.constant 0 : index
    %36 = vector.load %arg12[%c1_64, %c1_65, %c0_66] : memref<18x18x128xbf16, #tpu.memory_space<vmem>>, vector<16x16x128xbf16>
    %37 = vector.shape_cast %36 : vector<16x16x128xbf16> to vector<256x128xbf16>
    %c0_67 = arith.constant 0 : index
    %c0_68 = arith.constant 0 : index
    %38 = vector.load %arg8[%c0_67, %c0_68] : memref<128x128xbf16, #tpu.memory_space<vmem>>, vector<128x128xbf16>
    %cst_69 = arith.constant dense<0.000000e+00> : vector<256x128xf32>
    %39 = tpu.matmul %37, %38, %cst_69 {dimension_numbers = #tpu.dot_dimension_numbers<[1], [0], [0], [1], [0, 0, 1, 1], [], []>} : vector<256x128xbf16>, vector<128x128xbf16>, vector<256x128xf32> -> vector<256x128xf32>
    %c0_70 = arith.constant 0 : index
    %c0_71 = arith.constant 0 : index
    %40 = vector.load %arg9[%c0_70, %c0_71] : memref<1x128xf32, #tpu.memory_space<vmem>>, vector<1x128xf32>
    %41 = vector.broadcast %40 : vector<1x128xf32> to vector<256x128xf32>
    %42 = arith.mulf %39, %41 : vector<256x128xf32>
    %c0_72 = arith.constant 0 : index
    %c0_73 = arith.constant 0 : index
    %43 = vector.load %arg10[%c0_72, %c0_73] : memref<1x128xf32, #tpu.memory_space<vmem>>, vector<1x128xf32>
    %44 = vector.broadcast %43 : vector<1x128xf32> to vector<256x128xf32>
    %45 = arith.addf %42, %44 : vector<256x128xf32>
    %cst_74 = arith.constant 0.000000e+00 : bf16
    %46 = vector.broadcast %cst_74 : bf16 to vector<18x18x128xbf16>
    %c0_75 = arith.constant 0 : index
    %c0_76 = arith.constant 0 : index
    %c0_77 = arith.constant 0 : index
    %47 = vector.load %arg13[%c0_75, %c0_76, %c0_77] : memref<18x18x128xbf16, #tpu.memory_space<vmem>>, vector<18x18x128xbf16>
    tpu.vector_store %arg13[%c0_75, %c0_76, %c0_77], %46 {strides = array<i32>} : memref<18x18x128xbf16, #tpu.memory_space<vmem>>, vector<18x18x128xbf16>,
    %48 = vector.shape_cast %35 : vector<256x128xf32> to vector<16x16x128xf32>
    %49 = arith.truncf %48 : vector<16x16x128xf32> to vector<16x16x128xbf16>
    %c1_78 = arith.constant 1 : index
    %c1_79 = arith.constant 1 : index
    %c0_80 = arith.constant 0 : index
    %50 = vector.load %arg13[%c1_78, %c1_79, %c0_80] : memref<18x18x128xbf16, #tpu.memory_space<vmem>>, vector<16x16x128xbf16>
    tpu.vector_store %arg13[%c1_78, %c1_79, %c0_80], %49 {strides = array<i32>} : memref<18x18x128xbf16, #tpu.memory_space<vmem>>, vector<16x16x128xbf16>,
    %c0_81 = arith.constant 0 : index
    %c0_82 = arith.constant 0 : index
    %c0_83 = arith.constant 0 : index
    %51 = vector.load %arg13[%c0_81, %c0_82, %c0_83] : memref<18x18x128xbf16, #tpu.memory_space<vmem>>, vector<16x16x128xbf16>
    %c0_84 = arith.constant 0 : index
    %c0_85 = arith.constant 0 : index
    %c0_86 = arith.constant 0 : index
    %52 = vector.load %arg14[%c0_84, %c0_85, %c0_86] : memref<16x16x1152xbf16, #tpu.memory_space<vmem>>, vector<16x16x128xbf16>
    tpu.vector_store %arg14[%c0_84, %c0_85, %c0_86], %51 {strides = array<i32>} : memref<16x16x1152xbf16, #tpu.memory_space<vmem>>, vector<16x16x128xbf16>,
    %c0_87 = arith.constant 0 : index
    %c1_88 = arith.constant 1 : index
    %c0_89 = arith.constant 0 : index
    %53 = vector.load %arg13[%c0_87, %c1_88, %c0_89] : memref<18x18x128xbf16, #tpu.memory_space<vmem>>, vector<16x16x128xbf16>
    %c0_90 = arith.constant 0 : index
    %c0_91 = arith.constant 0 : index
    %c128_92 = arith.constant 128 : index
    %54 = vector.load %arg14[%c0_90, %c0_91, %c128_92] : memref<16x16x1152xbf16, #tpu.memory_space<vmem>>, vector<16x16x128xbf16>
    tpu.vector_store %arg14[%c0_90, %c0_91, %c128_92], %53 {strides = array<i32>} : memref<16x16x1152xbf16, #tpu.memory_space<vmem>>, vector<16x16x128xbf16>,
    %c0_93 = arith.constant 0 : index
    %c2_94 = arith.constant 2 : index
    %c0_95 = arith.constant 0 : index
    %55 = vector.load %arg13[%c0_93, %c2_94, %c0_95] : memref<18x18x128xbf16, #tpu.memory_space<vmem>>, vector<16x16x128xbf16>
    %c0_96 = arith.constant 0 : index
    %c0_97 = arith.constant 0 : index
    %c256_98 = arith.constant 256 : index
    %56 = vector.load %arg14[%c0_96, %c0_97, %c256_98] : memref<16x16x1152xbf16, #tpu.memory_space<vmem>>, vector<16x16x128xbf16>
    tpu.vector_store %arg14[%c0_96, %c0_97, %c256_98], %55 {strides = array<i32>} : memref<16x16x1152xbf16, #tpu.memory_space<vmem>>, vector<16x16x128xbf16>,
    %c1_99 = arith.constant 1 : index
    %c0_100 = arith.constant 0 : index
    %c0_101 = arith.constant 0 : index
    %57 = vector.load %arg13[%c1_99, %c0_100, %c0_101] : memref<18x18x128xbf16, #tpu.memory_space<vmem>>, vector<16x16x128xbf16>
    %c0_102 = arith.constant 0 : index
    %c0_103 = arith.constant 0 : index
    %c384_104 = arith.constant 384 : index
    %58 = vector.load %arg14[%c0_102, %c0_103, %c384_104] : memref<16x16x1152xbf16, #tpu.memory_space<vmem>>, vector<16x16x128xbf16>
    tpu.vector_store %arg14[%c0_102, %c0_103, %c384_104], %57 {strides = array<i32>} : memref<16x16x1152xbf16, #tpu.memory_space<vmem>>, vector<16x16x128xbf16>,
    %c1_105 = arith.constant 1 : index
    %c1_106 = arith.constant 1 : index
    %c0_107 = arith.constant 0 : index
    %59 = vector.load %arg13[%c1_105, %c1_106, %c0_107] : memref<18x18x128xbf16, #tpu.memory_space<vmem>>, vector<16x16x128xbf16>
    %c0_108 = arith.constant 0 : index
    %c0_109 = arith.constant 0 : index
    %c512_110 = arith.constant 512 : index
    %60 = vector.load %arg14[%c0_108, %c0_109, %c512_110] : memref<16x16x1152xbf16, #tpu.memory_space<vmem>>, vector<16x16x128xbf16>
    tpu.vector_store %arg14[%c0_108, %c0_109, %c512_110], %59 {strides = array<i32>} : memref<16x16x1152xbf16, #tpu.memory_space<vmem>>, vector<16x16x128xbf16>,
    %c1_111 = arith.constant 1 : index
    %c2_112 = arith.constant 2 : index
    %c0_113 = arith.constant 0 : index
    %61 = vector.load %arg13[%c1_111, %c2_112, %c0_113] : memref<18x18x128xbf16, #tpu.memory_space<vmem>>, vector<16x16x128xbf16>
    %c0_114 = arith.constant 0 : index
    %c0_115 = arith.constant 0 : index
    %c640_116 = arith.constant 640 : index
    %62 = vector.load %arg14[%c0_114, %c0_115, %c640_116] : memref<16x16x1152xbf16, #tpu.memory_space<vmem>>, vector<16x16x128xbf16>
    tpu.vector_store %arg14[%c0_114, %c0_115, %c640_116], %61 {strides = array<i32>} : memref<16x16x1152xbf16, #tpu.memory_space<vmem>>, vector<16x16x128xbf16>,
    %c2_117 = arith.constant 2 : index
    %c0_118 = arith.constant 0 : index
    %c0_119 = arith.constant 0 : index
    %63 = vector.load %arg13[%c2_117, %c0_118, %c0_119] : memref<18x18x128xbf16, #tpu.memory_space<vmem>>, vector<16x16x128xbf16>
    %c0_120 = arith.constant 0 : index
    %c0_121 = arith.constant 0 : index
    %c768_122 = arith.constant 768 : index
    %64 = vector.load %arg14[%c0_120, %c0_121, %c768_122] : memref<16x16x1152xbf16, #tpu.memory_space<vmem>>, vector<16x16x128xbf16>
    tpu.vector_store %arg14[%c0_120, %c0_121, %c768_122], %63 {strides = array<i32>} : memref<16x16x1152xbf16, #tpu.memory_space<vmem>>, vector<16x16x128xbf16>,
    %c2_123 = arith.constant 2 : index
    %c1_124 = arith.constant 1 : index
    %c0_125 = arith.constant 0 : index
    %65 = vector.load %arg13[%c2_123, %c1_124, %c0_125] : memref<18x18x128xbf16, #tpu.memory_space<vmem>>, vector<16x16x128xbf16>
    %c0_126 = arith.constant 0 : index
    %c0_127 = arith.constant 0 : index
    %c896_128 = arith.constant 896 : index
    %66 = vector.load %arg14[%c0_126, %c0_127, %c896_128] : memref<16x16x1152xbf16, #tpu.memory_space<vmem>>, vector<16x16x128xbf16>
    tpu.vector_store %arg14[%c0_126, %c0_127, %c896_128], %65 {strides = array<i32>} : memref<16x16x1152xbf16, #tpu.memory_space<vmem>>, vector<16x16x128xbf16>,
    %c2_129 = arith.constant 2 : index
    %c2_130 = arith.constant 2 : index
    %c0_131 = arith.constant 0 : index
    %67 = vector.load %arg13[%c2_129, %c2_130, %c0_131] : memref<18x18x128xbf16, #tpu.memory_space<vmem>>, vector<16x16x128xbf16>
    %c0_132 = arith.constant 0 : index
    %c0_133 = arith.constant 0 : index
    %c1024_134 = arith.constant 1024 : index
    %68 = vector.load %arg14[%c0_132, %c0_133, %c1024_134] : memref<16x16x1152xbf16, #tpu.memory_space<vmem>>, vector<16x16x128xbf16>
    tpu.vector_store %arg14[%c0_132, %c0_133, %c1024_134], %67 {strides = array<i32>} : memref<16x16x1152xbf16, #tpu.memory_space<vmem>>, vector<16x16x128xbf16>,
    %c0_135 = arith.constant 0 : index
    %c0_136 = arith.constant 0 : index
    %c0_137 = arith.constant 0 : index
    %69 = vector.load %arg14[%c0_135, %c0_136, %c0_137] : memref<16x16x1152xbf16, #tpu.memory_space<vmem>>, vector<16x16x1152xbf16>
    %70 = vector.shape_cast %69 : vector<16x16x1152xbf16> to vector<256x1152xbf16>
    %c0_138 = arith.constant 0 : index
    %c0_139 = arith.constant 0 : index
    %71 = vector.load %arg5[%c0_138, %c0_139] : memref<1152x128xbf16, #tpu.memory_space<vmem>>, vector<1152x128xbf16>
    %cst_140 = arith.constant dense<0.000000e+00> : vector<256x128xf32>
    %72 = tpu.matmul %70, %71, %cst_140 {dimension_numbers = #tpu.dot_dimension_numbers<[1], [0], [0], [1], [0, 0, 1, 1], [], []>} : vector<256x1152xbf16>, vector<1152x128xbf16>, vector<256x128xf32> -> vector<256x128xf32>
    %c0_141 = arith.constant 0 : index
    %c0_142 = arith.constant 0 : index
    %73 = vector.load %arg6[%c0_141, %c0_142] : memref<1x128xf32, #tpu.memory_space<vmem>>, vector<1x128xf32>
    %74 = vector.broadcast %73 : vector<1x128xf32> to vector<256x128xf32>
    %75 = arith.mulf %72, %74 : vector<256x128xf32>
    %c0_143 = arith.constant 0 : index
    %c0_144 = arith.constant 0 : index
    %76 = vector.load %arg7[%c0_143, %c0_144] : memref<1x128xf32, #tpu.memory_space<vmem>>, vector<1x128xf32>
    %77 = vector.broadcast %76 : vector<1x128xf32> to vector<256x128xf32>
    %78 = arith.addf %75, %77 : vector<256x128xf32>
    %79 = arith.addf %78, %45 : vector<256x128xf32>
    %cst_145 = arith.constant 0.000000e+00 : f32
    %80 = vector.broadcast %cst_145 : f32 to vector<256x128xf32>
    %81 = arith.maximumf %79, %80 : vector<256x128xf32>
    %82 = vector.shape_cast %81 : vector<256x128xf32> to vector<16x16x128xf32>
    %c0_146 = arith.constant 0 : index
    %c0_147 = arith.constant 0 : index
    %c0_148 = arith.constant 0 : index
    %c0_149 = arith.constant 0 : index
    %83 = vector.load %arg11[%c0_146, %c0_147, %c0_148, %c0_149] : memref<1x16x16x128xf32, #tpu.memory_space<vmem>>, vector<1x16x16x128xf32>
    %84 = vector.shape_cast %83 : vector<1x16x16x128xf32> to vector<16x16x128xf32>
    %85 = vector.shape_cast %82 : vector<16x16x128xf32> to vector<1x16x16x128xf32>
    tpu.vector_store %arg11[%c0_146, %c0_147, %c0_148, %c0_149], %85 {strides = array<i32>} : memref<1x16x16x128xf32, #tpu.memory_space<vmem>>, vector<1x16x16x128xf32>,
    return
  }
  func.func @transform_0(%arg0: i32) -> (i32, i32, i32, i32) {
    %c0_i32 = arith.constant 0 : i32
    %c0_i32_0 = arith.constant 0 : i32
    %c0_i32_1 = arith.constant 0 : i32
    %c0_i32_2 = arith.constant 0 : i32
    return %arg0, %c0_i32, %c0_i32_0, %c0_i32_1 : i32, i32, i32, i32
  }
  func.func @transform_1(%arg0: i32) -> (i32, i32) {
    %c0_i32 = arith.constant 0 : i32
    %c0_i32_0 = arith.constant 0 : i32
    %c0_i32_1 = arith.constant 0 : i32
    return %c0_i32, %c0_i32_0 : i32, i32
  }
  func.func @transform_2(%arg0: i32) -> (i32, i32) {
    %c0_i32 = arith.constant 0 : i32
    %c0_i32_0 = arith.constant 0 : i32
    %c0_i32_1 = arith.constant 0 : i32
    return %c0_i32, %c0_i32_0 : i32, i32
  }
  func.func @transform_3(%arg0: i32) -> (i32, i32) {
    %c0_i32 = arith.constant 0 : i32
    %c0_i32_0 = arith.constant 0 : i32
    %c0_i32_1 = arith.constant 0 : i32
    return %c0_i32, %c0_i32_0 : i32, i32
  }
  func.func @transform_4(%arg0: i32) -> (i32, i32) {
    %c0_i32 = arith.constant 0 : i32
    %c0_i32_0 = arith.constant 0 : i32
    %c0_i32_1 = arith.constant 0 : i32
    return %c0_i32, %c0_i32_0 : i32, i32
  }
  func.func @transform_5(%arg0: i32) -> (i32, i32) {
    %c0_i32 = arith.constant 0 : i32
    %c0_i32_0 = arith.constant 0 : i32
    %c0_i32_1 = arith.constant 0 : i32
    return %c0_i32, %c0_i32_0 : i32, i32
  }
  func.func @transform_6(%arg0: i32) -> (i32, i32) {
    %c0_i32 = arith.constant 0 : i32
    %c0_i32_0 = arith.constant 0 : i32
    %c0_i32_1 = arith.constant 0 : i32
    return %c0_i32, %c0_i32_0 : i32, i32
  }
  func.func @transform_7(%arg0: i32) -> (i32, i32) {
    %c0_i32 = arith.constant 0 : i32
    %c0_i32_0 = arith.constant 0 : i32
    %c0_i32_1 = arith.constant 0 : i32
    return %c0_i32, %c0_i32_0 : i32, i32
  }
  func.func @transform_8(%arg0: i32) -> (i32, i32) {
    %c0_i32 = arith.constant 0 : i32
    %c0_i32_0 = arith.constant 0 : i32
    %c0_i32_1 = arith.constant 0 : i32
    return %c0_i32, %c0_i32_0 : i32, i32
  }
  func.func @transform_9(%arg0: i32) -> (i32, i32) {
    %c0_i32 = arith.constant 0 : i32
    %c0_i32_0 = arith.constant 0 : i32
    %c0_i32_1 = arith.constant 0 : i32
    return %c0_i32, %c0_i32_0 : i32, i32
  }
  func.func @transform_10(%arg0: i32) -> (i32, i32, i32, i32) {
    %c0_i32 = arith.constant 0 : i32
    %c0_i32_0 = arith.constant 0 : i32
    %c0_i32_1 = arith.constant 0 : i32
    %c0_i32_2 = arith.constant 0 : i32
    return %arg0, %c0_i32, %c0_i32_0, %c0_i32_1 : i32, i32, i32, i32
  }
}

</mosaic_0001>

<bundles_post_ra>
// kernel: tpu_custom_call.1
= control target key start
LH: loop header
LB: loop body
LE: loop exit
PB: predicated region body
PF: predicated region fallthrough
CT: control target
= control target key end

     0   :  { %15 = vsyncpa [#allocation6], 0  ;;  %s15596_s0 = inlined_call_operand.vmem [shape: f32[2,16,16,4], index: 0, kind: input, shape index: {}]   ;;  %s15597_s1 = inlined_call_operand.vmem [shape: bf16[1152,128], index: 1, kind: input, shape index: {}]   ;;  %s15598_s2 = inlined_call_operand.vmem [shape: f32[1,128], index: 2, kind: input, shape index: {}]   ;;  %s15599_s3 = inlined_call_operand.vmem [shape: f32[1,128], index: 3, kind: input, shape index: {}]   ;;  %s15600_s4 = inlined_call_operand.hbm [shape: bf16[1152,128], index: 4, kind: input, shape index: {}]   ;;  %s15601_s5 = inlined_call_operand.vmem [shape: f32[1,128], index: 5, kind: input, shape index: {}]   ;;  %s15602_s6 = inlined_call_operand.vmem [shape: f32[1,128], index: 6, kind: input, shape index: {}]   ;;  %s15603_s7 = inlined_call_operand.vmem [shape: bf16[128,128], index: 7, kind: input, shape index: {}]   ;;  %s15604_s8 = inlined_call_operand.vmem [shape: f32[1,128], index: 8, kind: input, shape index: {}]   ;;  %s15605_s9 = inlined_call_operand.vmem [shape: f32[1,128], index: 9, kind: input, shape index: {}]   ;;  %s15606_s10 = inlined_call_operand.hbm [shape: f32[2,16,16,128], index: 10, kind: output, shape index: {}]  }
   0x1   :  { %16 = vsyncpa [#allocation7], 0 }
   0x2   :  { %18 = vsyncpa [#allocation7 + $0x1], 0  ;;  %s13386_s13 = smov 0   ;;  %s13388_s14 = smov 0  }
   0x3   :  { %s13390_s15 = smov 0   ;;  %s13392_s16 = smov 0  }
   0x4 LB: > { %s13407_s17 = sadd.s32 4294967295, %s13322_s16   ;;  %s10613_s18 = sadd.s32 4294967294, %s13322_s16   ;;  %s13322_s16 = sphi %s13392_s16, %s15707_s16   ;;  %s13318_s15 = sphi %s13390_s15, %s15706_s15   ;;  %s13314_s14 = sphi %s13388_s14, %s15705_s14   ;;  %s13310_s13 = sphi %s13386_s13, %s15704_s13  }
   0x5   : > { %s13411_s19 = sadd.s32 1, %s13322_s16   ;;  %s246_s20 = sadd.s32 1, %s13318_s15 }
   0x6   : > { %s243_s21 = ssub.s32 %s13322_s16, %s13411_s19  ;;  %p256_p0 = scmp.ne.s32.totalorder %s13318_s15, %s13314_s14 }
   0x7   : > { %p244_p1 = scmp.eq.s32.totalorder %s243_s21, 0  ;;  %p257_p2 = scmp.eq.s32.totalorder %s13407_s17, 1 }
   0x8   : > { %p262_p3 = scmp.ne.s32.totalorder %s13314_s14, %s13310_s13  ;;  %p263_p4 = scmp.eq.s32.totalorder %s10613_s18, 1 }
   0x9   : > { %s13422_s22 = scalar_select %p244_p1, %s13318_s15, %s246_s20  }
   0xa   : > { %p13424_p5 = por %p257_p2, %p256_p0  ;;  %p13428_p6 = por %p263_p4, %p262_p3 }
   0xb   : > { %p10614_p7 = scmp.ge.s32.totalorder %s13322_s16, 1  ;;  %p270_p8 = scmp.lt.s32.totalorder %s13322_s16, 3 }
   0xc   : > { %s15612_s23 = scalar_select %p13424_p5, 1, 0 }
   0xd   : > { %s15613_s24 = scalar_select %p13428_p6, 1, 0 }
   0xe   : > { %p15607_p9 = scmp.eq.s32.totalorder %s13407_s17, 0  ;;  %p13435_p10 = pnand %p10614_p7, %p270_p8 }
   0xf   : > { %s13324_s26 = smov [#allocation5]   ;;  %s13228_s11 = scalar_lea.hbm %s15600_s4, 9216 }
  0x10   : > { %s15614_s25 = scalar_select %p13435_p10, 1, 0 }
  0x11   : > { %s291_s27 = sshll.u32 %s13324_s26, 4  ;;  %p12545_p11 = pneg %p13435_p10  ;;  %s292_s27 = int_to_ptr.vmem [resolvable:$true] %s291_s27 }
  0x12   : > { %p13229_p13 = scmp.ne.s32.totalorder %s15600_s4, %s13228_s11  ;;  %p13235_p3 = scmp.lt.u32.totalorder %s13228_s11, %s15600_s4 }
  0x13   : > { %p13443_p12 = pnand %p15607_p9, %p12545_p11 }
  0x15   : > { %p13230_p0 = pneg %p13443_p12 }
  0x17   : > { %p13231_p1 = pnand %p13230_p0, %p13229_p13 }
  0x19   : > { %p13232_p2 = pneg %p13231_p1 }
  0x1b   : > { %p13237_p4 = pnand %p13235_p3, %p13232_p2 }
  0x1d   : > { %13240 = shalt.err (!%p13237_p4)
}
  0x1e   : > { %s13241_s26 = scalar_lea.vmem %s292_s27, 9216  ;;  %p13249_p9 = scmp.lt.s32.totalorder %s292_s27, %s292_s27 }
  0x1f   : > { %p13242_p7 = scmp.ne.s32.totalorder %s292_s27, %s13241_s26  ;;  %p13250_p6 = scmp.lt.s32.totalorder %s13241_s26, %s13241_s26 }
  0x21   : > { %p13244_p8 = pnand %p13242_p7, %p13230_p0  ;;  %p13251_p5 = por %p13250_p6, %p13249_p9 }
  0x23   : > { %p13245_p11 = pneg %p13244_p8 }
  0x25   : > { %p13252_p10 = pnand %p13251_p5, %p13245_p11 }
  0x27   : > { %13255 = shalt.err (!%p13252_p10)
}
  0x28   : > { %s13325_s29 = smov 64   ;;  %s13326_s30 = smov 4  }
  0x29   : > { %12548 = dma.hbm_to_vmem [thread:$0]  (!%p13443_p12), %s15600_s4, 9216, %s292_s27, [#allocation6], %s13325_s29, %s13325_s29, %s13326_s30  }
  0x2a   : > { %p15616_p13 = scmp.ne.s32.totalorder %s15614_s25, 0 }
  0x2c   : > { %330 = sbr.rel (%p15616_p13) target bundleno = 1203 (0x4b3), region = 60 }
  0x33   : > { %p15617_p1 = scmp.eq.s32.totalorder %s13407_s17, 0 }
  0x35   : > { %13301 = dma.done.wait (%p15617_p1), [#allocation6], 9216   ;;  %p15618_p0 = pmov %p15617_p1 }
  0x36   : > { %v13327_v0 = vmov 0   ;;  %v12594_v1 = vld [vmem:[%s15597_s1 + $0x40] sm:$0xff]   ;;  %v12596_v3 = vld [vmem:[%s15597_s1 + $0x48] sm:$0xff]   ;;  %p368_p5 = scmp.lt.s32.totalorder %s13407_s17, 1  ;;  %v12598_v5 = vld [vmem:[%s15597_s1 + $0x50] sm:$0xff]   ;;  %vm880_vm3 = vcmask 27648  }
  0x37   : > { %13303 = vsyncadd (%p15618_p0), [#allocation6], 4294958080  ;;  %374 = vst [vmem:[#allocation2] sm:$0xf] %v13327_v0  ;;  %v12595_v2 = vld [vmem:[%s15597_s1] sm:$0xff]   ;;  %11411 = vmatprep.subr.bf16.mxu0 %v12594_v1  ;;  %12523 = vmatprep.subr.bf16.mxu1 %v12594_v1  ;;  %v12597_v4 = vld [vmem:[%s15597_s1 + $0x8] sm:$0xff]  }
  0x38   : > { %375 = vst [vmem:[#allocation2 + $0x4] sm:$0xf] %v13327_v0  ;;  %376 = vst [vmem:[#allocation2 + $0x8] sm:$0x1] %v13327_v0  ;;  %11412 = vmatpush3.bf16.msra.mxu0 %v12595_v2  ;;  %12531 = vmatpush3.bf16.msra.mxu1 %v12595_v2  ;;  %v12599_v6 = vld [vmem:[%s15597_s1 + $0x10] sm:$0xff]   ;;  %s369_s27 = scalar_select %p368_p5, %s13407_s17, 1 }
  0x39   : > { %377 = vst [vmem:[#allocation2 + $0xc] sm:$0xf] %v13327_v0  ;;  %378 = vst [vmem:[#allocation2 + $0x10] sm:$0xf] %v13327_v0  ;;  %11413 = vmatprep.subr.bf16.mxu0 %v12596_v3  ;;  %12524 = vmatprep.subr.bf16.mxu1 %v12596_v3  ;;  %v12600_v7 = vld [vmem:[%s15597_s1 + $0x58] sm:$0xff]   ;;  %v12602_v9 = vld [vmem:[%s15597_s1 + $0x60] sm:$0xff]  }
  0x3a   : > { %379 = vst [vmem:[#allocation2 + $0x14] sm:$0x1] %v13327_v0  ;;  %380 = vst [vmem:[#allocation2 + $0x18] sm:$0xf] %v13327_v0  ;;  %vm556_vm0 = vsmask.f32 256 }
  0x3b   : > { %381 = vst [vmem:[#allocation2 + $0x1c] sm:$0xf] %v13327_v0  ;;  %382 = vst [vmem:[#allocation2 + $0x20] sm:$0x1] %v13327_v0  ;;  %v12601_v8 = vld [vmem:[%s15597_s1 + $0x18] sm:$0xff]   ;;  %s11345_s26 = sshll.u32 %s369_s27, 8 }
  0x3c   : > { %383 = vst [vmem:[#allocation2 + $0x24] sm:$0xf] %v13327_v0  ;;  %384 = vst [vmem:[#allocation2 + $0x28] sm:$0xf] %v13327_v0  ;;  %11414 = vmatpush3.bf16.msra.mxu0 %v12597_v4  ;;  %12532 = vmatpush3.bf16.msra.mxu1 %v12597_v4  ;;  %vm557_vm1 = vsmask.f32 4368  ;;  %s13612_s11 = scalar_lea.vmem %s15596_s0, %s11345_s26 }
  0x3d   : > { %385 = vst [vmem:[#allocation2 + $0x2c] sm:$0x1] %v13327_v0  ;;  %386 = vst [vmem:[#allocation2 + $0x30] sm:$0xf] %v13327_v0  ;;  %11415 = vmatprep.subr.bf16.mxu0 %v12598_v5  ;;  %12525 = vmatprep.subr.bf16.mxu1 %v12598_v5  ;;  %v12603_v10 = vld [vmem:[%s15597_s1 + $0x20] sm:$0xff]   ;;  %v12604_v11 = vld [vmem:[%s15597_s1 + $0x68] sm:$0xff]  }
  0x3e   : > { %387 = vst [vmem:[#allocation2 + $0x34] sm:$0xf] %v13327_v0  ;;  %388 = vst [vmem:[#allocation2 + $0x38] sm:$0x1] %v13327_v0  ;;  %vm1318_vm2 = vsmask.f32 7424 }
  0x3f   : > { %389 = vst [vmem:[#allocation2 + $0x3c] sm:$0xf] %v13327_v0  ;;  %390 = vst [vmem:[#allocation2 + $0x40] sm:$0xf] %v13327_v0  ;;  %v12610_v12 = vld [vmem:[#allocation2] sm:$0xff]   ;;  %v450_v14 = vld [vmem:[%s13612_s11 + $0xb0] sm:$0xff] }
  0x40   : > { %391 = vst [vmem:[#allocation2 + $0x44] sm:$0x1] %v13327_v0  ;;  %392 = vst [vmem:[#allocation2 + $0x48] sm:$0xf] %v13327_v0  ;;  %11416 = vmatpush3.bf16.msra.mxu0 %v12599_v6  ;;  %12533 = vmatpush3.bf16.msra.mxu1 %v12599_v6  ;;  %v12605_v15 = vld [vmem:[%s15597_s1 + $0x28] sm:$0xff]   ;;  %v451_v16 = vld [vmem:[%s13612_s11 + $0xb8] sm:$0xff]  ;;  %v11368_v17 = vpack.c.bf16 %v450_v14, %v450_v14 }
  0x41   : > { %393 = vst [vmem:[#allocation2 + $0x4c] sm:$0xf] %v13327_v0  ;;  %394 = vst [vmem:[#allocation2 + $0x50] sm:$0x1] %v13327_v0  ;;  %11417 = vmatprep.subr.bf16.mxu0 %v12600_v7  ;;  %12526 = vmatprep.subr.bf16.mxu1 %v12600_v7  ;;  %vm881_vm4 = vsmask.f32 7938  ;;  %v11369_v22 = vpack.c.bf16 %v451_v16, %v451_v16 }
  0x42   : > { %395 = vst [vmem:[#allocation2 + $0x54] sm:$0xf] %v13327_v0  ;;  %396 = vst [vmem:[#allocation2 + $0x58] sm:$0xf] %v13327_v0  ;;  %vm888_vm5 = vcmask 24576   ;;  %v12606_v18 = vld [vmem:[%s15597_s1 + $0x70] sm:$0xff]  }
  0x43   : > { %397 = vst [vmem:[#allocation2 + $0x5c] sm:$0x1] %v13327_v0  ;;  %398 = vst [vmem:[#allocation2 + $0x60] sm:$0xf] %v13327_v0  ;;  %v1320_v19 = vshrl.u32 %v12610_v12, 16  ;;  %v1322_v20 = vshll.u32 %v12610_v12, 16 }
  0x44   : > { %399 = vst [vmem:[#allocation2 + $0x64] sm:$0xf] %v13327_v0  ;;  %400 = vst [vmem:[#allocation2 + $0x68] sm:$0x1] %v13327_v0  ;;  %11418 = vmatpush3.bf16.msra.mxu0 %v12601_v8  ;;  %12534 = vmatpush3.bf16.msra.mxu1 %v12601_v8  ;;  %v15619_v23 = vmov 0  ;;  %v747_v24 = vshrl.u32 %v11368_v17, 16 }
  0x45   : > { %401 = vst [vmem:[#allocation2 + $0x6c] sm:$0xf] %v13327_v0  ;;  %402 = vst [vmem:[#allocation2 + $0x70] sm:$0xf] %v13327_v0  ;;  %11419 = vmatprep.subr.bf16.mxu0 %v12602_v9  ;;  %12527 = vmatprep.subr.bf16.mxu1 %v12602_v9  ;;  %v750_v25 = vshll.u32 %v11368_v17, 16  ;;  %v1324_v26 = vrot.slane %v1322_v20, 1 }
  0x46   : > { %403 = vst [vmem:[#allocation2 + $0x74] sm:$0x1] %v13327_v0  ;;  %404 = vst [vmem:[#allocation2 + $0x78] sm:$0xf] %v13327_v0  ;;  %v755_v28 = vshrl.u32 %v11369_v22, 16  ;;  %v758_v29 = vshll.u32 %v11369_v22, 16 }
  0x47   : > { %405 = vst [vmem:[#allocation2 + $0x7c] sm:$0xf] %v13327_v0  ;;  %406 = vst [vmem:[#allocation2 + $0x80] sm:$0x1] %v13327_v0  ;;  %v749_v32 = vrot.slane %v747_v24, 7  ;;  %v12607_v35 = vld [vmem:[%s15597_s1 + $0x30] sm:$0xff]   ;;  %v1325_v36 = vor.u32 %v1324_v26, %v1320_v19 }
  0x48   : > { %407 = vst [vmem:[#allocation2 + $0x84] sm:$0xf] %v13327_v0  ;;  %408 = vst [vmem:[#allocation2 + $0x88] sm:$0xf] %v13327_v0  ;;  %11420 = vmatpush3.bf16.msra.mxu0 %v12603_v10  ;;  %12535 = vmatpush3.bf16.msra.mxu1 %v12603_v10  ;;  %v757_v37 = vrot.slane %v755_v28, 7  ;;  %v12608_v38 = vld [vmem:[%s15597_s1 + $0x78] sm:$0xff]  }
  0x49   : > { %409 = vst [vmem:[#allocation2 + $0x8c] sm:$0x1] %v13327_v0  ;;  %410 = vst [vmem:[#allocation2 + $0x90] sm:$0xf] %v13327_v0  ;;  %11421 = vmatprep.subr.bf16.mxu0 %v12604_v11  ;;  %12528 = vmatprep.subr.bf16.mxu1 %v12604_v11  ;;  %v752_v39 = vor.u32 %v750_v25, %v749_v32  ;;  %v753_v40 = vrot.slane %v749_v32, 4  ;;  %v12609_v45 = vld [vmem:[%s15597_s1 + $0x38] sm:$0xff]  }
  0x4a   : > { %411 = vst [vmem:[#allocation2 + $0x94] sm:$0xf] %v13327_v0  ;;  %412 = vst [vmem:[#allocation2 + $0x98] sm:$0x1] %v13327_v0  ;;  %v760_v42 = vor.u32 %v758_v29, %v757_v37  ;;  %v762_v43 = vrot.slane %v757_v37, 4  ;;  %v428_v48 = vld [vmem:[%s13612_s11] sm:$0xff] }
  0x4b   : > { %413 = vst [vmem:[#allocation2 + $0x9c] sm:$0xf] %v13327_v0  ;;  %414 = vst [vmem:[#allocation2 + $0xa0] sm:$0xf] %v13327_v0  ;;  %v429_v49 = vld [vmem:[%s13612_s11 + $0x8] sm:$0xff]  ;;  %v12616_v50 = vld [vmem:[%s15597_s1 + $0xc0] sm:$0xff]   ;;  %v11346_v52 = vpack.c.bf16 %v428_v48, %v428_v48 }
  0x4c   : > { %415 = vst [vmem:[#allocation2 + $0xa4] sm:$0x1] %v13327_v0  ;;  %416 = vst [vmem:[#allocation2 + $0xa8] sm:$0xf] %v13327_v0  ;;  %11422 = vmatpush3.bf16.msra.mxu0 %v12605_v15  ;;  %12536 = vmatpush3.bf16.msra.mxu1 %v12605_v15  ;;  %v12617_v51 = vld [vmem:[%s15597_s1 + $0x140] sm:$0xff]   ;;  %v11347_v53 = vpack.c.bf16 %v429_v49, %v429_v49  ;;  %v453_v57 = vld [vmem:[%s13612_s11 + $0xc8] sm:$0xff] }
  0x4d   : > { %417 = vst [vmem:[#allocation2 + $0xac] sm:$0xf] %v13327_v0  ;;  %418 = vst [vmem:[#allocation2 + $0xb0] sm:$0x1] %v13327_v0  ;;  %11423 = vmatprep.subr.bf16.mxu0 %v12606_v18  ;;  %12529 = vmatprep.subr.bf16.mxu1 %v12606_v18  ;;  %v452_v54 = vld [vmem:[%s13612_s11 + $0xc0] sm:$0xff]  ;;  %v560_v59 = vshrl.u32 %v11346_v52, 16  ;;  %v11371_v1 = vpack.c.bf16 %v453_v57, %v453_v57 }
  0x4e   : > { %419 = vst [vmem:[#allocation2 + $0xb4] sm:$0xf] %v13327_v0  ;;  %420 = vst [vmem:[#allocation2 + $0xb8] sm:$0xf] %v13327_v0  ;;  %v12614_v55 = vld [vmem:[#allocation2] sm:$0xff]   ;;  %v11370_v58 = vpack.c.bf16 %v452_v54, %v452_v54  ;;  %v563_v60 = vshll.u32 %v11346_v52, 16 }
  0x4f   : > { %421 = vst [vmem:[#allocation2 + $0xbc] sm:$0x1] %v13327_v0  ;;  %422 = vst [vmem:[#allocation2 + $0xc0] sm:$0xf] %v13327_v0  ;;  %v12619_v56 = vld [vmem:[%s15597_s1 + $0x100] sm:$0xff]   ;;  %v568_v61 = vshrl.u32 %v11347_v53, 16 }
  0x50   : > { %423 = vst [vmem:[#allocation2 + $0xc4] sm:$0xf] %v13327_v0  ;;  %424 = vst [vmem:[#allocation2 + $0xc8] sm:$0x1] %v13327_v0  ;;  %v963_v31 = vld [vmem:[#allocation2 + $0x90] sm:$0xf]  ;;  %11424 = vmatpush3.bf16.msra.mxu0 %v12607_v35  ;;  %12537 = vmatpush3.bf16.msra.mxu1 %v12607_v35 }
  0x51   : > { %425 = vst [vmem:[#allocation2 + $0xcc] sm:$0xf] %v13327_v0  ;;  %426 = vst [vmem:[#allocation2 + $0xd0] sm:$0xf] %v13327_v0  ;;  %v967_v34 = vld [vmem:[#allocation2 + $0x98] sm:$0x1]  ;;  %11425 = vmatprep.subr.bf16.mxu0 %v12608_v38  ;;  %12530 = vmatprep.subr.bf16.mxu1 %v12608_v38 }
  0x52   : > { %427 = vst [vmem:[#allocation2 + $0xd4] sm:$0x1] %v13327_v0  ;;  %5838 = vst [vmem:[#allocation3] sm:$0xf] %v13327_v0  ;;  %v571_v62 = vshll.u32 %v11347_v53, 16  ;;  %v764_v2 = vshrl.u32 %v11370_v58, 16 }
  0x53   : > { %5839 = vst [vmem:[#allocation3 + $0x4] sm:$0xf] %v13327_v0  ;;  %5840 = vst [vmem:[#allocation3 + $0x8] sm:$0x1] %v13327_v0  ;;  %v883_v63 = vld [vmem:[#allocation2 + $0xc] sm:$0xf] }
  0x54   : > { %5841 = vst [vmem:[#allocation3 + $0xc] sm:$0xf] %v13327_v0  ;;  %5842 = vst [vmem:[#allocation3 + $0x10] sm:$0xf] %v13327_v0  ;;  %11426 = vmatpush3.bf16.msra.mxu0 %v12609_v45  ;;  %12538 = vmatpush3.bf16.msra.mxu1 %v12609_v45  ;;  %v767_v3 = vshll.u32 %v11370_v58, 16  ;;  %v562_v4 = vrot.slane %v560_v59, 7 }
  0x55   : > { %5843 = vst [vmem:[#allocation3 + $0x14] sm:$0x1] %v13327_v0  ;;  %5844 = vst [vmem:[#allocation3 + $0x18] sm:$0xf] %v13327_v0  ;;  %11523 = vmatprep.subr.bf16.mxu1 %v12616_v50  ;;  %11635 = vmatprep.subr.bf16.mxu0 %v12617_v51  ;;  %v570_v5 = vrot.slane %v568_v61, 7  ;;  %v766_v6 = vrot.slane %v764_v2, 7 }
  0x56   : > { %5845 = vst [vmem:[#allocation3 + $0x1c] sm:$0xf] %v13327_v0  ;;  %5846 = vst [vmem:[#allocation3 + $0x20] sm:$0x1] %v13327_v0  ;;  %v772_v7 = vshrl.u32 %v11371_v1, 16  ;;  %v565_v9 = vor.u32 %v563_v60, %v562_v4  ;;  %v566_v10 = vrot.slane %v562_v4, 4 }
  0x57   : > { %5847 = vst [vmem:[#allocation3 + $0x24] sm:$0xf] %v13327_v0  ;;  %5848 = vst [vmem:[#allocation3 + $0x28] sm:$0xf] %v13327_v0  ;;  %v970_v8 = vld [vmem:[#allocation2 + $0x9c] sm:$0xf]  ;;  %v573_v11 = vor.u32 %v571_v62, %v570_v5  ;;  %v769_v14 = vor.u32 %v767_v3, %v766_v6 }
  0x58   : > { %5849 = vst [vmem:[#allocation3 + $0x2c] sm:$0x1] %v13327_v0  ;;  %5850 = vst [vmem:[#allocation3 + $0x30] sm:$0xf] %v13327_v0  ;;  %v575_v12 = vrot.slane %v570_v5, 4  ;;  %v775_v15 = vshll.u32 %v11371_v1, 16 }
  0x59   : > { %5851 = vst [vmem:[#allocation3 + $0x34] sm:$0xf] %v13327_v0  ;;  %5852 = vst [vmem:[#allocation3 + $0x38] sm:$0x1] %v13327_v0  ;;  %v770_v20 = vrot.slane %v766_v6, 4  ;;  %v774_v25 = vrot.slane %v772_v7, 7 }
  0x5a   : > { %5853 = vst [vmem:[#allocation3 + $0x3c] sm:$0xf] %v13327_v0  ;;  %5854 = vst [vmem:[#allocation3 + $0x40] sm:$0xf] %v13327_v0  ;;  %v12633_v35 = vld [vmem:[%s15597_s1 + $0x108] sm:$0xff]   ;;  %v12628_v52 = vld [vmem:[%s15597_s1 + $0xd0] sm:$0xff]  }
  0x5b   : > { %5855 = vst [vmem:[#allocation3 + $0x44] sm:$0x1] %v13327_v0  ;;  %5856 = vst [vmem:[#allocation3 + $0x48] sm:$0xf] %v13327_v0  ;;  %v779_v32 = vrot.slane %v774_v25, 4  ;;  %v455_v54 = vld [vmem:[%s13612_s11 + $0xd8] sm:$0xff] }
  0x5c   : > { %5857 = vst [vmem:[#allocation3 + $0x4c] sm:$0xf] %v13327_v0  ;;  %5858 = vst [vmem:[#allocation3 + $0x50] sm:$0x1] %v13327_v0  ;;  %v893_v59 = vld [vmem:[#allocation2 + $0x18] sm:$0xf]  ;;  %v11373_v7 = vpack.c.bf16 %v455_v54, %v455_v54 }
  0x5d   : > { %5859 = vst [vmem:[#allocation3 + $0x54] sm:$0xf] %v13327_v0  ;;  %5860 = vst [vmem:[#allocation3 + $0x58] sm:$0xf] %v13327_v0  ;;  %v12629_v60 = vld [vmem:[%s15597_s1 + $0x90] sm:$0xff]   ;;  %v12630_v3 = vld [vmem:[%s15597_s1 + $0xd8] sm:$0xff]  }
  0x5e   : > { %5861 = vst [vmem:[#allocation3 + $0x5c] sm:$0x1] %v13327_v0  ;;  %5862 = vst [vmem:[#allocation3 + $0x60] sm:$0xf] %v13327_v0  ;;  %vm1719_vm9 = vcmask 1046528   ;;  %vm6309_vm13 = vcmask 1043456  }
  0x5f   : > { %5863 = vst [vmem:[#allocation3 + $0x64] sm:$0xf] %v13327_v0  ;;  %5864 = vst [vmem:[#allocation3 + $0x68] sm:$0x1] %v13327_v0  ;;  %vm5084_vm10 = vsmask.f32 3328 }
  0x60   : > { %5865 = vst [vmem:[#allocation3 + $0x6c] sm:$0xf] %v13327_v0  ;;  %5866 = vst [vmem:[#allocation3 + $0x70] sm:$0xf] %v13327_v0  ;;  %vm5085_vm11 = vsmask.f32 7440 }
  0x61   : > { %5867 = vst [vmem:[#allocation3 + $0x74] sm:$0x1] %v13327_v0  ;;  %5868 = vst [vmem:[#allocation3 + $0x78] sm:$0xf] %v13327_v0  ;;  %vm6315_vm14 = vcmask 1040384   ;;  %s11410_s26 = sshll.u32 %s13407_s17, 12 }
  0x62   : > { %5869 = vst [vmem:[#allocation3 + $0x7c] sm:$0xf] %v13327_v0  ;;  %5870 = vst [vmem:[#allocation3 + $0x80] sm:$0x1] %v13327_v0  ;;  %s15546_s25 = scalar_lea.hbm %s15606_s10, %s11410_s26  ;;  %p15702_p9 = scmp.ne.s32.totalorder %s15612_s23, 0 }
  0x63   : > { %5871 = vst [vmem:[#allocation3 + $0x84] sm:$0xf] %v13327_v0  ;;  %5872 = vst [vmem:[#allocation3 + $0x88] sm:$0xf] %v13327_v0  ;;  %s13328_s27 = smov [#allocation8]  }
  0x64   : > { %5873 = vst [vmem:[#allocation3 + $0x8c] sm:$0x1] %v13327_v0  ;;  %5874 = vst [vmem:[#allocation3 + $0x90] sm:$0xf] %v13327_v0  ;;  %s13260_s20 = sshll.u32 %s13328_s27, 4  ;;  %s13261_s20 = int_to_ptr.vmem [resolvable:$false] %s13260_s20 }
  0x65   : > { %5875 = vst [vmem:[#allocation3 + $0x94] sm:$0xf] %v13327_v0  ;;  %5876 = vst [vmem:[#allocation3 + $0x98] sm:$0x1] %v13327_v0 }
  0x66   : > { %5877 = vst [vmem:[#allocation3 + $0x9c] sm:$0xf] %v13327_v0  ;;  %5878 = vst [vmem:[#allocation3 + $0xa0] sm:$0xf] %v13327_v0 }
  0x67   : > { %5879 = vst [vmem:[#allocation3 + $0xa4] sm:$0x1] %v13327_v0  ;;  %5880 = vst [vmem:[#allocation3 + $0xa8] sm:$0xf] %v13327_v0 }
  0x68   : > { %5881 = vst [vmem:[#allocation3 + $0xac] sm:$0xf] %v13327_v0  ;;  %5882 = vst [vmem:[#allocation3 + $0xb0] sm:$0x1] %v13327_v0 }
  0x69   : > { %5883 = vst [vmem:[#allocation3 + $0xb4] sm:$0xf] %v13327_v0  ;;  %5884 = vst [vmem:[#allocation3 + $0xb8] sm:$0xf] %v13327_v0 }
  0x6a   : > { %5885 = vst [vmem:[#allocation3 + $0xbc] sm:$0x1] %v13327_v0  ;;  %5886 = vst [vmem:[#allocation3 + $0xc0] sm:$0xf] %v13327_v0 }
  0x6b   : > { %5887 = vst [vmem:[#allocation3 + $0xc4] sm:$0xf] %v13327_v0  ;;  %5888 = vst [vmem:[#allocation3 + $0xc8] sm:$0x1] %v13327_v0 }
  0x6c   : > { %5889 = vst [vmem:[#allocation3 + $0xcc] sm:$0xf] %v13327_v0  ;;  %5890 = vst [vmem:[#allocation3 + $0xd0] sm:$0xf] %v13327_v0 }
  0x6d   : > { %5891 = vst [vmem:[#allocation3 + $0xd4] sm:$0x1] %v13327_v0  ;;  %v12611_v13 = vld [vmem:[#allocation2 + $0x8] ss:$0 sps:$4 sm:$0x11]   ;;  %vm13627_vm6 = vmor %vm556_vm0, %vm557_vm1 }
  0x6e   : > { %v1327_v21 = vshll.u32 %v12611_v13, 16  ;;  %v15620_v23 = vsel %vm13627_vm6, 4294967295, %v15619_v23  ;;  %vm13633_vm7 = vmand %vm880_vm3, %vm881_vm4  ;;  %v761_v46 = vsel %vm13627_vm6, %v753_v40, %v760_v42  ;;  %v890_v0 = vld [vmem:[#allocation2 + $0x14] sm:$0x1]  ;;  %v574_v17 = vsel %vm13627_vm6, %v566_v10, %v573_v11  ;;  %v12618_v42 = vld [vmem:[%s15597_s1 + $0x80] sm:$0xff]  }
  0x6f   : > { %15621 = vst [vmem:[#allocation11_spill] sm:$0xff] %v15620_v23  ;;  %vm13639_vm8 = vmand %vm888_vm5, %vm556_vm0  ;;  %v964_v44 = vsel %vm13633_vm7, %v752_v39, %v963_v31  ;;  %v884_v18 = vsel %vm13633_vm7, %v565_v9, %v883_v63  ;;  %v971_v26 = vsel %vm13633_vm7, %v769_v14, %v970_v8  ;;  %v777_v31 = vor.u32 %v775_v15, %v774_v25  ;;  %v430_v40 = vld [vmem:[%s13612_s11 + $0x10] sm:$0xff] }
  0x70   : > { %v1329_v27 = vrot.slane %v1327_v21, 1  ;;  %965 = vst [vmem:[#allocation2 + $0x90] sm:$0xf] %v964_v44  ;;  %v968_v47 = vsel %vm13639_vm8, %v762_v43, %v967_v34  ;;  %966 = vst.msk [vmem:[#allocation2 + $0x94] sm:$0xf] %vm880_vm3, %v761_v46  ;;  %v891_v19 = vsel %vm13639_vm8, %v575_v12, %v890_v0  ;;  %v11348_v43 = vpack.c.bf16 %v430_v40, %v430_v40  ;;  %v454_v44 = vld [vmem:[%s13612_s11 + $0xd0] sm:$0xff] }
  0x71   : > { %969 = vst [vmem:[#allocation2 + $0x98] sm:$0x1] %v968_v47  ;;  %v974_v21 = vld [vmem:[#allocation2 + $0xa4] sm:$0x1]  ;;  %885 = vst [vmem:[#allocation2 + $0xc] sm:$0xf] %v884_v18  ;;  %v778_v38 = vsel %vm13627_vm6, %v770_v20, %v777_v31  ;;  %v11372_v49 = vpack.c.bf16 %v454_v44, %v454_v44 }
  0x72   : > { %v1330_v41 = vsel %vm1318_vm2, %v1325_v36, %v1329_v27  ;;  %887 = vst.msk [vmem:[#allocation2 + $0x10] sm:$0xf] %vm880_vm3, %v574_v17  ;;  %892 = vst [vmem:[#allocation2 + $0x14] sm:$0x1] %v891_v19  ;;  %v12631_v27 = vld [vmem:[%s15597_s1 + $0x148] sm:$0xff]   ;;  %v975_v39 = vsel %vm13639_vm8, %v779_v32, %v974_v21  ;;  %v577_v53 = vshrl.u32 %v11348_v43, 16 }
  0x73   : > { %4153 = vmatprep.mubr.bf16.mxu0 %v1330_v41  ;;  %972 = vst [vmem:[#allocation2 + $0x9c] sm:$0xf] %v971_v26  ;;  %v431_v41 = vld [vmem:[%s13612_s11 + $0x18] sm:$0xff]  ;;  %973 = vst.msk [vmem:[#allocation2 + $0xa0] sm:$0xf] %vm880_vm3, %v778_v38  ;;  %v12620_v46 = vld [vmem:[%s15597_s1 + $0xc8] sm:$0xff]  }
  0x74   : > { %4154 = vmatmul.mubr.bf16.vlgmr.msra.gmra.mrb[0].mxu0 %v12614_v55  ;;  %976 = vst [vmem:[#allocation2 + $0xa4] sm:$0x1] %v975_v39  ;;  %v12621_v47 = vld [vmem:[%s15597_s1 + $0x88] sm:$0xff]   ;;  %v11349_v48 = vpack.c.bf16 %v431_v41, %v431_v41  ;;  %v580_v58 = vshll.u32 %v11348_v43, 16  ;;  %v579_v61 = vrot.slane %v577_v53, 7  ;;  %v781_v0 = vshrl.u32 %v11372_v49, 16  ;;  %vm14212_vm12 = vmor %vm5084_vm10, %vm5085_vm11 }
  0x75   : > { %11636 = vmatpush3.bf16.msra.mxu0 %v12619_v56  ;;  %v897_v12 = vld [vmem:[#allocation2 + $0x20] sm:$0x1]  ;;  %v977_v18 = vld [vmem:[#allocation2 + $0xa8] sm:$0xf]  ;;  %v12632_v26 = vld [vmem:[%s15597_s1 + $0x98] sm:$0xff]   ;;  %v792_v32 = vshll.u32 %v11373_v7, 16 }
  0x76   : > { %11637 = vmatprep.subr.bf16.mxu0 %v12631_v27  ;;  %v585_v62 = vshrl.u32 %v11349_v48, 16  ;;  %v588_v63 = vshll.u32 %v11349_v48, 16  ;;  %v582_v6 = vor.u32 %v580_v58, %v579_v61  ;;  %v583_v10 = vrot.slane %v579_v61, 4  ;;  %v432_v39 = vld [vmem:[%s13612_s11 + $0x20] sm:$0xff]  ;;  %v433_v40 = vld [vmem:[%s13612_s11 + $0x28] sm:$0xff]  ;;  %vm14548_vm15 = vmand %vm6309_vm13, %vm881_vm4 }
  0x77   : > { %v12612_v13 = vld [vmem:[#allocation2 + $0x90] sm:$0xff]   ;;  %v789_v27 = vshrl.u32 %v11373_v7, 16  ;;  %v11350_v43 = vpack.c.bf16 %v432_v39, %v432_v39  ;;  %v11351_v44 = vpack.c.bf16 %v433_v40, %v433_v40  ;;  %vm14559_vm1 = vmand %vm6315_vm14, %vm556_vm0 }
  0x78   : > { %v12613_v16 = vld [vmem:[#allocation2 + $0x98] ss:$0 sps:$4 sm:$0x11]   ;;  %v1464_v22 = vshrl.u32 %v12612_v13, 16  ;;  %v1466_v24 = vshll.u32 %v12612_v13, 16  ;;  %v12615_v37 = vld [vmem:[#allocation2 + $0x90] sm:$0xff]   ;;  %v894_v17 = vsel %vm13633_vm7, %v582_v6, %v893_v59 }
  0x79   : > { %v1471_v28 = vshll.u32 %v12613_v16, 16  ;;  %11638 = vmatpush3.bf16.msra.mxu0 %v12633_v35  ;;  %v12622_v50 = vld [vmem:[#allocation2 + $0xc] sm:$0xff]   ;;  %v12623_v51 = vld [vmem:[#allocation2 + $0x14] ss:$0 sps:$4 sm:$0x11]   ;;  %v587_v11 = vrot.slane %v585_v62, 7 }
  0x7a   : > { %v1468_v29 = vrot.slane %v1466_v24, 1  ;;  %v1332_v55 = vshrl.u32 %v12622_v50, 16  ;;  %v1334_v56 = vshll.u32 %v12622_v50, 16  ;;  %v1339_v57 = vshll.u32 %v12623_v51, 16  ;;  %v12624_v4 = vld [vmem:[#allocation2 + $0x9c] sm:$0xff]   ;;  %v12626_v9 = vld [vmem:[#allocation2 + $0xc] sm:$0xff]  }
  0x7b   : > { %v1473_v34 = vrot.slane %v1471_v28, 1  ;;  %v12625_v5 = vld [vmem:[#allocation2 + $0xa4] ss:$0 sps:$4 sm:$0x11]   ;;  %v783_v13 = vrot.slane %v781_v0, 7  ;;  %v1476_v14 = vshrl.u32 %v12624_v4, 16  ;;  %v590_v20 = vor.u32 %v588_v63, %v587_v11 }
  0x7c   : > { %v1469_v36 = vor.u32 %v1468_v29, %v1464_v22  ;;  %v1336_v1 = vrot.slane %v1334_v56, 1  ;;  %v1341_v2 = vrot.slane %v1339_v57, 1  ;;  %v1478_v15 = vshll.u32 %v12624_v4, 16  ;;  %895 = vst [vmem:[#allocation2 + $0x18] sm:$0xf] %v894_v17  ;;  %v12641_v50 = vld [vmem:[%s15597_s1 + $0xa0] sm:$0xff]  }
  0x7d   : > { %v1483_v16 = vshll.u32 %v12625_v5, 16  ;;  %v592_v21 = vrot.slane %v587_v11, 4  ;;  %v784_v22 = vshll.u32 %v11372_v49, 16  ;;  %v591_v28 = vsel %vm13627_vm6, %v583_v10, %v590_v20  ;;  %v12642_v51 = vld [vmem:[%s15597_s1 + $0xe8] sm:$0xff]   ;;  %v900_v59 = vld [vmem:[#allocation2 + $0x24] sm:$0xf] }
  0x7e   : > { %v1474_v45 = vsel %vm1318_vm2, %v1469_v36, %v1473_v34  ;;  %v1337_v8 = vor.u32 %v1336_v1, %v1332_v55  ;;  %v1480_v24 = vrot.slane %v1478_v15, 1  ;;  %v12640_v34 = vld [vmem:[%s15597_s1 + $0xe0] sm:$0xff]   ;;  %896 = vst.msk [vmem:[#allocation2 + $0x1c] sm:$0xf] %vm880_vm3, %v591_v28  ;;  %v791_v38 = vrot.slane %v789_v27, 7  ;;  %v12651_v62 = vld [vmem:[%s15597_s1 + $0x150] sm:$0xff]  }
  0x7f   : > { %4249 = vmatprep.mubr.bf16.mxu1 %v1474_v45  ;;  %v1485_v25 = vrot.slane %v1483_v16, 1  ;;  %v898_v29 = vsel %vm13639_vm8, %v592_v21, %v897_v12  ;;  %v786_v31 = vor.u32 %v784_v22, %v783_v13  ;;  %v12627_v36 = vld [vmem:[#allocation2 + $0x9c] sm:$0xff]   ;;  %v594_v53 = vshrl.u32 %v11350_v43, 16  ;;  %v12643_v63 = vld [vmem:[%s15597_s1 + $0xa8] sm:$0xff]   ;;  %v984_v5 = vld [vmem:[#allocation2 + $0xb4] sm:$0xf]  ;;  %11639 = vmatprep.subr.bf16.mxu0 %v12651_v62 }
  0x80   : > { %4250 = vmatmul.mubr.bf16.vlgmr.msra.gmra.mrb[0].mxu1 %v12615_v37  ;;  %v1342_v19 = vsel %vm1318_vm2, %v1337_v8, %v1341_v2  ;;  %v1481_v35 = vor.u32 %v1480_v24, %v1476_v14  ;;  %899 = vst [vmem:[#allocation2 + $0x20] sm:$0x1] %v898_v29  ;;  %v787_v37 = vrot.slane %v783_v13, 4  ;;  %v456_v45 = vld [vmem:[%s13612_s11 + $0xe0] sm:$0xff]  ;;  %v794_v48 = vor.u32 %v792_v32, %v791_v38  ;;  %v12650_v6 = vld [vmem:[%s15597_s1 + $0xf0] sm:$0xff]   ;;  %v12654_v29 = vld [vmem:[%s15597_s1 + $0xf8] sm:$0xff]  }
  0x81   : > { %11524 = vmatpush3.bf16.msra.mxu1 %v12618_v42  ;;  %4161 = vmatprep.mubr.bf16.mxu0 %v1342_v19  ;;  %v978_v41 = vsel %vm13633_vm7, %v786_v31, %v977_v18  ;;  %v981_v42 = vld [vmem:[#allocation2 + $0xb0] sm:$0x1]  ;;  %v796_v49 = vrot.slane %v791_v38, 4  ;;  %v597_v54 = vshll.u32 %v11350_v43, 16  ;;  %v602_v55 = vshrl.u32 %v11351_v44, 16  ;;  %v12655_v43 = vld [vmem:[%s15597_s1 + $0xb8] sm:$0xff]  }
  0x82   : > { %11525 = vmatprep.subr.bf16.mxu1 %v12620_v46  ;;  %4162 = vmatmul.mubr.bf16.gmra.mrb[4].mxu0 %v12626_v9  ;;  %v457_v46 = vld [vmem:[%s13612_s11 + $0xe8] sm:$0xff]  ;;  %979 = vst [vmem:[#allocation2 + $0xa8] sm:$0xf] %v978_v41  ;;  %v605_v56 = vshll.u32 %v11351_v44, 16  ;;  %v795_v57 = vsel %vm13627_vm6, %v787_v37, %v794_v48  ;;  %v596_v0 = vrot.slane %v594_v53, 7  ;;  %v12653_v7 = vld [vmem:[%s15597_s1 + $0x110] sm:$0xff]  }
  0x83   : > { %v982_v58 = vsel %vm13639_vm8, %v796_v49, %v981_v42  ;;  %980 = vst.msk [vmem:[#allocation2 + $0xac] sm:$0xf] %vm880_vm3, %v795_v57  ;;  %v604_v1 = vrot.slane %v602_v55, 7  ;;  %v904_v12 = vld [vmem:[#allocation2 + $0x2c] sm:$0x1]  ;;  %v12652_v16 = vld [vmem:[%s15597_s1 + $0xb0] sm:$0xff]   ;;  %11640 = vmatpush3.bf16.msra.mxu0 %v12653_v7 }
  0x84   : > { %983 = vst [vmem:[#allocation2 + $0xb0] sm:$0x1] %v982_v58  ;;  %v599_v9 = vor.u32 %v597_v54, %v596_v0  ;;  %v600_v10 = vrot.slane %v596_v0, 4  ;;  %v988_v28 = vld [vmem:[#allocation2 + $0xbc] sm:$0x1] }
  0x85   : > { %11526 = vmatpush3.bf16.msra.mxu1 %v12621_v47  ;;  %v1486_v47 = vsel %vm1318_vm2, %v1481_v35, %v1485_v25  ;;  %v12634_v8 = vld [vmem:[#allocation2 + $0x18] sm:$0xff]   ;;  %v607_v11 = vor.u32 %v605_v56, %v604_v1  ;;  %v609_v22 = vrot.slane %v604_v1, 4 }
  0x86   : > { %11527 = vmatprep.subr.bf16.mxu1 %v12628_v52  ;;  %v11374_v52 = vpack.c.bf16 %v456_v45, %v456_v45  ;;  %4257 = vmatprep.mubr.bf16.mxu1 %v1486_v47  ;;  %v1344_v17 = vshrl.u32 %v12634_v8, 16  ;;  %v1346_v18 = vshll.u32 %v12634_v8, 16  ;;  %v901_v20 = vsel %vm13633_vm7, %v599_v9, %v900_v59  ;;  %v12638_v38 = vld [vmem:[#allocation2 + $0x18] sm:$0xff]   ;;  %v907_v9 = vld [vmem:[#allocation2 + $0x30] sm:$0xf] }
  0x87   : > { %v12635_v13 = vld [vmem:[#allocation2 + $0x20] ss:$0 sps:$4 sm:$0x11]   ;;  %v608_v19 = vsel %vm13627_vm6, %v600_v10, %v607_v11  ;;  %902 = vst [vmem:[#allocation2 + $0x24] sm:$0xf] %v901_v20  ;;  %v435_v49 = vld [vmem:[%s13612_s11 + $0x38] sm:$0xff] }
  0x88   : > { %4258 = vmatmul.mubr.bf16.gmra.mrb[4].mxu1 %v12627_v36  ;;  %v798_v61 = vshrl.u32 %v11374_v52, 16  ;;  %v801_v2 = vshll.u32 %v11374_v52, 16  ;;  %v1351_v21 = vshll.u32 %v12635_v13, 16  ;;  %903 = vst.msk [vmem:[#allocation2 + $0x28] sm:$0xf] %vm880_vm3, %v608_v19  ;;  %v11353_v53 = vpack.c.bf16 %v435_v49, %v435_v49  ;;  %v12792_v30 = vld [vmem:[#allocation2 + $0x18] sm:$0xff]  }
  0x89   : > { %11528 = vmatpush3.bf16.msra.mxu1 %v12629_v60  ;;  %v11375_v60 = vpack.c.bf16 %v457_v46, %v457_v46  ;;  %v434_v46 = vld [vmem:[%s13612_s11 + $0x30] sm:$0xff] }
  0x8a   : > { %11529 = vmatprep.subr.bf16.mxu1 %v12630_v3  ;;  %v800_v3 = vrot.slane %v798_v61, 7  ;;  %v1353_v31 = vrot.slane %v1351_v21, 1  ;;  %v12636_v32 = vld [vmem:[#allocation2 + $0xa8] sm:$0xff]   ;;  %v619_v0 = vshrl.u32 %v11353_v53, 16  ;;  %v622_v1 = vshll.u32 %v11353_v53, 16  ;;  %v12663_v21 = vld [vmem:[%s15597_s1 + $0x118] sm:$0xff]  }
  0x8b   : > { %v806_v4 = vshrl.u32 %v11375_v60, 16  ;;  %v809_v15 = vshll.u32 %v11375_v60, 16  ;;  %v12637_v37 = vld [vmem:[#allocation2 + $0xb0] ss:$0 sps:$4 sm:$0x11]   ;;  %v1488_v39 = vshrl.u32 %v12636_v32, 16 }
  0x8c   : > { %v803_v14 = vor.u32 %v801_v2, %v800_v3  ;;  %v804_v24 = vrot.slane %v800_v3, 4  ;;  %v1490_v40 = vshll.u32 %v12636_v32, 16  ;;  %v1495_v45 = vshll.u32 %v12637_v37, 16  ;;  %v12639_v55 = vld [vmem:[#allocation2 + $0xa8] sm:$0xff]  }
  0x8d   : > { %11530 = vmatpush3.bf16.msra.mxu1 %v12632_v26  ;;  %v808_v25 = vrot.slane %v806_v4, 7  ;;  %v1348_v26 = vrot.slane %v1346_v18, 1  ;;  %v621_v8 = vrot.slane %v619_v0, 7 }
  0x8e   : > { %11531 = vmatprep.subr.bf16.mxu1 %v12640_v34  ;;  %v985_v27 = vsel %vm13633_vm7, %v803_v14, %v984_v5  ;;  %v905_v34 = vsel %vm13639_vm8, %v609_v22, %v904_v12  ;;  %v1492_v47 = vrot.slane %v1490_v40, 1 }
  0x8f   : > { %v811_v35 = vor.u32 %v809_v15, %v808_v25  ;;  %986 = vst [vmem:[#allocation2 + $0xb4] sm:$0xf] %v985_v27  ;;  %v1349_v36 = vor.u32 %v1348_v26, %v1344_v17  ;;  %906 = vst [vmem:[#allocation2 + $0x2c] sm:$0x1] %v905_v34  ;;  %v813_v42 = vrot.slane %v808_v25, 4  ;;  %v12644_v52 = vld [vmem:[#allocation2 + $0x24] sm:$0xff]   ;;  %v624_v14 = vor.u32 %v622_v1, %v621_v8 }
  0x90   : > { %v1493_v54 = vor.u32 %v1492_v47, %v1488_v39  ;;  %v1356_v57 = vshrl.u32 %v12644_v52, 16  ;;  %v1358_v58 = vshll.u32 %v12644_v52, 16  ;;  %v12648_v5 = vld [vmem:[#allocation2 + $0x24] sm:$0xff]   ;;  %v626_v15 = vrot.slane %v621_v8, 4  ;;  %v12662_v17 = vld [vmem:[%s15597_s1 + $0x158] sm:$0xff]  }
  0x91   : > { %11532 = vmatpush3.bf16.msra.mxu1 %v12641_v50  ;;  %v812_v41 = vsel %vm13627_vm6, %v804_v24, %v811_v35  ;;  %v1354_v44 = vsel %vm1318_vm2, %v1349_v36, %v1353_v31  ;;  %v989_v48 = vsel %vm13639_vm8, %v813_v42, %v988_v28  ;;  %v11352_v50 = vpack.c.bf16 %v434_v46, %v434_v46  ;;  %v436_v27 = vld [vmem:[%s13612_s11 + $0x40] sm:$0xff]  ;;  %v437_v31 = vld [vmem:[%s13612_s11 + $0x48] sm:$0xff]  ;;  %v914_v47 = vld [vmem:[#allocation2 + $0x3c] sm:$0xf] }
  0x92   : > { %11533 = vmatprep.subr.bf16.mxu1 %v12642_v51  ;;  %987 = vst.msk [vmem:[#allocation2 + $0xb8] sm:$0xf] %vm880_vm3, %v812_v41  ;;  %4169 = vmatprep.mubr.bf16.mxu0 %v1354_v44  ;;  %v1497_v51 = vrot.slane %v1495_v45, 1  ;;  %990 = vst [vmem:[#allocation2 + $0xbc] sm:$0x1] %v989_v48  ;;  %v1360_v62 = vrot.slane %v1358_v58, 1  ;;  %v11354_v32 = vpack.c.bf16 %v436_v27, %v436_v27 }
  0x93   : > { %4170 = vmatmul.mubr.bf16.gmra.mrb[8].mxu0 %v12638_v38  ;;  %v611_v56 = vshrl.u32 %v11352_v50, 16  ;;  %11641 = vmatprep.subr.bf16.mxu0 %v12662_v17  ;;  %v12658_v35 = vld [vmem:[#allocation2 + $0xc] sm:$0xff]   ;;  %v12661_v36 = vld [vmem:[#allocation2 + $0x8] ss:$0 sps:$4 sm:$0x11]   ;;  %v11355_v37 = vpack.c.bf16 %v437_v31, %v437_v31 }
  0x94   : > { %v1498_v59 = vsel %vm1318_vm2, %v1493_v54, %v1497_v51  ;;  %v1361_v4 = vor.u32 %v1360_v62, %v1356_v57  ;;  %11642 = vmatpush3.bf16.msra.mxu0 %v12663_v21  ;;  %v628_v39 = vshrl.u32 %v11354_v32, 16  ;;  %v1721_v41 = vrot.slane %v12661_v36, 1  ;;  %v438_v44 = vld [vmem:[%s13612_s11 + $0x50] sm:$0xff]  ;;  %v918_v48 = vld [vmem:[#allocation2 + $0x44] sm:$0x1]  ;;  %v439_v51 = vld [vmem:[%s13612_s11 + $0x58] sm:$0xff] }
  0x95   : > { %11534 = vmatpush3.bf16.msra.mxu1 %v12643_v63  ;;  %v613_v61 = vrot.slane %v611_v56, 7  ;;  %4265 = vmatprep.mubr.bf16.mxu1 %v1498_v59  ;;  %v614_v63 = vshll.u32 %v11352_v50, 16  ;;  %v631_v42 = vshll.u32 %v11354_v32, 16  ;;  %v639_v46 = vshll.u32 %v11355_v37, 16  ;;  %v12674_v27 = vld [vmem:[#allocation2 + $0x18] sm:$0xfe]  }
  0x96   : > { %11535 = vmatprep.subr.bf16.mxu1 %v12650_v6  ;;  %v12645_v60 = vld [vmem:[#allocation2 + $0x2c] ss:$0 sps:$4 sm:$0x11]   ;;  %4266 = vmatmul.mubr.bf16.gmra.mrb[8].mxu1 %v12639_v55  ;;  %v630_v45 = vrot.slane %v628_v39, 7  ;;  %v11356_v49 = vpack.c.bf16 %v438_v44, %v438_v44  ;;  %v11357_v58 = vpack.c.bf16 %v439_v51, %v439_v51 }
  0x97   : > { %v1363_v2 = vshll.u32 %v12645_v60, 16  ;;  %v616_v6 = vor.u32 %v614_v63, %v613_v61  ;;  %v617_v7 = vrot.slane %v613_v61, 4  ;;  %v12666_v61 = vld [vmem:[#allocation2 + $0x18] sm:$0xff]  }
  0x98   : > { %v633_v52 = vor.u32 %v631_v42, %v630_v45  ;;  %v634_v53 = vrot.slane %v630_v45, 4  ;;  %v645_v54 = vshrl.u32 %v11356_v49, 16  ;;  %v648_v8 = vshll.u32 %v11356_v49, 16  ;;  %v440_v45 = vld [vmem:[%s13612_s11 + $0x60] sm:$0xff] }
  0x99   : > { %11536 = vmatpush3.bf16.msra.mxu1 %v12652_v16  ;;  %v12646_v3 = vld [vmem:[#allocation2 + $0xb4] sm:$0xff]   ;;  %v1365_v10 = vrot.slane %v1363_v2, 1  ;;  %v12647_v11 = vld [vmem:[#allocation2 + $0xbc] ss:$0 sps:$4 sm:$0x11]   ;;  %v908_v20 = vsel %vm13633_vm7, %v616_v6, %v907_v9  ;;  %v625_v25 = vsel %vm13627_vm6, %v617_v7, %v624_v14  ;;  %v653_v9 = vshrl.u32 %v11357_v58, 16 }
  0x9a   : > { %11537 = vmatprep.subr.bf16.mxu1 %v12654_v29  ;;  %v1500_v12 = vshrl.u32 %v12646_v3, 16  ;;  %v1502_v13 = vshll.u32 %v12646_v3, 16  ;;  %v911_v16 = vld [vmem:[#allocation2 + $0x38] sm:$0x1]  ;;  %v1507_v19 = vshll.u32 %v12647_v11, 16  ;;  %v915_v60 = vsel %vm13633_vm7, %v633_v52, %v914_v47 }
  0x9b   : > { %v1366_v18 = vsel %vm1318_vm2, %v1361_v4, %v1365_v10  ;;  %v12649_v24 = vld [vmem:[#allocation2 + $0xb4] sm:$0xff]   ;;  %909 = vst [vmem:[#allocation2 + $0x30] sm:$0xf] %v908_v20  ;;  %v912_v26 = vsel %vm13639_vm8, %v626_v15, %v911_v16  ;;  %910 = vst.msk [vmem:[#allocation2 + $0x34] sm:$0xf] %vm880_vm3, %v625_v25  ;;  %v656_v14 = vshll.u32 %v11357_v58, 16  ;;  %v11358_v49 = vpack.c.bf16 %v440_v45, %v440_v45 }
  0x9c   : > { %4177 = vmatprep.mubr.bf16.mxu0 %v1366_v18  ;;  %v1504_v22 = vrot.slane %v1502_v13, 1  ;;  %v1509_v28 = vrot.slane %v1507_v19, 1  ;;  %913 = vst [vmem:[#allocation2 + $0x38] sm:$0x1] %v912_v26  ;;  %v12660_v29 = vld [vmem:[#allocation2] sm:$0xfe]  }
  0x9d   : > { %11538 = vmatpush3.bf16.msra.mxu1 %v12655_v43  ;;  %4178 = vmatmul.mubr.bf16.gmra.mrb[12].mxu0 %v12648_v5  ;;  %v1720_v38 = vrot.slane %v12660_v29, 1  ;;  %v636_v43 = vshrl.u32 %v11355_v37, 16  ;;  %916 = vst [vmem:[#allocation2 + $0x3c] sm:$0xf] %v915_v60  ;;  %v12668_v4 = vld [vmem:[#allocation2 + $0xc] sm:$0xfe]  }
  0x9e   : > { %v1505_v34 = vor.u32 %v1504_v22, %v1500_v12  ;;  %v647_v5 = vrot.slane %v645_v54, 7  ;;  %v12669_v7 = vld [vmem:[#allocation2 + $0x14] ss:$0 sps:$4 sm:$0x11]   ;;  %v1723_v12 = vrot.slane %v12668_v4, 1  ;;  %v655_v18 = vrot.slane %v653_v9, 7 }
  0x9f   : > { %v638_v50 = vrot.slane %v636_v43, 7  ;;  %v1722_v3 = vsel %vm1719_vm9, %v1720_v38, %v1721_v41  ;;  %v1724_v16 = vrot.slane %v12669_v7, 1  ;;  %v921_v19 = vld [vmem:[#allocation2 + $0x48] sm:$0xf]  ;;  %v925_v20 = vld [vmem:[#allocation2 + $0x50] sm:$0x1] }
  0xa0   : > { %v1510_v40 = vsel %vm1318_vm2, %v1505_v34, %v1509_v28  ;;  %v651_v13 = vrot.slane %v647_v5, 4  ;;  %v650_v17 = vor.u32 %v648_v8, %v647_v5  ;;  %v658_v22 = vor.u32 %v656_v14, %v655_v18  ;;  %v12676_v25 = vld [vmem:[%s15597_s1 + $0x160] sm:$0xff]  }
  0xa1   : > { %4273 = vmatprep.mubr.bf16.mxu1 %v1510_v40  ;;  %v641_v56 = vor.u32 %v639_v46, %v638_v50  ;;  %v643_v57 = vrot.slane %v638_v50, 4  ;;  %11643 = vmatprep.subr.bf16.mxu0 %v12676_v25  ;;  %v1725_v34 = vsel %vm1719_vm9, %v1723_v12, %v1724_v16  ;;  %v12675_v38 = vld [vmem:[#allocation2 + $0x20] ss:$0 sps:$4 sm:$0x11]   ;;  %v1726_v43 = vrot.slane %v12674_v27, 1  ;;  %v441_v46 = vld [vmem:[%s13612_s11 + $0x68] sm:$0xff] }
  0xa2   : > { %4274 = vmatmul.mubr.bf16.gmra.mrb[12].mxu1 %v12649_v24  ;;  %v12656_v55 = vld [vmem:[#allocation2 + $0x30] sm:$0xff]   ;;  %v660_v24 = vrot.slane %v655_v18, 4  ;;  %v922_v26 = vsel %vm13633_vm7, %v650_v17, %v921_v19  ;;  %v659_v29 = vsel %vm13627_vm6, %v651_v13, %v658_v22  ;;  %v12677_v40 = vld [vmem:[%s15597_s1 + $0x120] sm:$0xff]   ;;  %v1727_v44 = vrot.slane %v12675_v38, 1  ;;  %v445_v38 = vld [vmem:[%s13612_s11 + $0x88] sm:$0xff] }
  0xa3   : > { %4314 = vmatprep.mubr.bf16.mxu1 %v12658_v35  ;;  %v12657_v59 = vld [vmem:[#allocation2 + $0x38] ss:$0 sps:$4 sm:$0x11]   ;;  %v1368_v62 = vshrl.u32 %v12656_v55, 16  ;;  %v1370_v63 = vshll.u32 %v12656_v55, 16  ;;  %v642_v0 = vsel %vm13627_vm6, %v634_v53, %v641_v56  ;;  %v919_v1 = vsel %vm13639_vm8, %v643_v57, %v918_v48  ;;  %v12659_v11 = vld [vmem:[#allocation2 + $0x30] sm:$0xff]   ;;  %11644 = vmatpush3.bf16.msra.mxu0 %v12677_v40 }
  0xa4   : > { %v1375_v2 = vshll.u32 %v12657_v59, 16  ;;  %917 = vst.msk [vmem:[#allocation2 + $0x40] sm:$0xf] %vm880_vm3, %v642_v0  ;;  %920 = vst [vmem:[#allocation2 + $0x44] sm:$0x1] %v919_v1  ;;  %v926_v31 = vsel %vm13639_vm8, %v660_v24, %v925_v20  ;;  %v12672_v35 = vld [vmem:[#allocation2 + $0x24] sm:$0xff]   ;;  %v11359_v50 = vpack.c.bf16 %v441_v46, %v441_v46  ;;  %v1728_v55 = vsel %vm1719_vm9, %v1726_v43, %v1727_v44 }
  0xa5   : > { %v1372_v6 = vrot.slane %v1370_v63, 1  ;;  %923 = vst [vmem:[#allocation2 + $0x48] sm:$0xf] %v922_v26  ;;  %924 = vst.msk [vmem:[#allocation2 + $0x4c] sm:$0xf] %vm880_vm3, %v659_v29  ;;  %v662_v53 = vshrl.u32 %v11358_v49, 16  ;;  %v11363_v44 = vpack.c.bf16 %v445_v38, %v445_v38 }
  0xa6   : > { %v1377_v10 = vrot.slane %v1375_v2, 1  ;;  %927 = vst [vmem:[#allocation2 + $0x50] sm:$0x1] %v926_v31  ;;  %v928_v56 = vld [vmem:[#allocation2 + $0x54] sm:$0xf]  ;;  %v670_v63 = vshrl.u32 %v11359_v50, 16 }
  0xa7   : > { %v1373_v15 = vor.u32 %v1372_v6, %v1368_v62  ;;  %v12680_v57 = vld [vmem:[#allocation2 + $0x30] sm:$0xff]   ;;  %v664_v60 = vrot.slane %v662_v53, 7  ;;  %v673_v0 = vshll.u32 %v11359_v50, 16  ;;  %v12684_v1 = vld [vmem:[%s15597_s1 + $0x168] sm:$0xff]   ;;  %v932_v6 = vld [vmem:[#allocation2 + $0x5c] sm:$0x1] }
  0xa8   : > { %v12682_v7 = vld [vmem:[#allocation2 + $0x24] sm:$0xfe]   ;;  %v672_v9 = vrot.slane %v670_v63, 7  ;;  %11645 = vmatprep.subr.bf16.mxu0 %v12684_v1  ;;  %v935_v40 = vld [vmem:[#allocation2 + $0x60] sm:$0xf]  ;;  %v704_v53 = vshrl.u32 %v11363_v44, 16 }
  0xa9   : > { %v1378_v21 = vsel %vm1318_vm2, %v1373_v15, %v1377_v10  ;;  %v668_v5 = vrot.slane %v664_v60, 4  ;;  %v12683_v10 = vld [vmem:[#allocation2 + $0x2c] ss:$0 sps:$4 sm:$0x11]   ;;  %v1729_v14 = vrot.slane %v12682_v7, 1  ;;  %v442_v15 = vld [vmem:[%s13612_s11 + $0x70] sm:$0xff] }
  0xaa   : > { %4315 = vmatmul.mubr.bf16.vlgmr.msra.gmra.mrb[16].mxu1 %v1722_v3  ;;  %4185 = vmatprep.mubr.bf16.mxu0 %v1378_v21  ;;  %v675_v16 = vor.u32 %v673_v0, %v672_v9  ;;  %v677_v17 = vrot.slane %v672_v9, 4  ;;  %v1730_v18 = vrot.slane %v12683_v10, 1  ;;  %v11360_v19 = vpack.c.bf16 %v442_v15, %v442_v15  ;;  %v443_v21 = vld [vmem:[%s13612_s11 + $0x78] sm:$0xff] }
  0xab   : > { %4322 = vmatprep.mubr.bf16.mxu1 %v12666_v61  ;;  %4186 = vmatmul.mubr.bf16.gmra.mrb[16].mxu0 %v12659_v11  ;;  %v12664_v28 = vld [vmem:[#allocation2 + $0x3c] sm:$0xff]   ;;  %v12665_v32 = vld [vmem:[#allocation2 + $0x44] ss:$0 sps:$4 sm:$0x11]   ;;  %v665_v61 = vshll.u32 %v11358_v49, 16  ;;  %v12685_v11 = vld [vmem:[%s15597_s1 + $0x128] sm:$0xff]   ;;  %v11361_v26 = vpack.c.bf16 %v443_v21, %v443_v21 }
  0xac   : > { %v1380_v36 = vshrl.u32 %v12664_v28, 16  ;;  %v1382_v37 = vshll.u32 %v12664_v28, 16  ;;  %v1387_v39 = vshll.u32 %v12665_v32, 16  ;;  %v12667_v48 = vld [vmem:[#allocation2 + $0x3c] sm:$0xff]   ;;  %v12670_v52 = vld [vmem:[#allocation2 + $0x48] sm:$0xff]   ;;  %11646 = vmatpush3.bf16.msra.mxu0 %v12685_v11  ;;  %v676_v22 = vsel %vm13627_vm6, %v668_v5, %v675_v16  ;;  %v12699_v16 = vld [vmem:[%s15597_s1 + $0x130] sm:$0xff]  }
  0xad   : > { %v12671_v54 = vld [vmem:[#allocation2 + $0x50] ss:$0 sps:$4 sm:$0x11]   ;;  %v1392_v58 = vshrl.u32 %v12670_v52, 16  ;;  %v1394_v59 = vshll.u32 %v12670_v52, 16  ;;  %v12673_v3 = vld [vmem:[#allocation2 + $0x48] sm:$0xff]   ;;  %v667_v4 = vor.u32 %v665_v61, %v664_v60  ;;  %v933_v24 = vsel %vm13639_vm8, %v677_v17, %v932_v6 }
  0xae   : > { %v1384_v41 = vrot.slane %v1382_v37, 1  ;;  %v1389_v42 = vrot.slane %v1387_v39, 1  ;;  %v1399_v62 = vshll.u32 %v12671_v54, 16  ;;  %v1731_v25 = vsel %vm1719_vm9, %v1729_v14, %v1730_v18  ;;  %v12688_v27 = vld [vmem:[#allocation2 + $0x3c] sm:$0xff]   ;;  %931 = vst.msk [vmem:[#allocation2 + $0x58] sm:$0xf] %vm880_vm3, %v676_v22 }
  0xaf   : > { %v1396_v2 = vrot.slane %v1394_v59, 1  ;;  %v929_v13 = vsel %vm13633_vm7, %v667_v4, %v928_v56  ;;  %934 = vst [vmem:[#allocation2 + $0x5c] sm:$0x1] %v933_v24  ;;  %v679_v28 = vshrl.u32 %v11360_v19, 16  ;;  %v682_v29 = vshll.u32 %v11360_v19, 16  ;;  %v444_v37 = vld [vmem:[%s13612_s11 + $0x80] sm:$0xff] }
  0xb0   : > { %v1385_v47 = vor.u32 %v1384_v41, %v1380_v36  ;;  %v1401_v8 = vrot.slane %v1399_v62, 1  ;;  %930 = vst [vmem:[#allocation2 + $0x54] sm:$0xf] %v929_v13  ;;  %v687_v31 = vshrl.u32 %v11361_v26, 16  ;;  %v690_v32 = vshll.u32 %v11361_v26, 16  ;;  %v12698_v4 = vld [vmem:[%s15597_s1 + $0x170] sm:$0xff]  }
  0xb1   : > { %v1397_v12 = vor.u32 %v1396_v2, %v1392_v58  ;;  %v12691_v36 = vld [vmem:[#allocation2 + $0x38] ss:$0 sps:$4 sm:$0x11]   ;;  %v939_v41 = vld [vmem:[#allocation2 + $0x68] sm:$0x1]  ;;  %v11362_v43 = vpack.c.bf16 %v444_v37, %v444_v37  ;;  %v707_v62 = vshll.u32 %v11363_v44, 16  ;;  %11647 = vmatprep.subr.bf16.mxu0 %v12698_v4 }
  0xb2   : > { %4323 = vmatmul.mubr.bf16.gmra.mrb[20].mxu1 %v1725_v34  ;;  %v1390_v51 = vsel %vm1318_vm2, %v1385_v47, %v1389_v42  ;;  %v12690_v34 = vld [vmem:[#allocation2 + $0x30] sm:$0xfe]   ;;  %v689_v39 = vrot.slane %v687_v31, 7  ;;  %v1733_v47 = vrot.slane %v12691_v36, 1  ;;  %v942_v54 = vld [vmem:[#allocation2 + $0x6c] sm:$0xf]  ;;  %11648 = vmatpush3.bf16.msra.mxu0 %v12699_v16 }
  0xb3   : > { %4330 = vmatprep.mubr.bf16.mxu1 %v12672_v35  ;;  %4193 = vmatprep.mubr.bf16.mxu0 %v1390_v51  ;;  %v1402_v20 = vsel %vm1318_vm2, %v1397_v12, %v1401_v8  ;;  %v681_v35 = vrot.slane %v679_v28, 7  ;;  %v1732_v42 = vrot.slane %v12690_v34, 1  ;;  %v696_v50 = vshrl.u32 %v11362_v43, 16  ;;  %v12696_v7 = vld [vmem:[#allocation2 + $0x3c] sm:$0xfe]   ;;  %v446_v19 = vld [vmem:[%s13612_s11 + $0x90] sm:$0xff] }
  0xb4   : > { %4194 = vmatmul.mubr.bf16.gmra.mrb[20].mxu0 %v12667_v48  ;;  %v692_v48 = vor.u32 %v690_v32, %v689_v39  ;;  %v694_v49 = vrot.slane %v689_v39, 4  ;;  %v699_v51 = vshll.u32 %v11362_v43, 16  ;;  %v706_v6 = vrot.slane %v704_v53, 7  ;;  %v12697_v11 = vld [vmem:[#allocation2 + $0x44] ss:$0 sps:$4 sm:$0x11]  }
  0xb5   : > { %4201 = vmatprep.mubr.bf16.mxu0 %v1402_v20  ;;  %v684_v45 = vor.u32 %v682_v29, %v681_v35  ;;  %v685_v46 = vrot.slane %v681_v35, 4  ;;  %v1734_v59 = vsel %vm1719_vm9, %v1732_v42, %v1733_v47  ;;  %v698_v60 = vrot.slane %v696_v50, 7  ;;  %v447_v22 = vld [vmem:[%s13612_s11 + $0x98] sm:$0xff]  ;;  %v953_v44 = vld [vmem:[#allocation2 + $0x80] sm:$0x1] }
  0xb6   : > { %v940_v58 = vsel %vm13639_vm8, %v694_v49, %v939_v41  ;;  %v12679_v61 = vld [vmem:[#allocation2 + $0x5c] ss:$0 sps:$4 sm:$0x11]   ;;  %v709_v13 = vor.u32 %v707_v62, %v706_v6  ;;  %v711_v14 = vrot.slane %v706_v6, 4  ;;  %v1735_v15 = vrot.slane %v12696_v7, 1 }
  0xb7   : > { %v936_v52 = vsel %vm13633_vm7, %v684_v45, %v935_v40  ;;  %v12678_v56 = vld [vmem:[#allocation2 + $0x54] sm:$0xff]   ;;  %941 = vst [vmem:[#allocation2 + $0x68] sm:$0x1] %v940_v58  ;;  %v701_v1 = vor.u32 %v699_v51, %v698_v60  ;;  %v702_v2 = vrot.slane %v698_v60, 4  ;;  %v1411_v5 = vshll.u32 %v12679_v61, 16 }
  0xb8   : > { %937 = vst [vmem:[#allocation2 + $0x60] sm:$0xf] %v936_v52  ;;  %v1404_v63 = vshrl.u32 %v12678_v56, 16  ;;  %v1406_v0 = vshll.u32 %v12678_v56, 16  ;;  %v12681_v9 = vld [vmem:[#allocation2 + $0x54] sm:$0xff]   ;;  %v1736_v18 = vrot.slane %v12697_v11, 1  ;;  %v11364_v24 = vpack.c.bf16 %v446_v19, %v446_v19 }
  0xb9   : > { %v943_v10 = vsel %vm13633_vm7, %v701_v1, %v942_v54  ;;  %v1413_v12 = vrot.slane %v1411_v5, 1  ;;  %v710_v20 = vsel %vm13627_vm6, %v702_v2, %v709_v13  ;;  %v11365_v28 = vpack.c.bf16 %v447_v22, %v447_v22  ;;  %v949_v39 = vld [vmem:[#allocation2 + $0x78] sm:$0xf]  ;;  %v12704_v61 = vld [vmem:[#allocation2 + $0x48] sm:$0xfe]   ;;  %v448_v5 = vld [vmem:[%s13612_s11 + $0xa0] sm:$0xff] }
  0xba   : > { %4331 = vmatmul.mubr.bf16.gmra.mrb[24].mxu1 %v1728_v55  ;;  %v12694_v55 = vld [vmem:[#allocation2 + $0x48] sm:$0xff]   ;;  %v1408_v8 = vrot.slane %v1406_v0, 1  ;;  %944 = vst [vmem:[#allocation2 + $0x6c] sm:$0xf] %v943_v10  ;;  %945 = vst.msk [vmem:[#allocation2 + $0x70] sm:$0xf] %vm880_vm3, %v710_v20 }
  0xbb   : > { %4338 = vmatprep.mubr.bf16.mxu1 %v12680_v57  ;;  %v693_v57 = vsel %vm13627_vm6, %v685_v46, %v692_v48  ;;  %v713_v34 = vshrl.u32 %v11364_v24, 16  ;;  %v716_v35 = vshll.u32 %v11364_v24, 16  ;;  %v721_v37 = vshrl.u32 %v11365_v28, 16  ;;  %v12702_v40 = vld [vmem:[#allocation2 + $0x54] sm:$0xff]   ;;  %v5053_v23 = vld [vmem:[#allocation2 + $0x50] sm:$0x1] }
  0xbc   : > { %4202 = vmatmul.mubr.bf16.gmra.mrb[24].mxu0 %v12673_v3  ;;  %938 = vst.msk [vmem:[#allocation2 + $0x64] sm:$0xf] %vm880_vm3, %v693_v57  ;;  %v946_v3 = vld [vmem:[#allocation2 + $0x74] sm:$0x1]  ;;  %v1409_v17 = vor.u32 %v1408_v8, %v1404_v63  ;;  %v724_v38 = vshll.u32 %v11365_v28, 16  ;;  %v12706_v50 = vld [vmem:[%s15597_s1 + $0x178] sm:$0xff]  }
  0xbd   : > { %v947_v21 = vsel %vm13639_vm8, %v711_v14, %v946_v3  ;;  %v715_v43 = vrot.slane %v713_v34, 7  ;;  %v723_v46 = vrot.slane %v721_v37, 7  ;;  %11649 = vmatprep.subr.bf16.mxu0 %v12706_v50  ;;  %v12705_v63 = vld [vmem:[#allocation2 + $0x50] ss:$0 sps:$4 sm:$0x11]   ;;  %v1738_v1 = vrot.slane %v12704_v61, 1 }
  0xbe   : > { %948 = vst [vmem:[#allocation2 + $0x74] sm:$0x1] %v947_v21  ;;  %v12687_v29 = vld [vmem:[#allocation2 + $0x68] ss:$0 sps:$4 sm:$0x11]   ;;  %v1739_v3 = vrot.slane %v12705_v63, 1 }
  0xbf   : > { %v1423_v36 = vshll.u32 %v12687_v29, 16  ;;  %v718_v48 = vor.u32 %v716_v35, %v715_v43  ;;  %v719_v49 = vrot.slane %v715_v43, 4  ;;  %v726_v52 = vor.u32 %v724_v38, %v723_v46  ;;  %v12707_v4 = vld [vmem:[%s15597_s1 + $0x138] sm:$0xff]   ;;  %v449_v8 = vld [vmem:[%s13612_s11 + $0xa8] sm:$0xff]  ;;  %v12714_v28 = vld [vmem:[%s15597_s1 + $0x1c0] sm:$0xff]  }
  0xc0   : > { %v728_v53 = vrot.slane %v723_v46, 4  ;;  %v1740_v10 = vsel %vm1719_vm9, %v1738_v1, %v1739_v3  ;;  %11650 = vmatpush3.bf16.msra.mxu0 %v12707_v4  ;;  %v11367_v11 = vpack.c.bf16 %v449_v8, %v449_v8  ;;  %v12713_v37 = vld [vmem:[#allocation2 + $0x5c] ss:$0 sps:$4 sm:$0x11]   ;;  %11747 = vmatprep.subr.bf16.mxu1 %v12714_v28  ;;  %v12717_v50 = vld [vmem:[#allocation2 + $0xc] sm:$0xfe]  }
  0xc1   : > { %v1425_v45 = vrot.slane %v1423_v36, 1  ;;  %v12692_v51 = vld [vmem:[#allocation2 + $0x6c] sm:$0xff]   ;;  %v950_v56 = vsel %vm13633_vm7, %v718_v48, %v949_v39  ;;  %v12722_v61 = vld [vmem:[#allocation2 + $0x14] ss:$0 sps:$4 sm:$0x11]  }
  0xc2   : > { %4339 = vmatmul.mubr.bf16.gmra.mrb[28].mxu1 %v1731_v25  ;;  %v1414_v25 = vsel %vm1318_vm2, %v1409_v17, %v1413_v12  ;;  %v1428_v57 = vshrl.u32 %v12692_v51, 16  ;;  %v1430_v58 = vshll.u32 %v12692_v51, 16  ;;  %951 = vst [vmem:[#allocation2 + $0x78] sm:$0xf] %v950_v56  ;;  %v954_v60 = vsel %vm13639_vm8, %v728_v53, %v953_v44  ;;  %v12695_v7 = vld [vmem:[#allocation2 + $0x6c] sm:$0xff]  }
  0xc3   : > { %4346 = vmatprep.mubr.bf16.mxu1 %v12688_v27  ;;  %v12686_v26 = vld [vmem:[#allocation2 + $0x60] sm:$0xff]   ;;  %v1737_v27 = vsel %vm1719_vm9, %v1735_v15, %v1736_v18  ;;  %4209 = vmatprep.mubr.bf16.mxu0 %v1414_v25  ;;  %955 = vst [vmem:[#allocation2 + $0x80] sm:$0x1] %v954_v60  ;;  %v738_v16 = vshrl.u32 %v11367_v11, 16  ;;  %v741_v21 = vshll.u32 %v11367_v11, 16  ;;  %v1742_v44 = vrot.slane %v12713_v37, 1 }
  0xc4   : > { %4210 = vmatmul.mubr.bf16.gmra.mrb[28].mxu0 %v12681_v9  ;;  %v1416_v31 = vshrl.u32 %v12686_v26, 16  ;;  %v1418_v32 = vshll.u32 %v12686_v26, 16  ;;  %v12689_v42 = vld [vmem:[#allocation2 + $0x60] sm:$0xff]   ;;  %v1432_v0 = vrot.slane %v1430_v58, 1  ;;  %v11366_v9 = vpack.c.bf16 %v448_v5, %v448_v5 }
  0xc5   : > { %v12710_v12 = vld [vmem:[#allocation2 + $0x60] sm:$0xff]   ;;  %v12718_v51 = vld [vmem:[#allocation2 + $0x14] ss:$0 sps:$4 sm:$0x11]  }
  0xc6   : > { %v1420_v41 = vrot.slane %v1418_v32, 1  ;;  %v1433_v6 = vor.u32 %v1432_v0, %v1428_v57  ;;  %v730_v14 = vshrl.u32 %v11366_v9, 16  ;;  %v733_v15 = vshll.u32 %v11366_v9, 16  ;;  %v956_v17 = vld [vmem:[#allocation2 + $0x84] sm:$0xf]  ;;  %v12731_v9 = vld [vmem:[%s15597_s1 + $0x1c8] sm:$0xff]  }
  0xc7   : > { %v12712_v32 = vld [vmem:[#allocation2 + $0x54] sm:$0xfe]   ;;  %v12719_v53 = vld [vmem:[#allocation2 + $0x60] sm:$0xfe]   ;;  %v2521_v57 = vrot.slane %v12718_v51, 1 }
  0xc8   : > { %v1421_v47 = vor.u32 %v1420_v41, %v1416_v31  ;;  %v732_v19 = vrot.slane %v730_v14, 7  ;;  %v740_v31 = vrot.slane %v738_v16, 7  ;;  %v1741_v41 = vrot.slane %v12712_v32, 1  ;;  %v12720_v56 = vld [vmem:[#allocation2 + $0x68] ss:$0 sps:$4 sm:$0x11]  }
  0xc9   : > { %v1744_v58 = vrot.slane %v12719_v53, 1  ;;  %v12725_v14 = vld [vmem:[#allocation2 + $0x18] sm:$0xfe]   ;;  %v12726_v16 = vld [vmem:[#allocation2 + $0x20] ss:$0 sps:$4 sm:$0x11]  }
  0xca   : > { %4347 = vmatmul.mubr.bf16.gmra.mrb[32].mxu1 %v1734_v59  ;;  %v1426_v54 = vsel %vm1318_vm2, %v1421_v47, %v1425_v45  ;;  %v727_v59 = vsel %vm13627_vm6, %v719_v49, %v726_v52  ;;  %v12701_v20 = vld [vmem:[#allocation2 + $0x80] ss:$0 sps:$4 sm:$0x11]   ;;  %v735_v25 = vor.u32 %v733_v15, %v732_v19  ;;  %v736_v26 = vrot.slane %v732_v19, 4  ;;  %v12716_v45 = vld [vmem:[#allocation2 + $0x6c] sm:$0xff]  }
  0xcb   : > { %4354 = vmatprep.mubr.bf16.mxu1 %v12694_v55  ;;  %v12693_v55 = vld [vmem:[#allocation2 + $0x74] ss:$0 sps:$4 sm:$0x11]   ;;  %4217 = vmatprep.mubr.bf16.mxu0 %v1426_v54  ;;  %952 = vst.msk [vmem:[#allocation2 + $0x7c] sm:$0xf] %vm880_vm3, %v727_v59  ;;  %v1447_v29 = vshll.u32 %v12701_v20, 16  ;;  %v743_v39 = vor.u32 %v741_v21, %v740_v31  ;;  %v1743_v49 = vsel %vm1719_vm9, %v1741_v41, %v1742_v44 }
  0xcc   : > { %4218 = vmatmul.mubr.bf16.gmra.mrb[32].mxu0 %v12689_v42  ;;  %v1435_v62 = vshll.u32 %v12693_v55, 16  ;;  %v957_v36 = vsel %vm13633_vm7, %v735_v25, %v956_v17  ;;  %v12715_v42 = vld [vmem:[%s15597_s1 + $0x180] sm:$0xff]   ;;  %v12721_v52 = vld [vmem:[#allocation2 + $0xc] sm:$0xff]   ;;  %v2520_v55 = vrot.slane %v12717_v50, 1  ;;  %v1745_v59 = vrot.slane %v12720_v56, 1 }
  0xcd   : > { %v1449_v38 = vrot.slane %v1447_v29, 1  ;;  %958 = vst [vmem:[#allocation2 + $0x84] sm:$0xf] %v957_v36  ;;  %v744_v46 = vsel %vm13627_vm6, %v736_v26, %v743_v39  ;;  %11748 = vmatpush3.bf16.msra.mxu1 %v12715_v42  ;;  %v13913_v54 = vld [vmem:[%s15597_s1 + $0x200] sm:$0xff]   ;;  %v2123_v60 = vshll.u32 %v12721_v52, 16  ;;  %v2121_v1 = vshrl.u32 %v12721_v52, 16 }
  0xce   : > { %v1437_v2 = vrot.slane %v1435_v62, 1  ;;  %959 = vst.msk [vmem:[#allocation2 + $0x88] sm:$0xf] %vm880_vm3, %v744_v46  ;;  %12379 = vmatprep.subr.bf16.mxu0 %v13913_v54  ;;  %v1746_v0 = vsel %vm1719_vm9, %v1744_v58, %v1745_v59  ;;  %11749 = vmatprep.subr.bf16.mxu1 %v12731_v9  ;;  %v12732_v19 = vld [vmem:[%s15597_s1 + $0x188] sm:$0xff]   ;;  %v2522_v21 = vsel %vm1719_vm9, %v2520_v55, %v2521_v57  ;;  %v2524_v26 = vrot.slane %v12726_v16, 1  ;;  %v12741_v58 = vld [vmem:[#allocation2 + $0x90] sm:$0xff]  }
  0xcf   : > { %v2125_v3 = vrot.slane %v2123_v60, 1  ;;  %v12728_v25 = vld [vmem:[#allocation2 + $0x74] ss:$0 sps:$4 sm:$0x11]   ;;  %v12738_v41 = vld [vmem:[#allocation2 + $0x24] sm:$0xff]  }
  0xd0   : > { %v1438_v13 = vsel %vm1318_vm2, %v1433_v6, %v1437_v2  ;;  %v2128_v6 = vshll.u32 %v12722_v61, 16  ;;  %v1748_v28 = vrot.slane %v12728_v25, 1  ;;  %v12730_v29 = vld [vmem:[#allocation2 + $0x20] ss:$0 sps:$4 sm:$0x11]   ;;  %v12740_v44 = vld [vmem:[%s15597_s1 + $0x208] sm:$0xff]  }
  0xd1   : > { %4225 = vmatprep.mubr.bf16.mxu0 %v1438_v13  ;;  %11750 = vmatpush3.bf16.msra.mxu1 %v12732_v19  ;;  %v12739_v51 = vld [vmem:[#allocation2 + $0x2c] ss:$0 sps:$4 sm:$0x11]   ;;  %v2147_v52 = vshll.u32 %v12738_v41, 16  ;;  %v2145_v55 = vshrl.u32 %v12738_v41, 16  ;;  %v12746_v59 = vld [vmem:[#allocation2 + $0x30] sm:$0xff]  }
  0xd2   : > { %4355 = vmatmul.mubr.bf16.gmra.mrb[36].mxu1 %v1737_v27  ;;  %v12700_v18 = vld [vmem:[#allocation2 + $0x78] sm:$0xff]   ;;  %v960_v27 = vld [vmem:[#allocation2 + $0x8c] sm:$0x1]  ;;  %v2130_v13 = vrot.slane %v2128_v6, 1  ;;  %v2152_v57 = vshll.u32 %v12739_v51, 16  ;;  %v2159_v9 = vshll.u32 %v12746_v59, 16 }
  0xd3   : > { %4362 = vmatprep.mubr.bf16.mxu1 %v12702_v40  ;;  %v1440_v22 = vshrl.u32 %v12700_v18, 16  ;;  %v1442_v24 = vshll.u32 %v12700_v18, 16  ;;  %v12703_v35 = vld [vmem:[#allocation2 + $0x78] sm:$0xff]   ;;  %v745_v40 = vrot.slane %v740_v31, 4  ;;  %v2126_v31 = vor.u32 %v2125_v3, %v2121_v1  ;;  %v12757_v25 = vld [vmem:[%s15597_s1 + $0x210] sm:$0xff]  }
  0xd4   : > { %4226 = vmatmul.mubr.bf16.gmra.mrb[36].mxu0 %v12695_v7  ;;  %v12724_v62 = vld [vmem:[#allocation2 + $0x78] sm:$0xff]   ;;  %v2149_v56 = vrot.slane %v2147_v52, 1  ;;  %v2154_v61 = vrot.slane %v2152_v57, 1 }
  0xd5   : > { %v1444_v34 = vrot.slane %v1442_v24, 1  ;;  %v961_v47 = vsel %vm13639_vm8, %v745_v40, %v960_v27  ;;  %v12708_v63 = vld [vmem:[#allocation2 + $0x84] sm:$0xff]   ;;  %v12729_v7 = vld [vmem:[#allocation2 + $0x18] sm:$0xff]   ;;  %v12727_v24 = vld [vmem:[#allocation2 + $0x6c] sm:$0xfe]   ;;  %v2131_v39 = vsel %vm1318_vm2, %v2126_v31, %v2130_v13  ;;  %v2161_v13 = vrot.slane %v2159_v9, 1 }
  0xd6   : > { %962 = vst [vmem:[#allocation2 + $0x8c] sm:$0x1] %v961_v47  ;;  %v1452_v4 = vshrl.u32 %v12708_v63, 16  ;;  %v1454_v5 = vshll.u32 %v12708_v63, 16  ;;  %v12711_v11 = vld [vmem:[#allocation2 + $0x84] sm:$0xff]   ;;  %v2133_v17 = vshrl.u32 %v12729_v7, 16 }
  0xd7   : > { %v1445_v43 = vor.u32 %v1444_v34, %v1440_v22  ;;  %v2135_v18 = vshll.u32 %v12729_v7, 16  ;;  %v2523_v22 = vrot.slane %v12725_v14, 1  ;;  %v1747_v27 = vrot.slane %v12727_v24, 1  ;;  %v12735_v40 = vld [vmem:[#allocation2 + $0x2c] ss:$0 sps:$4 sm:$0x11]  }
  0xd8   : > { %v2140_v34 = vshll.u32 %v12730_v29, 16  ;;  %v12736_v46 = vld [vmem:[#allocation2 + $0x78] sm:$0xfe]   ;;  %v12737_v47 = vld [vmem:[#allocation2 + $0x80] ss:$0 sps:$4 sm:$0x11]  }
  0xd9   : > { %v1450_v48 = vsel %vm1318_vm2, %v1445_v43, %v1449_v38  ;;  %v1749_v32 = vsel %vm1719_vm9, %v1747_v27, %v1748_v28  ;;  %v2137_v36 = vrot.slane %v2135_v18, 1  ;;  %v12734_v38 = vld [vmem:[#allocation2 + $0x24] sm:$0xfe]   ;;  %v2525_v42 = vsel %vm1719_vm9, %v2523_v22, %v2524_v26  ;;  %v12747_v7 = vld [vmem:[#allocation2 + $0x38] ss:$0 sps:$4 sm:$0x11]  }
  0xda   : > { %4363 = vmatmul.mubr.bf16.gmra.mrb[40].mxu1 %v1740_v10  ;;  %4233 = vmatprep.mubr.bf16.mxu0 %v1450_v48  ;;  %v1456_v10 = vrot.slane %v1454_v5, 1  ;;  %v2142_v37 = vrot.slane %v2140_v34, 1  ;;  %v2526_v43 = vrot.slane %v12734_v38, 1  ;;  %v1751_v50 = vrot.slane %v12737_v47, 1  ;;  %v12749_v14 = vld [vmem:[%s15597_s1 + $0x190] sm:$0xff]   ;;  %v12765_v57 = vld [vmem:[%s15597_s1 + $0x1d8] sm:$0xff]  }
  0xdb   : > { %4370 = vmatprep.mubr.bf16.mxu1 %v12710_v12  ;;  %v2138_v48 = vor.u32 %v2137_v36, %v2133_v17  ;;  %v2150_v5 = vor.u32 %v2149_v56, %v2145_v55  ;;  %v12750_v17 = vld [vmem:[#allocation2 + $0x9c] sm:$0xff]   ;;  %v12753_v24 = vld [vmem:[#allocation2 + $0x90] sm:$0xfe]   ;;  %v12754_v28 = vld [vmem:[#allocation2 + $0x98] ss:$0 sps:$4 sm:$0x11]  }
  0xdc   : > { %4234 = vmatmul.mubr.bf16.gmra.mrb[40].mxu0 %v12703_v35  ;;  %v1457_v15 = vor.u32 %v1456_v10, %v1452_v4  ;;  %v12733_v35 = vld [vmem:[#allocation2 + $0x84] sm:$0xff]   ;;  %v2157_v4 = vshrl.u32 %v12746_v59, 16  ;;  %v2164_v10 = vshll.u32 %v12747_v7, 16  ;;  %v12751_v19 = vld [vmem:[#allocation2 + $0x3c] sm:$0xfe]   ;;  %v1756_v29 = vrot.slane %v12753_v24, 1 }
  0xdd   : > { %v12709_v2 = vld [vmem:[#allocation2 + $0x8c] ss:$0 sps:$4 sm:$0x11]   ;;  %v2143_v60 = vsel %vm1318_vm2, %v2138_v48, %v2142_v37  ;;  %v2532_v22 = vrot.slane %v12751_v19, 1 }
  0xde   : > { %v1459_v8 = vshll.u32 %v12709_v2, 16  ;;  %v12744_v2 = vld [vmem:[#allocation2 + $0x84] sm:$0xfe]   ;;  %v12745_v3 = vld [vmem:[#allocation2 + $0x8c] ss:$0 sps:$4 sm:$0x11]   ;;  %v2162_v26 = vor.u32 %v2161_v13, %v2157_v4 }
  0xdf   : > { %v1753_v6 = vrot.slane %v12744_v2, 1  ;;  %v2166_v16 = vrot.slane %v2164_v10, 1  ;;  %v12756_v34 = vld [vmem:[#allocation2 + $0x44] ss:$0 sps:$4 sm:$0x11]   ;;  %v12758_v36 = vld [vmem:[#allocation2 + $0xa8] sm:$0xff]  }
  0xe0   : > { %v1461_v12 = vrot.slane %v1459_v8, 1  ;;  %v1754_v8 = vrot.slane %v12745_v3, 1  ;;  %v12768_v2 = vld [vmem:[#allocation2 + $0x54] sm:$0xfe]   ;;  %v12770_v7 = vld [vmem:[#allocation2 + $0xa8] sm:$0xfe]  }
  0xe1   : > { %v2167_v37 = vsel %vm1318_vm2, %v2162_v26, %v2166_v16  ;;  %v12769_v4 = vld [vmem:[#allocation2 + $0x5c] ss:$0 sps:$4 sm:$0x11]   ;;  %v12771_v10 = vld [vmem:[#allocation2 + $0xb0] ss:$0 sps:$4 sm:$0x11]  }
  0xe2   : > { %4371 = vmatmul.mubr.bf16.gmra.mrb[44].mxu1 %v1743_v49  ;;  %v1462_v20 = vsel %vm1318_vm2, %v1457_v15, %v1461_v12  ;;  %v1750_v49 = vrot.slane %v12736_v46, 1  ;;  %v1755_v12 = vsel %vm1719_vm9, %v1753_v6, %v1754_v8  ;;  %v2155_v15 = vsel %vm1318_vm2, %v2150_v5, %v2154_v61  ;;  %v12763_v46 = vld [vmem:[#allocation2 + $0x48] sm:$0xff]   ;;  %v12766_v61 = vld [vmem:[%s15597_s1 + $0x198] sm:$0xff]  }
  0xe3   : > { %4378 = vmatprep.mubr.bf16.mxu1 %v12716_v45  ;;  %4241 = vmatprep.mubr.bf16.mxu0 %v1462_v20  ;;  %v2527_v45 = vrot.slane %v12735_v40, 1  ;;  %v12752_v20 = vld [vmem:[#allocation2 + $0x44] ss:$0 sps:$4 sm:$0x11]   ;;  %v2176_v40 = vshll.u32 %v12756_v34, 16  ;;  %v2181_v55 = vshrl.u32 %v12763_v46, 16 }
  0xe4   : > { %4242 = vmatmul.mubr.bf16.gmra.mrb[44].mxu0 %v12711_v11  ;;  %v1752_v53 = vsel %vm1719_vm9, %v1750_v49, %v1751_v50  ;;  %v12748_v11 = vld [vmem:[%s15597_s1 + $0x1d0] sm:$0xff]   ;;  %v2533_v27 = vrot.slane %v12752_v20, 1  ;;  %v12761_v49 = vld [vmem:[#allocation2 + $0x9c] sm:$0xfe]   ;;  %v2183_v56 = vshll.u32 %v12763_v46, 16  ;;  %v2538_v6 = vrot.slane %v12768_v2, 1 }
  0xe5   : > { %4475 = vmatprep.mubr.bf16.mxu0 %v2522_v21  ;;  %v2528_v63 = vsel %vm1719_vm9, %v2526_v43, %v2527_v45  ;;  %11751 = vmatprep.subr.bf16.mxu1 %v12748_v11  ;;  %v12755_v21 = vld [vmem:[#allocation2 + $0x3c] sm:$0xff]   ;;  %v2178_v43 = vrot.slane %v2176_v40, 1  ;;  %v12762_v50 = vld [vmem:[#allocation2 + $0xa4] ss:$0 sps:$4 sm:$0x11]   ;;  %v1759_v51 = vrot.slane %v12761_v49, 1 }
  0xe6   : > { %11752 = vmatpush3.bf16.msra.mxu1 %v12749_v14  ;;  %v2169_v31 = vshrl.u32 %v12755_v21, 16  ;;  %v2534_v41 = vsel %vm1719_vm9, %v2532_v22, %v2533_v27  ;;  %v1760_v52 = vrot.slane %v12762_v50, 1  ;;  %v2539_v9 = vrot.slane %v12769_v4, 1  ;;  %v12775_v20 = vld [vmem:[%s15597_s1 + $0x218] sm:$0xff]   ;;  %v12778_v26 = vld [vmem:[%s15597_s1 + $0x1a8] sm:$0xff]   ;;  %v458_v27 = vld [vmem:[%s13612_s11 + $0xf0] sm:$0xff] }
  0xe7   : > { %11753 = vmatprep.subr.bf16.mxu1 %v12765_v57  ;;  %v1762_v11 = vrot.slane %v12770_v7, 1  ;;  %v1763_v14 = vrot.slane %v12771_v10, 1  ;;  %v12790_v4 = vld [vmem:[#allocation2 + $0x6c] sm:$0xfe]   ;;  %v2924_v7 = vshll.u32 %v12792_v30, 16 }
  0xe8   : > { %v1761_v59 = vsel %vm1719_vm9, %v1759_v51, %v1760_v52  ;;  %v2540_v16 = vsel %vm1719_vm9, %v2538_v6, %v2539_v9  ;;  %v12791_v6 = vld [vmem:[#allocation2 + $0x74] ss:$0 sps:$4 sm:$0x11]   ;;  %v12793_v9 = vld [vmem:[#allocation2 + $0x20] ss:$0 sps:$4 sm:$0x11]  }
  0xe9   : > { %v2545_v10 = vrot.slane %v12791_v6, 1 }
  0xea   : > { %4379 = vmatmul.mubr.bf16.gmra.mrb[48].mxu1 %v1746_v0 }
  0xeb   : > { %4386 = vmatprep.mubr.bf16.mxu1 %v12724_v62  ;;  %v12743_v62 = vld [vmem:[#allocation2 + $0x38] ss:$0 sps:$4 sm:$0x11]   ;;  %11754 = vmatpush3.bf16.msra.mxu1 %v12766_v61 }
  0xec   : > { %4476 = vmatmul.mubr.bf16.vlgmr.msra.gmra.mrb[48].mxu0 %v2131_v39  ;;  %v2530_v1 = vrot.slane %v12743_v62, 1  ;;  %v2185_v62 = vrot.slane %v2183_v56, 1  ;;  %v12788_v61 = vld [vmem:[%s15597_s1 + $0x1f8] sm:$0xff]  }
  0xed   : > { %12380 = vmatpush3.bf16.msra.mxu0 %v13913_v54  ;;  %4483 = vmatprep.mubr.bf16.mxu0 %v2525_v42  ;;  %v12742_v54 = vld [vmem:[#allocation2 + $0x30] sm:$0xfe]   ;;  %v12759_v42 = vld [vmem:[#allocation2 + $0x48] sm:$0xfe]  }
  0xee   : > { %12381 = vmatprep.subr.bf16.mxu0 %v12740_v44  ;;  %v2529_v0 = vrot.slane %v12742_v54, 1  ;;  %v2535_v45 = vrot.slane %v12759_v42, 1  ;;  %v2186_v3 = vor.u32 %v2185_v62, %v2181_v55 }
  0xf0   : > { %v2531_v18 = vsel %vm1719_vm9, %v2529_v0, %v2530_v1  ;;  %v12772_v1 = vld [vmem:[#allocation2 + $0x54] sm:$0xff]  }
  0xf1   : > { %12382 = vmatpush3.bf16.msra.mxu0 %v12740_v44  ;;  %v12760_v44 = vld [vmem:[#allocation2 + $0x50] ss:$0 sps:$4 sm:$0x11]   ;;  %v2193_v5 = vshrl.u32 %v12772_v1, 16  ;;  %v2195_v8 = vshll.u32 %v12772_v1, 16 }
  0xf2   : > { %4387 = vmatmul.mubr.bf16.gmra.mrb[52].mxu1 %v1749_v32  ;;  %12383 = vmatprep.subr.bf16.mxu0 %v12757_v25  ;;  %v1757_v32 = vrot.slane %v12754_v28, 1  ;;  %v2536_v48 = vrot.slane %v12760_v44, 1  ;;  %v459_v28 = vld [vmem:[%s13612_s11 + $0xf8] sm:$0xff]  ;;  %s365_s11 = sand.u32 1, %s13314_s14  }
  0xf3   : > { %4394 = vmatprep.mubr.bf16.mxu1 %v12733_v35  ;;  %v2171_v35 = vshll.u32 %v12755_v21, 16  ;;  %v12776_v21 = vld [vmem:[%s15597_s1 + $0x1a0] sm:$0xff]   ;;  %s10619_s21 = sshll.u32 %s365_s11, 8  ;;  %s15555_s17 = scalar_lea.sflag [#allocation7], %s365_s11 }
  0xf4   : > { %4484 = vmatmul.mubr.bf16.gmra.mrb[52].mxu0 %v2143_v60  ;;  %v1758_v38 = vsel %vm1719_vm9, %v1756_v29, %v1757_v32  ;;  %v2537_v54 = vsel %vm1719_vm9, %v2535_v45, %v2536_v48  ;;  %v11376_v29 = vpack.c.bf16 %v458_v27, %v458_v27  ;;  %v12780_v32 = vld [vmem:[#allocation2 + $0x60] sm:$0xfe]   ;;  %v12783_v48 = vld [vmem:[#allocation2 + $0xbc] ss:$0 sps:$4 sm:$0x11]   ;;  %s15350_s29 = scalar_lea.vmem [#allocation8], %s10619_s21 }
  0xf5   : > { %4491 = vmatprep.mubr.bf16.mxu0 %v2528_v63  ;;  %12384 = vmatpush3.bf16.msra.mxu0 %v12757_v25  ;;  %v2173_v39 = vrot.slane %v2171_v35, 1  ;;  %v12767_v63 = vld [vmem:[#allocation2 + $0xb4] sm:$0xff]   ;;  %v12777_v25 = vld [vmem:[%s15597_s1 + $0x1e8] sm:$0xff]   ;;  %v2541_v42 = vrot.slane %v12780_v32, 1  ;;  %v1766_v56 = vrot.slane %v12783_v48, 1  ;;  %s10539_s30 = sshll.u32 %s15350_s29, 4  ;;  %s15548_s30 = int_to_ptr.vmem [resolvable:$true] %s10539_s30 }
  0xf6   : > { %12385 = vmatprep.subr.bf16.mxu0 %v12775_v20  ;;  %v815_v35 = vshrl.u32 %v11376_v29, 16  ;;  %v12800_v32 = vld [vmem:[#allocation2 + $0x24] sm:$0xff]   ;;  %s13256_s28 = scalar_lea.vmem %s15548_s30, 4096  ;;  %s13262_s21 = scalar_lea.vmem %s13261_s20, 8192 }
  0xf7   : > { %v2174_v47 = vor.u32 %v2173_v39, %v2169_v31  ;;  %v11377_v31 = vpack.c.bf16 %v459_v28, %v459_v28  ;;  %v12796_v28 = vld [vmem:[#allocation2 + $0x18] sm:$0xff]   ;;  %p13257_p6 = scmp.ne.s32.totalorder %s15548_s30, %s13256_s28  ;;  %p13263_p2 = scmp.lt.s32.totalorder %s15548_s30, %s13261_s20 }
  0xf8   : > { %v817_v44 = vrot.slane %v815_v35, 7  ;;  %p13264_p3 = scmp.lt.s32.totalorder %s13262_s21, %s13256_s28 }
  0xf9   : > { %12386 = vmatpush3.bf16.msra.mxu0 %v12775_v20  ;;  %v823_v39 = vshrl.u32 %v11377_v31, 16  ;;  %v826_v40 = vshll.u32 %v11377_v31, 16  ;;  %v12799_v31 = vld [vmem:[#allocation2 + $0x80] ss:$0 sps:$4 sm:$0x11]   ;;  %p13258_p10 = pnand %p13257_p6, %p15702_p9 }
  0xfa   : > { %4395 = vmatmul.mubr.bf16.gmra.mrb[56].mxu1 %v1752_v53  ;;  %v12764_v53 = vld [vmem:[#allocation2 + $0x50] ss:$0 sps:$4 sm:$0x11]   ;;  %v821_v50 = vrot.slane %v817_v44, 4  ;;  %p13265_p4 = por %p13264_p3, %p13263_p2 }
  0xfb   : > { %4402 = vmatprep.mubr.bf16.mxu1 %v12741_v58  ;;  %v2179_v58 = vsel %vm1318_vm2, %v2174_v47, %v2178_v43  ;;  %v2188_v60 = vshll.u32 %v12764_v53, 16  ;;  %v12786_v43 = vld [vmem:[%s15597_s1 + $0x1f0] sm:$0xff]   ;;  %v13983_v46 = vrot.slane %v823_v39, 7  ;;  %v2934_v39 = vshrl.u32 %v12800_v32, 16  ;;  %p13259_p12 = pneg %p13258_p10 }
  0xfc   : > { %4492 = vmatmul.mubr.bf16.gmra.mrb[56].mxu0 %v2155_v15  ;;  %v12773_v15 = vld [vmem:[#allocation2 + $0x5c] ss:$0 sps:$4 sm:$0x11]   ;;  %v12782_v47 = vld [vmem:[#allocation2 + $0xb4] sm:$0xfe]  }
  0xfd   : > { %4499 = vmatprep.mubr.bf16.mxu0 %v2531_v18  ;;  %v2190_v0 = vrot.slane %v2188_v60, 1  ;;  %v1764_v18 = vsel %vm1719_vm9, %v1762_v11, %v1763_v14  ;;  %v2200_v19 = vshll.u32 %v12773_v15, 16  ;;  %v828_v53 = vor.u32 %v826_v40, %v13983_v46  ;;  %v12785_v60 = vld [vmem:[#allocation2 + $0x68] ss:$0 sps:$4 sm:$0x11]   ;;  %p13266_p7 = pnand %p13265_p4, %p13259_p12 }
  0xfe   : > { %v1765_v55 = vrot.slane %v12782_v47, 1  ;;  %v2926_v11 = vrot.slane %v2924_v7, 1  ;;  %v2929_v14 = vshll.u32 %v12793_v9, 16  ;;  %v2936_v40 = vshll.u32 %v12800_v32, 16 }
  0xff   : > { %v2191_v13 = vsel %vm1318_vm2, %v2186_v3, %v2190_v0  ;;  %v2202_v24 = vrot.slane %v2200_v19, 1  ;;  %v2212_v0 = vshll.u32 %v12785_v60, 16  ;;  %v2922_v3 = vshrl.u32 %v12792_v30, 16  ;;  %v12809_v30 = vld [vmem:[#allocation2 + $0x84] sm:$0xff]  }
 0x100   : > { %v2931_v19 = vrot.slane %v2929_v14, 1  ;;  %v2241_v6 = vshrl.u32 %v12809_v30, 16  ;;  %v2243_v7 = vshll.u32 %v12809_v30, 16  ;;  %v12826_v30 = vld [vmem:[#allocation2 + $0x48] sm:$0xff]  }
 0x101   : > { %v2214_v2 = vrot.slane %v2212_v0, 1 }
 0x102   : > { %4403 = vmatmul.mubr.bf16.gmra.mrb[60].mxu1 %v1755_v12  ;;  %v2197_v12 = vrot.slane %v2195_v8, 1  ;;  %v2544_v8 = vrot.slane %v12790_v4, 1 }
 0x103   : > { %4410 = vmatprep.mubr.bf16.mxu1 %v12750_v17  ;;  %v12774_v17 = vld [vmem:[%s15597_s1 + $0x1e0] sm:$0xff]  }
 0x104   : > { %4500 = vmatmul.mubr.bf16.gmra.mrb[60].mxu0 %v2167_v37  ;;  %v2198_v22 = vor.u32 %v2197_v12, %v2193_v5  ;;  %11755 = vmatprep.subr.bf16.mxu1 %v12774_v17  ;;  %v12781_v37 = vld [vmem:[#allocation2 + $0x68] ss:$0 sps:$4 sm:$0x11]   ;;  %v2546_v15 = vsel %vm1719_vm9, %v2544_v8, %v2545_v10  ;;  %v12794_v17 = vld [vmem:[#allocation2 + $0x6c] sm:$0xff]  }
 0x105   : > { %4507 = vmatprep.mubr.bf16.mxu0 %v2534_v41  ;;  %11756 = vmatpush3.bf16.msra.mxu1 %v12776_v21  ;;  %v991_v41 = vld [vmem:[#allocation2 + $0xc0] sm:$0xf]  ;;  %v2542_v45 = vrot.slane %v12781_v37, 1  ;;  %v2217_v20 = vshrl.u32 %v12794_v17, 16  ;;  %v2219_v21 = vshll.u32 %v12794_v17, 16  ;;  %v2548_v37 = vrot.slane %v12799_v31, 1 }
 0x106   : > { %11757 = vmatprep.subr.bf16.mxu1 %v12777_v25  ;;  %v2203_v34 = vsel %vm1318_vm2, %v2198_v22, %v2202_v24  ;;  %v12797_v24 = vld [vmem:[%s15597_s1 + $0x220] sm:$0xff]  }
 0x107   : > { %v2543_v51 = vsel %vm1719_vm9, %v2541_v42, %v2542_v45  ;;  %12387 = vmatprep.subr.bf16.mxu0 %v12797_v24  ;;  %v12803_v45 = vld [vmem:[#allocation2 + $0x80] ss:$0 sps:$4 sm:$0x11]  }
 0x108   : > { %12388 = vmatpush3.bf16.msra.mxu0 %v12797_v24  ;;  %v12815_v17 = vld [vmem:[#allocation2 + $0x3c] sm:$0xff]  }
 0x109   : > { %11758 = vmatpush3.bf16.msra.mxu1 %v12778_v26  ;;  %v2221_v26 = vrot.slane %v2219_v21, 1 }
 0x10a   : > { %4411 = vmatmul.mubr.bf16.gmra.mrb[64].mxu1 %v1758_v38  ;;  %v12784_v38 = vld [vmem:[#allocation2 + $0x60] sm:$0xff]   ;;  %11759 = vmatprep.subr.bf16.mxu1 %v12786_v43  ;;  %v2938_v43 = vrot.slane %v2936_v40, 1 }
 0x10b   : > { %4418 = vmatprep.mubr.bf16.mxu1 %v12758_v36  ;;  %v818_v36 = vshll.u32 %v11376_v29, 16  ;;  %v2205_v52 = vshrl.u32 %v12784_v38, 16  ;;  %v2207_v57 = vshll.u32 %v12784_v38, 16  ;;  %v12798_v29 = vld [vmem:[#allocation2 + $0x78] sm:$0xfe]  }
 0x10c   : > { %4508 = vmatmul.mubr.bf16.gmra.mrb[64].mxu0 %v2179_v58  ;;  %v12787_v58 = vld [vmem:[%s15597_s1 + $0x1b0] sm:$0xff]   ;;  %v2547_v35 = vrot.slane %v12798_v29, 1  ;;  %v12801_v38 = vld [vmem:[#allocation2 + $0x2c] ss:$0 sps:$4 sm:$0x11]  }
 0x10d   : > { %4515 = vmatprep.mubr.bf16.mxu0 %v2537_v54  ;;  %v820_v49 = vor.u32 %v818_v36, %v817_v44  ;;  %v829_v54 = vsel %vm13627_vm6, %v821_v50, %v828_v53  ;;  %v2209_v62 = vrot.slane %v2207_v57, 1  ;;  %11760 = vmatpush3.bf16.msra.mxu1 %v12787_v58  ;;  %v12802_v36 = vld [vmem:[#allocation2 + $0x78] sm:$0xff]   ;;  %v2941_v44 = vshll.u32 %v12801_v38, 16  ;;  %v12804_v53 = vld [vmem:[#allocation2 + $0x24] sm:$0xff]  }
 0x10e   : > { %994 = vst.msk [vmem:[#allocation2 + $0xc4] sm:$0xf] %vm880_vm3, %v829_v54  ;;  %11761 = vmatprep.subr.bf16.mxu1 %v12788_v61  ;;  %v2549_v42 = vsel %vm1719_vm9, %v2547_v35, %v2548_v37  ;;  %v2229_v47 = vshrl.u32 %v12802_v36, 16  ;;  %v2231_v48 = vshll.u32 %v12802_v36, 16 }
 0x10f   : > { %v2210_v1 = vor.u32 %v2209_v62, %v2205_v52  ;;  %v2943_v50 = vrot.slane %v2941_v44, 1 }
 0x110   : > { %v2233_v52 = vrot.slane %v2231_v48, 1  ;;  %v12821_v48 = vld [vmem:[#allocation2 + $0xa4] ss:$0 sps:$4 sm:$0x11]  }
 0x111   : > { %v2215_v5 = vsel %vm1318_vm2, %v2210_v1, %v2214_v2 }
 0x112   : > { %4419 = vmatmul.mubr.bf16.gmra.mrb[68].mxu1 %v1761_v59  ;;  %v992_v59 = vsel %vm13633_vm7, %v820_v49, %v991_v41  ;;  %v2939_v49 = vor.u32 %v2938_v43, %v2934_v39  ;;  %v2234_v60 = vor.u32 %v2233_v52, %v2229_v47  ;;  %v12820_v43 = vld [vmem:[#allocation2 + $0x9c] sm:$0xfe]   ;;  %v2557_v52 = vrot.slane %v12821_v48, 1 }
 0x113   : > { %4426 = vmatprep.mubr.bf16.mxu1 %v12767_v63  ;;  %993 = vst [vmem:[#allocation2 + $0xc0] sm:$0xf] %v992_v59  ;;  %v12789_v63 = vld [vmem:[%s15597_s1 + $0x1b8] sm:$0xff]   ;;  %v12806_v59 = vld [vmem:[#allocation2 + $0x8c] ss:$0 sps:$4 sm:$0x11]  }
 0x114   : > { %4516 = vmatmul.mubr.bf16.gmra.mrb[68].mxu0 %v2191_v13  ;;  %11762 = vmatpush3.bf16.msra.mxu1 %v12789_v63  ;;  %v1767_v13 = vsel %vm1719_vm9, %v1765_v55, %v1766_v56  ;;  %v12805_v55 = vld [vmem:[#allocation2 + $0x84] sm:$0xfe]   ;;  %v12807_v56 = vld [vmem:[#allocation2 + $0x30] sm:$0xff]   ;;  %v2944_v57 = vsel %vm1318_vm2, %v2939_v49, %v2943_v50  ;;  %v2551_v62 = vrot.slane %v12806_v59, 1  ;;  %v2556_v49 = vrot.slane %v12820_v43, 1 }
 0x115   : > { %4523 = vmatprep.mubr.bf16.mxu0 %v2540_v16  ;;  %v2927_v16 = vor.u32 %v2926_v11, %v2922_v3  ;;  %v2550_v61 = vrot.slane %v12805_v55, 1  ;;  %v2946_v54 = vshrl.u32 %v12807_v56, 16  ;;  %v12808_v63 = vld [vmem:[#allocation2 + $0x38] ss:$0 sps:$4 sm:$0x11]   ;;  %v2948_v0 = vshll.u32 %v12807_v56, 16 }
 0x116   : > { %v2953_v4 = vshll.u32 %v12808_v63, 16  ;;  %v2245_v11 = vrot.slane %v2243_v7, 1  ;;  %v12824_v56 = vld [vmem:[#allocation2 + $0x9c] sm:$0xff]   ;;  %v12838_v43 = vld [vmem:[#allocation2 + $0x68] ss:$0 sps:$4 sm:$0x11]  }
 0x117   : > { %v2932_v25 = vsel %vm1318_vm2, %v2927_v16, %v2931_v19  ;;  %v2552_v2 = vsel %vm1719_vm9, %v2550_v61, %v2551_v62  ;;  %v2950_v3 = vrot.slane %v2948_v0, 1  ;;  %v12813_v16 = vld [vmem:[#allocation2 + $0x90] sm:$0xfe]   ;;  %v12814_v19 = vld [vmem:[#allocation2 + $0x98] ss:$0 sps:$4 sm:$0x11]  }
 0x118   : > { %v2955_v9 = vrot.slane %v2953_v4, 1  ;;  %v2553_v21 = vrot.slane %v12813_v16, 1  ;;  %v2265_v61 = vshrl.u32 %v12824_v56, 16  ;;  %v3001_v48 = vshll.u32 %v12838_v43, 16 }
 0x119   : > { %v2951_v8 = vor.u32 %v2950_v3, %v2946_v54  ;;  %v2267_v54 = vshll.u32 %v12824_v56, 16 }
 0x11a   : > { %4427 = vmatmul.mubr.bf16.gmra.mrb[72].mxu1 %v1764_v18  ;;  %v12779_v12 = vld [vmem:[#allocation2 + $0xc0] sm:$0xff]   ;;  %v12795_v18 = vld [vmem:[#allocation2 + $0x74] ss:$0 sps:$4 sm:$0x11]  }
 0x11b   : > { %4434 = vmatprep.mubr.bf16.mxu1 %v12779_v12  ;;  %v2224_v22 = vshll.u32 %v12795_v18, 16  ;;  %v12811_v12 = vld [vmem:[#allocation2 + $0x30] sm:$0xff]   ;;  %v2956_v14 = vsel %vm1318_vm2, %v2951_v8, %v2955_v9  ;;  %v2246_v18 = vor.u32 %v2245_v11, %v2241_v6  ;;  %v12832_v9 = vld [vmem:[#allocation2 + $0xa8] sm:$0xff]  }
 0x11c   : > { %4524 = vmatmul.mubr.bf16.gmra.mrb[72].mxu0 %v2203_v34  ;;  %v2222_v34 = vor.u32 %v2221_v26, %v2217_v20  ;;  %v12817_v20 = vld [vmem:[#allocation2 + $0x90] sm:$0xff]   ;;  %v12816_v26 = vld [vmem:[#allocation2 + $0x44] ss:$0 sps:$4 sm:$0x11]   ;;  %v2277_v16 = vshrl.u32 %v12832_v9, 16 }
 0x11d   : > { %4531 = vmatprep.mubr.bf16.mxu0 %v2543_v51  ;;  %v2226_v27 = vrot.slane %v2224_v22, 1  ;;  %v2236_v51 = vshll.u32 %v12803_v45, 16  ;;  %v2958_v22 = vshrl.u32 %v12815_v17, 16  ;;  %v2965_v32 = vshll.u32 %v12816_v26, 16  ;;  %v12830_v6 = vld [vmem:[#allocation2 + $0x54] sm:$0xff]  }
 0x11e   : > { %v2255_v35 = vshll.u32 %v12817_v20, 16  ;;  %v12829_v8 = vld [vmem:[#allocation2 + $0xb0] ss:$0 sps:$4 sm:$0x11]   ;;  %v2982_v11 = vshrl.u32 %v12830_v6, 16 }
 0x11f   : > { %v2227_v41 = vsel %vm1318_vm2, %v2222_v34, %v2226_v27  ;;  %v2238_v58 = vrot.slane %v2236_v51, 1  ;;  %v2960_v27 = vshll.u32 %v12815_v17, 16  ;;  %v12818_v34 = vld [vmem:[#allocation2 + $0x98] ss:$0 sps:$4 sm:$0x11]   ;;  %v2967_v38 = vrot.slane %v2965_v32, 1 }
 0x120   : > { %v2257_v39 = vrot.slane %v2255_v35, 1  ;;  %v2260_v40 = vshll.u32 %v12818_v34, 16 }
 0x121   : > { %v2239_v1 = vsel %vm1318_vm2, %v2234_v60, %v2238_v58  ;;  %v2962_v31 = vrot.slane %v2960_v27, 1  ;;  %v12825_v60 = vld [vmem:[#allocation2 + $0xa4] ss:$0 sps:$4 sm:$0x11]  }
 0x122   : > { %4435 = vmatmul.mubr.bf16.gmra.mrb[76].mxu1 %v1767_v13  ;;  %v12812_v13 = vld [vmem:[%s15597_s1 + $0x228] sm:$0xff]   ;;  %v2262_v47 = vrot.slane %v2260_v40, 1  ;;  %v2272_v0 = vshll.u32 %v12825_v60, 16  ;;  %v830_v60 = vrot.slane %v13983_v46, 4 }
 0x123   : > { %4636 = vmatprep.mubr.bf16.mxu1 %v2932_v25  ;;  %12389 = vmatprep.subr.bf16.mxu0 %v12812_v13  ;;  %v2554_v25 = vrot.slane %v12814_v19, 1  ;;  %v2963_v37 = vor.u32 %v2962_v31, %v2958_v22  ;;  %v12834_v22 = vld [vmem:[#allocation2 + $0x54] sm:$0xff]  }
 0x124   : > { %4532 = vmatmul.mubr.bf16.gmra.mrb[76].mxu0 %v2215_v5  ;;  %v12810_v5 = vld [vmem:[#allocation2 + $0x8c] ss:$0 sps:$4 sm:$0x11]   ;;  %v2274_v4 = vrot.slane %v2272_v0, 1  ;;  %v12835_v31 = vld [vmem:[#allocation2 + $0xb4] sm:$0xfe]  }
 0x125   : > { %4539 = vmatprep.mubr.bf16.mxu0 %v2546_v15  ;;  %v2248_v10 = vshll.u32 %v12810_v5, 16  ;;  %12390 = vmatpush3.bf16.msra.mxu0 %v12812_v13  ;;  %v2555_v29 = vsel %vm1719_vm9, %v2553_v21, %v2554_v25  ;;  %v2968_v44 = vsel %vm1318_vm2, %v2963_v37, %v2967_v38  ;;  %v12828_v5 = vld [vmem:[#allocation2 + $0xa8] sm:$0xfe]   ;;  %v2560_v13 = vrot.slane %v12829_v8, 1 }
 0x126   : > { %v2279_v21 = vshll.u32 %v12832_v9, 16  ;;  %v12836_v38 = vld [vmem:[#allocation2 + $0xbc] ss:$0 sps:$4 sm:$0x11]  }
 0x127   : > { %v2250_v15 = vrot.slane %v2248_v10, 1  ;;  %v2559_v10 = vrot.slane %v12828_v5, 1  ;;  %v12847_v5 = vld [vmem:[#allocation2 + $0xc0] sm:$0xff]  }
 0x128   : > { %v2281_v27 = vrot.slane %v2279_v21, 1 }
 0x129   : > { %v2251_v24 = vsel %vm1318_vm2, %v2246_v18, %v2250_v15  ;;  %v2984_v15 = vshll.u32 %v12830_v6, 16  ;;  %v2561_v17 = vsel %vm1719_vm9, %v2559_v10, %v2560_v13  ;;  %v2303_v10 = vshll.u32 %v12847_v5, 16 }
 0x12a   : > { %4637 = vmatmul.mubr.bf16.vlgmr.msra.gmra.mrb[80].mxu1 %v12796_v28  ;;  %v2253_v28 = vshrl.u32 %v12817_v20, 16  ;;  %v12833_v20 = vld [vmem:[#allocation2 + $0xb0] ss:$0 sps:$4 sm:$0x11]   ;;  %v2282_v35 = vor.u32 %v2281_v27, %v2277_v16 }
 0x12b   : > { %4644 = vmatprep.mubr.bf16.mxu1 %v2944_v57  ;;  %v2558_v57 = vsel %vm1719_vm9, %v2556_v49, %v2557_v52  ;;  %v2986_v18 = vrot.slane %v2984_v15, 1  ;;  %v12840_v49 = vld [vmem:[#allocation2 + $0xbc] ss:$0 sps:$4 sm:$0x11]   ;;  %v12841_v52 = vld [vmem:[#allocation2 + $0x60] sm:$0xff]   ;;  %v12849_v15 = vld [vmem:[#allocation2 + $0x6c] sm:$0xff]  }
 0x12c   : > { %4540 = vmatmul.mubr.bf16.gmra.mrb[80].mxu0 %v2227_v41  ;;  %v12819_v41 = vld [vmem:[#allocation2 + $0x3c] sm:$0xff]   ;;  %v2258_v45 = vor.u32 %v2257_v39, %v2253_v28  ;;  %v2284_v28 = vshll.u32 %v12833_v20, 16  ;;  %v2562_v39 = vrot.slane %v12835_v31, 1  ;;  %v2296_v56 = vshll.u32 %v12840_v49, 16 }
 0x12d   : > { %4547 = vmatprep.mubr.bf16.mxu0 %v2549_v42  ;;  %v12822_v42 = vld [vmem:[#allocation2 + $0x48] sm:$0xff]   ;;  %v2987_v25 = vor.u32 %v2986_v18, %v2982_v11 }
 0x12e   : > { %v2970_v50 = vshrl.u32 %v12822_v42, 16  ;;  %v2263_v51 = vsel %vm1318_vm2, %v2258_v45, %v2262_v47  ;;  %v2972_v55 = vshll.u32 %v12822_v42, 16  ;;  %v2286_v37 = vrot.slane %v2284_v28, 1  ;;  %v12839_v45 = vld [vmem:[#allocation2 + $0xb4] sm:$0xff]  }
 0x12f   : > { %v2563_v42 = vrot.slane %v12836_v38, 1 }
 0x130   : > { %v2974_v58 = vrot.slane %v2972_v55, 1  ;;  %v3003_v55 = vrot.slane %v3001_v48, 1  ;;  %v12854_v48 = vld [vmem:[#allocation2 + $0x78] sm:$0xff]  }
 0x131   : > { %v2564_v47 = vsel %vm1719_vm9, %v2562_v39, %v2563_v42 }
 0x132   : > { %4645 = vmatmul.mubr.bf16.gmra.mrb[84].mxu1 %v12804_v53  ;;  %v12823_v53 = vld [vmem:[#allocation2 + $0x50] ss:$0 sps:$4 sm:$0x11]   ;;  %v2975_v62 = vor.u32 %v2974_v58, %v2970_v50  ;;  %v2289_v50 = vshrl.u32 %v12839_v45, 16  ;;  %v12842_v58 = vld [vmem:[%s15597_s1 + $0x238] sm:$0xff]  }
 0x133   : > { %4652 = vmatprep.mubr.bf16.mxu1 %v2956_v14  ;;  %v2977_v59 = vshll.u32 %v12823_v53, 16  ;;  %v12831_v14 = vld [vmem:[#allocation2 + $0x5c] ss:$0 sps:$4 sm:$0x11]  }
 0x134   : > { %4548 = vmatmul.mubr.bf16.gmra.mrb[84].mxu0 %v2239_v1  ;;  %v2269_v1 = vrot.slane %v2267_v54, 1  ;;  %v2989_v19 = vshll.u32 %v12831_v14, 16  ;;  %v2301_v14 = vshrl.u32 %v12847_v5, 16 }
 0x135   : > { %4555 = vmatprep.mubr.bf16.mxu0 %v2552_v2  ;;  %v2979_v63 = vrot.slane %v2977_v59, 1  ;;  %v12827_v2 = vld [vmem:[%s15597_s1 + $0x230] sm:$0xff]  }
 0x136   : > { %v2270_v7 = vor.u32 %v2269_v1, %v2265_v61  ;;  %12391 = vmatprep.subr.bf16.mxu0 %v12827_v2  ;;  %v2991_v26 = vrot.slane %v2989_v19, 1  ;;  %v995_v61 = vld [vmem:[#allocation2 + $0xc8] sm:$0x1] }
 0x137   : > { %v2980_v3 = vsel %vm1318_vm2, %v2975_v62, %v2979_v63  ;;  %12392 = vmatpush3.bf16.msra.mxu0 %v12827_v2  ;;  %v2298_v62 = vrot.slane %v2296_v56, 1  ;;  %v996_v1 = vsel %vm13639_vm8, %v830_v60, %v995_v61  ;;  %v12843_v2 = vld [vmem:[#allocation2 + $0xc0] sm:$0xfe]  }
 0x138   : > { %v2992_v34 = vsel %vm1318_vm2, %v2987_v25, %v2991_v26  ;;  %12393 = vmatprep.subr.bf16.mxu0 %v12842_v58  ;;  %997 = vst [vmem:[#allocation2 + $0xc8] sm:$0x1] %v996_v1  ;;  %v2565_v9 = vrot.slane %v12843_v2, 1 }
 0x13a   : > { %4653 = vmatmul.mubr.bf16.gmra.mrb[88].mxu1 %v12811_v12  ;;  %v2275_v12 = vsel %vm1318_vm2, %v2270_v7, %v2274_v4  ;;  %v12846_v4 = vld [vmem:[#allocation2 + $0x74] ss:$0 sps:$4 sm:$0x11]  }
 0x13b   : > { %4660 = vmatprep.mubr.bf16.mxu1 %v2968_v44  ;;  %12394 = vmatpush3.bf16.msra.mxu0 %v12842_v58  ;;  %v3013_v8 = vshll.u32 %v12846_v4, 16  ;;  %v12857_v4 = vld [vmem:[#allocation2 + $0x84] sm:$0xff]  }
 0x13c   : > { %4556 = vmatmul.mubr.bf16.gmra.mrb[88].mxu0 %v2251_v24  ;;  %v3030_v5 = vshrl.u32 %v12857_v4, 16 }
 0x13d   : > { %4563 = vmatprep.mubr.bf16.mxu0 %v2555_v29  ;;  %v12837_v29 = vld [vmem:[#allocation2 + $0x60] sm:$0xff]   ;;  %v3015_v33 = vrot.slane %v3013_v8, 1  ;;  %v12859_v8 = vld [vmem:[#allocation2 + $0x30] sm:$0xfe]  }
 0x13e   : > { %v2994_v40 = vshrl.u32 %v12837_v29, 16  ;;  %v2996_v44 = vshll.u32 %v12837_v29, 16 }
 0x13f   : > { %v12844_v26 = vld [vmem:[#allocation2 + $0xc8] ss:$0 sps:$4 sm:$0x11]  }
 0x140   : > { %v12848_v31 = vld [vmem:[#allocation2 + $0xc8] ss:$0 sps:$4 sm:$0x11]  }
 0x141   : > { %v2308_v39 = vshll.u32 %v12848_v31, 16 }
 0x142   : > { %4661 = vmatmul.mubr.bf16.gmra.mrb[92].mxu1 %v12819_v41  ;;  %v2287_v41 = vsel %vm1318_vm2, %v2282_v35, %v2286_v37  ;;  %v2566_v35 = vrot.slane %v12844_v26, 1 }
 0x143   : > { %4668 = vmatprep.mubr.bf16.mxu1 %v2980_v3  ;;  %v12845_v3 = vld [vmem:[#allocation2 + $0x6c] sm:$0xff]  }
 0x144   : > { %4564 = vmatmul.mubr.bf16.gmra.mrb[92].mxu0 %v2263_v51  ;;  %v2291_v51 = vshll.u32 %v12839_v45, 16  ;;  %v3006_v6 = vshrl.u32 %v12845_v3, 16  ;;  %v3008_v7 = vshll.u32 %v12845_v3, 16  ;;  %v2567_v43 = vsel %vm1719_vm9, %v2565_v9, %v2566_v35  ;;  %v12853_v45 = vld [vmem:[#allocation2 + $0x20] ss:$0 sps:$4 sm:$0x11]  }
 0x145   : > { %4571 = vmatprep.mubr.bf16.mxu0 %v2558_v57 }
 0x146   : > { %v2293_v57 = vrot.slane %v2291_v51, 1  ;;  %v3010_v13 = vrot.slane %v3008_v7, 1 }
 0x147   : > { %v14019_v36 = vpop.f32.mrb[0].mxu0 }
 0x148   : > { %v11428_v24 = vpop.f32.mrb[1].mxu0  ;;  %v2294_v0 = vor.u32 %v2293_v57, %v2289_v50  ;;  %v3011_v20 = vor.u32 %v3010_v13, %v3006_v6  ;;  %v3322_v50 = vrot.slane %v12853_v45, 1  ;;  %v3032_v6 = vshll.u32 %v12857_v4, 16 }
 0x149   : > { %v14031_v32 = vadd.f32 %v11428_v24, %v14019_v36  ;;  %v2998_v36 = vrot.slane %v2996_v44, 1  ;;  %v11430_v59 = vpop.f32.mrb[2].mxu0 }
 0x14a   : > { %4669 = vmatmul.mubr.bf16.gmra.mrb[96].mxu1 %v12826_v30  ;;  %v11431_v63 = vpop.f32.mrb[3].mxu0  ;;  %v2299_v46 = vsel %vm1318_vm2, %v2294_v0, %v2298_v62  ;;  %v3016_v29 = vsel %vm1318_vm2, %v3011_v20, %v3015_v33  ;;  %v3034_v33 = vrot.slane %v3032_v6, 1  ;;  %v12869_v6 = vld [vmem:[#allocation2 + $0x54] sm:$0xfe]  }
 0x14b   : > { %4676 = vmatprep.mubr.bf16.mxu1 %v2992_v34  ;;  %v2999_v53 = vor.u32 %v2998_v36, %v2994_v40  ;;  %v14041_v30 = vadd.f32 %v11431_v63, %v11430_v59 }
 0x14c   : > { %4572 = vmatmul.mubr.bf16.gmra.mrb[96].mxu0 %v2275_v12  ;;  %v12850_v12 = vld [vmem:[#allocation2 + $0x78] sm:$0xff]  }
 0x14d   : > { %4579 = vmatprep.mubr.bf16.mxu0 %v2561_v17  ;;  %v3004_v54 = vsel %vm1318_vm2, %v2999_v53, %v3003_v55  ;;  %v2305_v17 = vrot.slane %v2303_v10, 1  ;;  %v3018_v24 = vshrl.u32 %v12850_v12, 16  ;;  %v3020_v25 = vshll.u32 %v12850_v12, 16  ;;  %v12855_v53 = vld [vmem:[#allocation2 + $0x24] sm:$0xfe]  }
 0x14e   : > { %v12856_v55 = vld [vmem:[#allocation2 + $0x2c] ss:$0 sps:$4 sm:$0x11]  }
 0x14f   : > { %v3022_v34 = vrot.slane %v3020_v25, 1  ;;  %v2306_v38 = vor.u32 %v2305_v17, %v2301_v14  ;;  %v3325_v62 = vrot.slane %v12856_v55, 1  ;;  %v12866_v55 = vld [vmem:[#allocation2 + $0x48] sm:$0xfe]  }
 0x151   : > { %v3023_v40 = vor.u32 %v3022_v34, %v3018_v24  ;;  %v12862_v24 = vld [vmem:[#allocation2 + $0x3c] sm:$0xfe]  }
 0x152   : > { %4677 = vmatmul.mubr.bf16.gmra.mrb[100].mxu1 %v12834_v22  ;;  %v12851_v22 = vld [vmem:[#allocation2 + $0x80] ss:$0 sps:$4 sm:$0x11]  }
 0x153   : > { %4684 = vmatprep.mubr.bf16.mxu1 %v3004_v54  ;;  %v3025_v37 = vshll.u32 %v12851_v22, 16  ;;  %v11499_v42 = vpop.f32.mrb[0].mxu1  ;;  %v3324_v54 = vrot.slane %v12855_v53, 1  ;;  %v3035_v22 = vor.u32 %v3034_v33, %v3030_v5  ;;  %v3336_v33 = vrot.slane %v12869_v6, 1 }
 0x154   : > { %4580 = vmatmul.mubr.bf16.gmra.mrb[100].mxu0 %v2287_v41  ;;  %v12852_v41 = vld [vmem:[#allocation2 + $0x18] sm:$0xfe]   ;;  %v11500_v57 = vpop.f32.mrb[1].mxu1 }
 0x155   : > { %4587 = vmatprep.mubr.bf16.mxu0 %v2564_v47  ;;  %v11433_v11 = vpop.f32.mrb[4].mxu0  ;;  %v3027_v44 = vrot.slane %v3025_v37, 1  ;;  %v2310_v47 = vrot.slane %v2308_v39, 1  ;;  %v3321_v36 = vrot.slane %v12852_v41, 1  ;;  %v14057_v59 = vadd.f32 %v11500_v57, %v11499_v42  ;;  %v11502_v61 = vpop.f32.mrb[2].mxu1  ;;  %v12864_v37 = vld [vmem:[#allocation2 + $0x90] sm:$0xff]  }
 0x156   : > { %v11434_v16 = vpop.f32.mrb[5].mxu0  ;;  %v11503_v0 = vpop.f32.mrb[3].mxu1  ;;  %v3326_v10 = vsel %vm1719_vm9, %v3324_v54, %v3325_v62  ;;  %v3330_v39 = vrot.slane %v12862_v24, 1  ;;  %v12871_v24 = vld [vmem:[#allocation2 + $0x9c] sm:$0xff]  }
 0x157   : > { %v14046_v18 = vadd.f32 %v11434_v16, %v11433_v11  ;;  %v11436_v19 = vpop.f32.mrb[6].mxu0  ;;  %v3028_v49 = vsel %vm1318_vm2, %v3023_v40, %v3027_v44  ;;  %v3323_v58 = vsel %vm1719_vm9, %v3321_v36, %v3322_v50  ;;  %v14061_v2 = vadd.f32 %v11503_v0, %v11502_v61  ;;  %v12860_v11 = vld [vmem:[#allocation2 + $0x38] ss:$0 sps:$4 sm:$0x11]   ;;  %v12861_v16 = vld [vmem:[#allocation2 + $0x84] sm:$0xff]  }
 0x158   : > { %v11437_v21 = vpop.f32.mrb[7].mxu0  ;;  %v3044_v50 = vshll.u32 %v12864_v37, 16  ;;  %v12867_v61 = vld [vmem:[#allocation2 + $0x50] ss:$0 sps:$4 sm:$0x11]  }
 0x159   : > { %v14048_v27 = vadd.f32 %v11437_v21, %v11436_v19  ;;  %v3328_v19 = vrot.slane %v12860_v11, 1  ;;  %v3334_v4 = vrot.slane %v12867_v61, 1  ;;  %v12877_v61 = vld [vmem:[#allocation2 + $0x74] ss:$0 sps:$4 sm:$0x11]  }
 0x15a   : > { %4685 = vmatmul.mubr.bf16.gmra.mrb[104].mxu1 %v12841_v52  ;;  %v2311_v52 = vsel %vm1318_vm2, %v2306_v38, %v2310_v47  ;;  %v3343_v6 = vrot.slane %v12877_v61, 1 }
 0x15b   : > { %4692 = vmatprep.mubr.bf16.mxu1 %v3016_v29  ;;  %v11505_v3 = vpop.f32.mrb[4].mxu1  ;;  %v12863_v29 = vld [vmem:[#allocation2 + $0x44] ss:$0 sps:$4 sm:$0x11]  }
 0x15c   : > { %4588 = vmatmul.mubr.bf16.gmra.mrb[104].mxu0 %v2299_v46  ;;  %v12858_v46 = vld [vmem:[#allocation2 + $0x8c] ss:$0 sps:$4 sm:$0x11]   ;;  %v11506_v9 = vpop.f32.mrb[5].mxu1 }
 0x15d   : > { %4595 = vmatprep.mubr.bf16.mxu0 %v2567_v43  ;;  %v3037_v7 = vshll.u32 %v12858_v46, 16  ;;  %v14064_v12 = vadd.f32 %v11506_v9, %v11505_v3  ;;  %v11508_v13 = vpop.f32.mrb[6].mxu1  ;;  %v3331_v43 = vrot.slane %v12863_v29, 1  ;;  %v3333_v3 = vrot.slane %v12866_v55, 1 }
 0x15e   : > { %v11509_v17 = vpop.f32.mrb[7].mxu1 }
 0x15f   : > { %v3039_v14 = vrot.slane %v3037_v7, 1  ;;  %v14066_v20 = vadd.f32 %v11509_v17, %v11508_v13  ;;  %v12870_v7 = vld [vmem:[#allocation2 + $0x5c] ss:$0 sps:$4 sm:$0x11]  }
 0x161   : > { %v3040_v38 = vsel %vm1318_vm2, %v3035_v22, %v3039_v14  ;;  %v3337_v14 = vrot.slane %v12870_v7, 1 }
 0x162   : > { %4693 = vmatmul.mubr.bf16.gmra.mrb[108].mxu1 %v12849_v15  ;;  %v3327_v15 = vrot.slane %v12859_v8, 1 }
 0x163   : > { %4700 = vmatprep.mubr.bf16.mxu1 %v3028_v49  ;;  %v3042_v49 = vshrl.u32 %v12864_v37, 16  ;;  %v3056_v37 = vshll.u32 %v12871_v24, 16 }
 0x164   : > { %4596 = vmatmul.mubr.bf16.gmra.mrb[108].mxu0 %v2311_v52  ;;  %v3046_v52 = vrot.slane %v3044_v50, 1 }
 0x165   : > { %12395 = vmatprep.mubr.bf16.mxu0 %v3323_v58  ;;  %v12868_v58 = vld [vmem:[#allocation2 + $0x90] sm:$0xff]  }
 0x166   : > { %v11439_v28 = vpop.f32.mrb[8].mxu0 }
 0x167   : > { %v11440_v51 = vpop.f32.mrb[9].mxu0 }
 0x168   : > { %v14054_v56 = vadd.f32 %v11440_v51, %v11439_v28  ;;  %v11442_v60 = vpop.f32.mrb[10].mxu0  ;;  %v3329_v28 = vsel %vm1719_vm9, %v3327_v15, %v3328_v19  ;;  %v3332_v51 = vsel %vm1719_vm9, %v3330_v39, %v3331_v43  ;;  %v12873_v39 = vld [vmem:[#allocation2 + $0x60] sm:$0xfe]  }
 0x169   : > { %v11443_v63 = vpop.f32.mrb[11].mxu0  ;;  %v11511_v25 = vpop.f32.mrb[8].mxu1 }
 0x16a   : > { %v14059_v1 = vadd.f32 %v11443_v63, %v11442_v60  ;;  %4701 = vmatmul.mubr.bf16.gmra.mrb[112].mxu1 %v12854_v48  ;;  %v11512_v34 = vpop.f32.mrb[9].mxu1  ;;  %v12865_v48 = vld [vmem:[#allocation2 + $0x98] ss:$0 sps:$4 sm:$0x11]   ;;  %v3047_v63 = vor.u32 %v3046_v52, %v3042_v49  ;;  %v12875_v49 = vld [vmem:[#allocation2 + $0x9c] sm:$0xff]  }
 0x16b   : > { %v14072_v40 = vadd.f32 %v11512_v34, %v11511_v25  ;;  %v11514_v41 = vpop.f32.mrb[10].mxu1  ;;  %4708 = vmatprep.mubr.bf16.mxu1 %v3040_v38  ;;  %v3049_v53 = vshll.u32 %v12865_v48, 16  ;;  %v12872_v25 = vld [vmem:[#allocation2 + $0xa4] ss:$0 sps:$4 sm:$0x11]   ;;  %v3339_v48 = vrot.slane %v12873_v39, 1 }
 0x16c   : > { %12396 = vmatmul.mubr.bf16.vlgmr.msra.gmra.mrb[112].mxu0 %v3326_v10  ;;  %v11515_v45 = vpop.f32.mrb[11].mxu1  ;;  %v3335_v10 = vsel %vm1719_vm9, %v3333_v3, %v3334_v4  ;;  %v3061_v38 = vshll.u32 %v12872_v25, 16 }
 0x16d   : > { %12399 = vmatprep.mubr.bf16.mxu0 %v3329_v28  ;;  %v14076_v47 = vadd.f32 %v11515_v45, %v11514_v41  ;;  %v3051_v0 = vrot.slane %v3049_v53, 1  ;;  %v12874_v41 = vld [vmem:[#allocation2 + $0x68] ss:$0 sps:$4 sm:$0x11]   ;;  %v3058_v45 = vrot.slane %v3056_v37, 1 }
 0x16e   : > { %v12884_v37 = vld [vmem:[#allocation2 + $0x8c] ss:$0 sps:$4 sm:$0x11]  }
 0x16f   : > { %v3052_v5 = vsel %vm1318_vm2, %v3047_v63, %v3051_v0  ;;  %v12878_v0 = vld [vmem:[#allocation2 + $0xa8] sm:$0xff]  }
 0x170   : > { %v11445_v21 = vpop.f32.mrb[12].mxu0 }
 0x171   : > { %v11446_v26 = vpop.f32.mrb[13].mxu0 }
 0x172   : > { %v14069_v31 = vadd.f32 %v11446_v26, %v11445_v21  ;;  %v11448_v35 = vpop.f32.mrb[14].mxu0  ;;  %4709 = vmatmul.mubr.bf16.gmra.mrb[116].mxu1 %v12861_v16  ;;  %v3338_v26 = vsel %vm1719_vm9, %v3336_v33, %v3337_v14 }
 0x173   : > { %v11449_v42 = vpop.f32.mrb[15].mxu0  ;;  %4716 = vmatprep.mubr.bf16.mxu1 %v3052_v5 }
 0x174   : > { %v14074_v44 = vadd.f32 %v11449_v42, %v11448_v35  ;;  %12400 = vmatmul.mubr.bf16.gmra.mrb[116].mxu0 %v3332_v51  ;;  %v3054_v35 = vshrl.u32 %v12871_v24, 16  ;;  %v3340_v51 = vrot.slane %v12874_v41, 1 }
 0x175   : > { %v11517_v36 = vpop.f32.mrb[12].mxu1  ;;  %12403 = vmatprep.mubr.bf16.mxu0 %v3335_v10 }
 0x176   : > { %v11518_v57 = vpop.f32.mrb[13].mxu1  ;;  %v3059_v53 = vor.u32 %v3058_v45, %v3054_v35  ;;  %v12883_v35 = vld [vmem:[#allocation2 + $0x84] sm:$0xfe]  }
 0x177   : > { %v14079_v54 = vadd.f32 %v11518_v57, %v11517_v36  ;;  %v11520_v62 = vpop.f32.mrb[14].mxu1  ;;  %v3063_v36 = vrot.slane %v3061_v38, 1 }
 0x178   : > { %v11521_v46 = vpop.f32.mrb[15].mxu1 }
 0x179   : > { %v14082_v8 = vadd.f32 %v11521_v46, %v11520_v62  ;;  %v3064_v3 = vsel %vm1318_vm2, %v3059_v53, %v3063_v36  ;;  %v3349_v36 = vrot.slane %v12884_v37, 1 }
 0x17a   : > { %4717 = vmatmul.mubr.bf16.gmra.mrb[120].mxu1 %v12868_v58 }
 0x17b   : > { %4724 = vmatprep.mubr.bf16.mxu1 %v3064_v3  ;;  %v12887_v3 = vld [vmem:[#allocation2 + $0x90] sm:$0xfe]  }
 0x17c   : > { %12404 = vmatmul.mubr.bf16.gmra.mrb[120].mxu0 %v3338_v26 }
 0x17d   : > { %v11539_v9 = vpop.f32.mrb[16].mxu1 }
 0x17e   : > { %v11451_v60 = vpop.f32.mrb[16].mxu0  ;;  %v11540_v13 = vpop.f32.mrb[17].mxu1 }
 0x17f   : > { %v11452_v11 = vpop.f32.mrb[17].mxu0  ;;  %v11541_v16 = vadd.f32 %v11540_v13, %v11539_v9  ;;  %v11542_v19 = vpop.f32.mrb[18].mxu1  ;;  %v12879_v9 = vld [vmem:[#allocation2 + $0xb0] ss:$0 sps:$4 sm:$0x11]   ;;  %v3068_v13 = vshll.u32 %v12878_v0, 16 }
 0x180   : > { %v14085_v15 = vadd.f32 %v11452_v11, %v11451_v60  ;;  %v11454_v17 = vpop.f32.mrb[18].mxu0  ;;  %v11543_v22 = vpop.f32.mrb[19].mxu1  ;;  %v3341_v60 = vsel %vm1719_vm9, %v3339_v48, %v3340_v51  ;;  %v3066_v11 = vshrl.u32 %v12878_v0, 16  ;;  %v3073_v14 = vshll.u32 %v12879_v9, 16 }
 0x181   : > { %v11455_v21 = vpop.f32.mrb[19].mxu0  ;;  %v11544_v29 = vadd.f32 %v11543_v22, %v11542_v19  ;;  %v14091_v34 = vadd.f32 %v11541_v16, %v14031_v32  ;;  %v12876_v32 = vld [vmem:[#allocation2 + $0x6c] sm:$0xfe]   ;;  %12407 = vmatprep.mubr.bf16.mxu0 %v3341_v60  ;;  %v12880_v16 = vld [vmem:[#allocation2 + $0x78] sm:$0xfe]   ;;  %v3070_v19 = vrot.slane %v3068_v13, 1 }
 0x182   : > { %v14088_v28 = vadd.f32 %v11455_v21, %v11454_v17  ;;  %v3342_v4 = vrot.slane %v12876_v32, 1  ;;  %4725 = vmatmul.mubr.bf16.gmra.mrb[124].mxu1 %v12875_v49  ;;  %v12881_v21 = vld [vmem:[#allocation2 + $0x80] ss:$0 sps:$4 sm:$0x11]   ;;  %v12882_v22 = vld [vmem:[#allocation2 + $0xa8] sm:$0xff]   ;;  %v3075_v24 = vrot.slane %v3073_v14, 1 }
 0x183   : > { %v14094_v43 = vadd.f32 %v11544_v29, %v14041_v30  ;;  %v3345_v25 = vrot.slane %v12880_v16, 1  ;;  %v3071_v26 = vor.u32 %v3070_v19, %v3066_v11  ;;  %v3346_v29 = vrot.slane %v12881_v21, 1  ;;  %v12885_v32 = vld [vmem:[#allocation2 + $0xb4] sm:$0xff]  }
 0x184   : > { %v3344_v33 = vsel %vm1719_vm9, %v3342_v4, %v3343_v6  ;;  %v12888_v4 = vld [vmem:[#allocation2 + $0x98] ss:$0 sps:$4 sm:$0x11]   ;;  %v3351_v11 = vrot.slane %v12887_v3, 1 }
 0x185   : > { %v11545_v50 = vpop.f32.mrb[20].mxu1  ;;  %12408 = vmatmul.mubr.bf16.gmra.mrb[124].mxu0 %v3344_v33  ;;  %v3076_v39 = vsel %vm1318_vm2, %v3071_v26, %v3075_v24  ;;  %v3347_v41 = vsel %vm1719_vm9, %v3345_v25, %v3346_v29  ;;  %v12889_v13 = vld [vmem:[#allocation2 + $0xb4] sm:$0xff]   ;;  %v3352_v14 = vrot.slane %v12888_v4, 1  ;;  %v12891_v26 = vld [vmem:[#allocation2 + $0xa4] ss:$0 sps:$4 sm:$0x11]  }
 0x186   : > { %v11546_v57 = vpop.f32.mrb[21].mxu1  ;;  %4732 = vmatprep.mubr.bf16.mxu1 %v3076_v39  ;;  %12411 = vmatprep.mubr.bf16.mxu0 %v3347_v41  ;;  %v12897_v4 = vld [vmem:[#allocation2 + $0xb4] sm:$0xfe]  }
 0x187   : > { %v11457_v42 = vpop.f32.mrb[20].mxu0  ;;  %v11547_v62 = vadd.f32 %v11546_v57, %v11545_v50  ;;  %v11548_v63 = vpop.f32.mrb[22].mxu1  ;;  %v12886_v57 = vld [vmem:[#allocation2 + $0xbc] ss:$0 sps:$4 sm:$0x11]   ;;  %v3353_v25 = vsel %vm1719_vm9, %v3351_v11, %v3352_v14 }
 0x188   : > { %v11458_v52 = vpop.f32.mrb[21].mxu0  ;;  %v11549_v5 = vpop.f32.mrb[23].mxu1  ;;  %v3085_v0 = vshll.u32 %v12886_v57, 16 }
 0x189   : > { %v14096_v55 = vadd.f32 %v11458_v52, %v11457_v42  ;;  %v11460_v58 = vpop.f32.mrb[22].mxu0  ;;  %v11550_v7 = vadd.f32 %v11549_v5, %v11548_v63  ;;  %v14103_v10 = vadd.f32 %v11547_v62, %v14046_v18  ;;  %v3078_v63 = vshrl.u32 %v12885_v32, 16 }
 0x18a   : > { %v11461_v30 = vpop.f32.mrb[23].mxu0  ;;  %4733 = vmatmul.mubr.bf16.gmra.mrb[128].mxu1 %v12882_v22  ;;  %v3087_v9 = vrot.slane %v3085_v0, 1 }
 0x18b   : > { %v14100_v46 = vadd.f32 %v11461_v30, %v11460_v58  ;;  %v14107_v17 = vadd.f32 %v11550_v7, %v14048_v27  ;;  %v3348_v27 = vrot.slane %v12883_v35, 1  ;;  %v3080_v30 = vshll.u32 %v12885_v32, 16  ;;  %v12892_v35 = vld [vmem:[#allocation2 + $0xc0] sm:$0xff]  }
 0x18d   : > { %v11551_v38 = vpop.f32.mrb[24].mxu1  ;;  %v3350_v58 = vsel %vm1719_vm9, %v3348_v27, %v3349_v36  ;;  %v3082_v7 = vrot.slane %v3080_v30, 1  ;;  %v12893_v27 = vld [vmem:[#allocation2 + $0xc8] ss:$0 sps:$4 sm:$0x11]  }
 0x18e   : > { %v11552_v45 = vpop.f32.mrb[25].mxu1  ;;  %12412 = vmatmul.mubr.bf16.gmra.mrb[128].mxu0 %v3350_v58  ;;  %v12895_v58 = vld [vmem:[#allocation2 + $0xb0] ss:$0 sps:$4 sm:$0x11]  }
 0x18f   : > { %v11463_v18 = vpop.f32.mrb[24].mxu0  ;;  %v11553_v49 = vadd.f32 %v11552_v45, %v11551_v38  ;;  %v11554_v51 = vpop.f32.mrb[26].mxu1  ;;  %v3083_v19 = vor.u32 %v3082_v7, %v3078_v63  ;;  %12415 = vmatprep.mubr.bf16.mxu0 %v3353_v25  ;;  %v3358_v3 = vrot.slane %v12895_v58, 1 }
 0x190   : > { %v11464_v42 = vpop.f32.mrb[25].mxu0  ;;  %v11555_v53 = vpop.f32.mrb[27].mxu1 }
 0x191   : > { %v14111_v48 = vadd.f32 %v11464_v42, %v11463_v18  ;;  %v11466_v50 = vpop.f32.mrb[26].mxu0  ;;  %v11556_v61 = vadd.f32 %v11555_v53, %v11554_v51  ;;  %v14117_v62 = vadd.f32 %v11553_v49, %v14054_v56  ;;  %v12890_v56 = vld [vmem:[#allocation2 + $0x9c] sm:$0xfe]   ;;  %v3088_v37 = vsel %vm1318_vm2, %v3083_v19, %v3087_v9  ;;  %v12894_v53 = vld [vmem:[#allocation2 + $0xa8] sm:$0xfe]  }
 0x192   : > { %v11467_v52 = vpop.f32.mrb[27].mxu0  ;;  %v3354_v38 = vrot.slane %v12890_v56, 1  ;;  %4740 = vmatprep.mubr.bf16.mxu1 %v3088_v37  ;;  %v3355_v42 = vrot.slane %v12891_v26, 1  ;;  %v3090_v49 = vshrl.u32 %v12892_v35, 16  ;;  %v3357_v30 = vrot.slane %v12894_v53, 1  ;;  %v12899_v26 = vld [vmem:[#allocation2 + $0xcc] sm:$0xff]  }
 0x193   : > { %v14114_v60 = vadd.f32 %v11467_v52, %v11466_v50  ;;  %v14120_v6 = vadd.f32 %v11556_v61, %v14059_v1  ;;  %4741 = vmatmul.mubr.bf16.gmra.mrb[132].mxu1 %v12889_v13  ;;  %v3092_v50 = vshll.u32 %v12892_v35, 16  ;;  %v3097_v52 = vshll.u32 %v12893_v27, 16  ;;  %v12896_v61 = vld [vmem:[#allocation2 + $0xc0] sm:$0xff]   ;;  %v12902_v27 = vld [vmem:[#allocation2 + $0xc8] ss:$0 sps:$4 sm:$0x11]  }
 0x194   : > { %v3356_v51 = vsel %vm1719_vm9, %v3354_v38, %v3355_v42  ;;  %v3359_v11 = vsel %vm1719_vm9, %v3357_v30, %v3358_v3  ;;  %v3102_v38 = vshrl.u32 %v12899_v26, 16 }
 0x195   : > { %v11557_v33 = vpop.f32.mrb[28].mxu1  ;;  %v3094_v57 = vrot.slane %v3092_v50, 1  ;;  %v3099_v63 = vrot.slane %v3097_v52, 1 }
 0x196   : > { %v11558_v22 = vpop.f32.mrb[29].mxu1  ;;  %12416 = vmatmul.mubr.bf16.gmra.mrb[132].mxu0 %v3356_v51 }
 0x197   : > { %v11469_v5 = vpop.f32.mrb[28].mxu0  ;;  %v11559_v29 = vadd.f32 %v11558_v22, %v11557_v33  ;;  %v11560_v18 = vpop.f32.mrb[30].mxu1  ;;  %v3095_v0 = vor.u32 %v3094_v57, %v3090_v49  ;;  %12419 = vmatprep.mubr.bf16.mxu0 %v3359_v11  ;;  %v12903_v57 = vld [vmem:[#allocation2 + $0xcc] sm:$0xff]   ;;  %v12906_v11 = vld [vmem:[%s15603_s7] sm:$0xff]  }
 0x198   : > { %v11470_v16 = vpop.f32.mrb[29].mxu0  ;;  %v11561_v41 = vpop.f32.mrb[31].mxu1  ;;  %12427 = vmatprep.subr.bf16.mxu1 %v12906_v11 }
 0x199   : > { %v14122_v21 = vadd.f32 %v11470_v16, %v11469_v5  ;;  %v11472_v24 = vpop.f32.mrb[30].mxu0  ;;  %v11562_v45 = vadd.f32 %v11561_v41, %v11560_v18  ;;  %v14129_v36 = vadd.f32 %v11559_v29, %v14069_v31  ;;  %v12898_v5 = vld [vmem:[#allocation2 + $0xbc] ss:$0 sps:$4 sm:$0x11]   ;;  %v3100_v9 = vsel %vm1318_vm2, %v3095_v0, %v3099_v63  ;;  %12428 = vmatpush3.bf16.msra.mxu1 %v12906_v11 }
 0x19a   : > { %v11473_v1 = vpop.f32.mrb[31].mxu0  ;;  %4748 = vmatprep.mubr.bf16.mxu1 %v3100_v9  ;;  %v3361_v14 = vrot.slane %v12898_v5, 1  ;;  %v12900_v29 = vld [vmem:[#allocation2 + $0xd4] ss:$0 sps:$4 sm:$0x11]   ;;  %v3104_v41 = vshll.u32 %v12899_v26, 16 }
 0x19b   : > { %v14126_v39 = vadd.f32 %v11473_v1, %v11472_v24  ;;  %v14133_v32 = vadd.f32 %v11562_v45, %v14074_v44  ;;  %v3360_v44 = vrot.slane %v12897_v4, 1  ;;  %4749 = vmatmul.mubr.bf16.gmra.mrb[136].mxu1 %v12896_v61  ;;  %v3109_v42 = vshll.u32 %v12900_v29, 16  ;;  %v12901_v45 = vld [vmem:[#allocation2 + $0xc0] sm:$0xfe]  }
 0x19c   : > { %v3106_v51 = vrot.slane %v3104_v41, 1  ;;  %v3363_v53 = vrot.slane %v12901_v45, 1  ;;  %v3364_v61 = vrot.slane %v12902_v27, 1  ;;  %v12905_v5 = vld [vmem:[#allocation2 + $0xd4] ss:$0 sps:$4 sm:$0x11]  }
 0x19d   : > { %v11563_v7 = vpop.f32.mrb[32].mxu1  ;;  %v3362_v18 = vsel %vm1719_vm9, %v3360_v44, %v3361_v14  ;;  %v3111_v52 = vrot.slane %v3109_v42, 1 }
 0x19e   : > { %v11564_v33 = vpop.f32.mrb[33].mxu1  ;;  %12420 = vmatmul.mubr.bf16.gmra.mrb[136].mxu0 %v3362_v18  ;;  %v3107_v30 = vor.u32 %v3106_v51, %v3102_v38  ;;  %v3365_v4 = vsel %vm1719_vm9, %v3363_v53, %v3364_v61 }
 0x19f   : > { %v11475_v31 = vpop.f32.mrb[32].mxu0  ;;  %v11565_v19 = vadd.f32 %v11564_v33, %v11563_v7  ;;  %v11566_v22 = vpop.f32.mrb[34].mxu1  ;;  %12423 = vmatprep.mubr.bf16.mxu0 %v3365_v4 }
 0x1a0   : > { %v11476_v13 = vpop.f32.mrb[33].mxu0  ;;  %v11567_v25 = vpop.f32.mrb[35].mxu1 }
 0x1a1   : > { %v14137_v16 = vadd.f32 %v11476_v13, %v11475_v31  ;;  %v11478_v56 = vpop.f32.mrb[34].mxu0  ;;  %v11568_v35 = vadd.f32 %v11567_v25, %v11566_v22  ;;  %v14143_v37 = vadd.f32 %v11565_v19, %v14085_v15  ;;  %v12904_v15 = vld [vmem:[#allocation2 + $0xcc] sm:$0xfe]   ;;  %v3112_v13 = vsel %vm1318_vm2, %v3107_v30, %v3111_v52 }
 0x1a2   : > { %v11479_v24 = vpop.f32.mrb[35].mxu0  ;;  %v3366_v33 = vrot.slane %v12904_v15, 1  ;;  %4756 = vmatprep.mubr.bf16.mxu1 %v3112_v13  ;;  %v3367_v22 = vrot.slane %v12905_v5, 1 }
 0x1a3   : > { %v14140_v1 = vadd.f32 %v11479_v24, %v11478_v56  ;;  %v14146_v50 = vadd.f32 %v11568_v35, %v14088_v28  ;;  %v12907_v56 = vld [vmem:[%s15603_s7 + $0x8] sm:$0xff]   ;;  %4757 = vmatmul.mubr.bf16.gmra.mrb[140].mxu1 %v12903_v57 }
 0x1a4   : > { %v3368_v41 = vsel %vm1719_vm9, %v3366_v33, %v3367_v22  ;;  %12429 = vmatprep.subr.bf16.mxu1 %v12907_v56  ;;  %v12914_v33 = vld [vmem:[#allocation5 + $0x40] sm:$0xff]  }
 0x1a5   : > { %v11569_v58 = vpop.f32.mrb[36].mxu1  ;;  %12430 = vmatpush3.bf16.msra.mxu1 %v12907_v56  ;;  %v5037_v56 = vld [vmem:[#allocation2 + $0x10] sm:$0xf]  ;;  %11907 = vmatprep.subr.bf16.mxu0 %v12914_v33 }
 0x1a6   : > { %v11570_v3 = vpop.f32.mrb[37].mxu1  ;;  %12424 = vmatmul.mubr.bf16.gmra.mrb[140].mxu0 %v3368_v41  ;;  %v12915_v22 = vld [vmem:[#allocation5] sm:$0xff]  }
 0x1a7   : > { %v11481_v49 = vpop.f32.mrb[36].mxu0  ;;  %v11571_v7 = vadd.f32 %v11570_v3, %v11569_v58  ;;  %v11572_v9 = vpop.f32.mrb[38].mxu1  ;;  %11908 = vmatpush3.bf16.msra.mxu0 %v12915_v22 }
 0x1a8   : > { %v11482_v63 = vpop.f32.mrb[37].mxu0  ;;  %v11573_v14 = vpop.f32.mrb[39].mxu1 }
 0x1a9   : > { %v14148_v0 = vadd.f32 %v11482_v63, %v11481_v49  ;;  %v11484_v31 = vpop.f32.mrb[38].mxu0  ;;  %v11574_v24 = vadd.f32 %v11573_v14, %v11572_v9  ;;  %v14161_v29 = vadd.f32 %v11571_v7, %v14096_v55  ;;  %v12908_v55 = vld [vmem:[%s15603_s7 + $0x10] sm:$0xff]   ;;  %v12909_v9 = vld [vmem:[%s15603_s7 + $0x18] sm:$0xff]  }
 0x1aa   : > { %v11485_v28 = vpop.f32.mrb[39].mxu0  ;;  %12431 = vmatprep.subr.bf16.mxu1 %v12908_v55 }
 0x1ab   : > { %v14155_v44 = vadd.f32 %v11485_v28, %v11484_v31  ;;  %v14167_v49 = vadd.f32 %v11574_v24, %v14100_v46  ;;  %12432 = vmatpush3.bf16.msra.mxu1 %v12908_v55 }
 0x1ac   : > { %12433 = vmatprep.subr.bf16.mxu1 %v12909_v9 }
 0x1ad   : > { %v11575_v25 = vpop.f32.mrb[40].mxu1 }
 0x1ae   : > { %v11576_v35 = vpop.f32.mrb[41].mxu1 }
 0x1af   : > { %v11487_v19 = vpop.f32.mrb[40].mxu0  ;;  %v11577_v42 = vadd.f32 %v11576_v35, %v11575_v25  ;;  %v11578_v45 = vpop.f32.mrb[42].mxu1  ;;  %v5038_v35 = vld [vmem:[#allocation2 + $0x14] sm:$0x1]  ;;  %12434 = vmatpush3.bf16.msra.mxu1 %v12909_v9 }
 0x1b0   : > { %v11488_v26 = vpop.f32.mrb[41].mxu0  ;;  %v11579_v52 = vpop.f32.mrb[43].mxu1 }
 0x1b1   : > { %v14163_v18 = vadd.f32 %v11488_v26, %v11487_v19  ;;  %v11490_v38 = vpop.f32.mrb[42].mxu0  ;;  %v11580_v53 = vadd.f32 %v11579_v52, %v11578_v45  ;;  %v14175_v61 = vadd.f32 %v11577_v42, %v14111_v48  ;;  %v5036_v19 = vld [vmem:[#allocation2 + $0xc] sm:$0xf]  ;;  %v5097_v42 = vshll.u32 %v5037_v56, 16 }
 0x1b2   : > { %v11491_v27 = vpop.f32.mrb[43].mxu0  ;;  %v5091_v41 = vshll.u32 %v5036_v19, 16  ;;  %v5101_v45 = vshrl.u32 %v5037_v56, 16 }
 0x1b3   : > { %v14169_v51 = vadd.f32 %v11491_v27, %v11490_v38  ;;  %v14180_v4 = vadd.f32 %v11580_v53, %v14114_v60  ;;  %v14193_v60 = vld [vmem:[%s15603_s7 + $0x20] sm:$0xff]  }
 0x1b4   : > { %12435 = vmatprep.subr.bf16.mxu1 %v14193_v60 }
 0x1b5   : > { %v11581_v58 = vpop.f32.mrb[44].mxu1  ;;  %12436 = vmatpush3.bf16.msra.mxu1 %v14193_v60 }
 0x1b6   : > { %v11582_v30 = vpop.f32.mrb[45].mxu1 }
 0x1b7   : > { %v11493_v57 = vpop.f32.mrb[44].mxu0  ;;  %v11583_v46 = vadd.f32 %v11582_v30, %v11581_v58  ;;  %v11584_v31 = vpop.f32.mrb[46].mxu1  ;;  %v5107_v58 = vshll.u32 %v5038_v35, 16  ;;  %v14204_v30 = vld [vmem:[%s15603_s7 + $0x28] sm:$0xff]  }
 0x1b8   : > { %v11494_v63 = vpop.f32.mrb[45].mxu0  ;;  %v11585_v7 = vpop.f32.mrb[47].mxu1  ;;  %12437 = vmatprep.subr.bf16.mxu1 %v14204_v30 }
 0x1b9   : > { %v14177_v15 = vadd.f32 %v11494_v63, %v11493_v57  ;;  %v11496_v3 = vpop.f32.mrb[46].mxu0  ;;  %v11586_v28 = vadd.f32 %v11585_v7, %v11584_v31  ;;  %v14188_v13 = vadd.f32 %v11583_v46, %v14122_v21  ;;  %v5088_v21 = vshrl.u32 %v5036_v19, 16  ;;  %v12917_v19 = vld [vmem:[#allocation5 + $0x8] sm:$0xff]   ;;  %12438 = vmatpush3.bf16.msra.mxu1 %v14204_v30  ;;  %v5046_v30 = vld [vmem:[#allocation2 + $0x34] sm:$0xf] }
 0x1ba   : > { %v11497_v5 = vpop.f32.mrb[47].mxu0  ;;  %v5093_v46 = vrot.slane %v5091_v41, 5  ;;  %v5103_v31 = vrot.slane %v5101_v45, 4 }
 0x1bb   : > { %v14185_v48 = vadd.f32 %v11497_v5, %v11496_v3  ;;  %v14196_v26 = vadd.f32 %v11586_v28, %v14126_v39  ;;  %v5090_v39 = vrot.slane %v5088_v21, 4  ;;  %v5099_v3 = vrot.slane %v5097_v42, 5  ;;  %v12916_v5 = vld [vmem:[#allocation5 + $0x48] sm:$0xff]  }
 0x1bc   : > { %v5039_v21 = vld [vmem:[#allocation2 + $0x18] sm:$0xf]  ;;  %11909 = vmatprep.subr.bf16.mxu0 %v12916_v5 }
 0x1bd   : > { %v11587_v11 = vpop.f32.mrb[48].mxu1  ;;  %v5104_v35 = vor.u32 %v5103_v31, %v5099_v3  ;;  %11910 = vmatpush3.bf16.msra.mxu0 %v12917_v19 }
 0x1be   : > { %v11588_v14 = vpop.f32.mrb[49].mxu1 }
 0x1bf   : > { %v11589_v24 = vadd.f32 %v11588_v14, %v11587_v11  ;;  %v11590_v25 = vpop.f32.mrb[50].mxu1  ;;  %v11651_v27 = vpop.f32.mrb[48].mxu0  ;;  %v5109_v14 = vrot.slane %v5107_v58, 5 }
 0x1c0   : > { %v11591_v38 = vpop.f32.mrb[51].mxu1  ;;  %v11652_v55 = vpop.f32.mrb[49].mxu0 }
 0x1c1   : > { %v14199_v52 = vadd.f32 %v11589_v24, %v14137_v16  ;;  %v11592_v53 = vadd.f32 %v11591_v38, %v11590_v25  ;;  %v11653_v7 = vadd.f32 %v11652_v55, %v11651_v27  ;;  %v11654_v28 = vpop.f32.mrb[50].mxu0  ;;  %v5094_v25 = vor.u32 %v5093_v46, %v5090_v39  ;;  %v5041_v27 = vld [vmem:[#allocation2 + $0x20] sm:$0x1]  ;;  %v14225_v39 = vld [vmem:[%s15603_s7 + $0x30] sm:$0xff]  }
 0x1c2   : > { %v11655_v56 = vpop.f32.mrb[51].mxu0  ;;  %v5105_v55 = vrot.slane %v5104_v35, 4  ;;  %v12919_v46 = vld [vmem:[#allocation5 + $0x10] sm:$0xff]   ;;  %12439 = vmatprep.subr.bf16.mxu1 %v14225_v39 }
 0x1c3   : > { %v14207_v16 = vadd.f32 %v11592_v53, %v14140_v1  ;;  %v5040_v1 = vld [vmem:[#allocation2 + $0x1c] sm:$0xf]  ;;  %v14217_v38 = vadd.f32 %v11653_v7, %v14091_v34  ;;  %v11656_v9 = vadd.f32 %v11655_v56, %v11654_v28  ;;  %v12918_v53 = vld [vmem:[#allocation5 + $0x50] sm:$0xff]   ;;  %v5095_v58 = vrot.slane %v5094_v25, 4  ;;  %v12920_v25 = vld [vmem:[#allocation5 + $0x58] sm:$0xff]   ;;  %12440 = vmatpush3.bf16.msra.mxu1 %v14225_v39 }
 0x1c4   : > { %v5115_v34 = vshll.u32 %v5039_v21, 16  ;;  %v5121_v28 = vshll.u32 %v5040_v1, 16  ;;  %11911 = vmatprep.subr.bf16.mxu0 %v12918_v53 }
 0x1c5   : > { %v11593_v57 = vpop.f32.mrb[52].mxu1  ;;  %v14228_v31 = vadd.f32 %v11656_v9, %v14094_v43  ;;  %v5100_v19 = vsel %vm14212_vm12, %v5095_v58, %v5099_v3  ;;  %v5110_v43 = vsel %vm14212_vm12, %v5105_v55, %v5109_v14  ;;  %11912 = vmatpush3.bf16.msra.mxu0 %v12919_v46  ;;  %v12913_v3 = vld [vmem:[%s15603_s7 + $0x38] sm:$0xff]   ;;  %v5131_v58 = vshll.u32 %v5041_v27, 16 }
 0x1c6   : > { %v11594_v63 = vpop.f32.mrb[53].mxu1  ;;  %v10968_v9 = vcombine.low %v5100_v19, %v5110_v43  ;;  %11913 = vmatprep.subr.bf16.mxu0 %v12920_v25  ;;  %12441 = vmatprep.subr.bf16.mxu1 %v12913_v3 }
 0x1c7   : > { %v11595_v11 = vadd.f32 %v11594_v63, %v11593_v57  ;;  %v11596_v33 = vpop.f32.mrb[54].mxu1  ;;  %v5112_v63 = vshrl.u32 %v5039_v21, 16  ;;  %v11657_v35 = vpop.f32.mrb[52].mxu0  ;;  %v5133_v27 = vrot.slane %v5131_v58, 5  ;;  %12442 = vmatpush3.bf16.msra.mxu1 %v12913_v3 }
 0x1c8   : > { %v11597_v22 = vpop.f32.mrb[55].mxu1  ;;  %v11658_v53 = vpop.f32.mrb[53].mxu0  ;;  %12443 = vmatprep.mubr.bf16.mxu1 %v10968_v9 }
 0x1c9   : > { %v14220_v41 = vadd.f32 %v11595_v11, %v14148_v0  ;;  %v11598_v42 = vadd.f32 %v11597_v22, %v11596_v33  ;;  %v5042_v11 = vld [vmem:[#allocation2 + $0x24] sm:$0xf]  ;;  %v5114_v56 = vrot.slane %v5112_v63, 4  ;;  %v5117_v22 = vrot.slane %v5115_v34, 5  ;;  %v11660_v34 = vpop.f32.mrb[54].mxu0 }
 0x1ca   : > { %v5136_v55 = vshrl.u32 %v5042_v11, 16  ;;  %v11659_v63 = vadd.f32 %v11658_v53, %v11657_v35 }
 0x1cb   : > { %v14231_v0 = vadd.f32 %v11598_v42, %v14155_v44  ;;  %v5043_v44 = vld [vmem:[#allocation2 + $0x28] sm:$0xf]  ;;  %v14242_v42 = vrot.slane %v5121_v28, 5  ;;  %v5118_v14 = vor.u32 %v5117_v22, %v5114_v56  ;;  %v12922_v56 = vld [vmem:[#allocation5 + $0x60] sm:$0xff]  }
 0x1cc   : > { %v5145_v46 = vshll.u32 %v5043_v44, 16  ;;  %v12921_v28 = vld [vmem:[#allocation5 + $0x18] sm:$0xff]   ;;  %v5138_v43 = vrot.slane %v5136_v55, 4  ;;  %v14253_v22 = vadd.f32 %v11659_v63, %v14103_v10  ;;  %v5149_v53 = vshrl.u32 %v5043_v44, 16 }
 0x1cd   : > { %v11599_v45 = vpop.f32.mrb[56].mxu1  ;;  %v5119_v19 = vrot.slane %v5118_v14, 4  ;;  %11914 = vmatpush3.bf16.msra.mxu0 %v12921_v28 }
 0x1ce   : > { %v11600_v57 = vpop.f32.mrb[57].mxu1  ;;  %v14255_v35 = vrot.slane %v5145_v46, 5  ;;  %11915 = vmatprep.subr.bf16.mxu0 %v12922_v56  ;;  %v5151_v28 = vrot.slane %v5149_v53, 4  ;;  %v5169_v56 = vshll.u32 %v5046_v30, 16 }
 0x1cf   : > { %v11601_v5 = vadd.f32 %v11600_v57, %v11599_v45  ;;  %v11602_v7 = vpop.f32.mrb[58].mxu1  ;;  %v5044_v45 = vld [vmem:[#allocation2 + $0x2c] sm:$0x1]  ;;  %v5125_v57 = vshrl.u32 %v5040_v1, 16 }
 0x1d0   : > { %v11603_v33 = vpop.f32.mrb[59].mxu1  ;;  %v5155_v14 = vshll.u32 %v5044_v45, 16 }
 0x1d1   : > { %v14240_v21 = vadd.f32 %v11601_v5, %v14163_v18  ;;  %v11604_v60 = vadd.f32 %v11603_v33, %v11602_v7  ;;  %v5139_v5 = vshll.u32 %v5042_v11, 16  ;;  %v5045_v7 = vld [vmem:[#allocation2 + $0x30] sm:$0xf]  ;;  %v11661_v33 = vpop.f32.mrb[55].mxu0  ;;  %v5127_v1 = vrot.slane %v5125_v57, 4 }
 0x1d2   : > { %v5160_v55 = vshrl.u32 %v5045_v7, 16  ;;  %v5163_v63 = vshll.u32 %v5045_v7, 16 }
 0x1d3   : > { %v14248_v18 = vadd.f32 %v11604_v60, %v14169_v51  ;;  %v11662_v51 = vadd.f32 %v11661_v33, %v11660_v34  ;;  %v5141_v25 = vrot.slane %v5139_v5, 5  ;;  %v5124_v60 = vsel %vm14212_vm12, %v5119_v19, %v14242_v42  ;;  %v11663_v19 = vpop.f32.mrb[56].mxu0 }
 0x1d4   : > { %v5128_v9 = vor.u32 %v5127_v1, %v14242_v42  ;;  %v5157_v33 = vrot.slane %v5155_v14, 5  ;;  %v5162_v45 = vrot.slane %v5160_v55, 4  ;;  %v5165_v1 = vrot.slane %v5163_v63, 5 }
 0x1d5   : > { %v11605_v11 = vpop.f32.mrb[60].mxu1  ;;  %v14262_v57 = vadd.f32 %v11662_v51, %v14107_v17  ;;  %v5142_v58 = vor.u32 %v5141_v25, %v5138_v43  ;;  %v11664_v17 = vpop.f32.mrb[57].mxu0  ;;  %v5152_v43 = vor.u32 %v5151_v28, %v14255_v35  ;;  %v5047_v25 = vld [vmem:[#allocation2 + $0x38] sm:$0x1]  ;;  %v5049_v28 = vld [vmem:[#allocation2 + $0x40] sm:$0xf] }
 0x1d6   : > { %v11606_v10 = vpop.f32.mrb[61].mxu1  ;;  %v5129_v46 = vrot.slane %v5128_v9, 4  ;;  %v12924_v9 = vld [vmem:[#allocation5 + $0xc0] sm:$0xff]   ;;  %v11665_v53 = vadd.f32 %v11664_v17, %v11663_v19  ;;  %v11666_v14 = vpop.f32.mrb[58].mxu0  ;;  %v5166_v55 = vor.u32 %v5165_v1, %v5162_v45  ;;  %v5050_v17 = vld [vmem:[#allocation2 + $0x44] sm:$0x1] }
 0x1d7   : > { %v11607_v34 = vadd.f32 %v11606_v10, %v11605_v11  ;;  %v11608_v5 = vpop.f32.mrb[62].mxu1  ;;  %v5143_v44 = vrot.slane %v5142_v58, 4  ;;  %v5048_v11 = vld [vmem:[#allocation2 + $0x3c] sm:$0xf]  ;;  %v11667_v63 = vpop.f32.mrb[59].mxu0  ;;  %12019 = vmatprep.subr.bf16.mxu1 %v12924_v9 }
 0x1d8   : > { %v11609_v42 = vpop.f32.mrb[63].mxu1  ;;  %v5134_v7 = vsel %vm14212_vm12, %v5129_v46, %v5133_v27  ;;  %v5153_v27 = vrot.slane %v5152_v43, 4  ;;  %v5173_v46 = vshrl.u32 %v5046_v30, 16  ;;  %v14278_v19 = vadd.f32 %v11665_v53, %v14117_v62  ;;  %v12926_v1 = vld [vmem:[#allocation5 + $0xc8] sm:$0xff]  }
 0x1d9   : > { %v14266_v51 = vadd.f32 %v11607_v34, %v14177_v15  ;;  %v11610_v39 = vadd.f32 %v11609_v42, %v11608_v5  ;;  %v10969_v10 = vcombine.low %v5124_v60, %v5134_v7  ;;  %v5148_v58 = vsel %vm14212_vm12, %v5143_v44, %v14255_v35  ;;  %v12925_v15 = vld [vmem:[#allocation5 + $0x80] sm:$0xff]   ;;  %v5051_v7 = vld [vmem:[#allocation2 + $0x48] sm:$0xf] }
 0x1da   : > { %v5171_v5 = vrot.slane %v5169_v56, 5  ;;  %v11668_v3 = vadd.f32 %v11667_v63, %v11666_v14  ;;  %v5167_v60 = vrot.slane %v5166_v55, 4  ;;  %v5179_v42 = vshll.u32 %v5047_v25, 16 }
 0x1db   : > { %v14275_v34 = vadd.f32 %v11610_v39, %v14185_v48  ;;  %12444 = vmatmul.mubr.bf16.vlgmr.msra.gmra.mrb[144].mxu1 %v10969_v10  ;;  %v5158_v35 = vsel %vm14212_vm12, %v5153_v27, %v5157_v33  ;;  %v5175_v44 = vrot.slane %v5173_v46, 4  ;;  %v5184_v48 = vshrl.u32 %v5048_v11, 16  ;;  %v11669_v33 = vpop.f32.mrb[60].mxu0  ;;  %v5052_v27 = vld [vmem:[#allocation2 + $0x4c] sm:$0xf] }
 0x1dc   : > { %v5187_v45 = vshll.u32 %v5048_v11, 16  ;;  %v14283_v30 = vadd.f32 %v11668_v3, %v14120_v6  ;;  %v10970_v39 = vcombine.low %v5148_v58, %v5158_v35  ;;  %v5172_v62 = vsel %vm14212_vm12, %v5167_v60, %v5171_v5  ;;  %12020 = vmatpush3.bf16.msra.mxu1 %v12925_v15  ;;  %v12927_v58 = vld [vmem:[#allocation5 + $0x88] sm:$0xff]   ;;  %v11670_v3 = vpop.f32.mrb[61].mxu0 }
 0x1dd   : > { %15628 = vst [vmem:[#allocation12_spill] sm:$0xff] %v14275_v34  ;;  %v11611_v56 = vpop.f32.mrb[64].mxu1  ;;  %v5181_v43 = vrot.slane %v5179_v42, 5  ;;  %v5176_v9 = vor.u32 %v5175_v44, %v5171_v5  ;;  %v5186_v53 = vrot.slane %v5184_v48, 4  ;;  %v5193_v10 = vshll.u32 %v5049_v28, 16  ;;  %12021 = vmatprep.subr.bf16.mxu1 %v12926_v1  ;;  %v12930_v44 = vld [vmem:[#allocation5 + $0xd0] sm:$0xff]  }
 0x1de   : > { %v11612_v25 = vpop.f32.mrb[65].mxu1  ;;  %v5189_v14 = vrot.slane %v5187_v45, 5  ;;  %12447 = vmatprep.mubr.bf16.mxu1 %v10970_v39  ;;  %v5197_v63 = vshrl.u32 %v5049_v28, 16  ;;  %v5203_v6 = vshll.u32 %v5050_v17, 16  ;;  %v5208_v46 = vshrl.u32 %v5051_v7, 16  ;;  %v11672_v45 = vpop.f32.mrb[62].mxu0 }
 0x1df   : > { %v11613_v55 = vadd.f32 %v11612_v25, %v11611_v56  ;;  %v11614_v11 = vpop.f32.mrb[66].mxu1  ;;  %v5177_v60 = vrot.slane %v5176_v9, 4  ;;  %v5195_v15 = vrot.slane %v5193_v10, 5  ;;  %v5211_v5 = vshll.u32 %v5051_v7, 16  ;;  %v5054_v28 = vld [vmem:[#allocation2 + $0x54] sm:$0xf] }
 0x1e0   : > { %v11615_v35 = vpop.f32.mrb[67].mxu1  ;;  %v5190_v42 = vor.u32 %v5189_v14, %v5186_v53  ;;  %v11671_v48 = vadd.f32 %v11670_v3, %v11669_v33  ;;  %v5199_v39 = vrot.slane %v5197_v63, 4  ;;  %12022 = vmatpush3.bf16.msra.mxu1 %v12927_v58  ;;  %v11673_v17 = vpop.f32.mrb[63].mxu0  ;;  %v5205_v9 = vrot.slane %v5203_v6, 5 }
 0x1e1   : > { %v14288_v1 = vadd.f32 %v11613_v55, %v14057_v59  ;;  %v11616_v56 = vadd.f32 %v11615_v35, %v11614_v11  ;;  %v5182_v25 = vsel %vm14212_vm12, %v5177_v60, %v5181_v43  ;;  %v5210_v53 = vrot.slane %v5208_v46, 4  ;;  %12023 = vmatprep.subr.bf16.mxu1 %v12930_v44  ;;  %v11675_v44 = vpop.f32.mrb[64].mxu0 }
 0x1e2   : > { %v5191_v34 = vrot.slane %v5190_v42, 4  ;;  %v14293_v7 = vadd.f32 %v11671_v48, %v14129_v36  ;;  %v11674_v14 = vadd.f32 %v11673_v17, %v11672_v45  ;;  %v10971_v59 = vcombine.low %v5172_v62, %v5182_v25  ;;  %v5055_v36 = vld [vmem:[#allocation2 + $0x58] sm:$0xf]  ;;  %v5056_v45 = vld [vmem:[#allocation2 + $0x5c] sm:$0x1] }
 0x1e3   : > { %v14296_v10 = vadd.f32 %v11616_v56, %v14061_v2  ;;  %v5200_v55 = vor.u32 %v5199_v39, %v5195_v15  ;;  %v5213_v11 = vrot.slane %v5211_v5, 5  ;;  %v5217_v63 = vshll.u32 %v5052_v27, 16  ;;  %v11676_v39 = vpop.f32.mrb[65].mxu0 }
 0x1e4   : > { %v5196_v33 = vsel %vm14212_vm12, %v5191_v34, %v5195_v15  ;;  %v14301_v43 = vadd.f32 %v11674_v14, %v14133_v32  ;;  %12448 = vmatmul.mubr.bf16.gmra.mrb[148].mxu1 %v10971_v59  ;;  %v5221_v46 = vshrl.u32 %v5052_v27, 16  ;;  %v5227_v58 = vshll.u32 %v5053_v23, 16  ;;  %v12923_v32 = vld [vmem:[#allocation5 + $0x20] sm:$0xff]   ;;  %v12928_v59 = vld [vmem:[#allocation5 + $0x68] sm:$0xff]  }
 0x1e5   : > { %v11617_v6 = vpop.f32.mrb[68].mxu1  ;;  %v5232_v3 = vshrl.u32 %v5054_v28, 16  ;;  %v5201_v60 = vrot.slane %v5200_v55, 4  ;;  %v5214_v2 = vor.u32 %v5213_v11, %v5210_v53  ;;  %v5219_v42 = vrot.slane %v5217_v63, 5  ;;  %v11678_v55 = vpop.f32.mrb[66].mxu0  ;;  %11916 = vmatpush3.bf16.msra.mxu0 %v12923_v32 }
 0x1e6   : > { %v11618_v35 = vpop.f32.mrb[69].mxu1  ;;  %v5235_v62 = vshll.u32 %v5054_v28, 16  ;;  %v5223_v15 = vrot.slane %v5221_v46, 4  ;;  %v5229_v5 = vrot.slane %v5227_v58, 5  ;;  %v5241_v14 = vshll.u32 %v5055_v36, 16  ;;  %v12929_v46 = vld [vmem:[#allocation5 + $0x28] sm:$0xff]   ;;  %11917 = vmatprep.subr.bf16.mxu0 %v12928_v59 }
 0x1e7   : > { %v11619_v48 = vadd.f32 %v11618_v35, %v11617_v6  ;;  %v11620_v34 = vpop.f32.mrb[70].mxu1  ;;  %v5234_v56 = vrot.slane %v5232_v3, 4  ;;  %v5206_v23 = vsel %vm14212_vm12, %v5201_v60, %v5205_v9  ;;  %v5215_v27 = vrot.slane %v5214_v2, 4  ;;  %v5057_v6 = vld [vmem:[#allocation2 + $0x60] sm:$0xf]  ;;  %v11679_v58 = vpop.f32.mrb[67].mxu0 }
 0x1e8   : > { %v11621_v17 = vpop.f32.mrb[71].mxu1  ;;  %v5237_v25 = vrot.slane %v5235_v62, 5  ;;  %v11677_v53 = vadd.f32 %v11676_v39, %v11675_v44  ;;  %v10972_v63 = vcombine.low %v5196_v33, %v5206_v23  ;;  %v5224_v35 = vor.u32 %v5223_v15, %v5219_v42  ;;  %v5058_v2 = vld [vmem:[#allocation2 + $0x64] sm:$0xf]  ;;  %v11681_v59 = vpop.f32.mrb[68].mxu0 }
 0x1e9   : > { %v14306_v28 = vadd.f32 %v11619_v48, %v14064_v12  ;;  %v11622_v11 = vadd.f32 %v11621_v17, %v11620_v34  ;;  %v5220_v3 = vsel %vm14212_vm12, %v5215_v27, %v5219_v42  ;;  %v14310_v60 = vrot.slane %v5241_v14, 5  ;;  %v12931_v48 = vld [vmem:[#allocation5 + $0x90] sm:$0xff]   ;;  %v5059_v17 = vld [vmem:[#allocation2 + $0x68] sm:$0x1]  ;;  %11918 = vmatpush3.bf16.msra.mxu0 %v12929_v46 }
 0x1ea   : > { %v5238_v9 = vor.u32 %v5237_v25, %v5234_v56  ;;  %v14313_v62 = vadd.f32 %v11677_v53, %v14143_v37  ;;  %v11680_v12 = vadd.f32 %v11679_v58, %v11678_v55  ;;  %12451 = vmatprep.mubr.bf16.mxu1 %v10972_v63  ;;  %v5245_v33 = vshrl.u32 %v5055_v36, 16  ;;  %v5060_v37 = vld [vmem:[#allocation2 + $0x6c] sm:$0xf]  ;;  %12024 = vmatpush3.bf16.msra.mxu1 %v12931_v48 }
 0x1eb   : > { %v14316_v44 = vadd.f32 %v11622_v11, %v14066_v20  ;;  %v5225_v34 = vrot.slane %v5224_v35, 4  ;;  %v5251_v39 = vshll.u32 %v5056_v45, 16  ;;  %v5256_v42 = vshrl.u32 %v5057_v6, 16  ;;  %v12932_v25 = vld [vmem:[#allocation5 + $0xd8] sm:$0xff]  }
 0x1ec   : > { %v5239_v32 = vrot.slane %v5238_v9, 4  ;;  %v14319_v15 = vadd.f32 %v11680_v12, %v14146_v50  ;;  %v5247_v56 = vrot.slane %v5245_v33, 4  ;;  %v5259_v23 = vshll.u32 %v5057_v6, 16  ;;  %12025 = vmatprep.subr.bf16.mxu1 %v12932_v25  ;;  %v11682_v6 = vpop.f32.mrb[69].mxu0 }
 0x1ed   : > { %v5265_v27 = vshll.u32 %v5058_v2, 16  ;;  %v5230_v20 = vsel %vm14212_vm12, %v5225_v34, %v5229_v5  ;;  %v5253_v45 = vrot.slane %v5251_v39, 5  ;;  %v5258_v14 = vrot.slane %v5256_v42, 4  ;;  %v11623_v53 = vpop.f32.mrb[72].mxu1  ;;  %v5061_v5 = vld [vmem:[#allocation2 + $0x70] sm:$0xf] }
 0x1ee   : > { %v5244_v36 = vsel %vm14212_vm12, %v5239_v32, %v14310_v60  ;;  %v10973_v50 = vcombine.low %v5220_v3, %v5230_v20  ;;  %v5248_v55 = vor.u32 %v5247_v56, %v14310_v60  ;;  %v5261_v11 = vrot.slane %v5259_v23, 5  ;;  %v11624_v46 = vpop.f32.mrb[73].mxu1  ;;  %v11684_v48 = vpop.f32.mrb[70].mxu0  ;;  %v12933_v42 = vld [vmem:[#allocation5 + $0x98] sm:$0xff]  }
 0x1ef   : > { %v14327_v63 = vrot.slane %v5265_v27, 5  ;;  %v5269_v58 = vshrl.u32 %v5058_v2, 16  ;;  %v5275_v35 = vshll.u32 %v5059_v17, 16  ;;  %v5280_v9 = vshrl.u32 %v5060_v37, 16  ;;  %v11626_v32 = vpop.f32.mrb[74].mxu1  ;;  %v11685_v60 = vpop.f32.mrb[71].mxu0  ;;  %12026 = vmatpush3.bf16.msra.mxu1 %v12933_v42 }
 0x1f0   : > { %v5283_v12 = vshll.u32 %v5060_v37, 16  ;;  %v11683_v33 = vadd.f32 %v11682_v6, %v11681_v59  ;;  %v11625_v34 = vadd.f32 %v11624_v46, %v11623_v53  ;;  %12452 = vmatmul.mubr.bf16.gmra.mrb[152].mxu1 %v10973_v50  ;;  %v5249_v39 = vrot.slane %v5248_v55, 4  ;;  %v11627_v56 = vpop.f32.mrb[75].mxu1  ;;  %v5062_v53 = vld [vmem:[#allocation2 + $0x74] sm:$0x1]  ;;  %v12934_v46 = vld [vmem:[#allocation5 + $0x70] sm:$0xff]  }
 0x1f1   : > { %v5262_v3 = vor.u32 %v5261_v11, %v5258_v14  ;;  %v5271_v23 = vrot.slane %v5269_v58, 4  ;;  %v5277_v27 = vrot.slane %v5275_v35, 5  ;;  %v5282_v25 = vrot.slane %v5280_v9, 4  ;;  %v5063_v6 = vld [vmem:[#allocation2 + $0x78] sm:$0xf]  ;;  %11919 = vmatprep.subr.bf16.mxu0 %v12934_v46 }
 0x1f2   : > { %v5285_v20 = vrot.slane %v5283_v12, 5  ;;  %v14330_v2 = vadd.f32 %v11683_v33, %v14161_v29  ;;  %v11686_v17 = vadd.f32 %v11685_v60, %v11684_v48  ;;  %v14333_v37 = vadd.f32 %v11625_v34, %v14072_v40  ;;  %v5064_v9 = vld [vmem:[#allocation2 + $0x7c] sm:$0xf]  ;;  %v12935_v12 = vld [vmem:[#allocation5 + $0x30] sm:$0xff]  }
 0x1f3   : > { %v11628_v59 = vadd.f32 %v11627_v56, %v11626_v32  ;;  %v5254_v14 = vsel %vm14212_vm12, %v5249_v39, %v5253_v45  ;;  %v5263_v50 = vrot.slane %v5262_v3, 4  ;;  %v5272_v55 = vor.u32 %v5271_v23, %v14327_v63  ;;  %v5065_v34 = vld [vmem:[#allocation2 + $0x80] sm:$0x1]  ;;  %v12936_v32 = vld [vmem:[#allocation5 + $0xe0] sm:$0xff]   ;;  %v11687_v39 = vpop.f32.mrb[72].mxu0  ;;  %11920 = vmatpush3.bf16.msra.mxu0 %v12935_v12 }
 0x1f4   : > { %v5286_v11 = vor.u32 %v5285_v20, %v5282_v25  ;;  %v14339_v58 = vadd.f32 %v11686_v17, %v14167_v49  ;;  %v10974_v40 = vcombine.low %v5244_v36, %v5254_v14  ;;  %v5289_v35 = vshll.u32 %v5061_v5, 16  ;;  %v12937_v36 = vld [vmem:[#allocation5 + $0xa0] sm:$0xff]   ;;  %v11688_v60 = vpop.f32.mrb[73].mxu0  ;;  %12027 = vmatprep.subr.bf16.mxu1 %v12936_v32  ;;  %v5066_v14 = vld [vmem:[#allocation2 + $0x84] sm:$0xf] }
 0x1f5   : > { %v14342_v29 = vadd.f32 %v11628_v59, %v14076_v47  ;;  %v5268_v45 = vsel %vm14212_vm12, %v5263_v50, %v14327_v63  ;;  %v5273_v33 = vrot.slane %v5272_v55, 4  ;;  %v5293_v48 = vshrl.u32 %v5061_v5, 16  ;;  %v11690_v20 = vpop.f32.mrb[74].mxu0  ;;  %12028 = vmatpush3.bf16.msra.mxu1 %v12937_v36  ;;  %v5067_v12 = vld [vmem:[#allocation2 + $0x88] sm:$0xf] }
 0x1f6   : > { %12455 = vmatprep.mubr.bf16.mxu1 %v10974_v40  ;;  %v5287_v49 = vrot.slane %v5286_v11, 4  ;;  %v5291_v3 = vrot.slane %v5289_v35, 5  ;;  %v5299_v42 = vshll.u32 %v5062_v53, 16  ;;  %v5304_v47 = vshrl.u32 %v5063_v6, 16  ;;  %v11691_v50 = vpop.f32.mrb[75].mxu0 }
 0x1f7   : > { %v5278_v56 = vsel %vm14212_vm12, %v5273_v33, %v5277_v27  ;;  %v5295_v23 = vrot.slane %v5293_v48, 4  ;;  %v5307_v25 = vshll.u32 %v5063_v6, 16  ;;  %v5313_v63 = vshll.u32 %v5064_v9, 16 }
 0x1f8   : > { %v11689_v5 = vadd.f32 %v11688_v60, %v11687_v39  ;;  %v10975_v17 = vcombine.low %v5268_v45, %v5278_v56  ;;  %v5301_v59 = vrot.slane %v5299_v42, 5  ;;  %v5306_v53 = vrot.slane %v5304_v47, 4  ;;  %v12938_v39 = vld [vmem:[#allocation5 + $0xe8] sm:$0xff]   ;;  %v5068_v60 = vld [vmem:[#allocation2 + $0x8c] sm:$0x1] }
 0x1f9   : > { %v5296_v55 = vor.u32 %v5295_v23, %v5291_v3  ;;  %v5309_v11 = vrot.slane %v5307_v25, 5  ;;  %v5315_v46 = vrot.slane %v5313_v63, 5  ;;  %v11692_v35 = vadd.f32 %v11691_v50, %v11690_v20  ;;  %v12939_v56 = vld [vmem:[#allocation5 + $0xa8] sm:$0xff]   ;;  %v5069_v63 = vld [vmem:[#allocation2 + $0x90] sm:$0xf]  ;;  %12029 = vmatprep.subr.bf16.mxu1 %v12938_v39 }
 0x1fa   : > { %v14350_v40 = vadd.f32 %v11689_v5, %v14175_v61  ;;  %12456 = vmatmul.mubr.bf16.gmra.mrb[156].mxu1 %v10975_v17  ;;  %v5317_v27 = vshrl.u32 %v5064_v9, 16  ;;  %v5323_v6 = vshll.u32 %v5065_v34, 16  ;;  %v5292_v33 = vsel %vm14212_vm12, %v5287_v49, %v5291_v3  ;;  %v12940_v49 = vld [vmem:[#allocation5 + $0x78] sm:$0xff]  }
 0x1fb   : > { %v5297_v45 = vrot.slane %v5296_v55, 4  ;;  %v5310_v48 = vor.u32 %v5309_v11, %v5306_v53  ;;  %v5328_v32 = vshrl.u32 %v5066_v14, 16  ;;  %v14355_v42 = vadd.f32 %v11692_v35, %v14180_v4  ;;  %v5070_v4 = vld [vmem:[#allocation2 + $0x94] sm:$0xf]  ;;  %12030 = vmatpush3.bf16.msra.mxu1 %v12939_v56  ;;  %11921 = vmatprep.subr.bf16.mxu0 %v12940_v49  ;;  %v11693_v11 = vpop.f32.mrb[76].mxu0 }
 0x1fc   : > { %v5319_v47 = vrot.slane %v5317_v27, 4  ;;  %v5325_v36 = vrot.slane %v5323_v6, 5  ;;  %v5331_v61 = vshll.u32 %v5066_v14, 16  ;;  %v5337_v25 = vshll.u32 %v5067_v12, 16 }
 0x1fd   : > { %v5302_v9 = vsel %vm14212_vm12, %v5297_v45, %v5301_v59  ;;  %v5311_v34 = vrot.slane %v5310_v48, 4  ;;  %v5330_v23 = vrot.slane %v5328_v32, 4  ;;  %v5341_v17 = vshrl.u32 %v5067_v12, 16  ;;  %v12941_v59 = vld [vmem:[#allocation5 + $0x38] sm:$0xff]   ;;  %v5071_v45 = vld [vmem:[#allocation2 + $0x98] sm:$0x1] }
 0x1fe   : > { %v10976_v3 = vcombine.low %v5292_v33, %v5302_v9  ;;  %v5320_v5 = vor.u32 %v5319_v47, %v5315_v46  ;;  %v5333_v20 = vrot.slane %v5331_v61, 5  ;;  %v5339_v14 = vrot.slane %v5337_v25, 5  ;;  %v11694_v48 = vpop.f32.mrb[77].mxu0  ;;  %11922 = vmatpush3.bf16.msra.mxu0 %v12941_v59  ;;  %v12942_v61 = vld [vmem:[#allocation5 + $0xf0] sm:$0xff]  }
 0x1ff   : > { %v5316_v50 = vsel %vm14212_vm12, %v5311_v34, %v5315_v46  ;;  %v5347_v55 = vshll.u32 %v5068_v60, 16  ;;  %v5352_v53 = vshrl.u32 %v5069_v63, 16  ;;  %v5343_v6 = vrot.slane %v5341_v17, 4  ;;  %v11696_v56 = vpop.f32.mrb[78].mxu0  ;;  %12031 = vmatprep.subr.bf16.mxu1 %v12942_v61 }
 0x200   : > { %12459 = vmatprep.mubr.bf16.mxu1 %v10976_v3  ;;  %v5321_v35 = vrot.slane %v5320_v5, 4  ;;  %v5334_v27 = vor.u32 %v5333_v20, %v5330_v23  ;;  %v5355_v33 = vshll.u32 %v5069_v63, 16  ;;  %v5361_v39 = vshll.u32 %v5070_v4, 16  ;;  %v11697_v25 = vpop.f32.mrb[79].mxu0 }
 0x201   : > { %v5349_v32 = vrot.slane %v5347_v55, 5  ;;  %v5354_v12 = vrot.slane %v5352_v53, 4  ;;  %v5365_v47 = vshrl.u32 %v5070_v4, 16  ;;  %v11695_v46 = vadd.f32 %v11694_v48, %v11693_v11  ;;  %v12943_v55 = vld [vmem:[#allocation5 + $0xb0] sm:$0xff]   ;;  %v11629_v53 = vpop.f32.mrb[76].mxu1 }
 0x202   : > { %v5326_v60 = vsel %vm14212_vm12, %v5321_v35, %v5325_v36  ;;  %v5335_v9 = vrot.slane %v5334_v27, 4  ;;  %v5344_v34 = vor.u32 %v5343_v6, %v5339_v14  ;;  %v5357_v23 = vrot.slane %v5355_v33, 5  ;;  %v11630_v35 = vpop.f32.mrb[77].mxu1  ;;  %12032 = vmatpush3.bf16.msra.mxu1 %v12943_v55 }
 0x203   : > { %v10977_v49 = vcombine.low %v5316_v50, %v5326_v60  ;;  %v5363_v3 = vrot.slane %v5361_v39, 5  ;;  %v5367_v5 = vrot.slane %v5365_v47, 4  ;;  %v14364_v63 = vadd.f32 %v11695_v46, %v14188_v13  ;;  %v11632_v6 = vpop.f32.mrb[78].mxu1  ;;  %v12946_v39 = vld [vmem:[#allocation5 + $0xf8] sm:$0xff]   ;;  %v5072_v46 = vld [vmem:[#allocation2 + $0x9c] sm:$0xf] }
 0x204   : > { %v11698_v20 = vadd.f32 %v11697_v25, %v11696_v56  ;;  %v5340_v17 = vsel %vm14212_vm12, %v5335_v9, %v5339_v14  ;;  %v5345_v4 = vrot.slane %v5344_v34, 4  ;;  %v5358_v36 = vor.u32 %v5357_v23, %v5354_v12  ;;  %v11633_v47 = vpop.f32.mrb[79].mxu1  ;;  %v5073_v56 = vld [vmem:[#allocation2 + $0xa0] sm:$0xf]  ;;  %12033 = vmatprep.subr.bf16.mxu1 %v12946_v39  ;;  %v12948_v23 = vld [vmem:[#allocation5 + $0xb8] sm:$0xff]  }
 0x205   : > { %12460 = vmatmul.mubr.bf16.gmra.mrb[160].mxu1 %v10977_v49  ;;  %v5368_v59 = vor.u32 %v5367_v5, %v5363_v3  ;;  %v5371_v11 = vshll.u32 %v5071_v45, 16  ;;  %v11631_v13 = vadd.f32 %v11630_v35, %v11629_v53  ;;  %v11634_v45 = vadd.f32 %v11633_v47, %v11632_v6  ;;  %v5077_v39 = vld [vmem:[#allocation2 + $0xb0] sm:$0x1] }
 0x206   : > { %v14369_v50 = vadd.f32 %v11698_v20, %v14196_v26  ;;  %v5350_v27 = vsel %vm14212_vm12, %v5345_v4, %v5349_v32  ;;  %v5359_v48 = vrot.slane %v5358_v36, 4  ;;  %v5074_v32 = vld [vmem:[#allocation2 + $0xa4] sm:$0x1]  ;;  %v5376_v60 = vshrl.u32 %v5072_v46, 16  ;;  %v11699_v4 = vpop.f32.mrb[80].mxu0  ;;  %12034 = vmatpush3.bf16.msra.mxu1 %v12948_v23 }
 0x207   : > { %v10978_v33 = vcombine.low %v5340_v17, %v5350_v27  ;;  %v5369_v14 = vrot.slane %v5368_v59, 4  ;;  %v5373_v61 = vrot.slane %v5371_v11, 5  ;;  %v14374_v12 = vadd.f32 %v11631_v13, %v14079_v54  ;;  %v5075_v36 = vld [vmem:[#allocation2 + $0xa8] sm:$0xf]  ;;  %v11763_v59 = vpop.f32.mrb[80].mxu1  ;;  %v11700_v11 = vpop.f32.mrb[81].mxu0 }
 0x208   : > { %v5364_v26 = vsel %vm14212_vm12, %v5359_v48, %v5363_v3  ;;  %v5379_v34 = vshll.u32 %v5072_v46, 16  ;;  %v5385_v25 = vshll.u32 %v5073_v56, 16  ;;  %v5389_v49 = vshrl.u32 %v5073_v56, 16  ;;  %v5076_v27 = vld [vmem:[#allocation2 + $0xac] sm:$0xf]  ;;  %v11702_v48 = vpop.f32.mrb[82].mxu0 }
 0x209   : > { %12463 = vmatprep.mubr.bf16.mxu1 %v10978_v33  ;;  %v5374_v9 = vsel %vm14212_vm12, %v5369_v14, %v5373_v61  ;;  %v14381_v5 = vadd.f32 %v11634_v45, %v14082_v8  ;;  %v5378_v20 = vrot.slane %v5376_v60, 4  ;;  %v5395_v17 = vshll.u32 %v5074_v32, 16  ;;  %v11764_v33 = vpop.f32.mrb[81].mxu1  ;;  %v11703_v45 = vpop.f32.mrb[83].mxu0  ;;  %v12950_v60 = vld [vmem:[#allocation5 + $0x140] sm:$0xff]  }
 0x20a   : > { %v10979_v54 = vcombine.low %v5364_v26, %v5374_v9  ;;  %v5381_v55 = vrot.slane %v5379_v34, 5  ;;  %v5387_v3 = vrot.slane %v5385_v25, 5  ;;  %v5391_v53 = vrot.slane %v5389_v49, 4  ;;  %v11766_v46 = vpop.f32.mrb[82].mxu1  ;;  %12131 = vmatprep.subr.bf16.mxu0 %v12950_v60  ;;  %v5078_v60 = vld [vmem:[#allocation2 + $0xb4] sm:$0xf] }
 0x20b   : > { %v5397_v35 = vrot.slane %v5395_v17, 5  ;;  %v5400_v13 = vshrl.u32 %v5075_v36, 16  ;;  %v11701_v6 = vadd.f32 %v11700_v11, %v11699_v4  ;;  %v5403_v47 = vshll.u32 %v5075_v36, 16  ;;  %v11767_v25 = vpop.f32.mrb[83].mxu1 }
 0x20c   : > { %v5382_v8 = vor.u32 %v5381_v55, %v5378_v20  ;;  %v5392_v14 = vor.u32 %v5391_v53, %v5387_v3  ;;  %v11765_v61 = vadd.f32 %v11764_v33, %v11763_v59  ;;  %v5409_v56 = vshll.u32 %v5076_v27, 16  ;;  %v11769_v33 = vpop.f32.mrb[84].mxu1 }
 0x20d   : > { %12464 = vmatmul.mubr.bf16.gmra.mrb[164].mxu1 %v10979_v54  ;;  %v5402_v26 = vrot.slane %v5400_v13, 4  ;;  %v5413_v32 = vshrl.u32 %v5076_v27, 16  ;;  %v14384_v9 = vadd.f32 %v11701_v6, %v14199_v52  ;;  %v11704_v34 = vadd.f32 %v11703_v45, %v11702_v48  ;;  %v11705_v13 = vpop.f32.mrb[84].mxu0 }
 0x20e   : > { %v5383_v49 = vrot.slane %v5382_v8, 4  ;;  %v5393_v23 = vrot.slane %v5392_v14, 4  ;;  %v11768_v54 = vadd.f32 %v11767_v25, %v11766_v46  ;;  %v14387_v20 = vadd.f32 %v11765_v61, %v14217_v38  ;;  %v11706_v48 = vpop.f32.mrb[85].mxu0 }
 0x20f   : > { %v5405_v17 = vrot.slane %v5403_v47, 5  ;;  %v5411_v4 = vrot.slane %v5409_v56, 5  ;;  %v14390_v55 = vadd.f32 %v11704_v34, %v14207_v16  ;;  %v5415_v36 = vrot.slane %v5413_v32, 4  ;;  %v11770_v47 = vpop.f32.mrb[85].mxu1  ;;  %v5079_v34 = vld [vmem:[#allocation2 + $0xb8] sm:$0xf] }
 0x210   : > { %v5388_v53 = vsel %vm14212_vm12, %v5383_v49, %v5387_v3  ;;  %v5398_v52 = vsel %vm14212_vm12, %v5393_v23, %v5397_v35  ;;  %v14397_v59 = vadd.f32 %v11768_v54, %v14228_v31  ;;  %v5419_v38 = vshll.u32 %v5077_v39, 16  ;;  %v11708_v3 = vpop.f32.mrb[86].mxu0  ;;  %v11772_v35 = vpop.f32.mrb[86].mxu1  ;;  %v5080_v54 = vld [vmem:[#allocation2 + $0xbc] sm:$0x1] }
 0x211   : > { %v10980_v11 = vcombine.low %v5388_v53, %v5398_v52  ;;  %v5406_v27 = vor.u32 %v5405_v17, %v5402_v26  ;;  %v5416_v6 = vor.u32 %v5415_v36, %v5411_v4  ;;  %v11707_v14 = vadd.f32 %v11706_v48, %v11705_v13  ;;  %v11709_v45 = vpop.f32.mrb[87].mxu0  ;;  %v11773_v56 = vpop.f32.mrb[87].mxu1  ;;  %v14409_v53 = vld [vmem:[#allocation3] sm:$0xff]   ;;  %v5081_v13 = vld [vmem:[#allocation2 + $0xc0] sm:$0xf] }
 0x212   : > { %v5421_v8 = vrot.slane %v5419_v38, 5  ;;  %v11771_v46 = vadd.f32 %v11770_v47, %v11769_v33  ;;  %v11710_v39 = vadd.f32 %v11709_v45, %v11708_v3  ;;  %v11774_v25 = vadd.f32 %v11773_v56, %v11772_v35 }
 0x213   : > { %12467 = vmatprep.mubr.bf16.mxu1 %v10980_v11  ;;  %v5407_v16 = vrot.slane %v5406_v27, 4  ;;  %v5417_v61 = vrot.slane %v5416_v6, 4  ;;  %v14402_v26 = vadd.f32 %v11707_v14, %v14220_v41  ;;  %v5424_v17 = vshrl.u32 %v5078_v60, 16 }
 0x214   : > { %v14407_v49 = vadd.f32 %v11771_v46, %v14253_v22  ;;  %v5427_v41 = vshll.u32 %v5078_v60, 16  ;;  %v5433_v52 = vshll.u32 %v5079_v34, 16  ;;  %v5437_v36 = vshrl.u32 %v5079_v34, 16  ;;  %v11711_v22 = vpop.f32.mrb[88].mxu0 }
 0x215   : > { %v5412_v31 = vsel %vm14212_vm12, %v5407_v16, %v5411_v4  ;;  %v5422_v32 = vsel %vm14212_vm12, %v5417_v61, %v5421_v8  ;;  %v14412_v4 = vadd.f32 %v11710_v39, %v14231_v0  ;;  %v14415_v11 = vadd.f32 %v11774_v25, %v14262_v57  ;;  %v5082_v16 = vld [vmem:[#allocation2 + $0xc4] sm:$0xf]  ;;  %v11775_v8 = vpop.f32.mrb[88].mxu1  ;;  %v11712_v14 = vpop.f32.mrb[89].mxu0 }
 0x216   : > { %v10981_v23 = vcombine.low %v5412_v31, %v5422_v32  ;;  %v5426_v27 = vrot.slane %v5424_v17, 4  ;;  %v5443_v38 = vshll.u32 %v5080_v54, 16  ;;  %v5429_v6 = vrot.slane %v5427_v41, 5  ;;  %v11776_v46 = vpop.f32.mrb[89].mxu1  ;;  %v11714_v35 = vpop.f32.mrb[90].mxu0 }
 0x217   : > { %v5435_v33 = vrot.slane %v5433_v52, 5  ;;  %v5439_v48 = vrot.slane %v5437_v36, 4  ;;  %v5448_v0 = vshrl.u32 %v5081_v13, 16  ;;  %v6748_v3 = vshll.u32 %v14409_v53, 16  ;;  %v5083_v31 = vld [vmem:[#allocation2 + $0xc8] sm:$0x1] }
 0x218   : > { %12468 = vmatmul.mubr.bf16.gmra.mrb[168].mxu1 %v10981_v23  ;;  %v5445_v47 = vrot.slane %v5443_v38, 5  ;;  %v11713_v61 = vadd.f32 %v11712_v14, %v11711_v22  ;;  %v5430_v57 = vor.u32 %v5429_v6, %v5426_v27  ;;  %v5451_v39 = vshll.u32 %v5081_v13, 16  ;;  %v11778_v32 = vpop.f32.mrb[90].mxu1  ;;  %v11715_v60 = vpop.f32.mrb[91].mxu0 }
 0x219   : > { %v5440_v45 = vor.u32 %v5439_v48, %v5435_v33  ;;  %v11777_v56 = vadd.f32 %v11776_v46, %v11775_v8  ;;  %v5450_v34 = vrot.slane %v5448_v0, 4  ;;  %v5457_v25 = vshll.u32 %v5082_v16, 16  ;;  %v11779_v41 = vpop.f32.mrb[91].mxu1 }
 0x21a   : > { %v5461_v23 = vshrl.u32 %v5082_v16, 16  ;;  %v14419_v54 = vadd.f32 %v11713_v61, %v14240_v21  ;;  %v11716_v17 = vadd.f32 %v11715_v60, %v11714_v35  ;;  %v5431_v52 = vrot.slane %v5430_v57, 4 }
 0x21b   : > { %v5441_v36 = vrot.slane %v5440_v45, 4  ;;  %v11780_v38 = vadd.f32 %v11779_v41, %v11778_v32  ;;  %v14422_v22 = vadd.f32 %v11777_v56, %v14278_v19  ;;  %v5453_v27 = vrot.slane %v5451_v39, 5  ;;  %v11717_v19 = vpop.f32.mrb[92].mxu0 }
 0x21c   : > { %v5459_v6 = vrot.slane %v5457_v25, 5  ;;  %v14425_v13 = vadd.f32 %v11716_v17, %v14248_v18  ;;  %v5436_v48 = vsel %vm14212_vm12, %v5431_v52, %v5435_v33  ;;  %v5463_v16 = vrot.slane %v5461_v23, 4  ;;  %v11781_v18 = vpop.f32.mrb[92].mxu1  ;;  %v11718_v45 = vpop.f32.mrb[93].mxu0 }
 0x21d   : > { %v5446_v21 = vsel %vm14212_vm12, %v5441_v36, %v5445_v47  ;;  %v14432_v8 = vadd.f32 %v11780_v38, %v14283_v30  ;;  %v5454_v0 = vor.u32 %v5453_v27, %v5450_v34  ;;  %v5467_v61 = vshll.u32 %v5083_v31, 16  ;;  %v11782_v32 = vpop.f32.mrb[93].mxu1  ;;  %v11720_v47 = vpop.f32.mrb[94].mxu0  ;;  %v12945_v34 = vld [vmem:[#allocation3 + $0x8] ss:$0 sps:$4 sm:$0x11]  }
 0x21e   : > { %v10982_v14 = vcombine.low %v5436_v48, %v5446_v21  ;;  %v5464_v46 = vor.u32 %v5463_v16, %v5459_v6  ;;  %v6746_v35 = vshrl.u32 %v14409_v53, 16  ;;  %v6750_v57 = vrot.slane %v6748_v3, 1  ;;  %v11784_v30 = vpop.f32.mrb[94].mxu1  ;;  %v11721_v23 = vpop.f32.mrb[95].mxu0  ;;  %v15629_v21 = vld [vmem:[#allocation12_spill] sm:$0xff] }
 0x21f   : > { %v5455_v39 = vrot.slane %v5454_v0, 4  ;;  %v5469_v33 = vrot.slane %v5467_v61, 5  ;;  %v11719_v56 = vadd.f32 %v11718_v45, %v11717_v19  ;;  %v11783_v25 = vadd.f32 %v11782_v32, %v11781_v18  ;;  %v11785_v3 = vpop.f32.mrb[95].mxu1  ;;  %v12953_v0 = vld [vmem:[#allocation5 + $0x100] sm:$0xff]   ;;  %v11723_v61 = vpop.f32.mrb[96].mxu0 }
 0x220   : > { %12471 = vmatprep.mubr.bf16.mxu1 %v10982_v14  ;;  %v5465_v60 = vrot.slane %v5464_v46, 4  ;;  %v11722_v53 = vadd.f32 %v11721_v23, %v11720_v47  ;;  %v6751_v52 = vor.u32 %v6750_v57, %v6746_v35  ;;  %v11786_v36 = vadd.f32 %v11785_v3, %v11784_v30  ;;  %v12947_v14 = vld [vmem:[#allocation3] sm:$0xff]   ;;  %v11787_v24 = vpop.f32.mrb[96].mxu1  ;;  %v11724_v46 = vpop.f32.mrb[97].mxu0 }
 0x221   : > { %v5460_v31 = vsel %vm14212_vm12, %v5455_v39, %v5459_v6  ;;  %v14438_v17 = vadd.f32 %v11719_v56, %v14266_v51  ;;  %v14443_v38 = vadd.f32 %v11783_v25, %v14293_v7  ;;  %v6753_v48 = vshll.u32 %v12945_v34, 16  ;;  %v11788_v35 = vpop.f32.mrb[97].mxu1  ;;  %v12964_v7 = vld [vmem:[#allocation5 + $0x148] sm:$0xff]   ;;  %v11726_v45 = vpop.f32.mrb[98].mxu0 }
 0x222   : > { %v5470_v41 = vsel %vm14212_vm12, %v5465_v60, %v5469_v33  ;;  %v14446_v16 = vadd.f32 %v11722_v53, %v15629_v21  ;;  %v14449_v6 = vadd.f32 %v11786_v36, %v14301_v43  ;;  %v11725_v57 = vadd.f32 %v11724_v46, %v11723_v61  ;;  %v11790_v39 = vpop.f32.mrb[98].mxu1  ;;  %v11727_v33 = vpop.f32.mrb[99].mxu0  ;;  %v12969_v56 = vld [vmem:[#allocation5 + $0x108] sm:$0xff]  }
 0x223   : > { %v10983_v27 = vcombine.low %v5460_v31, %v5470_v41  ;;  %v6755_v51 = vrot.slane %v6753_v48, 1  ;;  %v11789_v18 = vadd.f32 %v11788_v35, %v11787_v24  ;;  %v11791_v43 = vpop.f32.mrb[99].mxu1  ;;  %v11728_v47 = vadd.f32 %v11727_v33, %v11726_v45 }
 0x224   : > { %v14453_v32 = vadd.f32 %v11725_v57, %v14288_v1  ;;  %v11792_v60 = vadd.f32 %v11791_v43, %v11790_v39 }
 0x225   : > { %12472 = vmatmul.mubr.bf16.gmra.mrb[172].mxu1 %v10983_v27  ;;  %v6756_v19 = vsel %vm1318_vm2, %v6751_v52, %v6755_v51  ;;  %v14456_v25 = vadd.f32 %v11789_v18, %v14313_v62  ;;  %v14459_v30 = vadd.f32 %v11728_v47, %v14296_v10  ;;  %v11793_v34 = vpop.f32.mrb[100].mxu1 }
 0x226   : > { %9578 = vmatprep.mubr.bf16.mxu0 %v6756_v19  ;;  %v14462_v23 = vadd.f32 %v11792_v60, %v14319_v15  ;;  %v11794_v3 = vpop.f32.mrb[101].mxu1 }
 0x227   : > { %9579 = vmatmul.mubr.bf16.vlgmr.msra.gmra.mrb[144].mxu0 %v12947_v14  ;;  %v11729_v31 = vpop.f32.mrb[100].mxu0  ;;  %v11795_v1 = vadd.f32 %v11794_v3, %v11793_v34  ;;  %v11796_v36 = vpop.f32.mrb[102].mxu1  ;;  %v12983_v3 = vld [vmem:[#allocation5 + $0x110] sm:$0xff]  }
 0x228   : > { %12132 = vmatpush3.bf16.msra.mxu0 %v12953_v0  ;;  %v11730_v53 = vpop.f32.mrb[101].mxu0  ;;  %v11797_v48 = vpop.f32.mrb[103].mxu1 }
 0x229   : > { %12133 = vmatprep.subr.bf16.mxu0 %v12964_v7  ;;  %v11731_v41 = vadd.f32 %v11730_v53, %v11729_v31  ;;  %v11732_v52 = vpop.f32.mrb[102].mxu0  ;;  %v11798_v10 = vadd.f32 %v11797_v48, %v11796_v36  ;;  %v14468_v51 = vadd.f32 %v11795_v1, %v14330_v2 }
 0x22a   : > { %v11733_v27 = vpop.f32.mrb[103].mxu0 }
 0x22b   : > { %v14465_v62 = vadd.f32 %v11731_v41, %v14306_v28  ;;  %v11734_v21 = vadd.f32 %v11733_v27, %v11732_v52  ;;  %v14474_v14 = vadd.f32 %v11798_v10, %v14339_v58  ;;  %v12992_v27 = vld [vmem:[#allocation5 + $0x158] sm:$0xff]  }
 0x22c   : > { %12134 = vmatpush3.bf16.msra.mxu0 %v12969_v56 }
 0x22d   : > { %v14471_v15 = vadd.f32 %v11734_v21, %v14316_v44  ;;  %v11799_v0 = vpop.f32.mrb[104].mxu1 }
 0x22e   : > { %v11800_v24 = vpop.f32.mrb[105].mxu1 }
 0x22f   : > { %v11735_v61 = vpop.f32.mrb[104].mxu0  ;;  %v11801_v46 = vadd.f32 %v11800_v24, %v11799_v0  ;;  %v11802_v35 = vpop.f32.mrb[106].mxu1 }
 0x230   : > { %v11736_v19 = vpop.f32.mrb[105].mxu0  ;;  %v11803_v57 = vpop.f32.mrb[107].mxu1 }
 0x231   : > { %v11737_v7 = vadd.f32 %v11736_v19, %v11735_v61  ;;  %v11738_v28 = vpop.f32.mrb[106].mxu0  ;;  %v11804_v45 = vadd.f32 %v11803_v57, %v11802_v35  ;;  %v14477_v2 = vadd.f32 %v11801_v46, %v14350_v40  ;;  %v12978_v40 = vld [vmem:[#allocation5 + $0x150] sm:$0xff]   ;;  %v12951_v19 = vld [vmem:[#allocation3] sm:$0xfe]  }
 0x232   : > { %v11739_v18 = vpop.f32.mrb[107].mxu0  ;;  %12135 = vmatprep.subr.bf16.mxu0 %v12978_v40  ;;  %v12952_v35 = vld [vmem:[#allocation3 + $0x8] ss:$0 sps:$4 sm:$0x11]  }
 0x233   : > { %v14480_v44 = vadd.f32 %v11737_v7, %v14333_v37  ;;  %v11740_v39 = vadd.f32 %v11739_v18, %v11738_v28  ;;  %v14483_v58 = vadd.f32 %v11804_v45, %v14355_v42  ;;  %12136 = vmatpush3.bf16.msra.mxu0 %v12983_v3  ;;  %v14511_v28 = vld [vmem:[%s15599_s3] ss:$0 sm:$0xff]  ;;  %v7146_v3 = vrot.slane %v12952_v35, 1 }
 0x234   : > { %12137 = vmatprep.subr.bf16.mxu0 %v12992_v27 }
 0x235   : > { %15630 = vst [vmem:[#allocation12_spill] sm:$0xff] %v14480_v44  ;;  %v14486_v33 = vadd.f32 %v11740_v39, %v14342_v29  ;;  %v11805_v43 = vpop.f32.mrb[108].mxu1 }
 0x236   : > { %v11806_v56 = vpop.f32.mrb[109].mxu1 }
 0x237   : > { %15631 = vst [vmem:[#allocation13_spill] sm:$0xff] %v14486_v33  ;;  %v11807_v47 = vadd.f32 %v11806_v56, %v11805_v43  ;;  %v11808_v60 = vpop.f32.mrb[110].mxu1  ;;  %v11741_v37 = vpop.f32.mrb[108].mxu0  ;;  %v12997_v43 = vld [vmem:[#allocation5 + $0x118] sm:$0xff]   ;;  %v13013_v33 = vld [vmem:[#allocation5 + $0x120] sm:$0xff]  }
 0x238   : > { %v11809_v31 = vpop.f32.mrb[111].mxu1  ;;  %v11742_v41 = vpop.f32.mrb[109].mxu0  ;;  %12138 = vmatpush3.bf16.msra.mxu0 %v12997_v43 }
 0x239   : > { %v11810_v34 = vadd.f32 %v11809_v31, %v11808_v60  ;;  %v14489_v53 = vadd.f32 %v11807_v47, %v14364_v63  ;;  %v11743_v42 = vadd.f32 %v11742_v41, %v11741_v37  ;;  %v11744_v29 = vpop.f32.mrb[110].mxu0 }
 0x23a   : > { %v11745_v52 = vpop.f32.mrb[111].mxu0 }
 0x23b   : > { %v14492_v1 = vadd.f32 %v11810_v34, %v14369_v50  ;;  %v14495_v48 = vadd.f32 %v11743_v42, %v14374_v12  ;;  %v11746_v21 = vadd.f32 %v11745_v52, %v11744_v29  ;;  %v14503_v50 = vld [vmem:[%s15598_s2] ss:$0 sm:$0xff] }
 0x23d   : > { %v11811_v36 = vpop.f32.mrb[112].mxu1  ;;  %15632 = vst [vmem:[#allocation14_spill] sm:$0xff] %v14495_v48  ;;  %v14498_v61 = vadd.f32 %v11746_v21, %v14381_v5 }
 0x23e   : > { %v11812_v63 = vpop.f32.mrb[113].mxu1 }
 0x23f   : > { %v11813_v10 = vadd.f32 %v11812_v63, %v11811_v36  ;;  %v11814_v0 = vpop.f32.mrb[114].mxu1  ;;  %15633 = vst [vmem:[#allocation15_spill] sm:$0xff] %v14498_v61  ;;  %v12397_v7 = vpop.f32.mrb[112].mxu0 }
 0x240   : > { %v11815_v24 = vpop.f32.mrb[115].mxu1  ;;  %v4808_v5 = vadd.f32 %v12397_v7, %v14407_v49  ;;  %v4799_v57 = vpop.f32.mrb[113].mxu0  ;;  %v7145_v49 = vrot.slane %v12951_v19, 1 }
 0x241   : > { %v11816_v46 = vadd.f32 %v11815_v24, %v11814_v0  ;;  %v14506_v12 = vadd.f32 %v11813_v10, %v14384_v9  ;;  %v4800_v45 = vadd.f32 %v4799_v57, %v14387_v20  ;;  %v12398_v39 = vpop.f32.mrb[114].mxu0 }
 0x242   : > { %v4935_v56 = vmul.f32 %v14503_v50, %v4808_v5  ;;  %v4811_v9 = vadd.f32 %v12398_v39, %v14415_v11  ;;  %v4802_v47 = vpop.f32.mrb[115].mxu0  ;;  %v14533_v35 = vsel %vm1719_vm9, %v7145_v49, %v7146_v3 }
 0x243   : > { %v14515_v18 = vadd.f32 %v11816_v46, %v14390_v55  ;;  %v4933_v60 = vmul.f32 %v14503_v50, %v4800_v45  ;;  %v4803_v31 = vadd.f32 %v4802_v47, %v14397_v59 }
 0x244   : > { %v4974_v55 = vadd.f32 %v14511_v28, %v4935_v56  ;;  %v4936_v40 = vmul.f32 %v14503_v50, %v4811_v9 }
 0x245   : > { %v11817_v34 = vpop.f32.mrb[116].mxu1  ;;  %v4972_v37 = vadd.f32 %v14511_v28, %v4933_v60  ;;  %v4934_v41 = vmul.f32 %v14503_v50, %v4803_v31  ;;  %v13008_v60 = vld [vmem:[#allocation5 + $0x160] sm:$0xff]  }
 0x246   : > { %v11818_v20 = vpop.f32.mrb[117].mxu1  ;;  %v5006_v29 = vmax.f32 %v4974_v55, 0.0  ;;  %v4975_v52 = vadd.f32 %v14511_v28, %v4936_v40  ;;  %12139 = vmatprep.subr.bf16.mxu0 %v13008_v60 }
 0x247   : > { %v11819_v11 = vadd.f32 %v11818_v20, %v11817_v34  ;;  %v11820_v42 = vpop.f32.mrb[118].mxu1  ;;  %v5004_v36 = vmax.f32 %v4972_v37, 0.0  ;;  %v4973_v27 = vadd.f32 %v14511_v28, %v4934_v41  ;;  %v12401_v21 = vpop.f32.mrb[116].mxu0  ;;  %12140 = vmatpush3.bf16.msra.mxu0 %v13013_v33 }
 0x248   : > { %v11821_v59 = vpop.f32.mrb[119].mxu1  ;;  %v11380_v0 = vpack.c.bf16 %v5006_v29, %v5006_v29  ;;  %v5007_v24 = vmax.f32 %v4975_v52, 0.0  ;;  %v4824_v19 = vadd.f32 %v12401_v21, %v14443_v38  ;;  %v4815_v46 = vpop.f32.mrb[117].mxu0  ;;  %v13005_v38 = vld [vmem:[#allocation5 + $0x1c0] sm:$0xff]  }
 0x249   : > { %v11822_v63 = vadd.f32 %v11821_v59, %v11820_v42  ;;  %v14529_v10 = vadd.f32 %v11819_v11, %v14402_v26  ;;  %v11378_v7 = vpack.c.bf16 %v5004_v36, %v5004_v36  ;;  %v5005_v5 = vmax.f32 %v4973_v27, 0.0  ;;  %v14536_v45 = vpop.f32.mrb[118].mxu0  ;;  %12243 = vmatprep.subr.bf16.mxu1 %v13005_v38  ;;  %v6320_v11 = vld [vmem:[#allocation3 + $0x18] sm:$0xf] }
 0x24a   : > { %v4816_v57 = vadd.f32 %v4815_v46, %v14422_v22  ;;  %v6006_v43 = vshrl.u32 %v11380_v0, 16  ;;  %v6009_v26 = vshll.u32 %v11380_v0, 16  ;;  %v11381_v56 = vpack.c.bf16 %v5007_v24, %v5007_v24  ;;  %v14542_v47 = vpop.f32.mrb[119].mxu0 }
 0x24b   : > { %v14539_v39 = vadd.f32 %v11822_v63, %v14412_v4  ;;  %v4939_v9 = vmul.f32 %v14503_v50, %v4824_v19  ;;  %v5989_v31 = vshrl.u32 %v11378_v7, 16  ;;  %v5992_v34 = vshll.u32 %v11378_v7, 16  ;;  %v6311_v63 = vld [vmem:[#allocation3 + $0xc] sm:$0xf] }
 0x24c   : > { %v11379_v49 = vpack.c.bf16 %v5005_v5, %v5005_v5  ;;  %v4937_v55 = vmul.f32 %v14503_v50, %v4816_v57  ;;  %v6008_v40 = vrot.slane %v6006_v43, 7  ;;  %v6014_v20 = vshrl.u32 %v11381_v56, 16  ;;  %v6324_v57 = vld [vmem:[#allocation3 + $0x20] sm:$0x1] }
 0x24d   : > { %v11823_v22 = vpop.f32.mrb[120].mxu1  ;;  %v6017_v3 = vshll.u32 %v11381_v56, 16  ;;  %v4978_v4 = vadd.f32 %v14511_v28, %v4939_v9  ;;  %v5991_v42 = vrot.slane %v5989_v31, 7  ;;  %v6317_v31 = vld [vmem:[#allocation3 + $0x14] sm:$0x1] }
 0x24e   : > { %v11824_v37 = vpop.f32.mrb[121].mxu1  ;;  %v5997_v29 = vshrl.u32 %v11379_v49, 16  ;;  %v6000_v52 = vshll.u32 %v11379_v49, 16  ;;  %v4976_v59 = vadd.f32 %v14511_v28, %v4937_v55  ;;  %v6011_v27 = vor.u32 %v6009_v26, %v6008_v40 }
 0x24f   : > { %v14553_v36 = vpop.f32.mrb[122].mxu1  ;;  %v6012_v21 = vrot.slane %v6008_v40, 4  ;;  %v6016_v0 = vrot.slane %v6014_v20, 7  ;;  %v5010_v24 = vmax.f32 %v4978_v4, 0.0  ;;  %v5994_v46 = vor.u32 %v5992_v34, %v5991_v42  ;;  %v12405_v9 = vpop.f32.mrb[120].mxu0 }
 0x250   : > { %v14555_v19 = vpop.f32.mrb[123].mxu1  ;;  %v5995_v7 = vrot.slane %v5991_v42, 4  ;;  %v5999_v43 = vrot.slane %v5997_v29, 7  ;;  %v5008_v56 = vmax.f32 %v4976_v59, 0.0  ;;  %v6321_v26 = vsel %vm14548_vm15, %v6011_v27, %v6320_v11  ;;  %v4831_v55 = vpop.f32.mrb[121].mxu0 }
 0x251   : > { %v6019_v38 = vor.u32 %v6017_v3, %v6016_v0  ;;  %v6021_v60 = vrot.slane %v6016_v0, 4  ;;  %v11384_v49 = vpack.c.bf16 %v5010_v24, %v5010_v24  ;;  %6322 = vst [vmem:[#allocation3 + $0x18] sm:$0xf] %v6321_v26  ;;  %v6312_v34 = vsel %vm14548_vm15, %v5994_v46, %v6311_v63  ;;  %v12406_v42 = vpop.f32.mrb[122].mxu0  ;;  %v6334_v26 = vld [vmem:[#allocation3 + $0x30] sm:$0xf] }
 0x252   : > { %v6002_v40 = vor.u32 %v6000_v52, %v5999_v43  ;;  %v6004_v20 = vrot.slane %v5999_v43, 4  ;;  %v11382_v4 = vpack.c.bf16 %v5008_v56, %v5008_v56  ;;  %6313 = vst [vmem:[#allocation3 + $0xc] sm:$0xf] %v6312_v34  ;;  %v4834_v0 = vpop.f32.mrb[123].mxu0  ;;  %v4819_v43 = vadd.f32 %v14542_v47, %v14432_v8  ;;  %v6327_v34 = vld [vmem:[#allocation3 + $0x24] sm:$0xf] }
 0x253   : > { %v6020_v59 = vsel %vm13627_vm6, %v6012_v21, %v6019_v38  ;;  %v6325_v3 = vsel %vm14559_vm1, %v6021_v60, %v6324_v57  ;;  %v6040_v11 = vshrl.u32 %v11384_v49, 16  ;;  %v6043_v27 = vshll.u32 %v11384_v49, 16  ;;  %v13021_v47 = vld [vmem:[#allocation5 + $0x1c8] sm:$0xff]  }
 0x254   : > { %6323 = vst [vmem:[#allocation3 + $0x1c] sm:$0xf] %v6020_v59  ;;  %6326 = vst [vmem:[#allocation3 + $0x20] sm:$0x1] %v6325_v3  ;;  %v6003_v63 = vsel %vm13627_vm6, %v5995_v7, %v6002_v40  ;;  %v6318_v52 = vsel %vm14559_vm1, %v6004_v20, %v6317_v31  ;;  %v6023_v24 = vshrl.u32 %v11382_v4, 16  ;;  %v6026_v46 = vshll.u32 %v11382_v4, 16 }
 0x255   : > { %6314 = vst [vmem:[#allocation3 + $0x10] sm:$0xf] %v6003_v63  ;;  %6319 = vst [vmem:[#allocation3 + $0x14] sm:$0x1] %v6318_v52  ;;  %v14575_v21 = vrot.slane %v6040_v11, 7  ;;  %v4827_v57 = vadd.f32 %v14536_v45, %v14449_v6  ;;  %v4840_v56 = vadd.f32 %v12405_v9, %v14468_v51  ;;  %v14584_v38 = vadd.f32 %v11824_v37, %v11823_v22  ;;  %v11829_v45 = vpop.f32.mrb[124].mxu1 }
 0x256   : > { %v14582_v7 = vrot.slane %v6023_v24, 7  ;;  %v4832_v60 = vadd.f32 %v4831_v55, %v14456_v25  ;;  %v4843_v33 = vadd.f32 %v12406_v42, %v14474_v14  ;;  %v4938_v8 = vmul.f32 %v14503_v50, %v4819_v43  ;;  %v11830_v37 = vpop.f32.mrb[125].mxu1 }
 0x257   : > { %v6045_v31 = vor.u32 %v6043_v27, %v14575_v21  ;;  %v4940_v6 = vmul.f32 %v14503_v50, %v4827_v57  ;;  %v4943_v22 = vmul.f32 %v14503_v50, %v4840_v56  ;;  %v14601_v4 = vpop.f32.mrb[126].mxu1  ;;  %v14609_v11 = vadd.f32 %v14555_v19, %v14553_v36  ;;  %v13006_v56 = vld [vmem:[#allocation5 + $0x180] sm:$0xff]  }
 0x258   : > { %v6028_v51 = vor.u32 %v6026_v46, %v14582_v7  ;;  %v4941_v25 = vmul.f32 %v14503_v50, %v4832_v60  ;;  %v4977_v55 = vadd.f32 %v14511_v28, %v4938_v8  ;;  %v4944_v40 = vmul.f32 %v14503_v50, %v4843_v33  ;;  %v12409_v20 = vpop.f32.mrb[124].mxu0  ;;  %v14611_v63 = vpop.f32.mrb[127].mxu1 }
 0x259   : > { %v6335_v14 = vsel %vm14548_vm15, %v6045_v31, %v6334_v26  ;;  %v4979_v9 = vadd.f32 %v14511_v28, %v4940_v6  ;;  %v4982_v59 = vadd.f32 %v14511_v28, %v4943_v22  ;;  %v4847_v27 = vpop.f32.mrb[125].mxu0  ;;  %v4835_v57 = vadd.f32 %v4834_v0, %v14462_v23 }
 0x25a   : > { %6336 = vst [vmem:[#allocation3 + $0x30] sm:$0xf] %v6335_v14  ;;  %v6328_v42 = vsel %vm14548_vm15, %v6028_v51, %v6327_v34  ;;  %v4980_v3 = vadd.f32 %v14511_v28, %v4941_v25  ;;  %v5009_v24 = vmax.f32 %v4977_v55, 0.0  ;;  %v4983_v46 = vadd.f32 %v14511_v28, %v4944_v40  ;;  %v14615_v43 = vpop.f32.mrb[126].mxu0  ;;  %v6338_v40 = vld [vmem:[#allocation3 + $0x38] sm:$0x1] }
 0x25b   : > { %6329 = vst [vmem:[#allocation3 + $0x24] sm:$0xf] %v6328_v42  ;;  %v5011_v52 = vmax.f32 %v4979_v9, 0.0  ;;  %v5014_v26 = vmax.f32 %v4982_v59, 0.0  ;;  %v4856_v33 = vadd.f32 %v12409_v20, %v14489_v53  ;;  %v14618_v31 = vadd.f32 %v11830_v37, %v11829_v45  ;;  %v14620_v36 = vpop.f32.mrb[127].mxu0  ;;  %v12954_v14 = vld [vmem:[#allocation3 + $0x18] sm:$0xff]  }
 0x25c   : > { %v5012_v60 = vmax.f32 %v4980_v3, 0.0  ;;  %v12949_v19 = vld [vmem:[#allocation3 + $0xc] sm:$0xff]   ;;  %v11383_v6 = vpack.c.bf16 %v5009_v24, %v5009_v24  ;;  %v5015_v8 = vmax.f32 %v4983_v46, 0.0  ;;  %v4942_v51 = vmul.f32 %v14503_v50, %v4835_v57  ;;  %v6348_v46 = vld [vmem:[#allocation3 + $0x48] sm:$0xf] }
 0x25d   : > { %v11385_v34 = vpack.c.bf16 %v5011_v52, %v5011_v52  ;;  %v11388_v22 = vpack.c.bf16 %v5014_v26, %v5014_v26  ;;  %v4947_v23 = vmul.f32 %v14503_v50, %v4856_v33  ;;  %v4848_v0 = vadd.f32 %v4847_v27, %v14477_v2  ;;  %9739 = vmatprep.mubr.bf16.mxu1 %v12949_v19  ;;  %v14625_v55 = vpop.f32.mrb[128].mxu1  ;;  %v6331_v20 = vld [vmem:[#allocation3 + $0x2c] sm:$0x1]  ;;  %v6341_v57 = vld [vmem:[#allocation3 + $0x3c] sm:$0xf] }
 0x25e   : > { %v11386_v25 = vpack.c.bf16 %v5012_v60, %v5012_v60  ;;  %v6031_v45 = vshrl.u32 %v11383_v6, 16  ;;  %v6034_v37 = vshll.u32 %v11383_v6, 16  ;;  %9740 = vmatmul.mubr.bf16.vlgmr.msra.gmra.mrb[176].mxu1 %v14533_v35  ;;  %v14628_v24 = vpop.f32.mrb[129].mxu1  ;;  %v11389_v26 = vpack.c.bf16 %v5015_v8, %v5015_v8 }
 0x25f   : > { %v6048_v9 = vshrl.u32 %v11385_v34, 16  ;;  %v6051_v53 = vshll.u32 %v11385_v34, 16  ;;  %v6074_v42 = vshrl.u32 %v11388_v22, 16  ;;  %v6077_v59 = vshll.u32 %v11388_v22, 16  ;;  %9747 = vmatprep.mubr.bf16.mxu1 %v12954_v14  ;;  %12244 = vmatpush3.bf16.msra.mxu1 %v13006_v56  ;;  %v14631_v19 = vpop.f32.mrb[130].mxu1 }
 0x260   : > { %v6057_v3 = vshrl.u32 %v11386_v25, 16  ;;  %v6060_v52 = vshll.u32 %v11386_v25, 16  ;;  %v6033_v27 = vrot.slane %v6031_v45, 7  ;;  %v4981_v60 = vadd.f32 %v14511_v28, %v4942_v51  ;;  %v14641_v56 = vpop.f32.mrb[131].mxu1  ;;  %12245 = vmatprep.subr.bf16.mxu1 %v13021_v47 }
 0x261   : > { %v6050_v2 = vrot.slane %v6048_v9, 7  ;;  %v12413_v33 = vpop.f32.mrb[128].mxu0  ;;  %v14633_v35 = vrot.slane %v6074_v42, 7  ;;  %v4986_v6 = vadd.f32 %v14511_v28, %v4947_v23  ;;  %v4945_v22 = vmul.f32 %v14503_v50, %v4848_v0 }
 0x262   : > { %v14635_v34 = vrot.slane %v6057_v3, 7  ;;  %v14639_v25 = vpop.f32.mrb[129].mxu0  ;;  %v6036_v8 = vor.u32 %v6034_v37, %v6033_v27  ;;  %v6038_v45 = vrot.slane %v6033_v27, 4  ;;  %v15639_v61 = vrot.slane %v14575_v21, 4 }
 0x263   : > { %v6053_v14 = vor.u32 %v6051_v53, %v6050_v2  ;;  %v6055_v9 = vrot.slane %v6050_v2, 4  ;;  %v14643_v51 = vpop.f32.mrb[130].mxu0  ;;  %v6079_v42 = vor.u32 %v6077_v59, %v14633_v35  ;;  %v6080_v3 = vrot.slane %v14633_v35, 4 }
 0x264   : > { %v6062_v49 = vor.u32 %v6060_v52, %v14635_v34  ;;  %v6063_v23 = vrot.slane %v14635_v34, 4  ;;  %v14649_v0 = vpop.f32.mrb[131].mxu0  ;;  %v15640_v2 = vrot.slane %v14582_v7, 4  ;;  %v6332_v52 = vsel %vm14559_vm1, %v6038_v45, %v6331_v20  ;;  %v6352_v7 = vld [vmem:[#allocation3 + $0x50] sm:$0x1] }
 0x265   : > { %v6054_v53 = vsel %vm13627_vm6, %v15639_v61, %v6053_v14  ;;  %v6339_v37 = vsel %vm14559_vm1, %v6055_v9, %v6338_v40  ;;  %6333 = vst [vmem:[#allocation3 + $0x2c] sm:$0x1] %v6332_v52  ;;  %v6349_v21 = vsel %vm14548_vm15, %v6079_v42, %v6348_v46  ;;  %v6082_v40 = vshrl.u32 %v11389_v26, 16  ;;  %v13022_v9 = vld [vmem:[#allocation5 + $0x188] sm:$0xff]  }
 0x266   : > { %v6037_v59 = vsel %vm13627_vm6, %v15640_v2, %v6036_v8  ;;  %6337 = vst [vmem:[#allocation3 + $0x34] sm:$0xf] %v6054_v53  ;;  %6340 = vst [vmem:[#allocation3 + $0x38] sm:$0x1] %v6339_v37  ;;  %v6342_v61 = vsel %vm14548_vm15, %v6062_v49, %v6341_v57  ;;  %v6085_v27 = vshll.u32 %v11389_v26, 16  ;;  %v5013_v35 = vmax.f32 %v4981_v60, 0.0  ;;  %12246 = vmatpush3.bf16.msra.mxu1 %v13022_v9 }
 0x267   : > { %6330 = vst [vmem:[#allocation3 + $0x28] sm:$0xf] %v6037_v59  ;;  %6350 = vst [vmem:[#allocation3 + $0x48] sm:$0xf] %v6349_v21  ;;  %v5018_v14 = vmax.f32 %v4986_v6, 0.0  ;;  %v4984_v20 = vadd.f32 %v14511_v28, %v4945_v22  ;;  %v4859_v47 = vadd.f32 %v14615_v43, %v14492_v1  ;;  %v6084_v8 = vrot.slane %v6082_v40, 7 }
 0x268   : > { %6343 = vst [vmem:[#allocation3 + $0x3c] sm:$0xf] %v6342_v61  ;;  %v14672_v46 = vadd.f32 %v14611_v63, %v14601_v4  ;;  %v4851_v49 = vadd.f32 %v14620_v36, %v14483_v58  ;;  %v4872_v57 = vadd.f32 %v12413_v33, %v14529_v10  ;;  %v13024_v26 = vld [vmem:[#allocation5 + $0x168] sm:$0xff]   ;;  %v11387_v45 = vpack.c.bf16 %v5013_v35, %v5013_v35  ;;  %v14678_v42 = vpop.f32.mrb[132].mxu1 }
 0x269   : > { %v11392_v60 = vpack.c.bf16 %v5018_v14, %v5018_v14  ;;  %v5016_v6 = vmax.f32 %v4984_v20, 0.0  ;;  %v4948_v22 = vmul.f32 %v14503_v50, %v4859_v47  ;;  %v6087_v1 = vor.u32 %v6085_v27, %v6084_v8  ;;  %v14682_v63 = vpop.f32.mrb[133].mxu1  ;;  %12141 = vmatprep.subr.bf16.mxu0 %v13024_v26  ;;  %v14684_v37 = vpop.f32.mrb[132].mxu0  ;;  %v6345_v21 = vld [vmem:[#allocation3 + $0x44] sm:$0x1] }
 0x26a   : > { %v6089_v43 = vrot.slane %v6084_v8, 4  ;;  %v4946_v53 = vmul.f32 %v14503_v50, %v4851_v49  ;;  %v4951_v4 = vmul.f32 %v14503_v50, %v4872_v57  ;;  %v6065_v58 = vshrl.u32 %v11387_v45, 16  ;;  %v14686_v2 = vpop.f32.mrb[134].mxu1  ;;  %v6362_v61 = vld [vmem:[#allocation3 + $0x60] sm:$0xf]  ;;  %v14693_v35 = vpop.f32.mrb[133].mxu0 }
 0x26b   : > { %v6068_v10 = vshll.u32 %v11387_v45, 16  ;;  %v6108_v36 = vshrl.u32 %v11392_v60, 16  ;;  %v6111_v33 = vshll.u32 %v11392_v60, 16  ;;  %v6088_v59 = vsel %vm13627_vm6, %v6080_v3, %v6087_v1  ;;  %v14695_v14 = vpop.f32.mrb[135].mxu1  ;;  %v14701_v8 = vpop.f32.mrb[134].mxu0 }
 0x26c   : > { %v6353_v52 = vsel %vm14559_vm1, %v6089_v43, %v6352_v7  ;;  %v11390_v40 = vpack.c.bf16 %v5016_v6, %v5016_v6  ;;  %v4987_v27 = vadd.f32 %v14511_v28, %v4948_v22  ;;  %6351 = vst [vmem:[#allocation3 + $0x4c] sm:$0xf] %v6088_v59  ;;  %v6067_v20 = vrot.slane %v6065_v58, 7  ;;  %v14707_v45 = vpop.f32.mrb[135].mxu0 }
 0x26d   : > { %6354 = vst [vmem:[#allocation3 + $0x50] sm:$0x1] %v6353_v52  ;;  %v14697_v47 = vrot.slane %v6108_v36, 7  ;;  %v4985_v9 = vadd.f32 %v14511_v28, %v4946_v53  ;;  %v4990_v3 = vadd.f32 %v14511_v28, %v4951_v4  ;;  %v14705_v26 = vadd.f32 %v14628_v24, %v14625_v55 }
 0x26e   : > { %v6091_v7 = vshrl.u32 %v11390_v40, 16  ;;  %v6094_v49 = vshll.u32 %v11390_v40, 16  ;;  %v5019_v57 = vmax.f32 %v4987_v27, 0.0  ;;  %v6070_v60 = vor.u32 %v6068_v10, %v6067_v20  ;;  %v6355_v10 = vld [vmem:[#allocation3 + $0x54] sm:$0xf]  ;;  %v14723_v59 = vpop.f32.mrb[136].mxu1 }
 0x26f   : > { %v6072_v6 = vrot.slane %v6067_v20, 4  ;;  %v6113_v22 = vor.u32 %v6111_v33, %v14697_v47  ;;  %v6114_v1 = vrot.slane %v14697_v47, 4  ;;  %v5017_v4 = vmax.f32 %v4985_v9, 0.0  ;;  %v14727_v27 = vpop.f32.mrb[137].mxu1 }
 0x270   : > { %v14711_v43 = vrot.slane %v6091_v7, 7  ;;  %v11393_v53 = vpack.c.bf16 %v5019_v57, %v5019_v57  ;;  %v5022_v58 = vmax.f32 %v4990_v3, 0.0  ;;  %v6071_v36 = vsel %vm13627_vm6, %v6063_v23, %v6070_v60  ;;  %v14736_v3 = vpop.f32.mrb[138].mxu1 }
 0x271   : > { %v6346_v55 = vsel %vm14559_vm1, %v6072_v6, %v6345_v21  ;;  %v6363_v24 = vsel %vm14548_vm15, %v6113_v22, %v6362_v61  ;;  %v4864_v33 = vadd.f32 %v14639_v25, %v14506_v12  ;;  %6344 = vst [vmem:[#allocation3 + $0x40] sm:$0xf] %v6071_v36  ;;  %v6366_v21 = vld [vmem:[#allocation3 + $0x68] sm:$0x1]  ;;  %v11391_v20 = vpack.c.bf16 %v5017_v4, %v5017_v4  ;;  %v14732_v25 = vld [vmem:[#allocation3 + $0xc] sm:$0xff]   ;;  %v14734_v9 = vpop.f32.mrb[136].mxu0 }
 0x272   : > { %6347 = vst [vmem:[#allocation3 + $0x44] sm:$0x1] %v6346_v55  ;;  %6364 = vst [vmem:[#allocation3 + $0x60] sm:$0xf] %v6363_v24  ;;  %v6096_v34 = vor.u32 %v6094_v49, %v14711_v43  ;;  %v6097_v52 = vrot.slane %v14711_v43, 4  ;;  %v6116_v23 = vshrl.u32 %v11393_v53, 16  ;;  %v11396_v61 = vpack.c.bf16 %v5022_v58, %v5022_v58 }
 0x273   : > { %v6119_v40 = vshll.u32 %v11393_v53, 16  ;;  %v4949_v47 = vmul.f32 %v14503_v50, %v4864_v33  ;;  %v4875_v12 = vadd.f32 %v14643_v51, %v14539_v39  ;;  %v14742_v57 = vadd.f32 %v14641_v56, %v14631_v19  ;;  %v14746_v6 = vpop.f32.mrb[137].mxu0  ;;  %v14748_v39 = vpop.f32.mrb[139].mxu1  ;;  %v6359_v55 = vld [vmem:[#allocation3 + $0x5c] sm:$0x1] }
 0x274   : > { %v6356_v7 = vsel %vm14548_vm15, %v6096_v34, %v6355_v10  ;;  %v6118_v49 = vrot.slane %v6116_v23, 7  ;;  %v4867_v60 = vadd.f32 %v14649_v0, %v14515_v18  ;;  %v6099_v51 = vshrl.u32 %v11391_v20, 16  ;;  %v14750_v4 = vpop.f32.mrb[138].mxu0  ;;  %v6376_v24 = vld [vmem:[#allocation3 + $0x78] sm:$0xf] }
 0x275   : > { %6357 = vst [vmem:[#allocation3 + $0x54] sm:$0xf] %v6356_v7  ;;  %v6102_v22 = vshll.u32 %v11391_v20, 16  ;;  %v6142_v43 = vshrl.u32 %v11396_v61, 16  ;;  %v6145_v53 = vshll.u32 %v11396_v61, 16  ;;  %v4988_v19 = vadd.f32 %v14511_v28, %v4949_v47  ;;  %v14754_v18 = vpop.f32.mrb[139].mxu0 }
 0x276   : > { %v6121_v58 = vor.u32 %v6119_v40, %v6118_v49  ;;  %v6123_v36 = vrot.slane %v6118_v49, 4  ;;  %v4952_v56 = vmul.f32 %v14503_v50, %v4875_v12  ;;  %v6101_v0 = vrot.slane %v6099_v51, 7  ;;  %v12956_v34 = vld [vmem:[#allocation3 + $0x14] ss:$0 sps:$4 sm:$0x11]   ;;  %v12958_v51 = vld [vmem:[#allocation3 + $0x18] sm:$0xff]  }
 0x277   : > { %v14756_v10 = vrot.slane %v6142_v43, 7  ;;  %v4950_v33 = vmul.f32 %v14503_v50, %v4867_v60  ;;  %v6758_v23 = vshrl.u32 %v14732_v25, 16  ;;  %v5020_v61 = vmax.f32 %v4988_v19, 0.0  ;;  %v14775_v19 = vpop.f32.mrb[140].mxu1 }
 0x278   : > { %v6122_v40 = vsel %vm13627_vm6, %v6114_v1, %v6121_v58  ;;  %v6367_v20 = vsel %vm14559_vm1, %v6123_v36, %v6366_v21  ;;  %v4991_v47 = vadd.f32 %v14511_v28, %v4952_v56  ;;  %v6104_v12 = vor.u32 %v6102_v22, %v6101_v0  ;;  %v12959_v58 = vld [vmem:[#allocation3 + $0x20] ss:$0 sps:$4 sm:$0x11]   ;;  %15641 = vst [vmem:[#allocation11_spill] sm:$0xff] %v14775_v19 }
 0x279   : > { %6365 = vst [vmem:[#allocation3 + $0x64] sm:$0xf] %v6122_v40  ;;  %6368 = vst [vmem:[#allocation3 + $0x68] sm:$0x1] %v6367_v20  ;;  %v6106_v7 = vrot.slane %v6101_v0, 4  ;;  %v6147_v49 = vor.u32 %v6145_v53, %v14756_v10  ;;  %v11394_v43 = vpack.c.bf16 %v5020_v61, %v5020_v61  ;;  %v4989_v44 = vadd.f32 %v14511_v28, %v4950_v33  ;;  %v14777_v40 = vpop.f32.mrb[141].mxu1 }
 0x27a   : > { %v5023_v48 = vmax.f32 %v4991_v47, 0.0  ;;  %v6760_v1 = vshll.u32 %v14732_v25, 16  ;;  %v6105_v21 = vsel %vm13627_vm6, %v6097_v52, %v6104_v12  ;;  %v6765_v53 = vshll.u32 %v12956_v34, 16  ;;  %15642 = vst [vmem:[#allocation16_spill] sm:$0xff] %v14777_v40  ;;  %v6369_v20 = vld [vmem:[#allocation3 + $0x6c] sm:$0xf] }
 0x27b   : > { %v6360_v36 = vsel %vm14559_vm1, %v6106_v7, %v6359_v55  ;;  %v6377_v22 = vsel %vm14548_vm15, %v6147_v49, %v6376_v24  ;;  %6358 = vst [vmem:[#allocation3 + $0x58] sm:$0xf] %v6105_v21  ;;  %v6125_v56 = vshrl.u32 %v11394_v43, 16  ;;  %v6128_v0 = vshll.u32 %v11394_v43, 16  ;;  %v12960_v24 = vld [vmem:[#allocation3 + $0xc] sm:$0xfe]  }
 0x27c   : > { %6361 = vst [vmem:[#allocation3 + $0x5c] sm:$0x1] %v6360_v36  ;;  %6378 = vst [vmem:[#allocation3 + $0x78] sm:$0xf] %v6377_v22  ;;  %v11397_v33 = vpack.c.bf16 %v5023_v48, %v5023_v48  ;;  %v5021_v25 = vmax.f32 %v4989_v44, 0.0  ;;  %v6762_v52 = vrot.slane %v6760_v1, 1  ;;  %v4727_v55 = vadd.f32 %v14618_v31, %v14438_v17 }
 0x27d   : > { %v6767_v61 = vrot.slane %v6765_v53, 1  ;;  %v6770_v47 = vshrl.u32 %v12958_v51, 16  ;;  %v14781_v34 = vpop.f32.mrb[140].mxu0  ;;  %v14783_v12 = vpop.f32.mrb[142].mxu1  ;;  %v6127_v7 = vrot.slane %v6125_v56, 7  ;;  %v12957_v22 = vld [vmem:[#allocation3 + $0xc] sm:$0xff]  }
 0x27e   : > { %15643 = vst [vmem:[#allocation17_spill] sm:$0xff] %v14781_v34  ;;  %15644 = vst [vmem:[#allocation18_spill] sm:$0xff] %v14783_v12  ;;  %v6150_v49 = vshrl.u32 %v11397_v33, 16  ;;  %v6153_v21 = vshll.u32 %v11397_v33, 16  ;;  %v11395_v43 = vpack.c.bf16 %v5021_v25, %v5021_v25  ;;  %v14785_v48 = vpop.f32.mrb[141].mxu0  ;;  %v14787_v44 = vpop.f32.mrb[143].mxu1  ;;  %v6763_v1 = vor.u32 %v6762_v52, %v6758_v23 }
 0x27f   : > { %15645 = vst [vmem:[#allocation19_spill] sm:$0xff] %v14785_v48  ;;  %15646 = vst [vmem:[#allocation20_spill] sm:$0xff] %v14787_v44  ;;  %v6380_v36 = vld [vmem:[#allocation3 + $0x80] sm:$0x1]  ;;  %v4888_v53 = vadd.f32 %v14684_v37, %v4727_v55  ;;  %v6772_v17 = vshll.u32 %v12958_v51, 16  ;;  %v6777_v31 = vshll.u32 %v12959_v58, 16  ;;  %v6130_v34 = vor.u32 %v6128_v0, %v6127_v7 }
 0x280   : > { %v12961_v60 = vld [vmem:[#allocation3 + $0x14] ss:$0 sps:$4 sm:$0x11]   ;;  %v14790_v40 = vpop.f32.mrb[142].mxu0  ;;  %v6131_v12 = vrot.slane %v6127_v7, 4  ;;  %v6152_v56 = vrot.slane %v6150_v49, 7  ;;  %v6768_v48 = vsel %vm1318_vm2, %v6763_v1, %v6767_v61 }
 0x281   : > { %v6133_v19 = vshrl.u32 %v11395_v43, 16  ;;  %v14792_v33 = vpop.f32.mrb[143].mxu0  ;;  %v6136_v25 = vshll.u32 %v11395_v43, 16  ;;  %v4955_v44 = vmul.f32 %v14503_v50, %v4888_v53  ;;  %v6774_v23 = vrot.slane %v6772_v17, 1  ;;  %v6373_v55 = vld [vmem:[#allocation3 + $0x74] sm:$0x1]  ;;  %9586 = vmatprep.mubr.bf16.mxu0 %v6768_v48 }
 0x282   : > { %v6370_v37 = vsel %vm14548_vm15, %v6130_v34, %v6369_v20  ;;  %v6155_v51 = vor.u32 %v6153_v21, %v6152_v56  ;;  %v6157_v58 = vrot.slane %v6152_v56, 4  ;;  %9587 = vmatmul.mubr.bf16.gmra.mrb[148].mxu0 %v12957_v22  ;;  %v6779_v49 = vrot.slane %v6777_v31, 1 }
 0x283   : > { %v6135_v52 = vrot.slane %v6133_v19, 7  ;;  %6371 = vst [vmem:[#allocation3 + $0x6c] sm:$0xf] %v6370_v37  ;;  %v4994_v0 = vadd.f32 %v14511_v28, %v4955_v44  ;;  %v6775_v7 = vor.u32 %v6774_v23, %v6770_v47  ;;  %v7148_v43 = vrot.slane %v12960_v24, 1  ;;  %v12965_v19 = vld [vmem:[#allocation3 + $0x24] sm:$0xff]   ;;  %v12963_v37 = vld [vmem:[#allocation3 + $0x18] sm:$0xff]  }
 0x284   : > { %v15647_v61 = vrot.slane %v14756_v10, 4  ;;  %v6381_v20 = vsel %vm14559_vm1, %v6157_v58, %v6380_v36  ;;  %v7149_v28 = vrot.slane %v12961_v60, 1  ;;  %v11843_v47 = vadd.f32 %v14682_v63, %v14678_v42  ;;  %v12962_v24 = vld [vmem:[#allocation3 + $0x24] sm:$0xff]   ;;  %v12966_v10 = vld [vmem:[#allocation3 + $0x2c] ss:$0 sps:$4 sm:$0x11]  }
 0x285   : > { %v6138_v34 = vor.u32 %v6136_v25, %v6135_v52  ;;  %v6140_v21 = vrot.slane %v6135_v52, 4  ;;  %6382 = vst [vmem:[#allocation3 + $0x80] sm:$0x1] %v6381_v20  ;;  %v5026_v48 = vmax.f32 %v4994_v0, 0.0  ;;  %v6780_v1 = vsel %vm1318_vm2, %v6775_v7, %v6779_v49  ;;  %v12967_v44 = vld [vmem:[#allocation3 + $0x18] sm:$0xfe]  }
 0x286   : > { %v6156_v50 = vsel %vm13627_vm6, %v15647_v61, %v6155_v51  ;;  %9594 = vmatprep.mubr.bf16.mxu0 %v6780_v1  ;;  %v4719_v53 = vadd.f32 %v14584_v38, %v14419_v54  ;;  %v4730_v17 = vadd.f32 %v14672_v46, %v14446_v16  ;;  %v7150_v42 = vsel %vm1719_vm9, %v7148_v43, %v7149_v28  ;;  %v12968_v16 = vld [vmem:[#allocation3 + $0x20] ss:$0 sps:$4 sm:$0x11]   ;;  %v6390_v52 = vld [vmem:[#allocation3 + $0x90] sm:$0xf] }
 0x287   : > { %6379 = vst [vmem:[#allocation3 + $0x7c] sm:$0xf] %v6156_v50  ;;  %v6139_v22 = vsel %vm13627_vm6, %v6131_v12, %v6138_v34  ;;  %v6374_v36 = vsel %vm14559_vm1, %v6140_v21, %v6373_v55  ;;  %v11400_v60 = vpack.c.bf16 %v5026_v48, %v5026_v48  ;;  %v11846_v63 = vadd.f32 %v14695_v14, %v14686_v2  ;;  %v14839_v55 = vld [vmem:[%s15599_s3] ss:$0 sm:$0xff] }
 0x288   : > { %6372 = vst [vmem:[#allocation3 + $0x70] sm:$0xf] %v6139_v22  ;;  %6375 = vst [vmem:[#allocation3 + $0x74] sm:$0x1] %v6374_v36  ;;  %v4722_v12 = vadd.f32 %v14609_v11, %v14425_v13  ;;  %9748 = vmatmul.mubr.bf16.gmra.mrb[180].mxu1 %v7150_v42  ;;  %v4880_v31 = vadd.f32 %v14693_v35, %v4719_v53  ;;  %v4891_v56 = vadd.f32 %v14701_v8, %v4730_v17  ;;  %v14828_v13 = vld [vmem:[%s15598_s2] ss:$0 sm:$0xff] }
 0x289   : > { %v4743_v54 = vadd.f32 %v11843_v47, %v14465_v62  ;;  %v6782_v38 = vshrl.u32 %v12965_v19, 16  ;;  %v6176_v46 = vshrl.u32 %v11400_v60, 16  ;;  %v6179_v25 = vshll.u32 %v11400_v60, 16  ;;  %9755 = vmatprep.mubr.bf16.mxu1 %v12962_v24  ;;  %v12970_v53 = vld [vmem:[#allocation3 + $0x30] sm:$0xff]   ;;  %v12971_v17 = vld [vmem:[#allocation3 + $0x24] sm:$0xff]  }
 0x28a   : > { %v4883_v23 = vadd.f32 %v14707_v45, %v4722_v12  ;;  %v6784_v51 = vshll.u32 %v12965_v19, 16  ;;  %v4953_v11 = vmul.f32 %v14828_v13, %v4880_v31  ;;  %v4956_v2 = vmul.f32 %v14828_v13, %v4891_v56  ;;  %9595 = vmatmul.mubr.bf16.gmra.mrb[152].mxu0 %v12963_v37 }
 0x28b   : > { %v4904_v62 = vadd.f32 %v14734_v9, %v4743_v54  ;;  %v6789_v35 = vshll.u32 %v12966_v10, 16  ;;  %v14833_v14 = vrot.slane %v6176_v46, 7  ;;  %v7151_v58 = vrot.slane %v12967_v44, 1 }
 0x28c   : > { %v4954_v8 = vmul.f32 %v14828_v13, %v4883_v23  ;;  %v6786_v45 = vrot.slane %v6784_v51, 1  ;;  %v4992_v0 = vadd.f32 %v14839_v55, %v4953_v11  ;;  %v4995_v7 = vadd.f32 %v14839_v55, %v4956_v2 }
 0x28d   : > { %v4959_v9 = vmul.f32 %v14828_v13, %v4904_v62  ;;  %v6791_v49 = vrot.slane %v6789_v35, 1  ;;  %v6181_v43 = vor.u32 %v6179_v25, %v14833_v14  ;;  %v6182_v61 = vrot.slane %v14833_v14, 4  ;;  %v12972_v62 = vld [vmem:[#allocation3 + $0x30] sm:$0xff]   ;;  %v12973_v35 = vld [vmem:[#allocation3 + $0x38] ss:$0 sps:$4 sm:$0x11]  }
 0x28e   : > { %v4993_v50 = vadd.f32 %v14839_v55, %v4954_v8  ;;  %v6787_v20 = vor.u32 %v6786_v45, %v6782_v38  ;;  %v5024_v34 = vmax.f32 %v4992_v0, 0.0  ;;  %v5027_v21 = vmax.f32 %v4995_v7, 0.0  ;;  %v6383_v38 = vld [vmem:[#allocation3 + $0x84] sm:$0xf] }
 0x28f   : > { %v4998_v19 = vadd.f32 %v14839_v55, %v4959_v9  ;;  %v7152_v48 = vrot.slane %v12968_v16, 1  ;;  %v6391_v1 = vsel %vm14548_vm15, %v6181_v43, %v6390_v52  ;;  %v14853_v24 = vadd.f32 %v14727_v27, %v14723_v59  ;;  %v6394_v16 = vld [vmem:[#allocation3 + $0x98] sm:$0x1]  ;;  %v12974_v14 = vld [vmem:[#allocation3 + $0x24] sm:$0xfe]  }
 0x290   : > { %v5025_v28 = vmax.f32 %v4993_v50, 0.0  ;;  %v6792_v47 = vsel %vm1318_vm2, %v6787_v20, %v6791_v49  ;;  %6392 = vst [vmem:[#allocation3 + $0x90] sm:$0xf] %v6391_v1  ;;  %v11398_v10 = vpack.c.bf16 %v5024_v34, %v5024_v34  ;;  %v11401_v44 = vpack.c.bf16 %v5027_v21, %v5027_v21  ;;  %v6404_v52 = vld [vmem:[#allocation3 + $0xa8] sm:$0xf] }
 0x291   : > { %v5030_v22 = vmax.f32 %v4998_v19, 0.0  ;;  %9602 = vmatprep.mubr.bf16.mxu0 %v6792_v47  ;;  %v7153_v36 = vsel %vm1719_vm9, %v7151_v58, %v7152_v48  ;;  %v4735_v42 = vadd.f32 %v14705_v26, %v14453_v32  ;;  %v4746_v12 = vadd.f32 %v11846_v63, %v14471_v15  ;;  %v6387_v15 = vld [vmem:[#allocation3 + $0x8c] sm:$0x1]  ;;  %v13029_v19 = vld [vmem:[#allocation5 + $0x128] sm:$0xff]  }
 0x292   : > { %v11399_v60 = vpack.c.bf16 %v5025_v28, %v5025_v28  ;;  %9756 = vmatmul.mubr.bf16.gmra.mrb[184].mxu1 %v7153_v36  ;;  %v14861_v59 = vadd.f32 %v14748_v39, %v14736_v3  ;;  %v6159_v27 = vshrl.u32 %v11398_v10, 16  ;;  %v6162_v31 = vshll.u32 %v11398_v10, 16  ;;  %9603 = vmatmul.mubr.bf16.gmra.mrb[156].mxu0 %v12971_v17  ;;  %v12975_v50 = vld [vmem:[#allocation3 + $0x2c] ss:$0 sps:$4 sm:$0x11]  }
 0x293   : > { %v6184_v56 = vshrl.u32 %v11401_v44, 16  ;;  %v6187_v54 = vshll.u32 %v11401_v44, 16  ;;  %9763 = vmatprep.mubr.bf16.mxu1 %v12970_v53  ;;  %v11404_v23 = vpack.c.bf16 %v5030_v22, %v5030_v22  ;;  %v4896_v37 = vadd.f32 %v14746_v6, %v4735_v42  ;;  %12142 = vmatpush3.bf16.msra.mxu0 %v13029_v19  ;;  %v15657_v19 = vld [vmem:[#allocation13_spill] sm:$0xff] }
 0x294   : > { %v6167_v46 = vshrl.u32 %v11399_v60, 16  ;;  %v6170_v25 = vshll.u32 %v11399_v60, 16  ;;  %v6161_v32 = vrot.slane %v6159_v27, 7  ;;  %v4907_v63 = vadd.f32 %v14750_v4, %v4746_v12  ;;  %v15648_v27 = vld [vmem:[#allocation11_spill] sm:$0xff] }
 0x295   : > { %v6186_v26 = vrot.slane %v6184_v56, 7  ;;  %v4738_v3 = vadd.f32 %v14742_v57, %v14459_v30  ;;  %v6210_v51 = vshrl.u32 %v11404_v23, 16  ;;  %v6213_v11 = vshll.u32 %v11404_v23, 16  ;;  %v6397_v23 = vld [vmem:[#allocation3 + $0x9c] sm:$0xf] }
 0x296   : > { %v6169_v39 = vrot.slane %v6167_v46, 7  ;;  %v4957_v2 = vmul.f32 %v14828_v13, %v4896_v37  ;;  %v6164_v8 = vor.u32 %v6162_v31, %v6161_v32  ;;  %v6165_v45 = vrot.slane %v6161_v32, 4  ;;  %v15649_v31 = vld [vmem:[#allocation16_spill] sm:$0xff] }
 0x297   : > { %v6189_v6 = vor.u32 %v6187_v54, %v6186_v26  ;;  %v6191_v58 = vrot.slane %v6186_v26, 4  ;;  %v14868_v9 = vrot.slane %v6210_v51, 7  ;;  %v4960_v43 = vmul.f32 %v14828_v13, %v4907_v63  ;;  %v15650_v54 = vld [vmem:[#allocation12_spill] sm:$0xff]  ;;  %v15651_v26 = vld [vmem:[#allocation14_spill] sm:$0xff]  ;;  %v15652_v63 = vld [vmem:[#allocation19_spill] sm:$0xff] }
 0x298   : > { %v6172_v0 = vor.u32 %v6170_v25, %v6169_v39  ;;  %v6174_v7 = vrot.slane %v6169_v39, 4  ;;  %v4996_v4 = vadd.f32 %v14839_v55, %v4957_v2  ;;  %v6384_v30 = vsel %vm14548_vm15, %v6164_v8, %v6383_v38  ;;  %v12976_v39 = vld [vmem:[#allocation3 + $0x3c] sm:$0xff]   ;;  %v13037_v51 = vld [vmem:[#allocation5 + $0x1d0] sm:$0xff]  }
 0x299   : > { %v6190_v57 = vsel %vm13627_vm6, %v6182_v61, %v6189_v6  ;;  %v6395_v49 = vsel %vm14559_vm1, %v6191_v58, %v6394_v16  ;;  %6385 = vst [vmem:[#allocation3 + $0x84] sm:$0xf] %v6384_v30  ;;  %v6215_v21 = vor.u32 %v6213_v11, %v14868_v9  ;;  %v6216_v61 = vrot.slane %v14868_v9, 4  ;;  %v15654_v6 = vld [vmem:[#allocation18_spill] sm:$0xff]  ;;  %v15655_v58 = vld [vmem:[#allocation20_spill] sm:$0xff]  ;;  %12247 = vmatprep.subr.bf16.mxu1 %v13037_v51 }
 0x29a   : > { %6393 = vst [vmem:[#allocation3 + $0x94] sm:$0xf] %v6190_v57  ;;  %6396 = vst [vmem:[#allocation3 + $0x98] sm:$0x1] %v6395_v49  ;;  %v6173_v20 = vsel %vm13627_vm6, %v6165_v45, %v6172_v0  ;;  %v6388_v34 = vsel %vm14559_vm1, %v6174_v7, %v6387_v15  ;;  %v5028_v48 = vmax.f32 %v4996_v4, 0.0  ;;  %v4999_v1 = vadd.f32 %v14839_v55, %v4960_v43  ;;  %v12977_v0 = vld [vmem:[#allocation3 + $0x30] sm:$0xff]  }
 0x29b   : > { %6386 = vst [vmem:[#allocation3 + $0x88] sm:$0xf] %v6173_v20  ;;  %6389 = vst [vmem:[#allocation3 + $0x8c] sm:$0x1] %v6388_v34  ;;  %v4899_v28 = vadd.f32 %v14754_v18, %v4738_v3  ;;  %v6405_v47 = vsel %vm14548_vm15, %v6215_v21, %v6404_v52  ;;  %v6796_v10 = vshll.u32 %v12972_v62, 16  ;;  %v6801_v44 = vshll.u32 %v12973_v35, 16 }
 0x29c   : > { %v7154_v22 = vrot.slane %v12974_v14, 1  ;;  %6406 = vst [vmem:[#allocation3 + $0xa8] sm:$0xf] %v6405_v47  ;;  %v11402_v36 = vpack.c.bf16 %v5028_v48, %v5028_v48  ;;  %v5031_v53 = vmax.f32 %v4999_v1, 0.0  ;;  %v7155_v60 = vrot.slane %v12975_v50, 1  ;;  %v15653_v14 = vld [vmem:[#allocation17_spill] sm:$0xff] }
 0x29d   : > { %v4958_v17 = vmul.f32 %v14828_v13, %v4899_v28  ;;  %v6794_v42 = vshrl.u32 %v12972_v62, 16  ;;  %v6798_v12 = vrot.slane %v6796_v10, 1  ;;  %v11855_v56 = vadd.f32 %v15649_v31, %v15648_v27  ;;  %v6408_v57 = vld [vmem:[#allocation3 + $0xb0] sm:$0x1]  ;;  %v12979_v43 = vld [vmem:[#allocation3 + $0x3c] sm:$0xff]  }
 0x29e   : > { %v4751_v18 = vadd.f32 %v14853_v24, %v15650_v54  ;;  %v6193_v38 = vshrl.u32 %v11402_v36, 16  ;;  %v11405_v16 = vpack.c.bf16 %v5031_v53, %v5031_v53  ;;  %v6803_v25 = vrot.slane %v6801_v44, 1  ;;  %v15656_v34 = vld [vmem:[#allocation15_spill] sm:$0xff]  ;;  %v12980_v27 = vld [vmem:[#allocation3 + $0x44] ss:$0 sps:$4 sm:$0x11]  }
 0x29f   : > { %v4997_v46 = vadd.f32 %v14839_v55, %v4958_v17  ;;  %v6799_v37 = vor.u32 %v6798_v12, %v6794_v42  ;;  %v7156_v32 = vsel %vm1719_vm9, %v7154_v22, %v7155_v60  ;;  %v4759_v15 = vadd.f32 %v11855_v56, %v15651_v26  ;;  %v6401_v22 = vld [vmem:[#allocation3 + $0xa4] sm:$0x1] }
 0x2a0   : > { %v4912_v3 = vadd.f32 %v15652_v63, %v4751_v18  ;;  %v6195_v11 = vrot.slane %v6193_v38, 7  ;;  %v6196_v2 = vshll.u32 %v11402_v36, 16  ;;  %v6218_v62 = vshrl.u32 %v11405_v16, 16  ;;  %9764 = vmatmul.mubr.bf16.gmra.mrb[188].mxu1 %v7156_v32 }
 0x2a1   : > { %v5029_v35 = vmax.f32 %v4997_v46, 0.0  ;;  %v6804_v24 = vsel %vm1318_vm2, %v6799_v37, %v6803_v25  ;;  %v4920_v8 = vadd.f32 %v15653_v14, %v4759_v15  ;;  %9771 = vmatprep.mubr.bf16.mxu1 %v12976_v39  ;;  %v11858_v52 = vadd.f32 %v15655_v58, %v15654_v6  ;;  %v12982_v46 = vld [vmem:[#allocation3 + $0x38] ss:$0 sps:$4 sm:$0x11]   ;;  %v6411_v15 = vld [vmem:[#allocation3 + $0xb4] sm:$0xf] }
 0x2a2   : > { %v4961_v45 = vmul.f32 %v14828_v13, %v4912_v3  ;;  %v6198_v7 = vor.u32 %v6196_v2, %v6195_v11  ;;  %v6220_v4 = vrot.slane %v6218_v62, 7  ;;  %v6221_v30 = vshll.u32 %v11405_v16, 16  ;;  %9610 = vmatprep.mubr.bf16.mxu0 %v6804_v24  ;;  %v14926_v39 = vld [vmem:[#allocation3 + $0x48] sm:$0xff]   ;;  %v14930_v6 = vld [vmem:[#allocation3 + $0x3c] sm:$0xfe]  }
 0x2a3   : > { %v11403_v49 = vpack.c.bf16 %v5029_v35, %v5029_v35  ;;  %v4963_v50 = vmul.f32 %v14828_v13, %v4920_v8  ;;  %v4762_v21 = vadd.f32 %v11858_v52, %v15656_v34  ;;  %v4754_v48 = vadd.f32 %v14861_v59, %v15657_v19  ;;  %9611 = vmatmul.mubr.bf16.gmra.mrb[160].mxu0 %v12977_v0  ;;  %v6418_v35 = vld [vmem:[#allocation3 + $0xc0] sm:$0xf] }
 0x2a4   : > { %v5000_v20 = vadd.f32 %v14839_v55, %v4961_v45  ;;  %v6398_v1 = vsel %vm14548_vm15, %v6198_v7, %v6397_v23  ;;  %v6223_v28 = vor.u32 %v6221_v30, %v6220_v4  ;;  %v6225_v47 = vrot.slane %v6220_v4, 4  ;;  %v12987_v45 = vld [vmem:[#allocation3 + $0x50] ss:$0 sps:$4 sm:$0x11]  }
 0x2a5   : > { %v6201_v10 = vshrl.u32 %v11403_v49, 16  ;;  %6399 = vst [vmem:[#allocation3 + $0x9c] sm:$0xf] %v6398_v1  ;;  %v6204_v44 = vshll.u32 %v11403_v49, 16  ;;  %v5002_v36 = vadd.f32 %v14839_v55, %v4963_v50  ;;  %v4923_v17 = vadd.f32 %v14790_v40, %v4762_v21  ;;  %v12981_v40 = vld [vmem:[#allocation3 + $0x30] sm:$0xfe]  }
 0x2a6   : > { %v5032_v53 = vmax.f32 %v5000_v20, 0.0  ;;  %v6224_v59 = vsel %vm13627_vm6, %v6216_v61, %v6223_v28  ;;  %v6409_v60 = vsel %vm14559_vm1, %v6225_v47, %v6408_v57  ;;  %v4915_v12 = vadd.f32 %v14792_v33, %v4754_v48  ;;  %v12989_v49 = vld [vmem:[#allocation3 + $0x44] ss:$0 sps:$4 sm:$0x11]   ;;  %v6422_v48 = vld [vmem:[#allocation3 + $0xc8] sm:$0x1] }
 0x2a7   : > { %v6203_v42 = vrot.slane %v6201_v10, 7  ;;  %v6199_v31 = vrot.slane %v6195_v11, 4  ;;  %6407 = vst [vmem:[#allocation3 + $0xac] sm:$0xf] %v6224_v59  ;;  %6410 = vst [vmem:[#allocation3 + $0xb0] sm:$0x1] %v6409_v60  ;;  %v4964_v18 = vmul.f32 %v14828_v13, %v4923_v17 }
 0x2a8   : > { %v5034_v56 = vmax.f32 %v5002_v36, 0.0  ;;  %v11406_v54 = vpack.c.bf16 %v5032_v53, %v5032_v53  ;;  %v4962_v16 = vmul.f32 %v14828_v13, %v4915_v12  ;;  %v6808_v61 = vshll.u32 %v12979_v43, 16  ;;  %v12984_v47 = vld [vmem:[#allocation3 + $0x48] sm:$0xff]   ;;  %v12985_v10 = vld [vmem:[#allocation3 + $0x3c] sm:$0xff]  }
 0x2a9   : > { %v6206_v38 = vor.u32 %v6204_v44, %v6203_v42  ;;  %v6208_v9 = vrot.slane %v6203_v42, 4  ;;  %v5003_v37 = vadd.f32 %v14839_v55, %v4964_v18  ;;  %v6806_v33 = vshrl.u32 %v12979_v43, 16  ;;  %v12993_v44 = vld [vmem:[#allocation3 + $0x54] sm:$0xff]   ;;  %v6415_v53 = vld [vmem:[#allocation3 + $0xbc] sm:$0x1]  ;;  %v13038_v42 = vld [vmem:[#allocation5 + $0x190] sm:$0xff]  }
 0x2aa   : > { %v11408_v25 = vpack.c.bf16 %v5034_v56, %v5034_v56  ;;  %v6227_v23 = vshrl.u32 %v11406_v54, 16  ;;  %v5001_v63 = vadd.f32 %v14839_v55, %v4962_v16  ;;  %v6810_v3 = vrot.slane %v6808_v61, 1  ;;  %v12994_v60 = vld [vmem:[#allocation3 + $0x5c] ss:$0 sps:$4 sm:$0x11]   ;;  %12248 = vmatpush3.bf16.msra.mxu1 %v13038_v42 }
 0x2ab   : > { %v6207_v32 = vsel %vm13627_vm6, %v6199_v31, %v6206_v38  ;;  %v6402_v26 = vsel %vm14559_vm1, %v6208_v9, %v6401_v22  ;;  %v6230_v11 = vshll.u32 %v11406_v54, 16  ;;  %v5035_v2 = vmax.f32 %v5003_v37, 0.0  ;;  %v13000_v38 = vld [vmem:[#allocation3 + $0x60] sm:$0xff]  }
 0x2ac   : > { %6400 = vst [vmem:[#allocation3 + $0xa0] sm:$0xf] %v6207_v32  ;;  %6403 = vst [vmem:[#allocation3 + $0xa4] sm:$0x1] %v6402_v26  ;;  %v6244_v13 = vshrl.u32 %v11408_v25, 16  ;;  %v14928_v51 = vrot.slane %v6227_v23, 7  ;;  %v6811_v14 = vor.u32 %v6810_v3, %v6806_v33 }
 0x2ad   : > { %v6247_v62 = vshll.u32 %v11408_v25, 16  ;;  %v5033_v24 = vmax.f32 %v5001_v63, 0.0  ;;  %v6813_v8 = vshll.u32 %v12980_v27, 16  ;;  %v11409_v52 = vpack.c.bf16 %v5035_v2, %v5035_v2  ;;  %v12990_v63 = vld [vmem:[#allocation3 + $0x54] sm:$0xff]   ;;  %v12991_v3 = vld [vmem:[#allocation3 + $0x48] sm:$0xff]  }
 0x2ae   : > { %v6246_v58 = vrot.slane %v6244_v13, 7  ;;  %v6232_v55 = vor.u32 %v6230_v11, %v14928_v51  ;;  %v7157_v0 = vrot.slane %v12981_v40, 1  ;;  %v6233_v7 = vrot.slane %v14928_v51, 4  ;;  %v12995_v51 = vld [vmem:[#allocation3 + $0x48] sm:$0xfe]  }
 0x2af   : > { %v11407_v4 = vpack.c.bf16 %v5033_v24, %v5033_v24  ;;  %v6815_v30 = vrot.slane %v6813_v8, 1  ;;  %v7158_v57 = vrot.slane %v12982_v46, 1  ;;  %v6252_v20 = vshrl.u32 %v11409_v52, 16  ;;  %v13001_v11 = vld [vmem:[#allocation3 + $0x68] ss:$0 sps:$4 sm:$0x11]  }
 0x2b0   : > { %v6249_v43 = vor.u32 %v6247_v62, %v6246_v58  ;;  %v6412_v50 = vsel %vm14548_vm15, %v6232_v55, %v6411_v15  ;;  %v6818_v34 = vshrl.u32 %v14926_v39, 16  ;;  %v6250_v21 = vrot.slane %v6246_v58, 4  ;;  %v12996_v24 = vld [vmem:[#allocation3 + $0x50] ss:$0 sps:$4 sm:$0x11]  }
 0x2b1   : > { %6413 = vst [vmem:[#allocation3 + $0xb4] sm:$0xf] %v6412_v50  ;;  %v6255_v19 = vshll.u32 %v11409_v52, 16  ;;  %v6235_v1 = vshrl.u32 %v11407_v4, 16  ;;  %v6816_v28 = vsel %vm1318_vm2, %v6811_v14, %v6815_v30  ;;  %v6254_v36 = vrot.slane %v6252_v20, 7  ;;  %v13009_v14 = vld [vmem:[#allocation3 + $0x6c] sm:$0xff]  }
 0x2b2   : > { %v6419_v22 = vsel %vm14548_vm15, %v6249_v43, %v6418_v35  ;;  %9618 = vmatprep.mubr.bf16.mxu0 %v6816_v28  ;;  %v7159_v17 = vsel %vm1719_vm9, %v7157_v0, %v7158_v57  ;;  %v6820_v59 = vshll.u32 %v14926_v39, 16  ;;  %v6238_v27 = vshll.u32 %v11407_v4, 16  ;;  %v13045_v0 = vld [vmem:[#allocation5 + $0x130] sm:$0xff]   ;;  %v13010_v30 = vld [vmem:[#allocation3 + $0x74] ss:$0 sps:$4 sm:$0x11]  }
 0x2b3   : > { %6420 = vst [vmem:[#allocation3 + $0xc0] sm:$0xf] %v6419_v22  ;;  %v6237_v12 = vrot.slane %v6235_v1, 7  ;;  %9772 = vmatmul.mubr.bf16.gmra.mrb[192].mxu1 %v7159_v17  ;;  %9619 = vmatmul.mubr.bf16.gmra.mrb[164].mxu0 %v12985_v10  ;;  %v6825_v31 = vshll.u32 %v12987_v45, 16  ;;  %v7160_v56 = vrot.slane %v14930_v6, 1  ;;  %v6257_v54 = vor.u32 %v6255_v19, %v6254_v36  ;;  %v13040_v45 = vld [vmem:[#allocation5 + $0x170] sm:$0xff]  }
 0x2b4   : > { %v6259_v41 = vrot.slane %v6254_v36, 4  ;;  %9779 = vmatprep.mubr.bf16.mxu1 %v12984_v47  ;;  %v6822_v18 = vrot.slane %v6820_v59, 1  ;;  %v7161_v40 = vrot.slane %v12989_v49, 1  ;;  %v6832_v37 = vshll.u32 %v12993_v44, 16  ;;  %12143 = vmatprep.subr.bf16.mxu0 %v13040_v45  ;;  %v12999_v57 = vld [vmem:[#allocation3 + $0x54] sm:$0xff]   ;;  %v12998_v50 = vld [vmem:[#allocation3 + $0x60] sm:$0xff]  }
 0x2b5   : > { %v6240_v9 = vor.u32 %v6238_v27, %v6237_v12  ;;  %v6242_v16 = vrot.slane %v6237_v12, 4  ;;  %v6827_v61 = vrot.slane %v6825_v31, 1  ;;  %v6258_v46 = vsel %vm13627_vm6, %v6250_v21, %v6257_v54  ;;  %12144 = vmatpush3.bf16.msra.mxu0 %v13045_v0  ;;  %v13002_v20 = vld [vmem:[#allocation3 + $0x54] sm:$0xfe]   ;;  %v13007_v22 = vld [vmem:[#allocation3 + $0x60] sm:$0xff]   ;;  %v13004_v17 = vld [vmem:[#allocation3 + $0x6c] sm:$0xff]  }
 0x2b6   : > { %v6423_v25 = vsel %vm14559_vm1, %v6259_v41, %v6422_v48  ;;  %v6823_v23 = vor.u32 %v6822_v18, %v6818_v34  ;;  %6421 = vst [vmem:[#allocation3 + $0xc4] sm:$0xf] %v6258_v46  ;;  %v6837_v26 = vshll.u32 %v12994_v60, 16  ;;  %v6830_v39 = vshrl.u32 %v12993_v44, 16  ;;  %v13016_v48 = vld [vmem:[#allocation3 + $0x78] sm:$0xff]   ;;  %v13025_v12 = vld [vmem:[#allocation3 + $0x84] sm:$0xff]  }
 0x2b7   : > { %6424 = vst [vmem:[#allocation3 + $0xc8] sm:$0x1] %v6423_v25  ;;  %v6241_v33 = vsel %vm13627_vm6, %v6233_v7, %v6240_v9  ;;  %v6416_v32 = vsel %vm14559_vm1, %v6242_v16, %v6415_v53  ;;  %v6834_v13 = vrot.slane %v6832_v37, 1  ;;  %v6844_v2 = vshll.u32 %v13000_v38, 16  ;;  %v13011_v42 = vld [vmem:[#allocation3 + $0x60] sm:$0xfe]  }
 0x2b8   : > { %6414 = vst [vmem:[#allocation3 + $0xb8] sm:$0xf] %v6241_v33  ;;  %6417 = vst [vmem:[#allocation3 + $0xbc] sm:$0x1] %v6416_v32  ;;  %v6828_v15 = vsel %vm1318_vm2, %v6823_v23, %v6827_v61  ;;  %v7162_v62 = vsel %vm1719_vm9, %v7160_v56, %v7161_v40  ;;  %v6839_v35 = vrot.slane %v6837_v26, 1  ;;  %v6842_v6 = vshrl.u32 %v13000_v38, 16 }
 0x2b9   : > { %9626 = vmatprep.mubr.bf16.mxu0 %v6828_v15  ;;  %v6835_v29 = vor.u32 %v6834_v13, %v6830_v39  ;;  %v6846_v5 = vrot.slane %v6844_v2, 1  ;;  %v6849_v58 = vshll.u32 %v13001_v11, 16  ;;  %v7163_v55 = vrot.slane %v12995_v51, 1  ;;  %v13003_v34 = vld [vmem:[#allocation3 + $0x5c] ss:$0 sps:$4 sm:$0x11]  }
 0x2ba   : > { %v7164_v52 = vrot.slane %v12996_v24, 1  ;;  %v6856_v4 = vshll.u32 %v13009_v14, 16  ;;  %v6854_v1 = vshrl.u32 %v13009_v14, 16  ;;  %v6861_v28 = vshll.u32 %v13010_v30, 16  ;;  %v13053_v41 = vld [vmem:[#allocation5 + $0x1d8] sm:$0xff]   ;;  %v14958_v33 = vpop.f32.mrb[144].mxu1 }
 0x2bb   : > { %9780 = vmatmul.mubr.bf16.gmra.mrb[196].mxu1 %v7162_v62  ;;  %9627 = vmatmul.mubr.bf16.gmra.mrb[168].mxu0 %v12991_v3  ;;  %v6840_v8 = vsel %vm1318_vm2, %v6835_v29, %v6839_v35  ;;  %v6847_v7 = vor.u32 %v6846_v5, %v6842_v6  ;;  %v6851_v49 = vrot.slane %v6849_v58, 1  ;;  %v7166_v47 = vrot.slane %v13002_v20, 1  ;;  %v13017_v44 = vld [vmem:[#allocation3 + $0x80] ss:$0 sps:$4 sm:$0x11]   ;;  %v13054_v38 = vld [vmem:[#allocation5 + $0x198] sm:$0xff]  }
 0x2bc   : > { %9787 = vmatprep.mubr.bf16.mxu1 %v12990_v63  ;;  %9634 = vmatprep.mubr.bf16.mxu0 %v6840_v8  ;;  %v7165_v43 = vsel %vm1719_vm9, %v7163_v55, %v7164_v52  ;;  %v6858_v19 = vrot.slane %v6856_v4, 1  ;;  %v7167_v10 = vrot.slane %v13003_v34, 1  ;;  %v6868_v53 = vshll.u32 %v13016_v48, 16  ;;  %v13012_v59 = vld [vmem:[#allocation3 + $0x68] ss:$0 sps:$4 sm:$0x11]  }
 0x2bd   : > { %v6852_v21 = vsel %vm1318_vm2, %v6847_v7, %v6851_v49  ;;  %v6863_v60 = vrot.slane %v6861_v28, 1  ;;  %v6873_v54 = vshll.u32 %v13017_v44, 16  ;;  %v7169_v18 = vrot.slane %v13011_v42, 1  ;;  %12249 = vmatprep.subr.bf16.mxu1 %v13053_v41  ;;  %v13015_v61 = vld [vmem:[#allocation3 + $0x6c] sm:$0xff]   ;;  %v13014_v63 = vld [vmem:[#allocation3 + $0x78] sm:$0xff]   ;;  %v13065_v5 = vld [vmem:[#allocation5 + $0x1e8] sm:$0xff]  }
 0x2be   : > { %v6859_v36 = vor.u32 %v6858_v19, %v6854_v1  ;;  %v7168_v27 = vsel %vm1719_vm9, %v7166_v47, %v7167_v10  ;;  %v6870_v56 = vrot.slane %v6868_v53, 1  ;;  %v6866_v40 = vshrl.u32 %v13016_v48, 16  ;;  %v13018_v25 = vld [vmem:[#allocation3 + $0x6c] sm:$0xfe]   ;;  %12250 = vmatpush3.bf16.msra.mxu1 %v13054_v38  ;;  %v13062_v11 = vld [vmem:[#allocation5 + $0x1e0] sm:$0xff]   ;;  %v14962_v14 = vpop.f32.mrb[145].mxu1 }
 0x2bf   : > { %v7170_v9 = vrot.slane %v13012_v59, 1  ;;  %v6880_v16 = vshll.u32 %v13025_v12, 16  ;;  %v13019_v23 = vld [vmem:[#allocation3 + $0x74] ss:$0 sps:$4 sm:$0x11]   ;;  %v6875_v32 = vrot.slane %v6873_v54, 1  ;;  %12251 = vmatprep.subr.bf16.mxu1 %v13062_v11 }
 0x2c0   : > { %v6864_v31 = vsel %vm1318_vm2, %v6859_v36, %v6863_v60  ;;  %v6871_v46 = vor.u32 %v6870_v56, %v6866_v40  ;;  %v13056_v37 = vld [vmem:[#allocation5 + $0x178] sm:$0xff]   ;;  %v13026_v26 = vld [vmem:[#allocation3 + $0x8c] ss:$0 sps:$4 sm:$0x11]   ;;  %v7172_v62 = vrot.slane %v13018_v25, 1  ;;  %v7173_v29 = vrot.slane %v13019_v23, 1 }
 0x2c1   : > { %12145 = vmatprep.subr.bf16.mxu0 %v13056_v37  ;;  %v7171_v15 = vsel %vm1719_vm9, %v7169_v18, %v7170_v9  ;;  %v13032_v3 = vld [vmem:[#allocation3 + $0x90] sm:$0xff]   ;;  %v6882_v51 = vrot.slane %v6880_v16, 1  ;;  %v6885_v2 = vshll.u32 %v13026_v26, 16  ;;  %v6878_v35 = vshrl.u32 %v13025_v12, 16  ;;  %v13064_v24 = vld [vmem:[#allocation5 + $0x1a0] sm:$0xff]   ;;  %v14964_v45 = vpop.f32.mrb[146].mxu1 }
 0x2c2   : > { %v13061_v39 = vld [vmem:[#allocation5 + $0x138] sm:$0xff]   ;;  %v6876_v13 = vsel %vm1318_vm2, %v6871_v46, %v6875_v32  ;;  %v6892_v8 = vshll.u32 %v13032_v3, 16  ;;  %v13027_v58 = vld [vmem:[#allocation3 + $0x78] sm:$0xfe]   ;;  %12252 = vmatpush3.bf16.msra.mxu1 %v13064_v24  ;;  %v13066_v4 = vld [vmem:[#allocation5 + $0x1a8] sm:$0xff]   ;;  %v7174_v30 = vsel %vm1719_vm9, %v7172_v62, %v7173_v29  ;;  %v6890_v19 = vshrl.u32 %v13032_v3, 16 }
 0x2c3   : > { %9788 = vmatmul.mubr.bf16.gmra.mrb[200].mxu1 %v7165_v43  ;;  %9635 = vmatmul.mubr.bf16.gmra.mrb[172].mxu0 %v12999_v57  ;;  %v6883_v6 = vor.u32 %v6882_v51, %v6878_v35  ;;  %v13028_v55 = vld [vmem:[#allocation3 + $0x80] ss:$0 sps:$4 sm:$0x11]   ;;  %v13023_v52 = vld [vmem:[#allocation3 + $0x78] sm:$0xff]   ;;  %v6887_v0 = vrot.slane %v6885_v2, 1  ;;  %v13020_v57 = vld [vmem:[#allocation3 + $0x84] sm:$0xff]  }
 0x2c4   : > { %9795 = vmatprep.mubr.bf16.mxu1 %v12998_v50  ;;  %9642 = vmatprep.mubr.bf16.mxu0 %v6852_v21  ;;  %v13033_v7 = vld [vmem:[#allocation3 + $0x98] ss:$0 sps:$4 sm:$0x11]   ;;  %v13072_v49 = vld [vmem:[#allocation5 + $0x1f0] sm:$0xff]   ;;  %v6894_v50 = vrot.slane %v6892_v8, 1  ;;  %v13041_v20 = vld [vmem:[#allocation3 + $0x9c] sm:$0xff]  }
 0x2c5   : > { %12146 = vmatpush3.bf16.msra.mxu0 %v13061_v39  ;;  %12253 = vmatprep.subr.bf16.mxu1 %v13065_v5  ;;  %v6888_v43 = vsel %vm1318_vm2, %v6883_v6, %v6887_v0  ;;  %v7175_v34 = vrot.slane %v13027_v58, 1  ;;  %v7176_v21 = vrot.slane %v13028_v55, 1  ;;  %v6897_v48 = vshll.u32 %v13033_v7, 16  ;;  %v13073_v1 = vld [vmem:[#allocation5 + $0x1b0] sm:$0xff]   ;;  %v13076_v28 = vld [vmem:[#allocation5 + $0x1f8] sm:$0xff]   ;;  %v14970_v36 = vpop.f32.mrb[147].mxu1 }
 0x2c6   : > { %12254 = vmatpush3.bf16.msra.mxu1 %v13066_v4  ;;  %v6895_v47 = vor.u32 %v6894_v50, %v6890_v19  ;;  %v13042_v10 = vld [vmem:[#allocation3 + $0xa4] ss:$0 sps:$4 sm:$0x11]   ;;  %v6904_v44 = vshll.u32 %v13041_v20, 16  ;;  %v13077_v59 = vld [vmem:[#allocation5 + $0x1b8] sm:$0xff]   ;;  %v13048_v54 = vld [vmem:[#allocation3 + $0xa8] sm:$0xff]  }
 0x2c7   : > { %12255 = vmatprep.subr.bf16.mxu1 %v13072_v49  ;;  %v13031_v53 = vld [vmem:[#allocation3 + $0x84] sm:$0xff]   ;;  %v7177_v60 = vsel %vm1719_vm9, %v7175_v34, %v7176_v21  ;;  %v13030_v42 = vld [vmem:[#allocation3 + $0x90] sm:$0xff]   ;;  %v6902_v41 = vshrl.u32 %v13041_v20, 16  ;;  %v6909_v18 = vshll.u32 %v13042_v10, 16  ;;  %v13036_v46 = vld [vmem:[#allocation3 + $0x9c] sm:$0xff]   ;;  %v14977_v24 = vpop.f32.mrb[148].mxu1 }
 0x2c8   : > { %v13034_v12 = vld [vmem:[#allocation3 + $0x84] sm:$0xfe]   ;;  %v6906_v56 = vrot.slane %v6904_v44, 1  ;;  %v13043_v9 = vld [vmem:[#allocation3 + $0x90] sm:$0xfe]   ;;  %v13047_v8 = vld [vmem:[#allocation3 + $0x9c] sm:$0xff]  }
 0x2c9   : > { %v7178_v40 = vrot.slane %v13034_v12, 1  ;;  %v13049_v25 = vld [vmem:[#allocation3 + $0xb0] ss:$0 sps:$4 sm:$0x11]   ;;  %v6911_v37 = vrot.slane %v6909_v18, 1  ;;  %v7181_v39 = vrot.slane %v13043_v9, 1 }
 0x2ca   : > { %12256 = vmatpush3.bf16.msra.mxu1 %v13073_v1  ;;  %v6907_v16 = vor.u32 %v6906_v56, %v6902_v41  ;;  %v13039_v23 = vld [vmem:[#allocation3 + $0x90] sm:$0xff]   ;;  %v13044_v26 = vld [vmem:[#allocation3 + $0x98] ss:$0 sps:$4 sm:$0x11]   ;;  %v6921_v51 = vshll.u32 %v13049_v25, 16  ;;  %v13055_v1 = vld [vmem:[#allocation3 + $0xa8] sm:$0xff]  }
 0x2cb   : > { %9796 = vmatmul.mubr.bf16.gmra.mrb[204].mxu1 %v7168_v27  ;;  %9643 = vmatmul.mubr.bf16.gmra.mrb[176].mxu0 %v13007_v22  ;;  %v14968_v22 = vld [vmem:[#allocation5 + $0x200] sm:$0xff]   ;;  %v13035_v27 = vld [vmem:[#allocation3 + $0x8c] ss:$0 sps:$4 sm:$0x11]   ;;  %v7182_v2 = vrot.slane %v13044_v26, 1 }
 0x2cc   : > { %9803 = vmatprep.mubr.bf16.mxu1 %v13004_v17  ;;  %9650 = vmatprep.mubr.bf16.mxu0 %v6864_v31  ;;  %v6899_v17 = vrot.slane %v6897_v48, 1  ;;  %v7179_v38 = vrot.slane %v13035_v27, 1  ;;  %v13058_v11 = vld [vmem:[#allocation3 + $0xbc] ss:$0 sps:$4 sm:$0x11]   ;;  %v6923_v6 = vrot.slane %v6921_v51, 1 }
 0x2cd   : > { %12257 = vmatprep.subr.bf16.mxu1 %v13076_v28  ;;  %12475 = vmatprep.subr.bf16.mxu0 %v14968_v22  ;;  %v13050_v35 = vld [vmem:[#allocation3 + $0x9c] sm:$0xfe]   ;;  %v13051_v5 = vld [vmem:[#allocation3 + $0xa4] ss:$0 sps:$4 sm:$0x11]   ;;  %v6933_v58 = vshll.u32 %v13058_v11, 16  ;;  %v7183_v55 = vsel %vm1719_vm9, %v7181_v39, %v7182_v2 }
 0x2ce   : > { %v6900_v31 = vsel %vm1318_vm2, %v6895_v47, %v6899_v17  ;;  %12258 = vmatpush3.bf16.msra.mxu1 %v13077_v59  ;;  %v7180_v32 = vsel %vm1719_vm9, %v7178_v40, %v7179_v38  ;;  %v7184_v4 = vrot.slane %v13050_v35, 1  ;;  %v14981_v20 = vld [vmem:[#allocation3 + $0xbc] ss:$0 sps:$4 sm:$0x11]   ;;  %v13068_v19 = vld [vmem:[#allocation3 + $0xb4] sm:$0xfe]  }
 0x2cf   : > { %v6935_v50 = vrot.slane %v6933_v58, 1  ;;  %v13074_v34 = vld [vmem:[#allocation3 + $0x18] sm:$0xff]   ;;  %v13070_v48 = vld [vmem:[#allocation3 + $0xc] sm:$0xfe]   ;;  %v14983_v47 = vpop.f32.mrb[149].mxu1  ;;  %v7191_v56 = vrot.slane %v14981_v20, 1 }
 0x2d0   : > { %v13052_v10 = vld [vmem:[#allocation3 + $0xb4] sm:$0xff]   ;;  %v8349_v17 = vshll.u32 %v13074_v34, 16  ;;  %v13078_v59 = vld [vmem:[#allocation3 + $0xc] sm:$0xff]   ;;  %v8347_v41 = vshrl.u32 %v13074_v34, 16  ;;  %v13088_v58 = vld [vmem:[#allocation3 + $0x24] sm:$0xfe]  }
 0x2d1   : > { %v13071_v44 = vld [vmem:[#allocation3 + $0x14] ss:$0 sps:$4 sm:$0x11]   ;;  %v7548_v9 = vshll.u32 %v13078_v59, 16  ;;  %v13081_v25 = vld [vmem:[#allocation3 + $0x18] sm:$0xfe]  }
 0x2d2   : > { %v13079_v27 = vld [vmem:[#allocation3 + $0x14] ss:$0 sps:$4 sm:$0x11]   ;;  %v7946_v18 = vrot.slane %v13071_v44, 1  ;;  %v8351_v38 = vrot.slane %v8349_v17, 1  ;;  %v7948_v2 = vrot.slane %v13081_v25, 1 }
 0x2d3   : > { %9804 = vmatmul.mubr.bf16.gmra.mrb[208].mxu1 %v7171_v15  ;;  %9651 = vmatmul.mubr.bf16.gmra.mrb[180].mxu0 %v13015_v61  ;;  %v6916_v61 = vshll.u32 %v13048_v54, 16  ;;  %v13057_v15 = vld [vmem:[#allocation3 + $0xb4] sm:$0xff]   ;;  %v13085_v26 = vld [vmem:[#allocation3 + $0x2c] ss:$0 sps:$4 sm:$0x11]   ;;  %v13093_v20 = vld [vmem:[#allocation3 + $0x24] sm:$0xff]  }
 0x2d4   : > { %9811 = vmatprep.mubr.bf16.mxu1 %v13014_v63  ;;  %9658 = vmatprep.mubr.bf16.mxu0 %v6876_v13  ;;  %v6912_v63 = vsel %vm1318_vm2, %v6907_v16, %v6911_v37  ;;  %v6914_v13 = vshrl.u32 %v13048_v54, 16  ;;  %v6928_v62 = vshll.u32 %v13057_v15, 16  ;;  %v6926_v49 = vshrl.u32 %v13057_v15, 16  ;;  %v13086_v15 = vld [vmem:[#allocation3 + $0x18] sm:$0xff]  }
 0x2d5   : > { %v6918_v3 = vrot.slane %v6916_v61, 1  ;;  %v7945_v54 = vrot.slane %v13070_v48, 1  ;;  %v7553_v16 = vshll.u32 %v13079_v27, 16  ;;  %v13082_v61 = vld [vmem:[#allocation3 + $0x20] ss:$0 sps:$4 sm:$0x11]  }
 0x2d6   : > { %v6930_v0 = vrot.slane %v6928_v62, 1  ;;  %v13087_v51 = vld [vmem:[#allocation3 + $0x20] ss:$0 sps:$4 sm:$0x11]   ;;  %v7949_v62 = vrot.slane %v13082_v61, 1 }
 0x2d7   : > { %v6919_v29 = vor.u32 %v6918_v3, %v6914_v13  ;;  %v7550_v3 = vrot.slane %v7548_v9, 1  ;;  %v7555_v13 = vrot.slane %v7553_v16, 1  ;;  %v7947_v11 = vsel %vm1719_vm9, %v7945_v54, %v7946_v18  ;;  %v13092_v35 = vld [vmem:[#allocation3 + $0x38] ss:$0 sps:$4 sm:$0x11]   ;;  %v13101_v16 = vld [vmem:[#allocation3 + $0x30] sm:$0xff]  }
 0x2d8   : > { %v6931_v21 = vor.u32 %v6930_v0, %v6926_v49  ;;  %v13089_v0 = vld [vmem:[#allocation3 + $0x2c] ss:$0 sps:$4 sm:$0x11]   ;;  %v13097_v54 = vld [vmem:[#allocation3 + $0x38] ss:$0 sps:$4 sm:$0x11]  }
 0x2d9   : > { %v6924_v7 = vsel %vm1318_vm2, %v6919_v29, %v6923_v6  ;;  %v14990_v29 = vld [vmem:[#allocation3 + $0x30] sm:$0xff]   ;;  %v8352_v6 = vor.u32 %v8351_v38, %v8347_v41  ;;  %v7952_v17 = vrot.slane %v13089_v0, 1  ;;  %v13110_v41 = vld [vmem:[#allocation5 + $0x210] sm:$0xff]   ;;  %v13083_v18 = vld [vmem:[#allocation3 + $0x18] sm:$0xff]  }
 0x2da   : > { %v14999_v38 = vld [vmem:[#allocation3 + $0x3c] sm:$0xff]   ;;  %v13100_v9 = vld [vmem:[#allocation3 + $0x44] ss:$0 sps:$4 sm:$0x11]  }
 0x2db   : > { %9812 = vmatmul.mubr.bf16.gmra.mrb[212].mxu1 %v7174_v30  ;;  %9659 = vmatmul.mubr.bf16.gmra.mrb[184].mxu0 %v13023_v52  ;;  %v13046_v52 = vld [vmem:[#allocation3 + $0xa8] sm:$0xff]   ;;  %v13102_v61 = vld [vmem:[#allocation3 + $0x38] ss:$0 sps:$4 sm:$0x11]  }
 0x2dc   : > { %9819 = vmatprep.mubr.bf16.mxu1 %v13020_v57  ;;  %9666 = vmatprep.mubr.bf16.mxu0 %v6888_v43  ;;  %v13059_v30 = vld [vmem:[#allocation3 + $0xa8] sm:$0xfe]   ;;  %v7185_v57 = vrot.slane %v13051_v5, 1  ;;  %v13060_v43 = vld [vmem:[#allocation3 + $0xb0] ss:$0 sps:$4 sm:$0x11]  }
 0x2dd   : > { %v7187_v28 = vrot.slane %v13059_v30, 1  ;;  %v7188_v12 = vrot.slane %v13060_v43, 1  ;;  %v8378_v30 = vshll.u32 %v13092_v35, 16  ;;  %v13090_v35 = vld [vmem:[#allocation3 + $0x24] sm:$0xff]  }
 0x2de   : > { %v13109_v0 = vld [vmem:[#allocation3 + $0x44] ss:$0 sps:$4 sm:$0x11]  }
 0x2df   : > { %v7189_v39 = vsel %vm1719_vm9, %v7187_v28, %v7188_v12  ;;  %v7572_v12 = vshll.u32 %v13093_v20, 16 }
 0x2e3   : > { %9820 = vmatmul.mubr.bf16.gmra.mrb[216].mxu1 %v7177_v60  ;;  %9667 = vmatmul.mubr.bf16.gmra.mrb[188].mxu0 %v13031_v53  ;;  %v13075_v53 = vld [vmem:[#allocation3 + $0x20] ss:$0 sps:$4 sm:$0x11]   ;;  %v7186_v60 = vsel %vm1719_vm9, %v7184_v4, %v7185_v57  ;;  %v8373_v4 = vshll.u32 %v14990_v29, 16 }
 0x2e4   : > { %9827 = vmatprep.mubr.bf16.mxu1 %v13030_v42  ;;  %9674 = vmatprep.mubr.bf16.mxu0 %v6900_v31  ;;  %v6936_v42 = vsel %vm1318_vm2, %v6931_v21, %v6935_v50  ;;  %v7190_v31 = vrot.slane %v13068_v19, 1  ;;  %v8354_v40 = vshll.u32 %v13075_v53, 16  ;;  %v13094_v57 = vld [vmem:[#allocation3 + $0x2c] ss:$0 sps:$4 sm:$0x11]   ;;  %v7950_v21 = vsel %vm1719_vm9, %v7948_v2, %v7949_v62 }
 0x2e5   : > { %v7951_v53 = vrot.slane %v13088_v58, 1  ;;  %v7577_v27 = vshll.u32 %v13094_v57, 16  ;;  %v7589_v62 = vshll.u32 %v13102_v61, 16  ;;  %v7582_v57 = vshrl.u32 %v13101_v16, 16 }
 0x2e6   : > { %v8356_v37 = vrot.slane %v8354_v40, 1  ;;  %v7192_v49 = vsel %vm1719_vm9, %v7190_v31, %v7191_v56  ;;  %v13096_v40 = vld [vmem:[#allocation3 + $0x30] sm:$0xfe]  }
 0x2e8   : > { %v8357_v43 = vsel %vm1318_vm2, %v8352_v6, %v8356_v37  ;;  %v13125_v37 = vld [vmem:[#allocation5 + $0x218] sm:$0xff]  }
 0x2e9   : > { %v13107_v6 = vld [vmem:[#allocation3 + $0x50] ss:$0 sps:$4 sm:$0x11]  }
 0x2eb   : > { %9828 = vmatmul.mubr.bf16.gmra.mrb[220].mxu1 %v7180_v32  ;;  %9675 = vmatmul.mubr.bf16.gmra.mrb[192].mxu0 %v13039_v23  ;;  %v13063_v23 = vld [vmem:[#allocation3 + $0xc0] sm:$0xff]  }
 0x2ec   : > { %9835 = vmatprep.mubr.bf16.mxu1 %v13036_v46  ;;  %9682 = vmatprep.mubr.bf16.mxu0 %v6912_v63  ;;  %v13067_v46 = vld [vmem:[#allocation3 + $0xb4] sm:$0xff]   ;;  %v13084_v32 = vld [vmem:[#allocation3 + $0x24] sm:$0xff]   ;;  %v7546_v63 = vshrl.u32 %v13078_v59, 16  ;;  %v8371_v59 = vshrl.u32 %v14990_v29, 16 }
 0x2ed   : > { %v8361_v5 = vshll.u32 %v13084_v32, 16  ;;  %v8359_v50 = vshrl.u32 %v13084_v32, 16  ;;  %v7570_v32 = vshrl.u32 %v13093_v20, 16  ;;  %v13104_v29 = vld [vmem:[#allocation3 + $0x44] ss:$0 sps:$4 sm:$0x11]  }
 0x2ef   : > { %v8363_v19 = vrot.slane %v8361_v5, 1  ;;  %v13103_v5 = vld [vmem:[#allocation3 + $0x3c] sm:$0xfe]  }
 0x2f0   : > { %v7957_v20 = vrot.slane %v13103_v5, 1  ;;  %v13122_v5 = vld [vmem:[#allocation3 + $0x68] ss:$0 sps:$4 sm:$0x11]  }
 0x2f1   : > { %v8364_v31 = vor.u32 %v8363_v19, %v8359_v50  ;;  %v7591_v50 = vrot.slane %v7589_v62, 1  ;;  %v13105_v62 = vld [vmem:[#allocation3 + $0x3c] sm:$0xff]  }
 0x2f3   : > { %9836 = vmatmul.mubr.bf16.gmra.mrb[224].mxu1 %v7183_v55  ;;  %9683 = vmatmul.mubr.bf16.gmra.mrb[196].mxu0 %v13047_v8  ;;  %v7560_v8 = vshll.u32 %v13086_v15, 16  ;;  %v7551_v55 = vor.u32 %v7550_v3, %v7546_v63  ;;  %v7955_v63 = vrot.slane %v13097_v54, 1  ;;  %v8383_v3 = vshrl.u32 %v14999_v38, 16  ;;  %v13115_v54 = vld [vmem:[#allocation3 + $0x5c] ss:$0 sps:$4 sm:$0x11]  }
 0x2f4   : > { %9843 = vmatprep.mubr.bf16.mxu1 %v13046_v52  ;;  %9690 = vmatprep.mubr.bf16.mxu0 %v6924_v7  ;;  %v8366_v52 = vshll.u32 %v13085_v26, 16  ;;  %v7565_v7 = vshll.u32 %v13087_v51, 16  ;;  %v7579_v26 = vrot.slane %v7577_v27, 1  ;;  %v7584_v51 = vshll.u32 %v13101_v16, 16 }
 0x2f5   : > { %v7556_v34 = vsel %vm1318_vm2, %v7551_v55, %v7555_v13  ;;  %v7562_v48 = vrot.slane %v7560_v8, 1  ;;  %v8390_v13 = vshll.u32 %v13100_v9, 16  ;;  %v15006_v8 = vld [vmem:[#allocation3 + $0x48] sm:$0xff]   ;;  %v13108_v55 = vld [vmem:[#allocation3 + $0x3c] sm:$0xff]  }
 0x2f6   : > { %v8368_v28 = vrot.slane %v8366_v52, 1  ;;  %v7567_v44 = vrot.slane %v7565_v7, 1  ;;  %v7586_v52 = vrot.slane %v7584_v51, 1  ;;  %v8395_v19 = vshrl.u32 %v15006_v8, 16 }
 0x2fb   : > { %9844 = vmatmul.mubr.bf16.gmra.mrb[228].mxu1 %v7186_v60  ;;  %9691 = vmatmul.mubr.bf16.gmra.mrb[200].mxu0 %v13055_v1  ;;  %v13095_v1 = vld [vmem:[#allocation5 + $0x208] sm:$0xff]   ;;  %v8375_v60 = vrot.slane %v8373_v4, 1 }
 0x2fc   : > { %9851 = vmatprep.mubr.bf16.mxu1 %v13052_v10  ;;  %9698 = vmatprep.mubr.bf16.mxu0 %v6936_v42  ;;  %v7558_v10 = vshrl.u32 %v13086_v15, 16  ;;  %v8380_v42 = vrot.slane %v8378_v30, 1  ;;  %v7954_v15 = vrot.slane %v13096_v40, 1  ;;  %v13116_v40 = vld [vmem:[#allocation3 + $0x48] sm:$0xff]  }
 0x2fe   : > { %v7563_v56 = vor.u32 %v7562_v48, %v7558_v10  ;;  %v7956_v30 = vsel %vm1719_vm9, %v7954_v15, %v7955_v63  ;;  %v8402_v48 = vshll.u32 %v13107_v6, 16  ;;  %v7587_v10 = vor.u32 %v7586_v52, %v7582_v57  ;;  %v13117_v15 = vld [vmem:[#allocation3 + $0x50] ss:$0 sps:$4 sm:$0x11]   ;;  %v13118_v6 = vld [vmem:[#allocation3 + $0x54] sm:$0xfe]  }
 0x2ff   : > { %v13119_v52 = vld [vmem:[#allocation3 + $0x5c] ss:$0 sps:$4 sm:$0x11]  }
 0x300   : > { %v7568_v25 = vsel %vm1318_vm2, %v7563_v56, %v7567_v44  ;;  %v7596_v44 = vshll.u32 %v13108_v55, 16  ;;  %v8404_v9 = vrot.slane %v8402_v48, 1  ;;  %v8426_v48 = vshll.u32 %v13122_v5, 16 }
 0x302   : > { %v7598_v16 = vrot.slane %v7596_v44, 1 }
 0x303   : > { %9852 = vmatmul.mubr.bf16.gmra.mrb[232].mxu1 %v7189_v39  ;;  %9699 = vmatmul.mubr.bf16.gmra.mrb[204].mxu0 %v13067_v46  ;;  %v8369_v46 = vsel %vm1318_vm2, %v8364_v31, %v8368_v28  ;;  %v8385_v39 = vshll.u32 %v14999_v38, 16  ;;  %v13112_v31 = vld [vmem:[#allocation3 + $0x50] ss:$0 sps:$4 sm:$0x11]  }
 0x304   : > { %9859 = vmatprep.mubr.bf16.mxu1 %v13063_v23  ;;  %9900 = vmatprep.mubr.bf16.mxu0 %v7947_v11  ;;  %v7574_v23 = vrot.slane %v7572_v12, 1  ;;  %v8376_v11 = vor.u32 %v8375_v60, %v8371_v59  ;;  %v15017_v59 = vld [vmem:[#allocation3 + $0x54] sm:$0xff]   ;;  %v7961_v63 = vrot.slane %v13112_v31, 1  ;;  %v13113_v31 = vld [vmem:[#allocation3 + $0x48] sm:$0xff]  }
 0x305   : > { %v8387_v58 = vrot.slane %v8385_v39, 1  ;;  %v8414_v39 = vshll.u32 %v13115_v54, 16 }
 0x306   : > { %v7575_v2 = vor.u32 %v7574_v23, %v7570_v32  ;;  %v8381_v7 = vsel %vm1318_vm2, %v8376_v11, %v8380_v42  ;;  %v13098_v42 = vld [vmem:[#allocation3 + $0x30] sm:$0xff]   ;;  %v15036_v11 = vld [vmem:[#allocation3 + $0x60] sm:$0xff]  }
 0x307   : > { %v8388_v12 = vor.u32 %v8387_v58, %v8383_v3  ;;  %v8407_v3 = vshrl.u32 %v15017_v59, 16  ;;  %v8419_v54 = vshrl.u32 %v15036_v11, 16 }
 0x308   : > { %v7580_v4 = vsel %vm1318_vm2, %v7575_v2, %v7579_v26 }
 0x30b   : > { %9860 = vmatmul.mubr.bf16.gmra.mrb[236].mxu1 %v7192_v49  ;;  %9901 = vmatmul.mubr.bf16.vlgmr.msra.gmra.mrb[208].mxu0 %v7556_v34  ;;  %v15011_v49 = vpop.f32.mrb[150].mxu1  ;;  %v8397_v34 = vshll.u32 %v15006_v8, 16  ;;  %v7613_v8 = vshll.u32 %v13117_v15, 16  ;;  %v13127_v15 = vld [vmem:[#allocation3 + $0x68] ss:$0 sps:$4 sm:$0x11]  }
 0x30c   : > { %10061 = vmatprep.mubr.bf16.mxu1 %v8357_v43  ;;  %9908 = vmatprep.mubr.bf16.mxu0 %v7950_v21  ;;  %v8392_v43 = vrot.slane %v8390_v13, 1  ;;  %v7958_v21 = vrot.slane %v13104_v29, 1  ;;  %v15015_v28 = vpop.f32.mrb[151].mxu1  ;;  %v7608_v13 = vshll.u32 %v13116_v40, 16 }
 0x30d   : > { %12476 = vmatpush3.bf16.msra.mxu0 %v14968_v22  ;;  %v7953_v22 = vsel %vm1719_vm9, %v7951_v53, %v7952_v17  ;;  %v7601_v53 = vshll.u32 %v13109_v0, 16  ;;  %v13111_v17 = vld [vmem:[#allocation3 + $0x48] sm:$0xfe]   ;;  %v15019_v60 = vpop.f32.mrb[152].mxu1  ;;  %v8399_v27 = vrot.slane %v8397_v34, 1  ;;  %v13123_v0 = vld [vmem:[#allocation3 + $0x54] sm:$0xff]  }
 0x30e   : > { %12477 = vmatprep.subr.bf16.mxu0 %v13095_v1  ;;  %v15021_v56 = vpop.f32.mrb[153].mxu1  ;;  %v7959_v23 = vsel %vm1719_vm9, %v7957_v20, %v7958_v21  ;;  %v7960_v26 = vrot.slane %v13111_v17, 1  ;;  %v13124_v20 = vld [vmem:[#allocation3 + $0x5c] ss:$0 sps:$4 sm:$0x11]   ;;  %v8416_v21 = vrot.slane %v8414_v39, 1 }
 0x30f   : > { %v7603_v61 = vrot.slane %v7601_v53, 1  ;;  %v8400_v29 = vor.u32 %v8399_v27, %v8395_v19  ;;  %v7606_v19 = vshrl.u32 %v13116_v40, 16  ;;  %v7620_v44 = vshll.u32 %v13123_v0, 16 }
 0x311   : > { %12478 = vmatpush3.bf16.msra.mxu0 %v13095_v1  ;;  %v7594_v1 = vshrl.u32 %v13108_v55, 16  ;;  %v7610_v55 = vrot.slane %v7608_v13, 1 }
 0x312   : > { %12479 = vmatprep.subr.bf16.mxu0 %v13110_v41 }
 0x313   : > { %10062 = vmatmul.mubr.bf16.vlgmr.msra.gmra.mrb[240].mxu1 %v13083_v18  ;;  %9909 = vmatmul.mubr.bf16.gmra.mrb[212].mxu0 %v7568_v25  ;;  %v7592_v18 = vsel %vm1318_vm2, %v7587_v10, %v7591_v50  ;;  %v7599_v51 = vor.u32 %v7598_v16, %v7594_v1  ;;  %v7962_v50 = vsel %vm1719_vm9, %v7960_v26, %v7961_v63  ;;  %v7625_v16 = vshll.u32 %v13124_v20, 16  ;;  %v13131_v63 = vld [vmem:[#allocation3 + $0x60] sm:$0xff]  }
 0x314   : > { %10069 = vmatprep.mubr.bf16.mxu1 %v8369_v46  ;;  %9916 = vmatprep.mubr.bf16.mxu0 %v7953_v22  ;;  %v8409_v46 = vshll.u32 %v15017_v59, 16  ;;  %v8393_v22 = vsel %vm1318_vm2, %v8388_v12, %v8392_v43  ;;  %v8405_v43 = vsel %vm1318_vm2, %v8400_v29, %v8404_v9  ;;  %v7611_v17 = vor.u32 %v7610_v55, %v7606_v19 }
 0x315   : > { %12480 = vmatpush3.bf16.msra.mxu0 %v13110_v41  ;;  %v15023_v41 = vpop.f32.mrb[154].mxu1  ;;  %v7615_v59 = vrot.slane %v7613_v8, 1  ;;  %v7964_v12 = vrot.slane %v13119_v52, 1  ;;  %v7618_v9 = vshrl.u32 %v13123_v0, 16  ;;  %v7627_v13 = vrot.slane %v7625_v16, 1  ;;  %v13155_v8 = vld [vmem:[#allocation5 + $0x228] sm:$0xff]  }
 0x316   : > { %12481 = vmatprep.subr.bf16.mxu0 %v13125_v37  ;;  %15658 = vst [vmem:[#allocation11_spill] sm:$0xff] %v15023_v41  ;;  %v15026_v38 = vpop.f32.mrb[155].mxu1  ;;  %v7632_v52 = vshll.u32 %v13131_v63, 16 }
 0x317   : > { %15659 = vst [vmem:[#allocation16_spill] sm:$0xff] %v15026_v38  ;;  %v15029_v25 = vpop.f32.mrb[156].mxu1  ;;  %v7616_v26 = vsel %vm1318_vm2, %v7611_v17, %v7615_v59  ;;  %v13134_v59 = vld [vmem:[#allocation3 + $0x74] ss:$0 sps:$4 sm:$0x11]  }
 0x318   : > { %15660 = vst [vmem:[#allocation12_spill] sm:$0xff] %v15029_v25  ;;  %v15033_v32 = vpop.f32.mrb[157].mxu1 }
 0x319   : > { %12482 = vmatpush3.bf16.msra.mxu0 %v13125_v37  ;;  %v13140_v37 = vld [vmem:[#allocation5 + $0x220] sm:$0xff]   ;;  %15661 = vst [vmem:[#allocation14_spill] sm:$0xff] %v15033_v32  ;;  %v15038_v2 = vpop.f32.mrb[158].mxu1 }
 0x31a   : > { %12483 = vmatprep.subr.bf16.mxu0 %v13140_v37  ;;  %15662 = vst [vmem:[#allocation19_spill] sm:$0xff] %v15038_v2  ;;  %v15040_v58 = vpop.f32.mrb[159].mxu1 }
 0x31b   : > { %10070 = vmatmul.mubr.bf16.gmra.mrb[244].mxu1 %v13090_v35  ;;  %9917 = vmatmul.mubr.bf16.gmra.mrb[216].mxu0 %v7580_v4  ;;  %v8411_v35 = vrot.slane %v8409_v46, 1  ;;  %15663 = vst [vmem:[#allocation17_spill] sm:$0xff] %v15040_v58  ;;  %v7604_v4 = vsel %vm1318_vm2, %v7599_v51, %v7603_v61  ;;  %v8428_v61 = vrot.slane %v8426_v48, 1  ;;  %v13126_v46 = vld [vmem:[#allocation3 + $0x60] sm:$0xfe]  }
 0x31c   : > { %10077 = vmatprep.mubr.bf16.mxu1 %v8381_v7  ;;  %9924 = vmatprep.mubr.bf16.mxu0 %v7956_v30  ;;  %v15042_v7 = vpop.f32.mrb[160].mxu1  ;;  %v8421_v30 = vshll.u32 %v15036_v11, 16  ;;  %v13130_v11 = vld [vmem:[#allocation3 + $0x74] ss:$0 sps:$4 sm:$0x11]   ;;  %v7966_v55 = vrot.slane %v13126_v46, 1 }
 0x31d   : > { %12484 = vmatpush3.bf16.msra.mxu0 %v13140_v37  ;;  %15664 = vst [vmem:[#allocation18_spill] sm:$0xff] %v15042_v7  ;;  %v15046_v57 = vpop.f32.mrb[161].mxu1  ;;  %v8412_v10 = vor.u32 %v8411_v35, %v8407_v3  ;;  %v15063_v37 = vld [vmem:[#allocation3 + $0x6c] sm:$0xff]   ;;  %v13132_v35 = vld [vmem:[#allocation3 + $0x68] ss:$0 sps:$4 sm:$0x11]  }
 0x31e   : > { %15665 = vst [vmem:[#allocation20_spill] sm:$0xff] %v15046_v57  ;;  %v15050_v34 = vpop.f32.mrb[162].mxu1  ;;  %v8433_v29 = vshll.u32 %v15063_v37, 16  ;;  %12485 = vmatprep.subr.bf16.mxu0 %v13155_v8  ;;  %v8438_v19 = vshll.u32 %v13130_v11, 16  ;;  %v13133_v48 = vld [vmem:[#allocation3 + $0x6c] sm:$0xfe]  }
 0x31f   : > { %15666 = vst [vmem:[#allocation15_spill] sm:$0xff] %v15050_v34  ;;  %v15052_v1 = vpop.f32.mrb[163].mxu1  ;;  %v8417_v3 = vsel %vm1318_vm2, %v8412_v10, %v8416_v21  ;;  %v8431_v21 = vshrl.u32 %v15063_v37, 16  ;;  %v13136_v10 = vld [vmem:[#allocation3 + $0x78] sm:$0xff]  }
 0x320   : > { %15667 = vst [vmem:[#allocation13_spill] sm:$0xff] %v15052_v1  ;;  %v15054_v53 = vpop.f32.mrb[164].mxu1  ;;  %v8435_v17 = vrot.slane %v8433_v29, 1  ;;  %v13225_v1 = vld [vmem:[#allocation3 + $0xd4] ss:$0 sps:$4 sm:$0x11]  }
 0x321   : > { %15668 = vst [vmem:[#allocation21_spill] sm:$0xff] %v15054_v53  ;;  %v15056_v27 = vpop.f32.mrb[165].mxu1  ;;  %12486 = vmatpush3.bf16.msra.mxu0 %v13155_v8  ;;  %v13221_v53 = vld [vmem:[#allocation3 + $0xbc] ss:$0 sps:$4 sm:$0x11]  }
 0x322   : > { %15669 = vst [vmem:[#allocation22_spill] sm:$0xff] %v15056_v27  ;;  %v15059_v40 = vpop.f32.mrb[166].mxu1 }
 0x323   : > { %10078 = vmatmul.mubr.bf16.gmra.mrb[248].mxu1 %v13098_v42  ;;  %9925 = vmatmul.mubr.bf16.gmra.mrb[220].mxu0 %v7592_v18  ;;  %v7963_v42 = vrot.slane %v13118_v6, 1  ;;  %v8423_v18 = vrot.slane %v8421_v30, 1  ;;  %15670 = vst [vmem:[#allocation23_spill] sm:$0xff] %v15059_v40  ;;  %v13120_v30 = vld [vmem:[#allocation3 + $0x54] sm:$0xff]  }
 0x324   : > { %10085 = vmatprep.mubr.bf16.mxu1 %v8393_v22  ;;  %9932 = vmatprep.mubr.bf16.mxu0 %v7959_v23  ;;  %v15061_v22 = vpop.f32.mrb[167].mxu1  ;;  %v7622_v23 = vrot.slane %v7620_v44, 1  ;;  %v13217_v40 = vld [vmem:[#allocation3 + $0xa4] ss:$0 sps:$4 sm:$0x11]  }
 0x325   : > { %15671 = vst [vmem:[#allocation24_spill] sm:$0xff] %v15061_v22  ;;  %v7965_v39 = vsel %vm1719_vm9, %v7963_v42, %v7964_v12  ;;  %v15068_v51 = vpop.f32.mrb[168].mxu1  ;;  %v13138_v42 = vld [vmem:[#allocation3 + $0x6c] sm:$0xff]  }
 0x326   : > { %15672 = vst [vmem:[#allocation25_spill] sm:$0xff] %v15068_v51  ;;  %v7623_v6 = vor.u32 %v7622_v23, %v7618_v9  ;;  %v7634_v9 = vrot.slane %v7632_v52, 1  ;;  %v7637_v23 = vshll.u32 %v13132_v35, 16  ;;  %v7644_v11 = vshll.u32 %v13138_v42, 16 }
 0x327   : > { %v7969_v52 = vrot.slane %v13133_v48, 1  ;;  %v8436_v35 = vor.u32 %v8435_v17, %v8431_v21  ;;  %v13145_v48 = vld [vmem:[#allocation3 + $0x8c] ss:$0 sps:$4 sm:$0x11]  }
 0x328   : > { %v7628_v12 = vsel %vm1318_vm2, %v7623_v6, %v7627_v13  ;;  %v8440_v13 = vrot.slane %v8438_v19, 1  ;;  %v7646_v19 = vrot.slane %v7644_v11, 1 }
 0x32a   : > { %v8441_v21 = vsel %vm1318_vm2, %v8436_v35, %v8440_v13  ;;  %v13148_v13 = vld [vmem:[#allocation3 + $0x84] sm:$0xfe]   ;;  %v8462_v35 = vshll.u32 %v13145_v48, 16 }
 0x32b   : > { %10086 = vmatmul.mubr.bf16.gmra.mrb[252].mxu1 %v13105_v62  ;;  %9933 = vmatmul.mubr.bf16.gmra.mrb[224].mxu0 %v7604_v4  ;;  %v15070_v62 = vpop.f32.mrb[169].mxu1  ;;  %v11923_v4 = vpop.f32.mrb[144].mxu0 }
 0x32c   : > { %10093 = vmatprep.mubr.bf16.mxu1 %v8405_v43  ;;  %9940 = vmatprep.mubr.bf16.mxu0 %v7962_v50  ;;  %15673 = vst [vmem:[#allocation26_spill] sm:$0xff] %v15070_v62  ;;  %v15073_v5 = vpop.f32.mrb[170].mxu1  ;;  %v8424_v43 = vor.u32 %v8423_v18, %v8419_v54  ;;  %v7967_v50 = vrot.slane %v13127_v15, 1  ;;  %v11924_v18 = vpop.f32.mrb[145].mxu0  ;;  %v8445_v15 = vshll.u32 %v13136_v10, 16 }
 0x32d   : > { %15674 = vst [vmem:[#allocation27_spill] sm:$0xff] %v15073_v5  ;;  %v15075_v0 = vpop.f32.mrb[171].mxu1 }
 0x32e   : > { %15675 = vst [vmem:[#allocation28_spill] sm:$0xff] %v15075_v0  ;;  %v15077_v20 = vpop.f32.mrb[172].mxu1  ;;  %v8429_v16 = vsel %vm1318_vm2, %v8424_v43, %v8428_v61  ;;  %v7968_v46 = vsel %vm1719_vm9, %v7966_v55, %v7967_v50  ;;  %v13128_v55 = vld [vmem:[#allocation3 + $0x60] sm:$0xff]   ;;  %v7639_v50 = vrot.slane %v7637_v23, 1 }
 0x32f   : > { %15676 = vst [vmem:[#allocation29_spill] sm:$0xff] %v15077_v20  ;;  %v15080_v44 = vpop.f32.mrb[173].mxu1  ;;  %v13142_v20 = vld [vmem:[#allocation3 + $0x80] ss:$0 sps:$4 sm:$0x11]   ;;  %v13144_v23 = vld [vmem:[#allocation3 + $0x84] sm:$0xff]  }
 0x330   : > { %15677 = vst [vmem:[#allocation30_spill] sm:$0xff] %v15080_v44  ;;  %v15083_v54 = vpop.f32.mrb[174].mxu1  ;;  %v13141_v44 = vld [vmem:[#allocation3 + $0x78] sm:$0xfe]  }
 0x331   : > { %15678 = vst [vmem:[#allocation31_spill] sm:$0xff] %v15083_v54  ;;  %v15087_v37 = vpop.f32.mrb[175].mxu1 }
 0x332   : > { %15679 = vst [vmem:[#allocation32_spill] sm:$0xff] %v15087_v37  ;;  %v8447_v37 = vrot.slane %v8445_v15, 1  ;;  %v7642_v15 = vshrl.u32 %v13138_v42, 16  ;;  %v13152_v42 = vld [vmem:[#allocation3 + $0x98] ss:$0 sps:$4 sm:$0x11]  }
 0x333   : > { %10094 = vmatmul.mubr.bf16.gmra.mrb[0].mxu1 %v13113_v31  ;;  %9941 = vmatmul.mubr.bf16.gmra.mrb[228].mxu0 %v7616_v26  ;;  %v7630_v31 = vshrl.u32 %v13131_v63, 16  ;;  %v13137_v26 = vld [vmem:[#allocation3 + $0x80] ss:$0 sps:$4 sm:$0x11]   ;;  %v12035_v63 = vpop.f32.mrb[176].mxu1 }
 0x334   : > { %10101 = vmatprep.mubr.bf16.mxu1 %v8417_v3  ;;  %9948 = vmatprep.mubr.bf16.mxu0 %v7965_v39  ;;  %v11925_v3 = vadd.f32 %v11924_v18, %v11923_v4  ;;  %v11926_v39 = vpop.f32.mrb[146].mxu0  ;;  %v12036_v8 = vpop.f32.mrb[177].mxu1  ;;  %v8450_v54 = vshll.u32 %v13137_v26, 16  ;;  %v8443_v26 = vshrl.u32 %v13136_v10, 16  ;;  %v13151_v10 = vld [vmem:[#allocation3 + $0x90] sm:$0xff]  }
 0x335   : > { %v11927_v29 = vpop.f32.mrb[147].mxu0  ;;  %v7635_v6 = vor.u32 %v7634_v9, %v7630_v31  ;;  %v12038_v43 = vpop.f32.mrb[178].mxu1  ;;  %v13146_v9 = vld [vmem:[#allocation3 + $0x78] sm:$0xff]  }
 0x336   : > { %v11928_v61 = vadd.f32 %v11927_v29, %v11926_v39  ;;  %v8452_v11 = vrot.slane %v8450_v54, 1  ;;  %v7647_v29 = vor.u32 %v7646_v19, %v7642_v15  ;;  %v7654_v19 = vshrl.u32 %v13146_v9, 16 }
 0x337   : > { %v7640_v31 = vsel %vm1318_vm2, %v7635_v6, %v7639_v50  ;;  %v13135_v6 = vld [vmem:[#allocation3 + $0x6c] sm:$0xff]  }
 0x338   : > { %v13170_v50 = vld [vmem:[#allocation5 + $0x230] sm:$0xff]  }
 0x339   : > { %12487 = vmatprep.subr.bf16.mxu0 %v13170_v50 }
 0x33a   : > { %12488 = vmatpush3.bf16.msra.mxu0 %v13170_v50 }
 0x33b   : > { %10102 = vmatmul.mubr.bf16.gmra.mrb[4].mxu1 %v13120_v30  ;;  %9949 = vmatmul.mubr.bf16.gmra.mrb[232].mxu0 %v7628_v12  ;;  %v12037_v30 = vadd.f32 %v12036_v8, %v12035_v63  ;;  %v7970_v12 = vrot.slane %v13134_v59, 1  ;;  %v8448_v63 = vor.u32 %v8447_v37, %v8443_v26  ;;  %v7656_v8 = vshll.u32 %v13146_v9, 16 }
 0x33c   : > { %10109 = vmatprep.mubr.bf16.mxu1 %v8429_v16  ;;  %9956 = vmatprep.mubr.bf16.mxu0 %v7968_v46  ;;  %v13139_v16 = vld [vmem:[#allocation3 + $0x74] ss:$0 sps:$4 sm:$0x11]   ;;  %v12039_v46 = vpop.f32.mrb[179].mxu1  ;;  %v8455_v37 = vshrl.u32 %v13144_v23, 16  ;;  %v8467_v26 = vshrl.u32 %v13151_v10, 16 }
 0x33d   : > { %v15089_v4 = vadd.f32 %v12037_v30, %v11925_v3  ;;  %v12040_v18 = vadd.f32 %v12039_v46, %v12038_v43  ;;  %v7971_v17 = vsel %vm1719_vm9, %v7969_v52, %v7970_v12  ;;  %v7649_v59 = vshll.u32 %v13139_v16, 16  ;;  %v13147_v3 = vld [vmem:[#allocation3 + $0x80] ss:$0 sps:$4 sm:$0x11]  }
 0x33e   : > { %v7972_v30 = vrot.slane %v13141_v44, 1  ;;  %v7973_v43 = vrot.slane %v13142_v20, 1  ;;  %v7661_v52 = vshll.u32 %v13147_v3, 16  ;;  %v13149_v12 = vld [vmem:[#allocation3 + $0x8c] ss:$0 sps:$4 sm:$0x11]   ;;  %v8453_v54 = vsel %vm1318_vm2, %v8448_v63, %v8452_v11 }
 0x33f   : > { %v15092_v39 = vadd.f32 %v12040_v18, %v11928_v61  ;;  %v7651_v61 = vrot.slane %v7649_v59, 1  ;;  %v7658_v46 = vrot.slane %v7656_v8, 1  ;;  %v13153_v18 = vld [vmem:[#allocation3 + $0x84] sm:$0xff]   ;;  %v13143_v3 = vld [vmem:[#allocation3 + $0x78] sm:$0xff]   ;;  %v8469_v8 = vshll.u32 %v13151_v10, 16 }
 0x340   : > { %v7974_v44 = vsel %vm1719_vm9, %v7972_v30, %v7973_v43  ;;  %v7663_v48 = vrot.slane %v7661_v52, 1  ;;  %v7668_v15 = vshll.u32 %v13153_v18, 16  ;;  %v13154_v63 = vld [vmem:[#allocation3 + $0x8c] ss:$0 sps:$4 sm:$0x11]   ;;  %v8474_v11 = vshll.u32 %v13152_v42, 16 }
 0x341   : > { %v7652_v16 = vsel %vm1318_vm2, %v7647_v29, %v7651_v61  ;;  %v7659_v59 = vor.u32 %v7658_v46, %v7654_v19  ;;  %v7666_v61 = vshrl.u32 %v13153_v18, 16  ;;  %v13156_v30 = vld [vmem:[#allocation3 + $0x90] sm:$0xfe]   ;;  %v8471_v50 = vrot.slane %v8469_v8, 1  ;;  %v13163_v8 = vld [vmem:[#allocation3 + $0x9c] sm:$0xfe]  }
 0x342   : > { %v13161_v43 = vld [vmem:[#allocation3 + $0x90] sm:$0xff]   ;;  %v7670_v9 = vrot.slane %v7668_v15, 1  ;;  %v13160_v52 = vld [vmem:[#allocation3 + $0xa4] ss:$0 sps:$4 sm:$0x11]   ;;  %v8476_v42 = vrot.slane %v8474_v11, 1 }
 0x343   : > { %10110 = vmatmul.mubr.bf16.gmra.mrb[8].mxu1 %v13128_v55  ;;  %9957 = vmatmul.mubr.bf16.gmra.mrb[236].mxu0 %v7640_v31  ;;  %v8457_v55 = vshll.u32 %v13144_v23, 16  ;;  %v8464_v31 = vrot.slane %v8462_v35, 1  ;;  %v7664_v23 = vsel %vm1318_vm2, %v7659_v59, %v7663_v48  ;;  %v13162_v46 = vld [vmem:[#allocation3 + $0x98] ss:$0 sps:$4 sm:$0x11]   ;;  %v7680_v10 = vshll.u32 %v13161_v43, 16 }
 0x344   : > { %10117 = vmatprep.mubr.bf16.mxu1 %v8441_v21  ;;  %9964 = vmatprep.mubr.bf16.mxu0 %v7971_v17  ;;  %v7975_v21 = vrot.slane %v13148_v13, 1  ;;  %v7976_v17 = vrot.slane %v13149_v12, 1  ;;  %v7673_v12 = vshll.u32 %v13154_v63, 16  ;;  %v7671_v18 = vor.u32 %v7670_v9, %v7666_v61  ;;  %v13185_v19 = vld [vmem:[#allocation5 + $0x238] sm:$0xff]   ;;  %v13150_v48 = vld [vmem:[#allocation3 + $0x84] sm:$0xff]  }
 0x345   : > { %v8459_v20 = vrot.slane %v8457_v55, 1  ;;  %v13157_v55 = vld [vmem:[#allocation3 + $0x98] ss:$0 sps:$4 sm:$0x11]   ;;  %12489 = vmatprep.subr.bf16.mxu0 %v13185_v19 }
 0x346   : > { %v7977_v35 = vsel %vm1719_vm9, %v7975_v21, %v7976_v17  ;;  %v8486_v21 = vshll.u32 %v13160_v52, 16  ;;  %v13164_v63 = vld [vmem:[#allocation3 + $0xa4] ss:$0 sps:$4 sm:$0x11]   ;;  %12490 = vmatpush3.bf16.msra.mxu0 %v13185_v19  ;;  %v7678_v52 = vshrl.u32 %v13161_v43, 16 }
 0x347   : > { %v8460_v29 = vor.u32 %v8459_v20, %v8455_v37  ;;  %v7979_v20 = vrot.slane %v13157_v55, 1  ;;  %v13167_v55 = vld [vmem:[#allocation3 + $0xb0] ss:$0 sps:$4 sm:$0x11]  }
 0x349   : > { %v8465_v13 = vsel %vm1318_vm2, %v8460_v29, %v8464_v31  ;;  %v7675_v31 = vrot.slane %v7673_v12, 1  ;;  %v7685_v29 = vshll.u32 %v13162_v46, 16  ;;  %v8488_v46 = vrot.slane %v8486_v21, 1 }
 0x34b   : > { %10118 = vmatmul.mubr.bf16.gmra.mrb[12].mxu1 %v13135_v6  ;;  %9965 = vmatmul.mubr.bf16.gmra.mrb[240].mxu0 %v7652_v16  ;;  %v13159_v6 = vld [vmem:[#allocation3 + $0x9c] sm:$0xff]  }
 0x34c   : > { %10125 = vmatprep.mubr.bf16.mxu1 %v8453_v54  ;;  %9972 = vmatprep.mubr.bf16.mxu0 %v7974_v44  ;;  %v8481_v16 = vshll.u32 %v13159_v6, 16  ;;  %v8472_v54 = vor.u32 %v8471_v50, %v8467_v26  ;;  %v7978_v44 = vrot.slane %v13156_v30, 1  ;;  %v8479_v59 = vshrl.u32 %v13159_v6, 16  ;;  %v13168_v30 = vld [vmem:[#allocation3 + $0x9c] sm:$0xff]  }
 0x34d   : > { %v7676_v26 = vsel %vm1318_vm2, %v7671_v18, %v7675_v31  ;;  %v13169_v50 = vld [vmem:[#allocation3 + $0xa4] ss:$0 sps:$4 sm:$0x11]  }
 0x34e   : > { %v8483_v15 = vrot.slane %v8481_v16, 1  ;;  %v8477_v6 = vsel %vm1318_vm2, %v8472_v54, %v8476_v42  ;;  %v7980_v9 = vsel %vm1719_vm9, %v7978_v44, %v7979_v20  ;;  %v7692_v42 = vshll.u32 %v13168_v30, 16  ;;  %v13158_v54 = vld [vmem:[#allocation3 + $0x90] sm:$0xff]  }
 0x34f   : > { %v7982_v44 = vrot.slane %v13164_v63, 1  ;;  %v8498_v20 = vshll.u32 %v13167_v55, 16  ;;  %v13174_v55 = vld [vmem:[#allocation3 + $0xb4] sm:$0xff]  }
 0x350   : > { %v8484_v16 = vor.u32 %v8483_v15, %v8479_v59  ;;  %v13171_v59 = vld [vmem:[#allocation3 + $0xa8] sm:$0xfe]   ;;  %v13172_v15 = vld [vmem:[#allocation3 + $0xb0] ss:$0 sps:$4 sm:$0x11]   ;;  %v7694_v63 = vrot.slane %v7692_v42, 1 }
 0x353   : > { %10126 = vmatmul.mubr.bf16.gmra.mrb[16].mxu1 %v13143_v3  ;;  %9973 = vmatmul.mubr.bf16.gmra.mrb[244].mxu0 %v7664_v23  ;;  %v7682_v3 = vrot.slane %v7680_v10, 1  ;;  %v15102_v23 = vld [vmem:[#allocation3 + $0xa8] sm:$0xff]   ;;  %v7687_v10 = vrot.slane %v7685_v29, 1  ;;  %v8489_v29 = vsel %vm1318_vm2, %v8484_v16, %v8488_v46  ;;  %v8500_v16 = vrot.slane %v8498_v20, 1 }
 0x354   : > { %10133 = vmatprep.mubr.bf16.mxu1 %v8465_v13  ;;  %9980 = vmatprep.mubr.bf16.mxu0 %v7977_v35  ;;  %v8493_v18 = vshll.u32 %v15102_v23, 16 }
 0x355   : > { %v11929_v37 = vpop.f32.mrb[148].mxu0  ;;  %v7683_v19 = vor.u32 %v7682_v3, %v7678_v52  ;;  %v13176_v52 = vld [vmem:[#allocation3 + $0xa8] sm:$0xff]  }
 0x356   : > { %v11930_v17 = vpop.f32.mrb[149].mxu0  ;;  %v7702_v0 = vshrl.u32 %v13176_v52, 16 }
 0x357   : > { %v11931_v13 = vadd.f32 %v11930_v17, %v11929_v37  ;;  %v11932_v11 = vpop.f32.mrb[150].mxu0  ;;  %v7981_v17 = vrot.slane %v13163_v8, 1 }
 0x358   : > { %v11933_v61 = vpop.f32.mrb[151].mxu0 }
 0x359   : > { %v11934_v35 = vadd.f32 %v11933_v61, %v11932_v11 }
 0x35b   : > { %10134 = vmatmul.mubr.bf16.gmra.mrb[20].mxu1 %v13150_v48  ;;  %9981 = vmatmul.mubr.bf16.gmra.mrb[248].mxu0 %v7676_v26  ;;  %v12041_v12 = vpop.f32.mrb[180].mxu1  ;;  %v7697_v26 = vshll.u32 %v13169_v50, 16 }
 0x35c   : > { %10141 = vmatprep.mubr.bf16.mxu1 %v8477_v6  ;;  %9988 = vmatprep.mubr.bf16.mxu0 %v7980_v9  ;;  %v12042_v37 = vpop.f32.mrb[181].mxu1 }
 0x35d   : > { %v12043_v48 = vadd.f32 %v12042_v37, %v12041_v12  ;;  %v12044_v31 = vpop.f32.mrb[182].mxu1  ;;  %v11935_v61 = vpop.f32.mrb[152].mxu0  ;;  %v7688_v12 = vsel %vm1318_vm2, %v7683_v19, %v7687_v10  ;;  %v8495_v37 = vrot.slane %v8493_v18, 1  ;;  %v7699_v46 = vrot.slane %v7697_v26, 1 }
 0x35e   : > { %v12045_v11 = vpop.f32.mrb[183].mxu1  ;;  %v11936_v21 = vpop.f32.mrb[153].mxu0  ;;  %v7985_v10 = vrot.slane %v13172_v15, 1  ;;  %v13175_v18 = vld [vmem:[#allocation3 + $0xbc] ss:$0 sps:$4 sm:$0x11]  }
 0x35f   : > { %v15108_v6 = vadd.f32 %v12043_v48, %v11931_v13  ;;  %v12046_v43 = vadd.f32 %v12045_v11, %v12044_v31  ;;  %v11937_v9 = vadd.f32 %v11936_v21, %v11935_v61  ;;  %v11938_v3 = vpop.f32.mrb[154].mxu0  ;;  %v7983_v13 = vsel %vm1719_vm9, %v7981_v17, %v7982_v44  ;;  %v13165_v17 = vld [vmem:[#allocation3 + $0x9c] sm:$0xff]  }
 0x360   : > { %v11939_v50 = vpop.f32.mrb[155].mxu0  ;;  %v8491_v48 = vshrl.u32 %v15102_v23, 16  ;;  %v7690_v31 = vshrl.u32 %v13168_v30, 16  ;;  %v7984_v61 = vrot.slane %v13171_v59, 1  ;;  %v7704_v19 = vshll.u32 %v13176_v52, 16 }
 0x361   : > { %v15112_v8 = vadd.f32 %v12046_v43, %v11934_v35  ;;  %v11940_v11 = vadd.f32 %v11939_v50, %v11938_v3  ;;  %v8505_v21 = vshll.u32 %v13174_v55, 16  ;;  %v13179_v15 = vld [vmem:[#allocation3 + $0xbc] ss:$0 sps:$4 sm:$0x11]   ;;  %v8510_v62 = vshll.u32 %v13175_v18, 16  ;;  %v13189_v18 = vld [vmem:[#allocation3 + $0xc0] sm:$0xff]  }
 0x362   : > { %v8496_v42 = vor.u32 %v8495_v37, %v8491_v48  ;;  %v7695_v43 = vor.u32 %v7694_v63, %v7690_v31  ;;  %v7706_v59 = vrot.slane %v7704_v19, 1  ;;  %v13183_v37 = vld [vmem:[#allocation3 + $0xb4] sm:$0xff]   ;;  %v7986_v52 = vsel %vm1719_vm9, %v7984_v61, %v7985_v10  ;;  %v13181_v31 = vld [vmem:[#allocation3 + $0xc0] sm:$0xff]   ;;  %v13184_v61 = vld [vmem:[#allocation3 + $0xbc] ss:$0 sps:$4 sm:$0x11]  }
 0x363   : > { %10142 = vmatmul.mubr.bf16.gmra.mrb[24].mxu1 %v13158_v54  ;;  %9989 = vmatmul.mubr.bf16.gmra.mrb[252].mxu0 %v7688_v12  ;;  %v13177_v12 = vld [vmem:[#allocation3 + $0xb0] ss:$0 sps:$4 sm:$0x11]   ;;  %v13173_v10 = vld [vmem:[#allocation3 + $0xa8] sm:$0xff]  }
 0x364   : > { %10149 = vmatprep.mubr.bf16.mxu1 %v8489_v29  ;;  %9996 = vmatprep.mubr.bf16.mxu0 %v7983_v13  ;;  %v13178_v29 = vld [vmem:[#allocation3 + $0xb4] sm:$0xfe]   ;;  %v8501_v63 = vsel %vm1318_vm2, %v8496_v42, %v8500_v16  ;;  %v7700_v48 = vsel %vm1318_vm2, %v7695_v43, %v7699_v46  ;;  %v7709_v19 = vshll.u32 %v13177_v12, 16  ;;  %v7707_v16 = vor.u32 %v7706_v59, %v7702_v0  ;;  %v13192_v59 = vld [vmem:[#allocation3 + $0xd4] ss:$0 sps:$4 sm:$0x11]  }
 0x365   : > { %v12047_v35 = vpop.f32.mrb[184].mxu1  ;;  %v11941_v30 = vpop.f32.mrb[156].mxu0  ;;  %v7987_v42 = vrot.slane %v13178_v29, 1  ;;  %v7988_v46 = vrot.slane %v13179_v15, 1  ;;  %v8517_v43 = vshll.u32 %v13181_v31, 16  ;;  %v7721_v12 = vshll.u32 %v13184_v61, 16 }
 0x366   : > { %v12048_v54 = vpop.f32.mrb[185].mxu1  ;;  %v11942_v50 = vpop.f32.mrb[157].mxu0  ;;  %v7714_v15 = vshrl.u32 %v13183_v37, 16 }
 0x367   : > { %v12049_v44 = vadd.f32 %v12048_v54, %v12047_v35  ;;  %v12050_v23 = vpop.f32.mrb[186].mxu1  ;;  %v11943_v13 = vadd.f32 %v11942_v50, %v11941_v30  ;;  %v11944_v5 = vpop.f32.mrb[158].mxu0  ;;  %v8507_v54 = vrot.slane %v8505_v21, 1  ;;  %v8503_v30 = vshrl.u32 %v13174_v55, 16 }
 0x368   : > { %v12051_v3 = vpop.f32.mrb[187].mxu1  ;;  %v11945_v35 = vpop.f32.mrb[159].mxu0  ;;  %v7989_v55 = vsel %vm1719_vm9, %v7987_v42, %v7988_v46  ;;  %v8519_v29 = vrot.slane %v8517_v43, 1  ;;  %v7723_v61 = vrot.slane %v7721_v12, 1 }
 0x369   : > { %v15116_v20 = vadd.f32 %v12049_v44, %v11937_v9  ;;  %v12052_v26 = vadd.f32 %v12051_v3, %v12050_v23  ;;  %v11946_v44 = vadd.f32 %v11945_v35, %v11944_v5  ;;  %v13182_v23 = vld [vmem:[#allocation3 + $0xc8] ss:$0 sps:$4 sm:$0x11]   ;;  %v7716_v3 = vshll.u32 %v13183_v37, 16  ;;  %v13191_v5 = vld [vmem:[#allocation3 + $0xcc] sm:$0xff]  }
 0x36a   : > { %v8508_v50 = vor.u32 %v8507_v54, %v8503_v30  ;;  %v8522_v21 = vshll.u32 %v13182_v23, 16  ;;  %v8515_v35 = vshrl.u32 %v13181_v31, 16  ;;  %v8529_v23 = vshll.u32 %v13191_v5, 16  ;;  %v13190_v37 = vld [vmem:[#allocation3 + $0xc8] ss:$0 sps:$4 sm:$0x11]  }
 0x36b   : > { %10150 = vmatmul.mubr.bf16.gmra.mrb[28].mxu1 %v13165_v17  ;;  %9997 = vmatmul.mubr.bf16.gmra.mrb[0].mxu0 %v7700_v48  ;;  %v15121_v9 = vadd.f32 %v12052_v26, %v11940_v11  ;;  %v8512_v17 = vrot.slane %v8510_v62, 1  ;;  %v7711_v48 = vrot.slane %v7709_v19, 1  ;;  %v7718_v11 = vrot.slane %v7716_v3, 1  ;;  %v13186_v26 = vld [vmem:[#allocation3 + $0xc0] sm:$0xfe]  }
 0x36c   : > { %10157 = vmatprep.mubr.bf16.mxu1 %v8501_v63  ;;  %10004 = vmatprep.mubr.bf16.mxu0 %v7986_v52  ;;  %v13187_v52 = vld [vmem:[#allocation3 + $0xc8] ss:$0 sps:$4 sm:$0x11]   ;;  %v8524_v54 = vrot.slane %v8522_v21, 1  ;;  %v8527_v51 = vshrl.u32 %v13191_v5, 16  ;;  %v8531_v22 = vrot.slane %v8529_v23, 1 }
 0x36d   : > { %v7712_v63 = vsel %vm1318_vm2, %v7707_v16, %v7711_v48  ;;  %v8513_v0 = vsel %vm1318_vm2, %v8508_v50, %v8512_v17  ;;  %v7719_v16 = vor.u32 %v7718_v11, %v7714_v15  ;;  %v13180_v48 = vld [vmem:[#allocation3 + $0xb4] sm:$0xff]   ;;  %v8520_v50 = vor.u32 %v8519_v29, %v8515_v35  ;;  %v13194_v35 = vld [vmem:[#allocation3 + $0x20] ss:$0 sps:$4 sm:$0x11]  }
 0x36e   : > { %v7991_v42 = vrot.slane %v13187_v52, 1  ;;  %v13193_v15 = vld [vmem:[#allocation3 + $0x18] sm:$0xfe]   ;;  %v7726_v5 = vshrl.u32 %v13189_v18, 16  ;;  %v7733_v23 = vshll.u32 %v13190_v37, 16  ;;  %v13195_v37 = vld [vmem:[#allocation3 + $0xcc] sm:$0xff]  }
 0x36f   : > { %v7724_v11 = vsel %vm1318_vm2, %v7719_v16, %v7723_v61  ;;  %v8747_v16 = vrot.slane %v13194_v35, 1 }
 0x370   : > { %v7735_v61 = vrot.slane %v7733_v23, 1 }
 0x373   : > { %10158 = vmatmul.mubr.bf16.gmra.mrb[32].mxu1 %v13173_v10  ;;  %10005 = vmatmul.mubr.bf16.gmra.mrb[4].mxu0 %v7712_v63  ;;  %v12053_v62 = vpop.f32.mrb[188].mxu1  ;;  %v7728_v10 = vshll.u32 %v13189_v18, 16  ;;  %v7990_v63 = vrot.slane %v13186_v26, 1  ;;  %v8525_v26 = vsel %vm1318_vm2, %v8520_v50, %v8524_v54  ;;  %v13197_v54 = vld [vmem:[#allocation3 + $0x2c] ss:$0 sps:$4 sm:$0x11]  }
 0x374   : > { %10165 = vmatprep.mubr.bf16.mxu1 %v8513_v0  ;;  %10012 = vmatprep.mubr.bf16.mxu0 %v7989_v55  ;;  %v12054_v19 = vpop.f32.mrb[189].mxu1  ;;  %v13198_v18 = vld [vmem:[#allocation3 + $0x30] sm:$0xfe]  }
 0x375   : > { %v12055_v30 = vadd.f32 %v12054_v19, %v12053_v62  ;;  %v12056_v3 = vpop.f32.mrb[190].mxu1  ;;  %v8534_v62 = vshll.u32 %v13192_v59, 16  ;;  %v7730_v29 = vrot.slane %v7728_v10, 1  ;;  %v8532_v59 = vor.u32 %v8531_v22, %v8527_v51  ;;  %v13196_v10 = vld [vmem:[#allocation3 + $0x24] sm:$0xfe]  }
 0x376   : > { %v12057_v17 = vpop.f32.mrb[191].mxu1  ;;  %v11947_v46 = vpop.f32.mrb[160].mxu0 }
 0x377   : > { %v15126_v43 = vadd.f32 %v12055_v30, %v11943_v13  ;;  %v12058_v0 = vadd.f32 %v12057_v17, %v12056_v3  ;;  %v11948_v55 = vpop.f32.mrb[161].mxu0  ;;  %v7992_v13 = vsel %vm1719_vm9, %v7990_v63, %v7991_v42  ;;  %v7731_v30 = vor.u32 %v7730_v29, %v7726_v5  ;;  %v13188_v17 = vld [vmem:[#allocation3 + $0xc0] sm:$0xff]   ;;  %v13199_v63 = vld [vmem:[#allocation3 + $0x38] ss:$0 sps:$4 sm:$0x11]  }
 0x378   : > { %v11949_v31 = vadd.f32 %v11948_v55, %v11947_v46  ;;  %v11950_v21 = vpop.f32.mrb[162].mxu0  ;;  %v8746_v3 = vrot.slane %v13193_v15, 1  ;;  %v8749_v46 = vrot.slane %v13196_v10, 1  ;;  %v13203_v10 = vld [vmem:[#allocation3 + $0x50] ss:$0 sps:$4 sm:$0x11]  }
 0x379   : > { %v15128_v19 = vadd.f32 %v12058_v0, %v11946_v44  ;;  %v11951_v12 = vpop.f32.mrb[163].mxu0  ;;  %v8536_v44 = vrot.slane %v8534_v62, 1  ;;  %v7736_v50 = vsel %vm1318_vm2, %v7731_v30, %v7735_v61  ;;  %v8750_v0 = vrot.slane %v13197_v54, 1  ;;  %v13200_v30 = vld [vmem:[#allocation3 + $0x3c] sm:$0xfe]  }
 0x37a   : > { %v11952_v52 = vadd.f32 %v11951_v12, %v11950_v21  ;;  %v8748_v42 = vsel %vm1719_vm9, %v8746_v3, %v8747_v16  ;;  %v8752_v62 = vrot.slane %v13198_v18, 1  ;;  %v13201_v3 = vld [vmem:[#allocation3 + $0x44] ss:$0 sps:$4 sm:$0x11]   ;;  %v13202_v61 = vld [vmem:[#allocation3 + $0x48] sm:$0xfe]  }
 0x37b   : > { %10166 = vmatmul.mubr.bf16.gmra.mrb[36].mxu1 %v13180_v48  ;;  %10013 = vmatmul.mubr.bf16.gmra.mrb[8].mxu0 %v7724_v11  ;;  %v8537_v48 = vsel %vm1318_vm2, %v8532_v59, %v8536_v44  ;;  %v8753_v11 = vrot.slane %v13199_v63, 1  ;;  %v8751_v44 = vsel %vm1719_vm9, %v8749_v46, %v8750_v0  ;;  %v8758_v18 = vrot.slane %v13202_v61, 1 }
 0x37c   : > { %10173 = vmatprep.mubr.bf16.mxu1 %v8525_v26  ;;  %10020 = vmatprep.mubr.bf16.mxu0 %v7992_v13 }
 0x37d   : > { %v8754_v16 = vsel %vm1719_vm9, %v8752_v62, %v8753_v11 }
 0x383   : > { %10174 = vmatmul.mubr.bf16.gmra.mrb[40].mxu1 %v13188_v17  ;;  %10021 = vmatmul.mubr.bf16.gmra.mrb[12].mxu0 %v7736_v50  ;;  %v8755_v50 = vrot.slane %v13200_v30, 1 }
 0x384   : > { %10181 = vmatprep.mubr.bf16.mxu1 %v8537_v48  ;;  %12491 = vmatprep.mubr.bf16.mxu0 %v8748_v42 }
 0x386   : > { %v12059_v22 = vpop.f32.mrb[192].mxu1  ;;  %v11953_v51 = vpop.f32.mrb[164].mxu0 }
 0x387   : > { %v12060_v55 = vpop.f32.mrb[193].mxu1  ;;  %v11954_v21 = vpop.f32.mrb[165].mxu0 }
 0x388   : > { %v12061_v12 = vadd.f32 %v12060_v55, %v12059_v22  ;;  %v12062_v29 = vpop.f32.mrb[194].mxu1  ;;  %v11955_v15 = vadd.f32 %v11954_v21, %v11953_v51  ;;  %v11956_v26 = vpop.f32.mrb[166].mxu0  ;;  %v8759_v22 = vrot.slane %v13203_v10, 1 }
 0x389   : > { %v12063_v13 = vpop.f32.mrb[195].mxu1  ;;  %v11957_v35 = vpop.f32.mrb[167].mxu0 }
 0x38a   : > { %v15136_v5 = vadd.f32 %v12061_v12, %v11949_v31  ;;  %v12064_v23 = vadd.f32 %v12063_v13, %v12062_v29  ;;  %v11958_v59 = vadd.f32 %v11957_v35, %v11956_v26  ;;  %v8756_v31 = vrot.slane %v13201_v3, 1  ;;  %v13204_v29 = vld [vmem:[#allocation3 + $0x54] sm:$0xfe]   ;;  %v13205_v26 = vld [vmem:[#allocation3 + $0x5c] ss:$0 sps:$4 sm:$0x11]  }
 0x38b   : > { %10182 = vmatmul.mubr.bf16.gmra.mrb[44].mxu1 %v13195_v37  ;;  %12492 = vmatmul.mubr.bf16.vlgmr.msra.gmra.mrb[16].mxu0 %v8751_v44  ;;  %v8760_v13 = vsel %vm1719_vm9, %v8758_v18, %v8759_v22  ;;  %v13206_v35 = vld [vmem:[#allocation3 + $0x60] sm:$0xfe]   ;;  %v8762_v61 = vrot.slane %v13205_v26, 1 }
 0x38c   : > { %v15140_v17 = vadd.f32 %v12064_v23, %v11952_v52  ;;  %12495 = vmatprep.mubr.bf16.mxu0 %v8754_v16  ;;  %v8757_v12 = vsel %vm1719_vm9, %v8755_v50, %v8756_v31  ;;  %v13207_v23 = vld [vmem:[#allocation3 + $0x68] ss:$0 sps:$4 sm:$0x11]   ;;  %v8761_v16 = vrot.slane %v13204_v29, 1 }
 0x38d   : > { %v13211_v29 = vld [vmem:[#allocation3 + $0x80] ss:$0 sps:$4 sm:$0x11]  }
 0x38e   : > { %v12065_v48 = vpop.f32.mrb[196].mxu1  ;;  %v11959_v54 = vpop.f32.mrb[168].mxu0 }
 0x38f   : > { %v12066_v63 = vpop.f32.mrb[197].mxu1  ;;  %v11960_v42 = vpop.f32.mrb[169].mxu0 }
 0x390   : > { %v12067_v51 = vadd.f32 %v12066_v63, %v12065_v48  ;;  %v12068_v46 = vpop.f32.mrb[198].mxu1  ;;  %v11961_v0 = vadd.f32 %v11960_v42, %v11959_v54  ;;  %v11962_v55 = vpop.f32.mrb[170].mxu0  ;;  %v8764_v48 = vrot.slane %v13206_v35, 1  ;;  %v8765_v54 = vrot.slane %v13207_v23, 1 }
 0x391   : > { %v12069_v37 = vpop.f32.mrb[199].mxu1  ;;  %v11963_v21 = vpop.f32.mrb[171].mxu0 }
 0x392   : > { %v15142_v62 = vadd.f32 %v12067_v51, %v11955_v15  ;;  %v12070_v11 = vadd.f32 %v12069_v37, %v12068_v46  ;;  %v11964_v52 = vadd.f32 %v11963_v21, %v11962_v55  ;;  %v8763_v55 = vsel %vm1719_vm9, %v8761_v16, %v8762_v61  ;;  %v13208_v37 = vld [vmem:[#allocation3 + $0x6c] sm:$0xfe]   ;;  %v13209_v21 = vld [vmem:[#allocation3 + $0x74] ss:$0 sps:$4 sm:$0x11]  }
 0x393   : > { %12496 = vmatmul.mubr.bf16.gmra.mrb[20].mxu0 %v8757_v12  ;;  %v13210_v12 = vld [vmem:[#allocation3 + $0x78] sm:$0xfe]   ;;  %v8767_v23 = vrot.slane %v13208_v37, 1 }
 0x394   : > { %v15146_v44 = vadd.f32 %v12070_v11, %v11958_v59  ;;  %12499 = vmatprep.mubr.bf16.mxu0 %v8760_v13  ;;  %v8766_v11 = vsel %vm1719_vm9, %v8764_v48, %v8765_v54 }
 0x396   : > { %v12071_v30 = vpop.f32.mrb[200].mxu1  ;;  %v11965_v3 = vpop.f32.mrb[172].mxu0 }
 0x397   : > { %v12072_v15 = vpop.f32.mrb[201].mxu1  ;;  %v11966_v10 = vpop.f32.mrb[173].mxu0 }
 0x398   : > { %v12073_v63 = vadd.f32 %v12072_v15, %v12071_v30  ;;  %v12074_v50 = vpop.f32.mrb[202].mxu1  ;;  %v11967_v31 = vadd.f32 %v11966_v10, %v11965_v3  ;;  %v11968_v42 = vpop.f32.mrb[174].mxu0  ;;  %v8768_v30 = vrot.slane %v13209_v21, 1  ;;  %v8770_v15 = vrot.slane %v13210_v12, 1  ;;  %v13214_v21 = vld [vmem:[#allocation3 + $0x90] sm:$0xfe]  }
 0x399   : > { %v12075_v51 = vpop.f32.mrb[203].mxu1  ;;  %v11969_v46 = vpop.f32.mrb[175].mxu0  ;;  %v8771_v10 = vrot.slane %v13211_v29, 1 }
 0x39a   : > { %v15148_v18 = vadd.f32 %v12073_v63, %v11961_v0  ;;  %v12076_v22 = vadd.f32 %v12075_v51, %v12074_v50  ;;  %v11970_v59 = vadd.f32 %v11969_v46, %v11968_v42  ;;  %v8769_v46 = vsel %vm1719_vm9, %v8767_v23, %v8768_v30 }
 0x39b   : > { %12500 = vmatmul.mubr.bf16.gmra.mrb[24].mxu0 %v8763_v55  ;;  %v13213_v55 = vld [vmem:[#allocation3 + $0x8c] ss:$0 sps:$4 sm:$0x11]   ;;  %v8772_v37 = vsel %vm1719_vm9, %v8770_v15, %v8771_v10 }
 0x39c   : > { %v15152_v26 = vadd.f32 %v12076_v22, %v11964_v52  ;;  %12503 = vmatprep.mubr.bf16.mxu0 %v8766_v11  ;;  %v13212_v22 = vld [vmem:[#allocation3 + $0x84] sm:$0xfe]   ;;  %v13215_v11 = vld [vmem:[#allocation3 + $0x98] ss:$0 sps:$4 sm:$0x11]  }
 0x39e   : > { %v12077_v13 = vpop.f32.mrb[204].mxu1  ;;  %v11971_v35 = vpop.f32.mrb[176].mxu0 }
 0x39f   : > { %v12078_v0 = vpop.f32.mrb[205].mxu1  ;;  %v11972_v3 = vpop.f32.mrb[177].mxu0 }
 0x3a0   : > { %v12079_v63 = vadd.f32 %v12078_v0, %v12077_v13  ;;  %v12080_v16 = vpop.f32.mrb[206].mxu1  ;;  %v11973_v61 = vadd.f32 %v11972_v3, %v11971_v35  ;;  %v11974_v50 = vpop.f32.mrb[178].mxu0  ;;  %v8773_v35 = vrot.slane %v13212_v22, 1  ;;  %v8774_v0 = vrot.slane %v13213_v55, 1  ;;  %v13218_v55 = vld [vmem:[#allocation3 + $0xa8] sm:$0xfe]  }
 0x3a1   : > { %v12081_v42 = vpop.f32.mrb[207].mxu1  ;;  %v11975_v51 = vpop.f32.mrb[179].mxu0 }
 0x3a2   : > { %v15154_v48 = vadd.f32 %v12079_v63, %v11967_v31  ;;  %v12082_v54 = vadd.f32 %v12081_v42, %v12080_v16  ;;  %v11976_v52 = vadd.f32 %v11975_v51, %v11974_v50  ;;  %v8776_v63 = vrot.slane %v13214_v21, 1  ;;  %v13219_v21 = vld [vmem:[#allocation3 + $0xb0] ss:$0 sps:$4 sm:$0x11]  }
 0x3a3   : > { %12504 = vmatmul.mubr.bf16.gmra.mrb[28].mxu0 %v8769_v46  ;;  %v8777_v16 = vrot.slane %v13215_v11, 1 }
 0x3a4   : > { %v15158_v12 = vadd.f32 %v12082_v54, %v11970_v59  ;;  %12507 = vmatprep.mubr.bf16.mxu0 %v8772_v37  ;;  %v8775_v54 = vsel %vm1719_vm9, %v8773_v35, %v8774_v0  ;;  %v13216_v37 = vld [vmem:[#allocation3 + $0x9c] sm:$0xfe]  }
 0x3a5   : > { %v8778_v22 = vsel %vm1719_vm9, %v8776_v63, %v8777_v16 }
 0x3a6   : > { %v12083_v29 = vpop.f32.mrb[208].mxu1  ;;  %v11977_v13 = vpop.f32.mrb[180].mxu0 }
 0x3a7   : > { %v12084_v31 = vpop.f32.mrb[209].mxu1  ;;  %v11978_v3 = vpop.f32.mrb[181].mxu0 }
 0x3a8   : > { %v12085_v50 = vadd.f32 %v12084_v31, %v12083_v29  ;;  %v12086_v23 = vpop.f32.mrb[210].mxu1  ;;  %v11979_v30 = vadd.f32 %v11978_v3, %v11977_v13  ;;  %v11980_v42 = vpop.f32.mrb[182].mxu0  ;;  %v8779_v31 = vrot.slane %v13216_v37, 1  ;;  %v8780_v3 = vrot.slane %v13217_v40, 1  ;;  %v13222_v37 = vld [vmem:[#allocation3 + $0xc0] sm:$0xfe]  }
 0x3a9   : > { %v12087_v51 = vpop.f32.mrb[211].mxu1  ;;  %v11981_v46 = vpop.f32.mrb[183].mxu0 }
 0x3aa   : > { %v15160_v15 = vadd.f32 %v12085_v50, %v11973_v61  ;;  %v12088_v10 = vadd.f32 %v12087_v51, %v12086_v23  ;;  %v11982_v59 = vadd.f32 %v11981_v46, %v11980_v42  ;;  %v8782_v23 = vrot.slane %v13218_v55, 1  ;;  %v13223_v55 = vld [vmem:[#allocation3 + $0xc8] ss:$0 sps:$4 sm:$0x11]  }
 0x3ab   : > { %12508 = vmatmul.mubr.bf16.gmra.mrb[32].mxu0 %v8775_v54  ;;  %v8783_v42 = vrot.slane %v13219_v21, 1 }
 0x3ac   : > { %v15164_v11 = vadd.f32 %v12088_v10, %v11976_v52  ;;  %12511 = vmatprep.mubr.bf16.mxu0 %v8778_v22  ;;  %v8781_v10 = vsel %vm1719_vm9, %v8779_v31, %v8780_v3  ;;  %v13220_v22 = vld [vmem:[#allocation3 + $0xb4] sm:$0xfe]  }
 0x3ad   : > { %v8784_v40 = vsel %vm1719_vm9, %v8782_v23, %v8783_v42 }
 0x3ae   : > { %v12089_v29 = vpop.f32.mrb[212].mxu1  ;;  %v11983_v13 = vpop.f32.mrb[184].mxu0 }
 0x3af   : > { %v12090_v61 = vpop.f32.mrb[213].mxu1  ;;  %v11984_v50 = vpop.f32.mrb[185].mxu0 }
 0x3b0   : > { %v12091_v51 = vadd.f32 %v12090_v61, %v12089_v29  ;;  %v12092_v35 = vpop.f32.mrb[214].mxu1  ;;  %v11985_v0 = vadd.f32 %v11984_v50, %v11983_v13  ;;  %v11986_v46 = vpop.f32.mrb[186].mxu0  ;;  %v8785_v61 = vrot.slane %v13220_v22, 1  ;;  %v8786_v50 = vrot.slane %v13221_v53, 1 }
 0x3b1   : > { %v12093_v54 = vpop.f32.mrb[215].mxu1  ;;  %v11987_v27 = vpop.f32.mrb[187].mxu0 }
 0x3b2   : > { %v15166_v63 = vadd.f32 %v12091_v51, %v11979_v30  ;;  %v12094_v16 = vadd.f32 %v12093_v54, %v12092_v35  ;;  %v11988_v52 = vadd.f32 %v11987_v27, %v11986_v46  ;;  %v8788_v35 = vrot.slane %v13222_v37, 1  ;;  %v13224_v46 = vld [vmem:[#allocation3 + $0xcc] sm:$0xfe]  }
 0x3b3   : > { %12512 = vmatmul.mubr.bf16.gmra.mrb[36].mxu0 %v8781_v10  ;;  %v8789_v27 = vrot.slane %v13223_v55, 1  ;;  %v8791_v37 = vrot.slane %v13224_v46, 1  ;;  %v8792_v55 = vrot.slane %v13225_v1, 1 }
 0x3b4   : > { %v15170_v21 = vadd.f32 %v12094_v16, %v11982_v59  ;;  %12515 = vmatprep.mubr.bf16.mxu0 %v8784_v40  ;;  %v8787_v40 = vsel %vm1719_vm9, %v8785_v61, %v8786_v50 }
 0x3b5   : > { %v8790_v53 = vsel %vm1719_vm9, %v8788_v35, %v8789_v27 }
 0x3b6   : > { %v12095_v29 = vpop.f32.mrb[216].mxu1  ;;  %v11989_v13 = vpop.f32.mrb[188].mxu0 }
 0x3b7   : > { %v12096_v30 = vpop.f32.mrb[217].mxu1  ;;  %v11990_v51 = vpop.f32.mrb[189].mxu0 }
 0x3b8   : > { %v12097_v31 = vadd.f32 %v12096_v30, %v12095_v29  ;;  %v12098_v3 = vpop.f32.mrb[218].mxu1  ;;  %v11991_v54 = vadd.f32 %v11990_v51, %v11989_v13  ;;  %v11992_v10 = vpop.f32.mrb[190].mxu0 }
 0x3b9   : > { %v12099_v23 = vpop.f32.mrb[219].mxu1  ;;  %v11993_v42 = vpop.f32.mrb[191].mxu0 }
 0x3ba   : > { %v15172_v34 = vadd.f32 %v12097_v31, %v11985_v0  ;;  %v12100_v59 = vadd.f32 %v12099_v23, %v12098_v3  ;;  %v11994_v16 = vadd.f32 %v11993_v42, %v11992_v10  ;;  %v8793_v3 = vsel %vm1719_vm9, %v8791_v37, %v8792_v55 }
 0x3bb   : > { %12516 = vmatmul.mubr.bf16.gmra.mrb[40].mxu0 %v8787_v40 }
 0x3bc   : > { %v15176_v22 = vadd.f32 %v12100_v59, %v11988_v52  ;;  %12519 = vmatprep.mubr.bf16.mxu0 %v8790_v53 }
 0x3be   : > { %v12101_v29 = vpop.f32.mrb[220].mxu1  ;;  %v11995_v13 = vpop.f32.mrb[192].mxu0 }
 0x3bf   : > { %v12102_v30 = vpop.f32.mrb[221].mxu1  ;;  %v11996_v51 = vpop.f32.mrb[193].mxu0 }
 0x3c0   : > { %v12103_v57 = vadd.f32 %v12102_v30, %v12101_v29  ;;  %v12104_v7 = vpop.f32.mrb[222].mxu1  ;;  %v11997_v0 = vadd.f32 %v11996_v51, %v11995_v13  ;;  %v11998_v31 = vpop.f32.mrb[194].mxu0 }
 0x3c1   : > { %v12105_v10 = vpop.f32.mrb[223].mxu1  ;;  %v11999_v61 = vpop.f32.mrb[195].mxu0 }
 0x3c2   : > { %v15179_v50 = vadd.f32 %v12103_v57, %v11991_v54  ;;  %v12106_v35 = vadd.f32 %v12105_v10, %v12104_v7  ;;  %v12000_v52 = vadd.f32 %v11999_v61, %v11998_v31 }
 0x3c3   : > { %12520 = vmatmul.mubr.bf16.gmra.mrb[44].mxu0 %v8793_v3 }
 0x3c4   : > { %v15181_v27 = vadd.f32 %v12106_v35, %v11994_v16 }
 0x3c6   : > { %v12107_v1 = vpop.f32.mrb[224].mxu1  ;;  %v12001_v46 = vpop.f32.mrb[196].mxu0 }
 0x3c7   : > { %v12108_v23 = vpop.f32.mrb[225].mxu1  ;;  %v12002_v42 = vpop.f32.mrb[197].mxu0 }
 0x3c8   : > { %v12109_v59 = vadd.f32 %v12108_v23, %v12107_v1  ;;  %v12110_v40 = vpop.f32.mrb[226].mxu1  ;;  %v12003_v53 = vadd.f32 %v12002_v42, %v12001_v46  ;;  %v12004_v29 = vpop.f32.mrb[198].mxu0 }
 0x3c9   : > { %v12111_v13 = vpop.f32.mrb[227].mxu1  ;;  %v12005_v30 = vpop.f32.mrb[199].mxu0 }
 0x3ca   : > { %v15183_v37 = vadd.f32 %v12109_v59, %v11997_v0  ;;  %v12112_v55 = vadd.f32 %v12111_v13, %v12110_v40  ;;  %v12006_v57 = vadd.f32 %v12005_v30, %v12004_v29 }
 0x3cc   : > { %v15185_v54 = vadd.f32 %v12112_v55, %v12000_v52 }
 0x3ce   : > { %v12113_v7 = vpop.f32.mrb[228].mxu1  ;;  %v12007_v51 = vpop.f32.mrb[200].mxu0 }
 0x3cf   : > { %v12114_v16 = vpop.f32.mrb[229].mxu1  ;;  %v12008_v31 = vpop.f32.mrb[201].mxu0 }
 0x3d0   : > { %v12115_v3 = vadd.f32 %v12114_v16, %v12113_v7  ;;  %v12116_v10 = vpop.f32.mrb[230].mxu1  ;;  %v12009_v61 = vadd.f32 %v12008_v31, %v12007_v51  ;;  %v12010_v35 = vpop.f32.mrb[202].mxu0 }
 0x3d1   : > { %v12117_v1 = vpop.f32.mrb[231].mxu1  ;;  %v12011_v23 = vpop.f32.mrb[203].mxu0 }
 0x3d2   : > { %v15187_v46 = vadd.f32 %v12115_v3, %v12003_v53  ;;  %v12118_v42 = vadd.f32 %v12117_v1, %v12116_v10  ;;  %v12012_v58 = vadd.f32 %v12011_v23, %v12010_v35 }
 0x3d4   : > { %v15189_v0 = vadd.f32 %v12118_v42, %v12006_v57 }
 0x3d6   : > { %v12119_v59 = vpop.f32.mrb[232].mxu1  ;;  %v12013_v40 = vpop.f32.mrb[204].mxu0 }
 0x3d7   : > { %v12120_v52 = vpop.f32.mrb[233].mxu1  ;;  %v12014_v29 = vpop.f32.mrb[205].mxu0 }
 0x3d8   : > { %v12121_v13 = vadd.f32 %v12120_v52, %v12119_v59  ;;  %v12122_v30 = vpop.f32.mrb[234].mxu1  ;;  %v12015_v55 = vadd.f32 %v12014_v29, %v12013_v40  ;;  %v12016_v2 = vpop.f32.mrb[206].mxu0 }
 0x3d9   : > { %v12123_v7 = vpop.f32.mrb[235].mxu1  ;;  %v12017_v16 = vpop.f32.mrb[207].mxu0 }
 0x3da   : > { %v15191_v51 = vadd.f32 %v12121_v13, %v12009_v61  ;;  %v12124_v31 = vadd.f32 %v12123_v7, %v12122_v30  ;;  %v12018_v32 = vadd.f32 %v12017_v16, %v12016_v2 }
 0x3dc   : > { %v15193_v53 = vadd.f32 %v12124_v31, %v12012_v58 }
 0x3de   : > { %v12125_v3 = vpop.f32.mrb[236].mxu1  ;;  %v12147_v10 = vpop.f32.mrb[208].mxu0 }
 0x3df   : > { %v12126_v57 = vpop.f32.mrb[237].mxu1  ;;  %v12148_v35 = vpop.f32.mrb[209].mxu0 }
 0x3e0   : > { %v12127_v1 = vadd.f32 %v12126_v57, %v12125_v3  ;;  %v12128_v23 = vpop.f32.mrb[238].mxu1  ;;  %v12149_v42 = vadd.f32 %v12148_v35, %v12147_v10  ;;  %v12150_v25 = vpop.f32.mrb[210].mxu0 }
 0x3e1   : > { %v12129_v59 = vpop.f32.mrb[239].mxu1  ;;  %v12151_v52 = vpop.f32.mrb[211].mxu0 }
 0x3e2   : > { %v15195_v40 = vadd.f32 %v12127_v1, %v12015_v55  ;;  %v12130_v29 = vadd.f32 %v12129_v59, %v12128_v23  ;;  %v9903_v61 = vadd.f32 %v12149_v42, %v15089_v4  ;;  %v12152_v13 = vadd.f32 %v12151_v52, %v12150_v25 }
 0x3e4   : > { %v15198_v30 = vadd.f32 %v12130_v29, %v12018_v32  ;;  %v9906_v2 = vadd.f32 %v12152_v13, %v15092_v39 }
 0x3e6   : > { %v12259_v58 = vpop.f32.mrb[240].mxu1  ;;  %v12153_v7 = vpop.f32.mrb[212].mxu0 }
 0x3e7   : > { %v12260_v16 = vpop.f32.mrb[241].mxu1  ;;  %v12154_v31 = vpop.f32.mrb[213].mxu0 }
 0x3e8   : > { %v12261_v3 = vadd.f32 %v12260_v16, %v12259_v58  ;;  %v12262_v57 = vpop.f32.mrb[242].mxu1  ;;  %v12155_v10 = vadd.f32 %v12154_v31, %v12153_v7  ;;  %v12156_v35 = vpop.f32.mrb[214].mxu0 }
 0x3e9   : > { %v12263_v38 = vpop.f32.mrb[243].mxu1  ;;  %v12157_v41 = vpop.f32.mrb[215].mxu0 }
 0x3ea   : > { %v12264_v55 = vadd.f32 %v12263_v38, %v12262_v57  ;;  %v9911_v1 = vadd.f32 %v12155_v10, %v15108_v6  ;;  %v12158_v23 = vadd.f32 %v12157_v41, %v12156_v35  ;;  %v15202_v4 = vadd.f32 %v12261_v3, %v9903_v61 }
 0x3ec   : > { %v9914_v25 = vadd.f32 %v12158_v23, %v15112_v8  ;;  %v15205_v32 = vadd.f32 %v12264_v55, %v9906_v2 }
 0x3ee   : > { %v12265_v39 = vpop.f32.mrb[244].mxu1  ;;  %v12159_v42 = vpop.f32.mrb[216].mxu0 }
 0x3ef   : > { %v12266_v59 = vpop.f32.mrb[245].mxu1  ;;  %v12160_v52 = vpop.f32.mrb[217].mxu0 }
 0x3f0   : > { %v12267_v29 = vadd.f32 %v12266_v59, %v12265_v39  ;;  %v12268_v13 = vpop.f32.mrb[246].mxu1  ;;  %v12161_v58 = vadd.f32 %v12160_v52, %v12159_v42  ;;  %v12162_v7 = vpop.f32.mrb[218].mxu0 }
 0x3f1   : > { %v12269_v16 = vpop.f32.mrb[247].mxu1  ;;  %v12163_v31 = vpop.f32.mrb[219].mxu0 }
 0x3f2   : > { %v12270_v38 = vadd.f32 %v12269_v16, %v12268_v13  ;;  %v9919_v6 = vadd.f32 %v12161_v58, %v15116_v20  ;;  %v12164_v41 = vadd.f32 %v12163_v31, %v12162_v7  ;;  %v15208_v61 = vadd.f32 %v12267_v29, %v9911_v1 }
 0x3f4   : > { %v9922_v8 = vadd.f32 %v12164_v41, %v15121_v9  ;;  %v15211_v2 = vadd.f32 %v12270_v38, %v9914_v25 }
 0x3f6   : > { %v12271_v3 = vpop.f32.mrb[248].mxu1  ;;  %v12165_v57 = vpop.f32.mrb[220].mxu0 }
 0x3f7   : > { %v12272_v10 = vpop.f32.mrb[249].mxu1  ;;  %v12166_v35 = vpop.f32.mrb[221].mxu0 }
 0x3f8   : > { %v12273_v55 = vadd.f32 %v12272_v10, %v12271_v3  ;;  %v12274_v23 = vpop.f32.mrb[250].mxu1  ;;  %v12167_v39 = vadd.f32 %v12166_v35, %v12165_v57  ;;  %v12168_v42 = vpop.f32.mrb[222].mxu0 }
 0x3f9   : > { %v12275_v59 = vpop.f32.mrb[251].mxu1  ;;  %v12169_v52 = vpop.f32.mrb[223].mxu0 }
 0x3fa   : > { %v12276_v13 = vadd.f32 %v12275_v59, %v12274_v23  ;;  %v9927_v20 = vadd.f32 %v12167_v39, %v15126_v43  ;;  %v12170_v58 = vadd.f32 %v12169_v52, %v12168_v42  ;;  %v15214_v1 = vadd.f32 %v12273_v55, %v9919_v6 }
 0x3fc   : > { %v9930_v9 = vadd.f32 %v12170_v58, %v15128_v19  ;;  %v15217_v25 = vadd.f32 %v12276_v13, %v9922_v8 }
 0x3fe   : > { %v12277_v29 = vpop.f32.mrb[252].mxu1  ;;  %v12171_v7 = vpop.f32.mrb[224].mxu0 }
 0x3ff   : > { %v12278_v16 = vpop.f32.mrb[253].mxu1  ;;  %v12172_v31 = vpop.f32.mrb[225].mxu0 }
 0x400   : > { %v12279_v38 = vadd.f32 %v12278_v16, %v12277_v29  ;;  %v12280_v41 = vpop.f32.mrb[254].mxu1  ;;  %v12173_v3 = vadd.f32 %v12172_v31, %v12171_v7  ;;  %v12174_v57 = vpop.f32.mrb[226].mxu0 }
 0x401   : > { %v12281_v10 = vpop.f32.mrb[255].mxu1  ;;  %v12175_v35 = vpop.f32.mrb[227].mxu0 }
 0x402   : > { %v12282_v23 = vadd.f32 %v12281_v10, %v12280_v41  ;;  %v9935_v43 = vadd.f32 %v12173_v3, %v15136_v5  ;;  %v12176_v39 = vadd.f32 %v12175_v35, %v12174_v57  ;;  %v15220_v6 = vadd.f32 %v12279_v38, %v9927_v20 }
 0x404   : > { %v9938_v19 = vadd.f32 %v12176_v39, %v15140_v17  ;;  %v15223_v8 = vadd.f32 %v12282_v23, %v9930_v9 }
 0x406   : > { %v12283_v55 = vpop.f32.mrb[0].mxu1  ;;  %v12177_v42 = vpop.f32.mrb[228].mxu0 }
 0x407   : > { %v12284_v59 = vpop.f32.mrb[1].mxu1  ;;  %v12178_v52 = vpop.f32.mrb[229].mxu0 }
 0x408   : > { %v12285_v13 = vadd.f32 %v12284_v59, %v12283_v55  ;;  %v12286_v58 = vpop.f32.mrb[2].mxu1  ;;  %v12179_v29 = vadd.f32 %v12178_v52, %v12177_v42  ;;  %v12180_v7 = vpop.f32.mrb[230].mxu0 }
 0x409   : > { %v12287_v16 = vpop.f32.mrb[3].mxu1  ;;  %v12181_v31 = vpop.f32.mrb[231].mxu0 }
 0x40a   : > { %v12288_v41 = vadd.f32 %v12287_v16, %v12286_v58  ;;  %v9943_v5 = vadd.f32 %v12179_v29, %v15142_v62  ;;  %v12182_v3 = vadd.f32 %v12181_v31, %v12180_v7  ;;  %v15226_v20 = vadd.f32 %v12285_v13, %v9935_v43 }
 0x40c   : > { %v9946_v17 = vadd.f32 %v12182_v3, %v15146_v44  ;;  %v15229_v9 = vadd.f32 %v12288_v41, %v9938_v19 }
 0x40e   : > { %v12289_v38 = vpop.f32.mrb[4].mxu1  ;;  %v12183_v57 = vpop.f32.mrb[232].mxu0 }
 0x40f   : > { %v12290_v10 = vpop.f32.mrb[5].mxu1  ;;  %v12184_v35 = vpop.f32.mrb[233].mxu0 }
 0x410   : > { %v12291_v23 = vadd.f32 %v12290_v10, %v12289_v38  ;;  %v12292_v39 = vpop.f32.mrb[6].mxu1  ;;  %v12185_v55 = vadd.f32 %v12184_v35, %v12183_v57  ;;  %v12186_v42 = vpop.f32.mrb[234].mxu0 }
 0x411   : > { %v12293_v59 = vpop.f32.mrb[7].mxu1  ;;  %v12187_v52 = vpop.f32.mrb[235].mxu0 }
 0x412   : > { %v12294_v58 = vadd.f32 %v12293_v59, %v12292_v39  ;;  %v9951_v62 = vadd.f32 %v12185_v55, %v15148_v18  ;;  %v12188_v29 = vadd.f32 %v12187_v52, %v12186_v42  ;;  %v15232_v43 = vadd.f32 %v12291_v23, %v9943_v5 }
 0x414   : > { %v9954_v44 = vadd.f32 %v12188_v29, %v15152_v26  ;;  %v15235_v19 = vadd.f32 %v12294_v58, %v9946_v17 }
 0x416   : > { %v12295_v13 = vpop.f32.mrb[8].mxu1  ;;  %v12189_v7 = vpop.f32.mrb[236].mxu0 }
 0x417   : > { %v12296_v16 = vpop.f32.mrb[9].mxu1  ;;  %v12190_v31 = vpop.f32.mrb[237].mxu0 }
 0x418   : > { %v12297_v41 = vadd.f32 %v12296_v16, %v12295_v13  ;;  %v12298_v3 = vpop.f32.mrb[10].mxu1  ;;  %v12191_v38 = vadd.f32 %v12190_v31, %v12189_v7  ;;  %v12192_v57 = vpop.f32.mrb[238].mxu0 }
 0x419   : > { %v12299_v10 = vpop.f32.mrb[11].mxu1  ;;  %v12193_v35 = vpop.f32.mrb[239].mxu0 }
 0x41a   : > { %v12300_v39 = vadd.f32 %v12299_v10, %v12298_v3  ;;  %v9959_v18 = vadd.f32 %v12191_v38, %v15154_v48  ;;  %v12194_v55 = vadd.f32 %v12193_v35, %v12192_v57  ;;  %v15238_v5 = vadd.f32 %v12297_v41, %v9951_v62 }
 0x41c   : > { %v9962_v26 = vadd.f32 %v12194_v55, %v15158_v12  ;;  %v15241_v17 = vadd.f32 %v12300_v39, %v9954_v44 }
 0x41e   : > { %v12301_v23 = vpop.f32.mrb[12].mxu1  ;;  %v12195_v42 = vpop.f32.mrb[240].mxu0 }
 0x41f   : > { %v12302_v59 = vpop.f32.mrb[13].mxu1  ;;  %v12196_v52 = vpop.f32.mrb[241].mxu0 }
 0x420   : > { %v12303_v58 = vadd.f32 %v12302_v59, %v12301_v23  ;;  %v12304_v29 = vpop.f32.mrb[14].mxu1  ;;  %v12197_v13 = vadd.f32 %v12196_v52, %v12195_v42  ;;  %v12198_v7 = vpop.f32.mrb[242].mxu0 }
 0x421   : > { %v12305_v16 = vpop.f32.mrb[15].mxu1  ;;  %v12199_v31 = vpop.f32.mrb[243].mxu0 }
 0x422   : > { %v12306_v3 = vadd.f32 %v12305_v16, %v12304_v29  ;;  %v9967_v48 = vadd.f32 %v12197_v13, %v15160_v15  ;;  %v12200_v38 = vadd.f32 %v12199_v31, %v12198_v7  ;;  %v15244_v62 = vadd.f32 %v12303_v58, %v9959_v18 }
 0x424   : > { %v9970_v12 = vadd.f32 %v12200_v38, %v15164_v11  ;;  %v15247_v44 = vadd.f32 %v12306_v3, %v9962_v26 }
 0x426   : > { %v12307_v41 = vpop.f32.mrb[16].mxu1  ;;  %v12201_v57 = vpop.f32.mrb[244].mxu0 }
 0x427   : > { %v12308_v10 = vpop.f32.mrb[17].mxu1  ;;  %v12202_v35 = vpop.f32.mrb[245].mxu0 }
 0x428   : > { %v12309_v39 = vadd.f32 %v12308_v10, %v12307_v41  ;;  %v12310_v55 = vpop.f32.mrb[18].mxu1  ;;  %v12203_v23 = vadd.f32 %v12202_v35, %v12201_v57  ;;  %v12204_v42 = vpop.f32.mrb[246].mxu0 }
 0x429   : > { %v12311_v59 = vpop.f32.mrb[19].mxu1  ;;  %v12205_v52 = vpop.f32.mrb[247].mxu0 }
 0x42a   : > { %v12312_v29 = vadd.f32 %v12311_v59, %v12310_v55  ;;  %v9975_v15 = vadd.f32 %v12203_v23, %v15166_v63  ;;  %v12206_v13 = vadd.f32 %v12205_v52, %v12204_v42  ;;  %v15250_v18 = vadd.f32 %v12309_v39, %v9967_v48 }
 0x42c   : > { %v9978_v11 = vadd.f32 %v12206_v13, %v15170_v21  ;;  %v15253_v26 = vadd.f32 %v12312_v29, %v9970_v12 }
 0x42e   : > { %v12313_v58 = vpop.f32.mrb[20].mxu1  ;;  %v12207_v7 = vpop.f32.mrb[248].mxu0 }
 0x42f   : > { %v12314_v16 = vpop.f32.mrb[21].mxu1  ;;  %v12208_v31 = vpop.f32.mrb[249].mxu0 }
 0x430   : > { %v12315_v3 = vadd.f32 %v12314_v16, %v12313_v58  ;;  %v12316_v38 = vpop.f32.mrb[22].mxu1  ;;  %v12209_v41 = vadd.f32 %v12208_v31, %v12207_v7  ;;  %v12210_v57 = vpop.f32.mrb[250].mxu0 }
 0x431   : > { %v12317_v10 = vpop.f32.mrb[23].mxu1  ;;  %v12211_v35 = vpop.f32.mrb[251].mxu0 }
 0x432   : > { %v12318_v55 = vadd.f32 %v12317_v10, %v12316_v38  ;;  %v9983_v63 = vadd.f32 %v12209_v41, %v15172_v34  ;;  %v12212_v23 = vadd.f32 %v12211_v35, %v12210_v57  ;;  %v15256_v48 = vadd.f32 %v12315_v3, %v9975_v15 }
 0x434   : > { %v9986_v21 = vadd.f32 %v12212_v23, %v15176_v22  ;;  %v15259_v12 = vadd.f32 %v12318_v55, %v9978_v11 }
 0x436   : > { %v12319_v39 = vpop.f32.mrb[24].mxu1  ;;  %v12213_v42 = vpop.f32.mrb[252].mxu0 }
 0x437   : > { %v12320_v59 = vpop.f32.mrb[25].mxu1  ;;  %v12214_v52 = vpop.f32.mrb[253].mxu0 }
 0x438   : > { %v12321_v29 = vadd.f32 %v12320_v59, %v12319_v39  ;;  %v12322_v13 = vpop.f32.mrb[26].mxu1  ;;  %v12215_v58 = vadd.f32 %v12214_v52, %v12213_v42  ;;  %v12216_v7 = vpop.f32.mrb[254].mxu0 }
 0x439   : > { %v12323_v16 = vpop.f32.mrb[27].mxu1  ;;  %v12217_v31 = vpop.f32.mrb[255].mxu0 }
 0x43a   : > { %v12324_v38 = vadd.f32 %v12323_v16, %v12322_v13  ;;  %v9991_v34 = vadd.f32 %v12215_v58, %v15179_v50  ;;  %v12218_v41 = vadd.f32 %v12217_v31, %v12216_v7  ;;  %v15262_v15 = vadd.f32 %v12321_v29, %v9983_v63 }
 0x43c   : > { %v9994_v22 = vadd.f32 %v12218_v41, %v15181_v27  ;;  %v15265_v11 = vadd.f32 %v12324_v38, %v9986_v21 }
 0x43e   : > { %v12325_v3 = vpop.f32.mrb[28].mxu1  ;;  %v12219_v57 = vpop.f32.mrb[0].mxu0 }
 0x43f   : > { %v12326_v10 = vpop.f32.mrb[29].mxu1  ;;  %v12220_v35 = vpop.f32.mrb[1].mxu0 }
 0x440   : > { %v12327_v55 = vadd.f32 %v12326_v10, %v12325_v3  ;;  %v12328_v23 = vpop.f32.mrb[30].mxu1  ;;  %v12221_v39 = vadd.f32 %v12220_v35, %v12219_v57  ;;  %v12222_v42 = vpop.f32.mrb[2].mxu0 }
 0x441   : > { %v12329_v59 = vpop.f32.mrb[31].mxu1  ;;  %v12223_v52 = vpop.f32.mrb[3].mxu0 }
 0x442   : > { %v12330_v13 = vadd.f32 %v12329_v59, %v12328_v23  ;;  %v9999_v50 = vadd.f32 %v12221_v39, %v15183_v37  ;;  %v12224_v58 = vadd.f32 %v12223_v52, %v12222_v42  ;;  %v15268_v63 = vadd.f32 %v12327_v55, %v9991_v34 }
 0x444   : > { %v10002_v27 = vadd.f32 %v12224_v58, %v15185_v54  ;;  %v15271_v21 = vadd.f32 %v12330_v13, %v9994_v22 }
 0x446   : > { %v12331_v29 = vpop.f32.mrb[32].mxu1  ;;  %v12225_v7 = vpop.f32.mrb[4].mxu0 }
 0x447   : > { %v12332_v16 = vpop.f32.mrb[33].mxu1  ;;  %v12226_v31 = vpop.f32.mrb[5].mxu0 }
 0x448   : > { %v12333_v38 = vadd.f32 %v12332_v16, %v12331_v29  ;;  %v12334_v41 = vpop.f32.mrb[34].mxu1  ;;  %v12227_v3 = vadd.f32 %v12226_v31, %v12225_v7  ;;  %v12228_v57 = vpop.f32.mrb[6].mxu0 }
 0x449   : > { %v12335_v10 = vpop.f32.mrb[35].mxu1  ;;  %v12229_v35 = vpop.f32.mrb[7].mxu0 }
 0x44a   : > { %v12336_v23 = vadd.f32 %v12335_v10, %v12334_v41  ;;  %v10007_v37 = vadd.f32 %v12227_v3, %v15187_v46  ;;  %v12230_v39 = vadd.f32 %v12229_v35, %v12228_v57  ;;  %v15274_v34 = vadd.f32 %v12333_v38, %v9999_v50 }
 0x44c   : > { %v10010_v54 = vadd.f32 %v12230_v39, %v15189_v0  ;;  %v15277_v22 = vadd.f32 %v12336_v23, %v10002_v27 }
 0x44e   : > { %v12337_v55 = vpop.f32.mrb[36].mxu1  ;;  %v12231_v42 = vpop.f32.mrb[8].mxu0 }
 0x44f   : > { %v12338_v59 = vpop.f32.mrb[37].mxu1  ;;  %v12232_v52 = vpop.f32.mrb[9].mxu0 }
 0x450   : > { %v12339_v13 = vadd.f32 %v12338_v59, %v12337_v55  ;;  %v12340_v58 = vpop.f32.mrb[38].mxu1  ;;  %v12233_v29 = vadd.f32 %v12232_v52, %v12231_v42  ;;  %v12234_v7 = vpop.f32.mrb[10].mxu0 }
 0x451   : > { %v12341_v16 = vpop.f32.mrb[39].mxu1  ;;  %v12235_v31 = vpop.f32.mrb[11].mxu0 }
 0x452   : > { %v12342_v41 = vadd.f32 %v12341_v16, %v12340_v58  ;;  %v10015_v46 = vadd.f32 %v12233_v29, %v15191_v51  ;;  %v12236_v3 = vadd.f32 %v12235_v31, %v12234_v7  ;;  %v15280_v50 = vadd.f32 %v12339_v13, %v10007_v37  ;;  %v15299_v31 = vld [vmem:[%s15601_s5] ss:$0 sm:$0xff] }
 0x454   : > { %v10018_v0 = vadd.f32 %v12236_v3, %v15193_v53  ;;  %v15283_v27 = vadd.f32 %v12342_v41, %v10010_v54  ;;  %v15291_v53 = vld [vmem:[%s15604_s8] ss:$0 sm:$0xff] }
 0x455   : > { %v15306_v41 = vld [vmem:[%s15605_s9] ss:$0 sm:$0xff] }
 0x456   : > { %v12343_v38 = vpop.f32.mrb[40].mxu1  ;;  %v12237_v57 = vpop.f32.mrb[12].mxu0 }
 0x457   : > { %v12344_v10 = vpop.f32.mrb[41].mxu1  ;;  %v12238_v35 = vpop.f32.mrb[13].mxu0 }
 0x458   : > { %v12345_v23 = vadd.f32 %v12344_v10, %v12343_v38  ;;  %v12346_v39 = vpop.f32.mrb[42].mxu1  ;;  %v12239_v55 = vadd.f32 %v12238_v35, %v12237_v57  ;;  %v12240_v42 = vpop.f32.mrb[14].mxu0 }
 0x459   : > { %v12347_v59 = vpop.f32.mrb[43].mxu1  ;;  %v12241_v52 = vpop.f32.mrb[15].mxu0 }
 0x45a   : > { %v12348_v58 = vadd.f32 %v12347_v59, %v12346_v39  ;;  %v10023_v51 = vadd.f32 %v12239_v55, %v15195_v40  ;;  %v12242_v29 = vadd.f32 %v12241_v52, %v12240_v42  ;;  %v15286_v37 = vadd.f32 %v12345_v23, %v10015_v46 }
 0x45b   : > { %v5769_v40 = vmul.f32 %v14958_v33, %v15291_v53  ;;  %v15315_v33 = vld [vmem:[%s15602_s6] ss:$0 sm:$0xff]  ;;  %v5770_v23 = vmul.f32 %v14964_v45, %v15291_v53 }
 0x45c   : > { %v10026_v54 = vadd.f32 %v12242_v29, %v15198_v30  ;;  %v15294_v13 = vadd.f32 %v12348_v58, %v10018_v0  ;;  %v5767_v0 = vmul.f32 %v15291_v53, %v14962_v14 }
 0x45e   : > { %v12349_v7 = vpop.f32.mrb[44].mxu1  ;;  %v12493_v16 = vpop.f32.mrb[16].mxu0 }
 0x45f   : > { %v12350_v46 = vpop.f32.mrb[45].mxu1  ;;  %v10233_v30 = vadd.f32 %v12493_v16, %v15208_v61  ;;  %v10224_v3 = vpop.f32.mrb[17].mxu0  ;;  %v5768_v61 = vmul.f32 %v15291_v53, %v14970_v36 }
 0x460   : > { %v12351_v38 = vadd.f32 %v12350_v46, %v12349_v7  ;;  %v12352_v57 = vpop.f32.mrb[46].mxu1  ;;  %v10225_v10 = vadd.f32 %v10224_v3, %v15202_v4  ;;  %v12494_v35 = vpop.f32.mrb[18].mxu0  ;;  %v5808_v4 = vadd.f32 %v15306_v41, %v5769_v40  ;;  %v5806_v7 = vadd.f32 %v15306_v41, %v5767_v0 }
 0x461   : > { %v12353_v39 = vpop.f32.mrb[47].mxu1  ;;  %v10360_v14 = vmul.f32 %v15299_v31, %v10233_v30  ;;  %v10236_v55 = vadd.f32 %v12494_v35, %v15211_v2  ;;  %v10227_v42 = vpop.f32.mrb[19].mxu0  ;;  %v5807_v40 = vadd.f32 %v15306_v41, %v5768_v61  ;;  %v5773_v0 = vmul.f32 %v14977_v24, %v15291_v53 }
 0x462   : > { %v12354_v59 = vadd.f32 %v12353_v39, %v12352_v57  ;;  %v10358_v52 = vmul.f32 %v15299_v31, %v10225_v10  ;;  %v10228_v58 = vadd.f32 %v10227_v42, %v15205_v32  ;;  %v15326_v29 = vadd.f32 %v12351_v38, %v10023_v51 }
 0x463   : > { %v10399_v45 = vadd.f32 %v15315_v33, %v10360_v14  ;;  %v10361_v36 = vmul.f32 %v15299_v31, %v10236_v55  ;;  %v5809_v32 = vadd.f32 %v15306_v41, %v5770_v23  ;;  %v5771_v23 = vmul.f32 %v15291_v53, %v14983_v47 }
 0x464   : > { %v10397_v2 = vadd.f32 %v15315_v33, %v10358_v52  ;;  %v10359_v16 = vmul.f32 %v15299_v31, %v10228_v58  ;;  %v15336_v46 = vadd.f32 %v12354_v59, %v10026_v54  ;;  %v5774_v59 = vmul.f32 %v15011_v49, %v15291_v53 }
 0x465   : > { %v10431_v51 = vadd.f32 %v10399_v45, %v5808_v4  ;;  %v10400_v30 = vadd.f32 %v15315_v33, %v10361_v36  ;;  %v5812_v45 = vadd.f32 %v15306_v41, %v5773_v0 }
 0x466   : > { %v10429_v3 = vadd.f32 %v10397_v2, %v5806_v7  ;;  %v10398_v38 = vadd.f32 %v15315_v33, %v10359_v16  ;;  %v12497_v57 = vpop.f32.mrb[20].mxu0  ;;  %v5810_v2 = vadd.f32 %v15306_v41, %v5771_v23  ;;  %v5813_v16 = vadd.f32 %v15306_v41, %v5774_v59 }
 0x467   : > { %v10463_v10 = vmax.f32 %v10431_v51, 0.0  ;;  %v10432_v35 = vadd.f32 %v10400_v30, %v5809_v32  ;;  %v10249_v39 = vadd.f32 %v12497_v57, %v15220_v6  ;;  %v10240_v54 = vpop.f32.mrb[21].mxu0 }
 0x468   : > { %v10461_v14 = vmax.f32 %v10429_v3, 0.0  ;;  %v10430_v55 = vadd.f32 %v10398_v38, %v5807_v40  ;;  %v10241_v42 = vadd.f32 %v10240_v54, %v15214_v1  ;;  %v12498_v61 = vpop.f32.mrb[22].mxu0  ;;  %v5772_v1 = vmul.f32 %v15291_v53, %v15015_v28 }
 0x469   : > { %10495 = vst [vmem:[%s15350_s29 + $0x10] sm:$0xff] %v10463_v10  ;;  %v10464_v24 = vmax.f32 %v10432_v35, 0.0  ;;  %v10364_v6 = vmul.f32 %v15299_v31, %v10249_v39  ;;  %v10252_v47 = vadd.f32 %v12498_v61, %v15223_v8  ;;  %v10243_v52 = vpop.f32.mrb[23].mxu0  ;;  %v5777_v38 = vmul.f32 %v15019_v60, %v15291_v53 }
 0x46a   : > { %10493 = vst [vmem:[%s15350_s29] sm:$0xff] %v10461_v14  ;;  %v10462_v58 = vmax.f32 %v10430_v55, 0.0  ;;  %v10362_v49 = vmul.f32 %v15299_v31, %v10241_v42  ;;  %v10244_v4 = vadd.f32 %v10243_v52, %v15217_v25  ;;  %v5811_v25 = vadd.f32 %v15306_v41, %v5772_v1  ;;  %v15680_v42 = vld [vmem:[#allocation11_spill] sm:$0xff] }
 0x46b   : > { %10496 = vst [vmem:[%s15350_s29 + $0x18] sm:$0xff] %v10464_v24  ;;  %v10403_v36 = vadd.f32 %v15315_v33, %v10364_v6  ;;  %v10365_v7 = vmul.f32 %v15299_v31, %v10252_v47  ;;  %v5775_v39 = vmul.f32 %v15291_v53, %v15021_v56  ;;  %v5778_v61 = vmul.f32 %v15680_v42, %v15291_v53  ;;  %v15681_v6 = vld [vmem:[#allocation16_spill] sm:$0xff] }
 0x46c   : > { %10494 = vst [vmem:[%s15350_s29 + $0x8] sm:$0xff] %v10462_v58  ;;  %v10401_v8 = vadd.f32 %v15315_v33, %v10362_v49  ;;  %v10363_v28 = vmul.f32 %v15299_v31, %v10244_v4  ;;  %v5776_v56 = vmul.f32 %v15291_v53, %v15681_v6  ;;  %v5816_v1 = vadd.f32 %v15306_v41, %v5777_v38  ;;  %v15683_v38 = vld [vmem:[#allocation14_spill] sm:$0xff] }
 0x46d   : > { %v10435_v32 = vadd.f32 %v10403_v36, %v5812_v45  ;;  %v10404_v51 = vadd.f32 %v15315_v33, %v10365_v7  ;;  %v5814_v4 = vadd.f32 %v15306_v41, %v5775_v39  ;;  %v5817_v36 = vadd.f32 %v15306_v41, %v5778_v61  ;;  %v15685_v61 = vld [vmem:[#allocation17_spill] sm:$0xff] }
 0x46e   : > { %v10433_v30 = vadd.f32 %v10401_v8, %v5810_v2  ;;  %v10402_v40 = vadd.f32 %v15315_v33, %v10363_v28  ;;  %v12501_v3 = vpop.f32.mrb[24].mxu0 }
 0x46f   : > { %v10467_v57 = vmax.f32 %v10435_v32, 0.0  ;;  %v10436_v0 = vadd.f32 %v10404_v51, %v5813_v16  ;;  %v10265_v10 = vadd.f32 %v12501_v3, %v15232_v43  ;;  %v10256_v35 = vpop.f32.mrb[25].mxu0  ;;  %v15682_v32 = vld [vmem:[#allocation12_spill] sm:$0xff] }
 0x470   : > { %v10465_v54 = vmax.f32 %v10433_v30, 0.0  ;;  %v10434_v23 = vadd.f32 %v10402_v40, %v5811_v25  ;;  %v10257_v14 = vadd.f32 %v10256_v35, %v15226_v20  ;;  %v12502_v55 = vpop.f32.mrb[26].mxu0  ;;  %v5781_v51 = vmul.f32 %v15682_v32, %v15291_v53 }
 0x471   : > { %10499 = vst [vmem:[%s15350_s29 + $0x30] sm:$0xff] %v10467_v57  ;;  %v10468_v60 = vmax.f32 %v10436_v0, 0.0  ;;  %v10368_v59 = vmul.f32 %v15299_v31, %v10265_v10  ;;  %v10268_v43 = vadd.f32 %v12502_v55, %v15235_v19  ;;  %v10259_v24 = vpop.f32.mrb[27].mxu0  ;;  %v5779_v57 = vmul.f32 %v15291_v53, %v15683_v38 }
 0x472   : > { %10497 = vst [vmem:[%s15350_s29 + $0x20] sm:$0xff] %v10465_v54  ;;  %v10466_v47 = vmax.f32 %v10434_v23, 0.0  ;;  %v10366_v52 = vmul.f32 %v15299_v31, %v10257_v14  ;;  %v10260_v20 = vadd.f32 %v10259_v24, %v15229_v9  ;;  %v5815_v9 = vadd.f32 %v15306_v41, %v5776_v56  ;;  %v15684_v54 = vld [vmem:[#allocation19_spill] sm:$0xff] }
 0x473   : > { %10500 = vst [vmem:[%s15350_s29 + $0x38] sm:$0xff] %v10468_v60  ;;  %v10407_v58 = vadd.f32 %v15315_v33, %v10368_v59  ;;  %v10369_v49 = vmul.f32 %v15299_v31, %v10268_v43  ;;  %v5782_v23 = vmul.f32 %v15684_v54, %v15291_v53  ;;  %v5780_v60 = vmul.f32 %v15291_v53, %v15685_v61 }
 0x474   : > { %10498 = vst [vmem:[%s15350_s29 + $0x28] sm:$0xff] %v10466_v47  ;;  %v10405_v19 = vadd.f32 %v15315_v33, %v10366_v52  ;;  %v10367_v45 = vmul.f32 %v15299_v31, %v10260_v20  ;;  %v5820_v24 = vadd.f32 %v15306_v41, %v5781_v51  ;;  %v5818_v47 = vadd.f32 %v15306_v41, %v5779_v57 }
 0x475   : > { %v10439_v7 = vadd.f32 %v10407_v58, %v5816_v1  ;;  %v10408_v2 = vadd.f32 %v15315_v33, %v10369_v49  ;;  %v5821_v20 = vadd.f32 %v15306_v41, %v5782_v23 }
 0x476   : > { %v10437_v8 = vadd.f32 %v10405_v19, %v5814_v4  ;;  %v10406_v28 = vadd.f32 %v15315_v33, %v10367_v45  ;;  %v12505_v16 = vpop.f32.mrb[28].mxu0  ;;  %v15686_v45 = vld [vmem:[#allocation18_spill] sm:$0xff] }
 0x477   : > { %v10471_v25 = vmax.f32 %v10439_v7, 0.0  ;;  %v10440_v30 = vadd.f32 %v10408_v2, %v5817_v36  ;;  %v10281_v40 = vadd.f32 %v12505_v16, %v15244_v62  ;;  %v10272_v3 = vpop.f32.mrb[29].mxu0  ;;  %v5785_v36 = vmul.f32 %v15686_v45, %v15291_v53  ;;  %v15692_v45 = vld [vmem:[#allocation23_spill] sm:$0xff] }
 0x478   : > { %v10469_v0 = vmax.f32 %v10437_v8, 0.0  ;;  %v10438_v10 = vadd.f32 %v10406_v28, %v5815_v9  ;;  %v10273_v35 = vadd.f32 %v10272_v3, %v15238_v5  ;;  %v12506_v39 = vpop.f32.mrb[30].mxu0  ;;  %v15687_v28 = vld [vmem:[#allocation20_spill] sm:$0xff] }
 0x479   : > { %10503 = vst [vmem:[%s15350_s29 + $0x50] sm:$0xff] %v10471_v25  ;;  %v10472_v14 = vmax.f32 %v10440_v30, 0.0  ;;  %v10372_v55 = vmul.f32 %v15299_v31, %v10281_v40  ;;  %v10284_v62 = vadd.f32 %v12506_v39, %v15247_v44  ;;  %v10275_v42 = vpop.f32.mrb[31].mxu0  ;;  %v5783_v16 = vmul.f32 %v15291_v53, %v15687_v28  ;;  %v15688_v40 = vld [vmem:[#allocation15_spill] sm:$0xff] }
 0x47a   : > { %10501 = vst [vmem:[%s15350_s29 + $0x40] sm:$0xff] %v10469_v0  ;;  %v10470_v59 = vmax.f32 %v10438_v10, 0.0  ;;  %v10370_v43 = vmul.f32 %v15299_v31, %v10273_v35  ;;  %v10276_v5 = vadd.f32 %v10275_v42, %v15241_v17  ;;  %v5819_v17 = vadd.f32 %v15306_v41, %v5780_v60  ;;  %v15689_v10 = vld [vmem:[#allocation13_spill] sm:$0xff] }
 0x47b   : > { %10504 = vst [vmem:[%s15350_s29 + $0x58] sm:$0xff] %v10472_v14  ;;  %v10411_v6 = vadd.f32 %v15315_v33, %v10372_v55  ;;  %v10373_v56 = vmul.f32 %v15299_v31, %v10284_v62  ;;  %v5786_v3 = vmul.f32 %v15688_v40, %v15291_v53  ;;  %v5784_v35 = vmul.f32 %v15291_v53, %v15689_v10 }
 0x47c   : > { %10502 = vst [vmem:[%s15350_s29 + $0x48] sm:$0xff] %v10470_v59  ;;  %v10409_v44 = vadd.f32 %v15315_v33, %v10370_v43  ;;  %v10371_v52 = vmul.f32 %v15299_v31, %v10276_v5  ;;  %v5824_v23 = vadd.f32 %v15306_v41, %v5785_v36  ;;  %v5822_v62 = vadd.f32 %v15306_v41, %v5783_v16 }
 0x47d   : > { %v10443_v1 = vadd.f32 %v10411_v6, %v5820_v24  ;;  %v10412_v58 = vadd.f32 %v15315_v33, %v10373_v56  ;;  %v5825_v61 = vadd.f32 %v15306_v41, %v5786_v3  ;;  %v15690_v6 = vld [vmem:[#allocation21_spill] sm:$0xff]  ;;  %v5790_v36 = vmul.f32 %v15692_v45, %v15291_v53 }
 0x47e   : > { %v10441_v49 = vadd.f32 %v10409_v44, %v5818_v47  ;;  %v10410_v4 = vadd.f32 %v15315_v33, %v10371_v52  ;;  %v12509_v19 = vpop.f32.mrb[32].mxu0  ;;  %v5789_v56 = vmul.f32 %v15690_v6, %v15291_v53 }
 0x47f   : > { %v10475_v7 = vmax.f32 %v10443_v1, 0.0  ;;  %v10444_v2 = vadd.f32 %v10412_v58, %v5821_v20  ;;  %v10297_v9 = vadd.f32 %v12509_v19, %v15256_v48  ;;  %v10288_v8 = vpop.f32.mrb[33].mxu0  ;;  %v15691_v1 = vld [vmem:[#allocation22_spill] sm:$0xff] }
 0x480   : > { %v10473_v32 = vmax.f32 %v10441_v49, 0.0  ;;  %v10442_v51 = vadd.f32 %v10410_v4, %v5819_v17  ;;  %v10289_v25 = vadd.f32 %v10288_v8, %v15250_v18  ;;  %v12510_v30 = vpop.f32.mrb[34].mxu0  ;;  %v5787_v58 = vmul.f32 %v15291_v53, %v15691_v1  ;;  %v15693_v8 = vld [vmem:[#allocation24_spill] sm:$0xff] }
 0x481   : > { %10507 = vst [vmem:[%s15350_s29 + $0x70] sm:$0xff] %v10475_v7  ;;  %v10476_v38 = vmax.f32 %v10444_v2, 0.0  ;;  %v10376_v57 = vmul.f32 %v15299_v31, %v10297_v9  ;;  %v10300_v48 = vadd.f32 %v12510_v30, %v15259_v12  ;;  %v10291_v0 = vpop.f32.mrb[35].mxu0  ;;  %v5788_v28 = vmul.f32 %v15291_v53, %v15693_v8 }
 0x482   : > { %10505 = vst [vmem:[%s15350_s29 + $0x60] sm:$0xff] %v10473_v32  ;;  %v10474_v39 = vmax.f32 %v10442_v51, 0.0  ;;  %v10374_v54 = vmul.f32 %v15299_v31, %v10289_v25  ;;  %v10292_v18 = vadd.f32 %v10291_v0, %v15253_v26  ;;  %v5823_v26 = vadd.f32 %v15306_v41, %v5784_v35 }
 0x483   : > { %10508 = vst [vmem:[%s15350_s29 + $0x78] sm:$0xff] %v10476_v38  ;;  %v10415_v14 = vadd.f32 %v15315_v33, %v10376_v57  ;;  %v10377_v55 = vmul.f32 %v15299_v31, %v10300_v48  ;;  %v5828_v51 = vadd.f32 %v15306_v41, %v5789_v56  ;;  %v5826_v40 = vadd.f32 %v15306_v41, %v5787_v58  ;;  %v15697_v56 = vld [vmem:[#allocation28_spill] sm:$0xff] }
 0x484   : > { %10506 = vst [vmem:[%s15350_s29 + $0x68] sm:$0xff] %v10474_v39  ;;  %v10413_v12 = vadd.f32 %v15315_v33, %v10374_v54  ;;  %v10375_v42 = vmul.f32 %v15299_v31, %v10292_v18  ;;  %v5829_v38 = vadd.f32 %v15306_v41, %v5790_v36  ;;  %v15694_v39 = vld [vmem:[#allocation25_spill] sm:$0xff] }
 0x485   : > { %v10447_v60 = vadd.f32 %v10415_v14, %v5824_v23  ;;  %v10416_v59 = vadd.f32 %v15315_v33, %v10377_v55  ;;  %v5793_v54 = vmul.f32 %v15694_v39, %v15291_v53 }
 0x486   : > { %v10445_v43 = vadd.f32 %v10413_v12, %v5822_v62  ;;  %v10414_v5 = vadd.f32 %v15315_v33, %v10375_v42  ;;  %v12513_v24 = vpop.f32.mrb[36].mxu0  ;;  %v15695_v62 = vld [vmem:[#allocation26_spill] sm:$0xff] }
 0x487   : > { %v10479_v47 = vmax.f32 %v10447_v60, 0.0  ;;  %v10448_v44 = vadd.f32 %v10416_v59, %v5825_v61  ;;  %v10313_v52 = vadd.f32 %v12513_v24, %v15268_v63  ;;  %v10304_v20 = vpop.f32.mrb[37].mxu0  ;;  %v5791_v12 = vmul.f32 %v15291_v53, %v15695_v62 }
 0x488   : > { %v10477_v17 = vmax.f32 %v10445_v43, 0.0  ;;  %v10446_v49 = vadd.f32 %v10414_v5, %v5823_v26  ;;  %v10305_v4 = vadd.f32 %v10304_v20, %v15262_v15  ;;  %v12514_v19 = vpop.f32.mrb[38].mxu0  ;;  %v15696_v26 = vld [vmem:[#allocation27_spill] sm:$0xff]  ;;  %v5832_v20 = vadd.f32 %v15306_v41, %v5793_v54 }
 0x489   : > { %10511 = vst [vmem:[%s15350_s29 + $0x90] sm:$0xff] %v10479_v47  ;;  %v10480_v7 = vmax.f32 %v10448_v44, 0.0  ;;  %v10380_v2 = vmul.f32 %v15299_v31, %v10313_v52  ;;  %v10316_v63 = vadd.f32 %v12514_v19, %v15271_v21  ;;  %v10307_v9 = vpop.f32.mrb[39].mxu0  ;;  %v5794_v43 = vmul.f32 %v15696_v26, %v15291_v53 }
 0x48a   : > { %10509 = vst [vmem:[%s15350_s29 + $0x80] sm:$0xff] %v10477_v17  ;;  %v10478_v16 = vmax.f32 %v10446_v49, 0.0  ;;  %v10378_v32 = vmul.f32 %v15299_v31, %v10305_v4  ;;  %v10308_v15 = vadd.f32 %v10307_v9, %v15265_v11  ;;  %v5827_v11 = vadd.f32 %v15306_v41, %v5788_v28 }
 0x48b   : > { %10512 = vst [vmem:[%s15350_s29 + $0x98] sm:$0xff] %v10480_v7  ;;  %v10419_v25 = vadd.f32 %v15315_v33, %v10380_v2  ;;  %v10381_v30 = vmul.f32 %v15299_v31, %v10316_v63  ;;  %v5792_v47 = vmul.f32 %v15291_v53, %v15697_v56  ;;  %v5830_v17 = vadd.f32 %v15306_v41, %v5791_v12  ;;  %v15698_v63 = vld [vmem:[#allocation29_spill] sm:$0xff] }
 0x48c   : > { %10510 = vst [vmem:[%s15350_s29 + $0x88] sm:$0xff] %v10478_v16  ;;  %v10417_v21 = vadd.f32 %v15315_v33, %v10378_v32  ;;  %v10379_v3 = vmul.f32 %v15299_v31, %v10308_v15  ;;  %v5833_v4 = vadd.f32 %v15306_v41, %v5794_v43  ;;  %v5797_v9 = vmul.f32 %v15698_v63, %v15291_v53  ;;  %v15699_v15 = vld [vmem:[#allocation30_spill] sm:$0xff] }
 0x48d   : > { %v10451_v57 = vadd.f32 %v10419_v25, %v5828_v51  ;;  %v10420_v48 = vadd.f32 %v15315_v33, %v10381_v30  ;;  %v5795_v51 = vmul.f32 %v15291_v53, %v15699_v15 }
 0x48e   : > { %v10449_v0 = vadd.f32 %v10417_v21, %v5826_v40  ;;  %v10418_v10 = vadd.f32 %v15315_v33, %v10379_v3  ;;  %v12517_v35 = vpop.f32.mrb[40].mxu0  ;;  %v15700_v3 = vld [vmem:[#allocation31_spill] sm:$0xff]  ;;  %v5836_v54 = vadd.f32 %v15306_v41, %v5797_v9 }
 0x48f   : > { %v10483_v18 = vmax.f32 %v10451_v57, 0.0  ;;  %v10452_v23 = vadd.f32 %v10420_v48, %v5829_v38  ;;  %v10329_v14 = vadd.f32 %v12517_v35, %v15280_v50  ;;  %v10320_v55 = vpop.f32.mrb[41].mxu0  ;;  %v5798_v38 = vmul.f32 %v15700_v3, %v15291_v53 }
 0x490   : > { %v10481_v42 = vmax.f32 %v10449_v0, 0.0  ;;  %v10450_v61 = vadd.f32 %v10418_v10, %v5827_v11  ;;  %v10321_v60 = vadd.f32 %v10320_v55, %v15274_v34  ;;  %v12518_v59 = vpop.f32.mrb[42].mxu0  ;;  %v15701_v0 = vld [vmem:[#allocation32_spill] sm:$0xff] }
 0x491   : > { %10515 = vst [vmem:[%s15350_s29 + $0xb0] sm:$0xff] %v10483_v18  ;;  %v10484_v5 = vmax.f32 %v10452_v23, 0.0  ;;  %v10384_v24 = vmul.f32 %v15299_v31, %v10329_v14  ;;  %v10332_v50 = vadd.f32 %v12518_v59, %v15283_v27  ;;  %v10323_v6 = vpop.f32.mrb[43].mxu0  ;;  %v5796_v10 = vmul.f32 %v15291_v53, %v15701_v0 }
 0x492   : > { %10513 = vst [vmem:[%s15350_s29 + $0xa0] sm:$0xff] %v10481_v42  ;;  %v10482_v44 = vmax.f32 %v10450_v61, 0.0  ;;  %v10382_v52 = vmul.f32 %v15299_v31, %v10321_v60  ;;  %v10324_v34 = vadd.f32 %v10323_v6, %v15277_v22  ;;  %v5831_v22 = vadd.f32 %v15306_v41, %v5792_v47 }
 0x493   : > { %10516 = vst [vmem:[%s15350_s29 + $0xb8] sm:$0xff] %v10484_v5  ;;  %v10423_v1 = vadd.f32 %v15315_v33, %v10384_v24  ;;  %v10385_v58 = vmul.f32 %v15299_v31, %v10332_v50  ;;  %v5837_v55 = vadd.f32 %v15306_v41, %v5798_v38  ;;  %v5835_v12 = vadd.f32 %v15306_v41, %v5796_v10 }
 0x494   : > { %10514 = vst [vmem:[%s15350_s29 + $0xa8] sm:$0xff] %v10482_v44  ;;  %v10421_v27 = vadd.f32 %v15315_v33, %v10382_v52  ;;  %v10383_v49 = vmul.f32 %v15299_v31, %v10324_v34 }
 0x495   : > { %v10455_v19 = vadd.f32 %v10423_v1, %v5832_v20  ;;  %v10424_v45 = vadd.f32 %v15315_v33, %v10385_v58 }
 0x496   : > { %v10453_v36 = vadd.f32 %v10421_v27, %v5830_v17  ;;  %v10422_v7 = vadd.f32 %v15315_v33, %v10383_v49  ;;  %v12521_v2 = vpop.f32.mrb[44].mxu0 }
 0x497   : > { %v10487_v8 = vmax.f32 %v10455_v19, 0.0  ;;  %v10456_v28 = vadd.f32 %v10424_v45, %v5833_v4  ;;  %v10345_v16 = vadd.f32 %v12521_v2, %v15326_v29  ;;  %v10336_v32 = vpop.f32.mrb[45].mxu0 }
 0x498   : > { %v10485_v25 = vmax.f32 %v10453_v36, 0.0  ;;  %v10454_v30 = vadd.f32 %v10422_v7, %v5831_v22  ;;  %v10337_v40 = vadd.f32 %v10336_v32, %v15286_v37  ;;  %v12522_v21 = vpop.f32.mrb[46].mxu0 }
 0x499   : > { %10519 = vst [vmem:[%s15350_s29 + $0xd0] sm:$0xff] %v10487_v8  ;;  %v10488_v57 = vmax.f32 %v10456_v28, 0.0  ;;  %v10388_v48 = vmul.f32 %v15299_v31, %v10345_v16  ;;  %v10348_v29 = vadd.f32 %v12522_v21, %v15336_v46  ;;  %v10339_v11 = vpop.f32.mrb[47].mxu0  ;;  %v5834_v46 = vadd.f32 %v15306_v41, %v5795_v51 }
 0x49a   : > { %10517 = vst [vmem:[%s15350_s29 + $0xc0] sm:$0xff] %v10485_v25  ;;  %v10486_v35 = vmax.f32 %v10454_v30, 0.0  ;;  %v10386_v39 = vmul.f32 %v15299_v31, %v10337_v40  ;;  %v10340_v37 = vadd.f32 %v10339_v11, %v15294_v13 }
 0x49b   : > { %10520 = vst [vmem:[%s15350_s29 + $0xd8] sm:$0xff] %v10488_v57  ;;  %v10427_v18 = vadd.f32 %v15315_v33, %v10388_v48  ;;  %v10389_v23 = vmul.f32 %v15299_v31, %v10348_v29 }
 0x49c   : > { %10518 = vst [vmem:[%s15350_s29 + $0xc8] sm:$0xff] %v10486_v35  ;;  %v10425_v53 = vadd.f32 %v15315_v33, %v10386_v39  ;;  %v10387_v14 = vmul.f32 %v15299_v31, %v10340_v37 }
 0x49d   : > { %v10459_v13 = vadd.f32 %v10427_v18, %v5836_v54  ;;  %v10428_v62 = vadd.f32 %v15315_v33, %v10389_v23 }
 0x49e   : > { %v10457_v42 = vadd.f32 %v10425_v53, %v5834_v46  ;;  %v10426_v61 = vadd.f32 %v15315_v33, %v10387_v14 }
 0x49f   : > { %v10491_v60 = vmax.f32 %v10459_v13, 0.0  ;;  %v10460_v59 = vadd.f32 %v10428_v62, %v5837_v55 }
 0x4a0   : > { %v10489_v31 = vmax.f32 %v10457_v42, 0.0  ;;  %v10458_v26 = vadd.f32 %v10426_v61, %v5835_v12 }
 0x4a1   : > { %10523 = vst [vmem:[%s15350_s29 + $0xf0] sm:$0xff] %v10491_v60  ;;  %v10492_v43 = vmax.f32 %v10460_v59, 0.0 }
 0x4a2   : > { %10521 = vst [vmem:[%s15350_s29 + $0xe0] sm:$0xff] %v10489_v31  ;;  %v10490_v41 = vmax.f32 %v10458_v26, 0.0 }
 0x4a3   : > { %10524 = vst [vmem:[%s15350_s29 + $0xf8] sm:$0xff] %v10492_v43 }
 0x4a4   : > { %10522 = vst [vmem:[%s15350_s29 + $0xe8] sm:$0xff] %v10490_v41 }
 0x4a5   : > { %13269 = shalt.err (!%p13266_p7)
}
 0x4a6   : > { %s13270_s11 = scalar_lea.hbm %s15546_s25, 4096  ;;  %s13274_s12 = scalar_lea.hbm %s15606_s10, 8192 }
 0x4a7   : > { %p13271_p8 = scmp.ne.s32.totalorder %s15546_s25, %s13270_s11  ;;  %p13275_p1 = scmp.lt.u32.totalorder %s15546_s25, %s15606_s10 }
 0x4a8   : > { %p13276_p0 = scmp.lt.u32.totalorder %s13274_s12, %s13270_s11  ;;  %p13278_p6 = scmp.lt.u32.totalorder %s13270_s11, %s15546_s25 }
 0x4a9   : > { %p13272_p11 = pnand %p13271_p8, %p15702_p9 }
 0x4aa   : > { %p13277_p5 = por %p13276_p0, %p13275_p1 }
 0x4ab   : > { %p13273_p13 = pneg %p13272_p11 }
 0x4ac   : > { %p13279_p10 = por %p13278_p6, %p13277_p5 }
 0x4ae   : > { %p13280_p12 = pnand %p13279_p10, %p13273_p13 }
 0x4b0   : > { %13283 = shalt.err (!%p13280_p12)
}
 0x4b1   : > { %s13329_s28 = smov 128   ;;  %s13330_s20 = smov 8  }
 0x4b2   : > { %12543 = dma.vmem_to_hbm [thread:$0]  (%p15702_p9), %s15548_s30, 4096, %s15546_s25, %s15555_s17, %s13329_s28, %s13329_s28, %s13330_s20  }
 0x4b3 PF: > { %p12555_p2 = scmp.ge.s32.totalorder %s13322_s16, 2  ;;  %s10554_s21 = sand.u32 1, %s13310_s13  }
 0x4b4   : > { %p15703_p3 = scmp.ne.s32.totalorder %s15613_s24, 0  ;;  %s10555_s11 = scalar_lea.sflag [#allocation7], %s10554_s21 }
 0x4b6   : > { %p12550_p4 = pnand %p12555_p2, %p15703_p3 }
 0x4b8   : > { %13305 = dma.done.wait (!%p12550_p4), %s10555_s11, 4096  }
 0x4b9   : > { %13307 = vsyncadd (!%p12550_p4), %s10555_s11, 4294963200  ;;  %p21_p7 = scmp.ge.s32.totalorder %s13411_s19, 4   ;;  %s15704_s13 = smov %s13314_s14 }
 0x4ba   : > { %s15705_s14 = smov %s13318_s15  ;;  %s15706_s15 = smov %s13422_s22 }
 0x4bb   : > { %s15707_s16 = smov %s13411_s19  ;;  %23 = sbr.rel (!%p21_p7) target bundleno = 4 (0x4), region = 104 }
 0x4c2   :  { %10560 = vsyncpa [#allocation6], 1 }
 0x4c3   :  { %10562 = vsyncpa [#allocation6 + $0x1], 1 }
 0x4c4   :  { %10563 = vsyncpa [#allocation7], 1 }
 0x4c5   :  { %10565 = vsyncpa [#allocation7 + $0x1], 1 }

</bundles_post_ra>
